<compile_context>
chip_gen: v5e
topology: v5e:2x2
jax: 0.10.0
libtpu: 0.0.40
codegen_flags: <defaults>
</compile_context>

<pallas_src>
import functools
import numpy as np
import jax
import jax.numpy as jnp
from jax import lax
from jax.experimental import pallas as pl
from jax.experimental.pallas import tpu as pltpu

EPS = 1e-5


def _sigmoid(x):
    return 1.0 / (1.0 + jnp.exp(-x))


# ---------------------------------------------------------------------------
# Fused Conv3x3(stride 1, pad 1) + BN(eval) + ReLU + MaxPool 2x2
# Input is pre-gathered im2col along kw (or the full 3x3 window for layer 1):
#   xcat: (N, H + n_taps - 1, W, Ktap)   w_taps: (n_taps, Ktap, Cout)
# Grid = (N, H // Hc): each step convolves Hc output rows with n_taps fat
# MXU matmuls, applies folded BN + ReLU, and 2x2-maxpools the chunk.
# ---------------------------------------------------------------------------
def _conv_bn_relu_pool_kernel(x_ref, w_ref, scale_ref, shift_ref, out_ref,
                              scr_ref, *, n_taps, Hc, W, Ktap, Cout):
    r = pl.program_id(1)
    h0 = r * Hc
    Wo, Hco = W // 2, Hc // 2

    acc = None
    for dh in range(n_taps):
        lhs = x_ref[0, pl.ds(h0 + dh, Hc), :, :].reshape(Hc * W, Ktap)
        d = jnp.dot(lhs, w_ref[dh], preferred_element_type=jnp.float32)
        acc = d if acc is None else acc + d

    # Folded BatchNorm (per-channel scale/shift) + ReLU.
    y = jnp.maximum(acc * scale_ref[...] + shift_ref[...], 0.0)

    # MaxPool 2x2: pool H via leading-dim reshape + max; pool W via a small
    # VMEM scratch bounce and two stride-2 sublane reads (W is even).
    y = y.reshape(Hc, W, Cout).reshape(Hco, 2, W, Cout)
    yh = jnp.max(y, axis=1)                                   # (Hco, W, Cout)
    scr_ref[...] = yh.reshape(Hco * W, Cout)
    p0 = scr_ref[pl.ds(0, Hco * Wo, stride=2), :]
    p1 = scr_ref[pl.ds(1, Hco * Wo, stride=2), :]
    out_ref[0] = jnp.maximum(p0, p1).reshape(Hco, Wo, Cout)


def _pick_hc(H, W):
    # Row-chunk height: keep the f32 accumulator (Hc*W, Cout) around 256 rows.
    hc = min(H, max(2, 256 // W))
    while H % hc or hc % 2:
        hc -= 1
    return hc


def conv_bn_relu_pool(xcat, w_taps, scale, shift, *, H):
    N = xcat.shape[0]
    W = xcat.shape[2]
    n_taps, Ktap, Cout = w_taps.shape
    assert xcat.shape[1] == H + n_taps - 1
    assert H % 2 == 0 and W % 2 == 0
    Hc = _pick_hc(H, W)
    Ho, Wo, Hco = H // 2, W // 2, Hc // 2
    R = H // Hc

    kernel = functools.partial(_conv_bn_relu_pool_kernel, n_taps=n_taps,
                               Hc=Hc, W=W, Ktap=Ktap, Cout=Cout)
    return pl.pallas_call(
        kernel,
        out_shape=jax.ShapeDtypeStruct((N, Ho, Wo, Cout), jnp.float32),
        grid_spec=pltpu.PrefetchScalarGridSpec(
            num_scalar_prefetch=0,
            grid=(N, R),
            in_specs=[
                pl.BlockSpec((1, H + n_taps - 1, W, Ktap),
                             lambda n, r: (n, 0, 0, 0)),
                pl.BlockSpec((n_taps, Ktap, Cout), lambda n, r: (0, 0, 0)),
                pl.BlockSpec((1, Cout), lambda n, r: (0, 0)),
                pl.BlockSpec((1, Cout), lambda n, r: (0, 0)),
            ],
            out_specs=pl.BlockSpec((1, Hco, Wo, Cout),
                                   lambda n, r: (n, r, 0, 0)),
            scratch_shapes=[pltpu.VMEM((Hco * W, Cout), jnp.float32)]),
        compiler_params=pltpu.CompilerParams(
            dimension_semantics=("parallel", "arbitrary")),
    )(xcat, w_taps, scale, shift)


# ---------------------------------------------------------------------------
# LSTM input projection, hoisted out of the recurrence:
#   gx[d] = X (T*B, D) @ Wih[d] (D, 4H) + b[d]     for d in {fwd, bwd}
# One fat matmul per direction (grid=(2,), parallel -> both v7x cores).
# ---------------------------------------------------------------------------
def _gates_proj_kernel(x_ref, w_ref, b_ref, out_ref):
    out_ref[0] = (jnp.dot(x_ref[...], w_ref[0],
                          preferred_element_type=jnp.float32) + b_ref[0])


def gates_projection(x2d, wih, bih):
    M, D = x2d.shape
    G = wih.shape[2]
    return pl.pallas_call(
        _gates_proj_kernel,
        out_shape=jax.ShapeDtypeStruct((2, M, G), jnp.float32),
        grid_spec=pltpu.PrefetchScalarGridSpec(
            num_scalar_prefetch=0,
            grid=(2,),
            in_specs=[
                pl.BlockSpec((M, D), lambda d: (0, 0)),
                pl.BlockSpec((1, D, G), lambda d: (d, 0, 0)),
                pl.BlockSpec((1, 1, G), lambda d: (d, 0, 0)),
            ],
            out_specs=pl.BlockSpec((1, M, G), lambda d: (d, 0, 0))),
        compiler_params=pltpu.CompilerParams(
            dimension_semantics=("parallel",)),
    )(x2d, wih, bih)


# ---------------------------------------------------------------------------
# Fused bidirectional LSTM recurrence + FC epilogue.
# Grid = (direction, time); direction is a parallel axis (v7x: one per core),
# the backward direction reads/writes time index T-1-t via the index_map.
# Only the recurrent (B,H)@(H,4H) matmul stays inside the sequential loop;
# the Linear(2H, num_classes) is applied per step as lane-dense (Cpad=128)
# partial logits:  logits[t] = h_f[t] @ Wfc[:H] + h_b[t] @ Wfc[H:] + b_fc.
# Gate order matches PyTorch: [i, f, g, o].
# ---------------------------------------------------------------------------
def _bilstm_fc_kernel(gx_ref, whh_ref, wfc_ref, out_ref, h_scr, c_scr, *, H):
    @pl.when(pl.program_id(1) == 0)
    def _init():
        h_scr[...] = jnp.zeros_like(h_scr)
        c_scr[...] = jnp.zeros_like(c_scr)

    g = gx_ref[0, 0] + jnp.dot(h_scr[...], whh_ref[0],
                               preferred_element_type=jnp.float32)
    i = _sigmoid(g[:, 0:H])
    f = _sigmoid(g[:, H:2 * H])
    gg = jnp.tanh(g[:, 2 * H:3 * H])
    o = _sigmoid(g[:, 3 * H:4 * H])
    c = f * c_scr[...] + i * gg
    h = o * jnp.tanh(c)
    c_scr[...] = c
    h_scr[...] = h
    out_ref[0, 0] = jnp.dot(h, wfc_ref[0], preferred_element_type=jnp.float32)


def bilstm_fc(gx, whh, wfc):
    _, T, B, G = gx.shape
    H = whh.shape[1]
    Cpad = wfc.shape[2]

    def t_map(d, t):
        # d == 0 -> t ; d == 1 -> T - 1 - t   (backward direction)
        return (d, t + d * (T - 1 - 2 * t), 0, 0)

    return pl.pallas_call(
        functools.partial(_bilstm_fc_kernel, H=H),
        out_shape=jax.ShapeDtypeStruct((2, T, B, Cpad), jnp.float32),
        grid_spec=pltpu.PrefetchScalarGridSpec(
            num_scalar_prefetch=0,
            grid=(2, T),
            in_specs=[
                pl.BlockSpec((1, 1, B, G), t_map),
                pl.BlockSpec((1, H, G), lambda d, t: (d, 0, 0)),
                pl.BlockSpec((1, H, Cpad), lambda d, t: (d, 0, 0)),
            ],
            out_specs=pl.BlockSpec((1, 1, B, Cpad), t_map),
            scratch_shapes=[pltpu.VMEM((B, H), jnp.float32),
                            pltpu.VMEM((B, H), jnp.float32)]),
        compiler_params=pltpu.CompilerParams(
            dimension_semantics=("parallel", "arbitrary")),
    )(gx, whh, wfc)


# ---------------------------------------------------------------------------
# Full forward (glue is plain JAX, fused under jit)
# ---------------------------------------------------------------------------
def cnn_forward(x_nchw, p, num_classes):
    x = jnp.transpose(x_nchw, (0, 2, 3, 1)).astype(jnp.float32)   # NCHW -> NHWC

    # layer1: full 3x3 im2col (Cin=1 -> K=9), single matmul per row tile.
    N, H, W, _ = x.shape
    xp = jnp.pad(x, ((0, 0), (1, 1), (1, 1), (0, 0)))
    xcat = jnp.concatenate([xp[:, dh:dh + H, dw:dw + W, :]
                            for dh in range(3) for dw in range(3)], axis=-1)
    out = conv_bn_relu_pool(xcat, p['w1'], p['s1'], p['t1'], H=H)

    # layers 2/3: kw-only im2col (K = 3*Cin), 3 matmuls per row tile.
    for l in (2, 3):
        N, H, W, _ = out.shape
        xp = jnp.pad(out, ((0, 0), (1, 1), (1, 1), (0, 0)))
        xcat = jnp.concatenate([xp[:, :, dw:dw + W, :] for dw in range(3)],
                               axis=-1)
        out = conv_bn_relu_pool(xcat, p[f'w{l}'], p[f's{l}'], p[f't{l}'], H=H)

    N, H3, W3, C3 = out.shape
    T, D = W3, C3 * H3
    # PyTorch: permute(0,3,1,2).view(N, W, C*H) -> feature index = c*H + h
    seq = jnp.transpose(out, (0, 2, 3, 1)).reshape(N, T, D)
    x_tb = jnp.transpose(seq, (1, 0, 2)).reshape(T * N, D)        # time-major rows

    gx = gates_projection(x_tb, p['wih'], p['bih'])               # (2, T*N, 4H)
    Hh = p['whh'].shape[1]
    gx = gx.reshape(2, T, N, 4 * Hh)                              # metadata reshape

    part = bilstm_fc(gx, p['whh'], p['wfc'])                      # (2, T, N, Cpad)
    logits = part[0] + part[1] + p['bfc']                         # (T, N, Cpad)
    logits = jnp.transpose(logits, (1, 0, 2))[:, :, :num_classes]
    return logits


# ---------------------------------------------------------------------------
# Deterministic parameter init (shapes from the PyTorch __init__)
# ---------------------------------------------------------------------------
def init_params(key, num_classes):
    ks = iter(jax.random.split(key, 32))
    raw = {}
    for l, (cin, cout) in enumerate([(1, 32), (32, 64), (64, 128)], start=1):
        raw[f'conv{l}_w'] = jax.random.normal(next(ks), (3, 3, cin, cout),
                                              jnp.float32) / np.sqrt(9 * cin)
        raw[f'conv{l}_b'] = 0.1 * jax.random.normal(next(ks), (cout,), jnp.float32)
        raw[f'bn{l}_gamma'] = 1.0 + 0.1 * jax.random.normal(next(ks), (cout,), jnp.float32)
        raw[f'bn{l}_beta'] = 0.1 * jax.random.normal(next(ks), (cout,), jnp.float32)
        raw[f'bn{l}_mean'] = 0.1 * jax.random.normal(next(ks), (cout,), jnp.float32)
        raw[f'bn{l}_var'] = jax.random.uniform(next(ks), (cout,), jnp.float32, 0.5, 1.5)
    D, H = 128 * 4, 256
    bound = 1.0 / np.sqrt(H)
    for d in ('f', 'b'):
        raw[f'wih_{d}'] = jax.random.uniform(next(ks), (D, 4 * H), jnp.float32, -bound, bound)
        raw[f'whh_{d}'] = jax.random.uniform(next(ks), (H, 4 * H), jnp.float32, -bound, bound)
        raw[f'b_{d}'] = jax.random.uniform(next(ks), (1, 4 * H), jnp.float32, -bound, bound)
    fb = 1.0 / np.sqrt(2 * H)
    raw['w_fc'] = jax.random.uniform(next(ks), (2 * H, num_classes), jnp.float32, -fb, fb)
    raw['b_fc'] = jax.random.uniform(next(ks), (1, num_classes), jnp.float32, -fb, fb)
    return raw


def build_kernel_params(raw):
    p = {}
    # conv weights: layer1 -> (1, 9*Cin, Cout) (full-window taps),
    # layers 2/3 -> (3, 3*Cin, Cout) (kh-major, kw*Cin contraction rows).
    for l, n_taps in ((1, 1), (2, 3), (3, 3)):
        w = raw[f'conv{l}_w']                       # (3, 3, Cin, Cout) HWIO
        cin, cout = w.shape[2], w.shape[3]
        if n_taps == 1:
            p[f'w{l}'] = w.reshape(1, 9 * cin, cout)
        else:
            p[f'w{l}'] = w.reshape(3, 3 * cin, cout)
        s = raw[f'bn{l}_gamma'] / jnp.sqrt(raw[f'bn{l}_var'] + EPS)
        t = (raw[f'conv{l}_b'] - raw[f'bn{l}_mean']) * s + raw[f'bn{l}_beta']
        p[f's{l}'] = s.reshape(1, cout)
        p[f't{l}'] = t.reshape(1, cout)

    # LSTM: stack the two directions so one kernel serves both.
    p['wih'] = jnp.stack([raw['wih_f'], raw['wih_b']])            # (2, D, 4H)
    p['bih'] = jnp.stack([raw['b_f'], raw['b_b']])                # (2, 1, 4H)
    p['whh'] = jnp.stack([raw['whh_f'], raw['whh_b']])            # (2, H, 4H)

    # FC fused into the LSTM epilogue: split per direction, pad lanes to 128.
    H = raw['whh_f'].shape[0]
    C = raw['w_fc'].shape[1]
    Cpad = ((C + 127) // 128) * 128
    wfc = jnp.pad(raw['w_fc'], ((0, 0), (0, Cpad - C)))           # (2H, Cpad)
    p['wfc'] = jnp.stack([wfc[:H], wfc[H:]])                      # (2, H, Cpad)
    p['bfc'] = jnp.pad(raw['b_fc'], ((0, 0), (0, Cpad - C)))      # (1, Cpad)
    return p


# ---------------------------------------------------------------------------
# Pure-JAX reference for correctness check
# ---------------------------------------------------------------------------
def ref_forward(x_nchw, raw):
    x = jnp.transpose(x_nchw, (0, 2, 3, 1)).astype(jnp.float32)
    for l in (1, 2, 3):
        y = lax.conv_general_dilated(
            x, raw[f'conv{l}_w'], (1, 1), 'SAME',
            dimension_numbers=('NHWC', 'HWIO', 'NHWC'))
        y = y + raw[f'conv{l}_b']
        s = raw[f'bn{l}_gamma'] / jnp.sqrt(raw[f'bn{l}_var'] + EPS)
        y = (y - raw[f'bn{l}_mean']) * s + raw[f'bn{l}_beta']
        y = jnp.maximum(y, 0.0)
        N, H, W, C = y.shape
        x = y.reshape(N, H // 2, 2, W // 2, 2, C).max(axis=(2, 4))
    N, H, W, C = x.shape
    seq = jnp.transpose(x, (0, 2, 3, 1)).reshape(N, W, C * H)
    x_tbd = jnp.transpose(seq, (1, 0, 2))

    def run_dir(wih, whh, b, reverse):
        Hh = whh.shape[0]
        B = x_tbd.shape[1]

        def step(carry, xt):
            h, c = carry
            g = xt @ wih + h @ whh + b
            i = _sigmoid(g[:, :Hh]); f = _sigmoid(g[:, Hh:2 * Hh])
            gg = jnp.tanh(g[:, 2 * Hh:3 * Hh]); o = _sigmoid(g[:, 3 * Hh:])
            c = f * c + i * gg
            h = o * jnp.tanh(c)
            return (h, c), h

        xs = x_tbd[::-1] if reverse else x_tbd
        _, hs = lax.scan(step, (jnp.zeros((B, Hh), jnp.float32),
                                jnp.zeros((B, Hh), jnp.float32)), xs)
        return hs[::-1] if reverse else hs

    hf = run_dir(raw['wih_f'], raw['whh_f'], raw['b_f'], False)
    hb = run_dir(raw['wih_b'], raw['whh_b'], raw['b_b'], True)
    out = jnp.transpose(jnp.concatenate([hf, hb], axis=-1), (1, 0, 2))
    return out @ raw['w_fc'] + raw['b_fc']


if __name__ == "__main__":
    num_classes = 16
    key = jax.random.PRNGKey(0)
    kx, kp = jax.random.split(key)
    # NCHW input like PyTorch: batch=2, channels=1, H=32 (rnn_input_size=128*4), W=64
    x = jax.random.normal(kx, (2, 1, 32, 64), jnp.float32)
    raw = init_params(kp, num_classes)
    params = build_kernel_params(raw)

    fwd = jax.jit(cnn_forward, static_argnames=('num_classes',))
    out = fwd(x, params, num_classes=num_classes)
    out = jax.block_until_ready(out)
    assert out.shape == (2, 8, num_classes), out.shape

    ref = jax.block_until_ready(jax.jit(ref_forward)(x, raw))
    np.testing.assert_allclose(np.asarray(out), np.asarray(ref),
                               rtol=2e-2, atol=2e-2)
    print("KERNEL_OK")
</pallas_src>

<mosaic_0001>
module attributes {stable_mosaic.version = 11 : i64} {
  func.func @_conv_bn_relu_pool_kernel(%arg0: i32, %arg1: i32, %arg2: memref<1x32x64x9xf32, #tpu.memory_space<vmem>>, %arg3: memref<1x9x32xf32, #tpu.memory_space<vmem>>, %arg4: memref<1x32xf32, #tpu.memory_space<vmem>>, %arg5: memref<1x32xf32, #tpu.memory_space<vmem>>, %arg6: memref<1x2x32x32xf32, #tpu.memory_space<vmem>>, %arg7: memref<128x32xf32, #tpu.memory_space<vmem>>) attributes {dimension_semantics = [#tpu.dimension_semantics<parallel>, #tpu.dimension_semantics<arbitrary>], iteration_bounds = array<i64: 2, 8>, scalar_prefetch = 0 : i64, scratch_operands = 1 : i64, tpu.core_type = #tpu.core_type<tc>, window_params = [{transform_indices = @transform_0, window_bounds = array<i64: 1, 32, 64, 9>}, {pipeline_mode = #tpu.pipeline_mode<synchronous>, transform_indices = @transform_1, window_bounds = array<i64: 1, 9, 32>}, {pipeline_mode = #tpu.pipeline_mode<synchronous>, transform_indices = @transform_2, window_bounds = array<i64: 1, 32>}, {pipeline_mode = #tpu.pipeline_mode<synchronous>, transform_indices = @transform_3, window_bounds = array<i64: 1, 32>}, {transform_indices = @transform_4, window_bounds = array<i64: 1, 2, 32, 32>}]} {
    %c4_i32 = arith.constant 4 : i32
    %0 = arith.muli %arg1, %c4_i32 : i32
    %c0_i32 = arith.constant 0 : i32
    %1 = arith.addi %0, %c0_i32 : i32
    %c0 = arith.constant 0 : index
    %2 = arith.index_cast %1 : i32 to index
    %c0_0 = arith.constant 0 : index
    %c0_1 = arith.constant 0 : index
    %3 = vector.load %arg2[%c0, %2, %c0_0, %c0_1] : memref<1x32x64x9xf32, #tpu.memory_space<vmem>>, vector<1x4x64x9xf32>
    %4 = vector.shape_cast %3 : vector<1x4x64x9xf32> to vector<4x64x9xf32>
    %5 = vector.shape_cast %4 : vector<4x64x9xf32> to vector<256x9xf32>
    %c0_2 = arith.constant 0 : index
    %c0_3 = arith.constant 0 : index
    %c0_4 = arith.constant 0 : index
    %6 = vector.load %arg3[%c0_2, %c0_3, %c0_4] : memref<1x9x32xf32, #tpu.memory_space<vmem>>, vector<1x9x32xf32>
    %7 = vector.shape_cast %6 : vector<1x9x32xf32> to vector<9x32xf32>
    %cst = arith.constant dense<0.000000e+00> : vector<256x32xf32>
    %8 = tpu.matmul %5, %7, %cst {dimension_numbers = #tpu.dot_dimension_numbers<[1], [0], [0], [1], [0, 0, 1, 1], [], []>} : vector<256x9xf32>, vector<9x32xf32>, vector<256x32xf32> -> vector<256x32xf32>
    %c0_5 = arith.constant 0 : index
    %c0_6 = arith.constant 0 : index
    %9 = vector.load %arg4[%c0_5, %c0_6] : memref<1x32xf32, #tpu.memory_space<vmem>>, vector<1x32xf32>
    %10 = vector.broadcast %9 : vector<1x32xf32> to vector<256x32xf32>
    %11 = arith.mulf %8, %10 : vector<256x32xf32>
    %c0_7 = arith.constant 0 : index
    %c0_8 = arith.constant 0 : index
    %12 = vector.load %arg5[%c0_7, %c0_8] : memref<1x32xf32, #tpu.memory_space<vmem>>, vector<1x32xf32>
    %13 = vector.broadcast %12 : vector<1x32xf32> to vector<256x32xf32>
    %14 = arith.addf %11, %13 : vector<256x32xf32>
    %cst_9 = arith.constant 0.000000e+00 : f32
    %15 = vector.broadcast %cst_9 : f32 to vector<256x32xf32>
    %16 = arith.maximumf %14, %15 : vector<256x32xf32>
    %17 = vector.shape_cast %16 : vector<256x32xf32> to vector<4x64x32xf32>
    %18 = vector.shape_cast %17 : vector<4x64x32xf32> to vector<2x2x64x32xf32>
    %cst_10 = arith.constant dense<0xFF800000> : vector<2x64x32xf32>
    %19 = vector.multi_reduction <maximumf>, %18, %cst_10 [1] : vector<2x2x64x32xf32> to vector<2x64x32xf32>
    %20 = vector.shape_cast %19 : vector<2x64x32xf32> to vector<128x32xf32>
    %c0_11 = arith.constant 0 : index
    %c0_12 = arith.constant 0 : index
    %21 = vector.load %arg7[%c0_11, %c0_12] : memref<128x32xf32, #tpu.memory_space<vmem>>, vector<128x32xf32>
    tpu.vector_store %arg7[%c0_11, %c0_12], %20 {strides = array<i32>} : memref<128x32xf32, #tpu.memory_space<vmem>>, vector<128x32xf32>,
    %c0_13 = arith.constant 0 : index
    %c0_14 = arith.constant 0 : index
    %22 = tpu.strided_load %arg7[%c0_13, %c0_14] {strides = array<i32: 2, 1>} : memref<128x32xf32, #tpu.memory_space<vmem>>, vector<64x32xf32>
    %c1 = arith.constant 1 : index
    %c0_15 = arith.constant 0 : index
    %23 = tpu.strided_load %arg7[%c1, %c0_15] {strides = array<i32: 2, 1>} : memref<128x32xf32, #tpu.memory_space<vmem>>, vector<64x32xf32>
    %24 = arith.maximumf %22, %23 : vector<64x32xf32>
    %25 = vector.shape_cast %24 : vector<64x32xf32> to vector<2x32x32xf32>
    %c0_16 = arith.constant 0 : index
    %c0_17 = arith.constant 0 : index
    %c0_18 = arith.constant 0 : index
    %c0_19 = arith.constant 0 : index
    %26 = vector.load %arg6[%c0_16, %c0_17, %c0_18, %c0_19] : memref<1x2x32x32xf32, #tpu.memory_space<vmem>>, vector<1x2x32x32xf32>
    %27 = vector.shape_cast %26 : vector<1x2x32x32xf32> to vector<2x32x32xf32>
    %28 = vector.shape_cast %25 : vector<2x32x32xf32> to vector<1x2x32x32xf32>
    tpu.vector_store %arg6[%c0_16, %c0_17, %c0_18, %c0_19], %28 {strides = array<i32>} : memref<1x2x32x32xf32, #tpu.memory_space<vmem>>, vector<1x2x32x32xf32>,
    return
  }
  func.func @transform_0(%arg0: i32, %arg1: i32) -> (i32, i32, i32, i32) {
    %c0_i32 = arith.constant 0 : i32
    %c0_i32_0 = arith.constant 0 : i32
    %c0_i32_1 = arith.constant 0 : i32
    %c0_i32_2 = arith.constant 0 : i32
    return %arg0, %c0_i32, %c0_i32_0, %c0_i32_1 : i32, i32, i32, i32
  }
  func.func @transform_1(%arg0: i32, %arg1: i32) -> (i32, i32, i32) {
    %c0_i32 = arith.constant 0 : i32
    %c0_i32_0 = arith.constant 0 : i32
    %c0_i32_1 = arith.constant 0 : i32
    %c0_i32_2 = arith.constant 0 : i32
    return %c0_i32, %c0_i32_0, %c0_i32_1 : i32, i32, i32
  }
  func.func @transform_2(%arg0: i32, %arg1: i32) -> (i32, i32) {
    %c0_i32 = arith.constant 0 : i32
    %c0_i32_0 = arith.constant 0 : i32
    %c0_i32_1 = arith.constant 0 : i32
    return %c0_i32, %c0_i32_0 : i32, i32
  }
  func.func @transform_3(%arg0: i32, %arg1: i32) -> (i32, i32) {
    %c0_i32 = arith.constant 0 : i32
    %c0_i32_0 = arith.constant 0 : i32
    %c0_i32_1 = arith.constant 0 : i32
    return %c0_i32, %c0_i32_0 : i32, i32
  }
  func.func @transform_4(%arg0: i32, %arg1: i32) -> (i32, i32, i32, i32) {
    %c0_i32 = arith.constant 0 : i32
    %c0_i32_0 = arith.constant 0 : i32
    %c0_i32_1 = arith.constant 0 : i32
    return %arg0, %arg1, %c0_i32, %c0_i32_0 : i32, i32, i32, i32
  }
}

module attributes {stable_mosaic.version = 11 : i64} {
  func.func @_conv_bn_relu_pool_kernel(%arg0: i32, %arg1: i32, %arg2: memref<1x18x32x96xf32, #tpu.memory_space<vmem>>, %arg3: memref<3x96x64xf32, #tpu.memory_space<vmem>>, %arg4: memref<1x64xf32, #tpu.memory_space<vmem>>, %arg5: memref<1x64xf32, #tpu.memory_space<vmem>>, %arg6: memref<1x4x16x64xf32, #tpu.memory_space<vmem>>, %arg7: memref<128x64xf32, #tpu.memory_space<vmem>>) attributes {dimension_semantics = [#tpu.dimension_semantics<parallel>, #tpu.dimension_semantics<arbitrary>], iteration_bounds = array<i64: 2, 2>, scalar_prefetch = 0 : i64, scratch_operands = 1 : i64, tpu.core_type = #tpu.core_type<tc>, window_params = [{transform_indices = @transform_0, window_bounds = array<i64: 1, 18, 32, 96>}, {pipeline_mode = #tpu.pipeline_mode<synchronous>, transform_indices = @transform_1, window_bounds = array<i64: 3, 96, 64>}, {pipeline_mode = #tpu.pipeline_mode<synchronous>, transform_indices = @transform_2, window_bounds = array<i64: 1, 64>}, {pipeline_mode = #tpu.pipeline_mode<synchronous>, transform_indices = @transform_3, window_bounds = array<i64: 1, 64>}, {transform_indices = @transform_4, window_bounds = array<i64: 1, 4, 16, 64>}]} {
    %c8_i32 = arith.constant 8 : i32
    %0 = arith.muli %arg1, %c8_i32 : i32
    %c0_i32 = arith.constant 0 : i32
    %1 = arith.addi %0, %c0_i32 : i32
    %c0 = arith.constant 0 : index
    %2 = arith.index_cast %1 : i32 to index
    %c0_0 = arith.constant 0 : index
    %c0_1 = arith.constant 0 : index
    %3 = vector.load %arg2[%c0, %2, %c0_0, %c0_1] : memref<1x18x32x96xf32, #tpu.memory_space<vmem>>, vector<1x8x32x96xf32>
    %4 = vector.shape_cast %3 : vector<1x8x32x96xf32> to vector<8x32x96xf32>
    %5 = vector.shape_cast %4 : vector<8x32x96xf32> to vector<256x96xf32>
    %c0_2 = arith.constant 0 : index
    %c0_3 = arith.constant 0 : index
    %c0_4 = arith.constant 0 : index
    %6 = vector.load %arg3[%c0_2, %c0_3, %c0_4] : memref<3x96x64xf32, #tpu.memory_space<vmem>>, vector<1x96x64xf32>
    %7 = vector.shape_cast %6 : vector<1x96x64xf32> to vector<96x64xf32>
    %cst = arith.constant dense<0.000000e+00> : vector<256x64xf32>
    %8 = tpu.matmul %5, %7, %cst {dimension_numbers = #tpu.dot_dimension_numbers<[1], [0], [0], [1], [0, 0, 1, 1], [], []>} : vector<256x96xf32>, vector<96x64xf32>, vector<256x64xf32> -> vector<256x64xf32>
    %c1_i32 = arith.constant 1 : i32
    %9 = arith.addi %0, %c1_i32 : i32
    %c0_5 = arith.constant 0 : index
    %10 = arith.index_cast %9 : i32 to index
    %c0_6 = arith.constant 0 : index
    %c0_7 = arith.constant 0 : index
    %11 = vector.load %arg2[%c0_5, %10, %c0_6, %c0_7] : memref<1x18x32x96xf32, #tpu.memory_space<vmem>>, vector<1x8x32x96xf32>
    %12 = vector.shape_cast %11 : vector<1x8x32x96xf32> to vector<8x32x96xf32>
    %13 = vector.shape_cast %12 : vector<8x32x96xf32> to vector<256x96xf32>
    %c1 = arith.constant 1 : index
    %c0_8 = arith.constant 0 : index
    %c0_9 = arith.constant 0 : index
    %14 = vector.load %arg3[%c1, %c0_8, %c0_9] : memref<3x96x64xf32, #tpu.memory_space<vmem>>, vector<1x96x64xf32>
    %15 = vector.shape_cast %14 : vector<1x96x64xf32> to vector<96x64xf32>
    %cst_10 = arith.constant dense<0.000000e+00> : vector<256x64xf32>
    %16 = tpu.matmul %13, %15, %cst_10 {dimension_numbers = #tpu.dot_dimension_numbers<[1], [0], [0], [1], [0, 0, 1, 1], [], []>} : vector<256x96xf32>, vector<96x64xf32>, vector<256x64xf32> -> vector<256x64xf32>
    %17 = arith.addf %8, %16 : vector<256x64xf32>
    %c2_i32 = arith.constant 2 : i32
    %18 = arith.addi %0, %c2_i32 : i32
    %c0_11 = arith.constant 0 : index
    %19 = arith.index_cast %18 : i32 to index
    %c0_12 = arith.constant 0 : index
    %c0_13 = arith.constant 0 : index
    %20 = vector.load %arg2[%c0_11, %19, %c0_12, %c0_13] : memref<1x18x32x96xf32, #tpu.memory_space<vmem>>, vector<1x8x32x96xf32>
    %21 = vector.shape_cast %20 : vector<1x8x32x96xf32> to vector<8x32x96xf32>
    %22 = vector.shape_cast %21 : vector<8x32x96xf32> to vector<256x96xf32>
    %c2 = arith.constant 2 : index
    %c0_14 = arith.constant 0 : index
    %c0_15 = arith.constant 0 : index
    %23 = vector.load %arg3[%c2, %c0_14, %c0_15] : memref<3x96x64xf32, #tpu.memory_space<vmem>>, vector<1x96x64xf32>
    %24 = vector.shape_cast %23 : vector<1x96x64xf32> to vector<96x64xf32>
    %cst_16 = arith.constant dense<0.000000e+00> : vector<256x64xf32>
    %25 = tpu.matmul %22, %24, %cst_16 {dimension_numbers = #tpu.dot_dimension_numbers<[1], [0], [0], [1], [0, 0, 1, 1], [], []>} : vector<256x96xf32>, vector<96x64xf32>, vector<256x64xf32> -> vector<256x64xf32>
    %26 = arith.addf %17, %25 : vector<256x64xf32>
    %c0_17 = arith.constant 0 : index
    %c0_18 = arith.constant 0 : index
    %27 = vector.load %arg4[%c0_17, %c0_18] : memref<1x64xf32, #tpu.memory_space<vmem>>, vector<1x64xf32>
    %28 = vector.broadcast %27 : vector<1x64xf32> to vector<256x64xf32>
    %29 = arith.mulf %26, %28 : vector<256x64xf32>
    %c0_19 = arith.constant 0 : index
    %c0_20 = arith.constant 0 : index
    %30 = vector.load %arg5[%c0_19, %c0_20] : memref<1x64xf32, #tpu.memory_space<vmem>>, vector<1x64xf32>
    %31 = vector.broadcast %30 : vector<1x64xf32> to vector<256x64xf32>
    %32 = arith.addf %29, %31 : vector<256x64xf32>
    %cst_21 = arith.constant 0.000000e+00 : f32
    %33 = vector.broadcast %cst_21 : f32 to vector<256x64xf32>
    %34 = arith.maximumf %32, %33 : vector<256x64xf32>
    %35 = vector.shape_cast %34 : vector<256x64xf32> to vector<8x32x64xf32>
    %36 = vector.shape_cast %35 : vector<8x32x64xf32> to vector<4x2x32x64xf32>
    %cst_22 = arith.constant dense<0xFF800000> : vector<4x32x64xf32>
    %37 = vector.multi_reduction <maximumf>, %36, %cst_22 [1] : vector<4x2x32x64xf32> to vector<4x32x64xf32>
    %38 = vector.shape_cast %37 : vector<4x32x64xf32> to vector<128x64xf32>
    %c0_23 = arith.constant 0 : index
    %c0_24 = arith.constant 0 : index
    %39 = vector.load %arg7[%c0_23, %c0_24] : memref<128x64xf32, #tpu.memory_space<vmem>>, vector<128x64xf32>
    tpu.vector_store %arg7[%c0_23, %c0_24], %38 {strides = array<i32>} : memref<128x64xf32, #tpu.memory_space<vmem>>, vector<128x64xf32>,
    %c0_25 = arith.constant 0 : index
    %c0_26 = arith.constant 0 : index
    %40 = tpu.strided_load %arg7[%c0_25, %c0_26] {strides = array<i32: 2, 1>} : memref<128x64xf32, #tpu.memory_space<vmem>>, vector<64x64xf32>
    %c1_27 = arith.constant 1 : index
    %c0_28 = arith.constant 0 : index
    %41 = tpu.strided_load %arg7[%c1_27, %c0_28] {strides = array<i32: 2, 1>} : memref<128x64xf32, #tpu.memory_space<vmem>>, vector<64x64xf32>
    %42 = arith.maximumf %40, %41 : vector<64x64xf32>
    %43 = vector.shape_cast %42 : vector<64x64xf32> to vector<4x16x64xf32>
    %c0_29 = arith.constant 0 : index
    %c0_30 = arith.constant 0 : index
    %c0_31 = arith.constant 0 : index
    %c0_32 = arith.constant 0 : index
    %44 = vector.load %arg6[%c0_29, %c0_30, %c0_31, %c0_32] : memref<1x4x16x64xf32, #tpu.memory_space<vmem>>, vector<1x4x16x64xf32>
    %45 = vector.shape_cast %44 : vector<1x4x16x64xf32> to vector<4x16x64xf32>
    %46 = vector.shape_cast %43 : vector<4x16x64xf32> to vector<1x4x16x64xf32>
    tpu.vector_store %arg6[%c0_29, %c0_30, %c0_31, %c0_32], %46 {strides = array<i32>} : memref<1x4x16x64xf32, #tpu.memory_space<vmem>>, vector<1x4x16x64xf32>,
    return
  }
  func.func @transform_0(%arg0: i32, %arg1: i32) -> (i32, i32, i32, i32) {
    %c0_i32 = arith.constant 0 : i32
    %c0_i32_0 = arith.constant 0 : i32
    %c0_i32_1 = arith.constant 0 : i32
    %c0_i32_2 = arith.constant 0 : i32
    return %arg0, %c0_i32, %c0_i32_0, %c0_i32_1 : i32, i32, i32, i32
  }
  func.func @transform_1(%arg0: i32, %arg1: i32) -> (i32, i32, i32) {
    %c0_i32 = arith.constant 0 : i32
    %c0_i32_0 = arith.constant 0 : i32
    %c0_i32_1 = arith.constant 0 : i32
    %c0_i32_2 = arith.constant 0 : i32
    return %c0_i32, %c0_i32_0, %c0_i32_1 : i32, i32, i32
  }
  func.func @transform_2(%arg0: i32, %arg1: i32) -> (i32, i32) {
    %c0_i32 = arith.constant 0 : i32
    %c0_i32_0 = arith.constant 0 : i32
    %c0_i32_1 = arith.constant 0 : i32
    return %c0_i32, %c0_i32_0 : i32, i32
  }
  func.func @transform_3(%arg0: i32, %arg1: i32) -> (i32, i32) {
    %c0_i32 = arith.constant 0 : i32
    %c0_i32_0 = arith.constant 0 : i32
    %c0_i32_1 = arith.constant 0 : i32
    return %c0_i32, %c0_i32_0 : i32, i32
  }
  func.func @transform_4(%arg0: i32, %arg1: i32) -> (i32, i32, i32, i32) {
    %c0_i32 = arith.constant 0 : i32
    %c0_i32_0 = arith.constant 0 : i32
    %c0_i32_1 = arith.constant 0 : i32
    return %arg0, %arg1, %c0_i32, %c0_i32_0 : i32, i32, i32, i32
  }
}

module attributes {stable_mosaic.version = 11 : i64} {
  func.func @_conv_bn_relu_pool_kernel(%arg0: i32, %arg1: i32, %arg2: memref<1x10x16x192xf32, #tpu.memory_space<vmem>>, %arg3: memref<3x192x128xf32, #tpu.memory_space<vmem>>, %arg4: memref<1x128xf32, #tpu.memory_space<vmem>>, %arg5: memref<1x128xf32, #tpu.memory_space<vmem>>, %arg6: memref<1x4x8x128xf32, #tpu.memory_space<vmem>>, %arg7: memref<64x128xf32, #tpu.memory_space<vmem>>) attributes {dimension_semantics = [#tpu.dimension_semantics<parallel>, #tpu.dimension_semantics<arbitrary>], iteration_bounds = array<i64: 2, 1>, scalar_prefetch = 0 : i64, scratch_operands = 1 : i64, tpu.core_type = #tpu.core_type<tc>, window_params = [{transform_indices = @transform_0, window_bounds = array<i64: 1, 10, 16, 192>}, {pipeline_mode = #tpu.pipeline_mode<synchronous>, transform_indices = @transform_1, window_bounds = array<i64: 3, 192, 128>}, {pipeline_mode = #tpu.pipeline_mode<synchronous>, transform_indices = @transform_2, window_bounds = array<i64: 1, 128>}, {pipeline_mode = #tpu.pipeline_mode<synchronous>, transform_indices = @transform_3, window_bounds = array<i64: 1, 128>}, {transform_indices = @transform_4, window_bounds = array<i64: 1, 4, 8, 128>}]} {
    %c8_i32 = arith.constant 8 : i32
    %0 = arith.muli %arg1, %c8_i32 : i32
    %c0_i32 = arith.constant 0 : i32
    %1 = arith.addi %0, %c0_i32 : i32
    %c0 = arith.constant 0 : index
    %2 = arith.index_cast %1 : i32 to index
    %c0_0 = arith.constant 0 : index
    %c0_1 = arith.constant 0 : index
    %3 = vector.load %arg2[%c0, %2, %c0_0, %c0_1] : memref<1x10x16x192xf32, #tpu.memory_space<vmem>>, vector<1x8x16x192xf32>
    %4 = vector.shape_cast %3 : vector<1x8x16x192xf32> to vector<8x16x192xf32>
    %5 = vector.shape_cast %4 : vector<8x16x192xf32> to vector<128x192xf32>
    %c0_2 = arith.constant 0 : index
    %c0_3 = arith.constant 0 : index
    %c0_4 = arith.constant 0 : index
    %6 = vector.load %arg3[%c0_2, %c0_3, %c0_4] : memref<3x192x128xf32, #tpu.memory_space<vmem>>, vector<1x192x128xf32>
    %7 = vector.shape_cast %6 : vector<1x192x128xf32> to vector<192x128xf32>
    %cst = arith.constant dense<0.000000e+00> : vector<128x128xf32>
    %8 = tpu.matmul %5, %7, %cst {dimension_numbers = #tpu.dot_dimension_numbers<[1], [0], [0], [1], [0, 0, 1, 1], [], []>} : vector<128x192xf32>, vector<192x128xf32>, vector<128x128xf32> -> vector<128x128xf32>
    %c1_i32 = arith.constant 1 : i32
    %9 = arith.addi %0, %c1_i32 : i32
    %c0_5 = arith.constant 0 : index
    %10 = arith.index_cast %9 : i32 to index
    %c0_6 = arith.constant 0 : index
    %c0_7 = arith.constant 0 : index
    %11 = vector.load %arg2[%c0_5, %10, %c0_6, %c0_7] : memref<1x10x16x192xf32, #tpu.memory_space<vmem>>, vector<1x8x16x192xf32>
    %12 = vector.shape_cast %11 : vector<1x8x16x192xf32> to vector<8x16x192xf32>
    %13 = vector.shape_cast %12 : vector<8x16x192xf32> to vector<128x192xf32>
    %c1 = arith.constant 1 : index
    %c0_8 = arith.constant 0 : index
    %c0_9 = arith.constant 0 : index
    %14 = vector.load %arg3[%c1, %c0_8, %c0_9] : memref<3x192x128xf32, #tpu.memory_space<vmem>>, vector<1x192x128xf32>
    %15 = vector.shape_cast %14 : vector<1x192x128xf32> to vector<192x128xf32>
    %cst_10 = arith.constant dense<0.000000e+00> : vector<128x128xf32>
    %16 = tpu.matmul %13, %15, %cst_10 {dimension_numbers = #tpu.dot_dimension_numbers<[1], [0], [0], [1], [0, 0, 1, 1], [], []>} : vector<128x192xf32>, vector<192x128xf32>, vector<128x128xf32> -> vector<128x128xf32>
    %17 = arith.addf %8, %16 : vector<128x128xf32>
    %c2_i32 = arith.constant 2 : i32
    %18 = arith.addi %0, %c2_i32 : i32
    %c0_11 = arith.constant 0 : index
    %19 = arith.index_cast %18 : i32 to index
    %c0_12 = arith.constant 0 : index
    %c0_13 = arith.constant 0 : index
    %20 = vector.load %arg2[%c0_11, %19, %c0_12, %c0_13] : memref<1x10x16x192xf32, #tpu.memory_space<vmem>>, vector<1x8x16x192xf32>
    %21 = vector.shape_cast %20 : vector<1x8x16x192xf32> to vector<8x16x192xf32>
    %22 = vector.shape_cast %21 : vector<8x16x192xf32> to vector<128x192xf32>
    %c2 = arith.constant 2 : index
    %c0_14 = arith.constant 0 : index
    %c0_15 = arith.constant 0 : index
    %23 = vector.load %arg3[%c2, %c0_14, %c0_15] : memref<3x192x128xf32, #tpu.memory_space<vmem>>, vector<1x192x128xf32>
    %24 = vector.shape_cast %23 : vector<1x192x128xf32> to vector<192x128xf32>
    %cst_16 = arith.constant dense<0.000000e+00> : vector<128x128xf32>
    %25 = tpu.matmul %22, %24, %cst_16 {dimension_numbers = #tpu.dot_dimension_numbers<[1], [0], [0], [1], [0, 0, 1, 1], [], []>} : vector<128x192xf32>, vector<192x128xf32>, vector<128x128xf32> -> vector<128x128xf32>
    %26 = arith.addf %17, %25 : vector<128x128xf32>
    %c0_17 = arith.constant 0 : index
    %c0_18 = arith.constant 0 : index
    %27 = vector.load %arg4[%c0_17, %c0_18] : memref<1x128xf32, #tpu.memory_space<vmem>>, vector<1x128xf32>
    %28 = vector.broadcast %27 : vector<1x128xf32> to vector<128x128xf32>
    %29 = arith.mulf %26, %28 : vector<128x128xf32>
    %c0_19 = arith.constant 0 : index
    %c0_20 = arith.constant 0 : index
    %30 = vector.load %arg5[%c0_19, %c0_20] : memref<1x128xf32, #tpu.memory_space<vmem>>, vector<1x128xf32>
    %31 = vector.broadcast %30 : vector<1x128xf32> to vector<128x128xf32>
    %32 = arith.addf %29, %31 : vector<128x128xf32>
    %cst_21 = arith.constant 0.000000e+00 : f32
    %33 = vector.broadcast %cst_21 : f32 to vector<128x128xf32>
    %34 = arith.maximumf %32, %33 : vector<128x128xf32>
    %35 = vector.shape_cast %34 : vector<128x128xf32> to vector<8x16x128xf32>
    %36 = vector.shape_cast %35 : vector<8x16x128xf32> to vector<4x2x16x128xf32>
    %cst_22 = arith.constant dense<0xFF800000> : vector<4x16x128xf32>
    %37 = vector.multi_reduction <maximumf>, %36, %cst_22 [1] : vector<4x2x16x128xf32> to vector<4x16x128xf32>
    %38 = vector.shape_cast %37 : vector<4x16x128xf32> to vector<64x128xf32>
    %c0_23 = arith.constant 0 : index
    %c0_24 = arith.constant 0 : index
    %39 = vector.load %arg7[%c0_23, %c0_24] : memref<64x128xf32, #tpu.memory_space<vmem>>, vector<64x128xf32>
    tpu.vector_store %arg7[%c0_23, %c0_24], %38 {strides = array<i32>} : memref<64x128xf32, #tpu.memory_space<vmem>>, vector<64x128xf32>,
    %c0_25 = arith.constant 0 : index
    %c0_26 = arith.constant 0 : index
    %40 = tpu.strided_load %arg7[%c0_25, %c0_26] {strides = array<i32: 2, 1>} : memref<64x128xf32, #tpu.memory_space<vmem>>, vector<32x128xf32>
    %c1_27 = arith.constant 1 : index
    %c0_28 = arith.constant 0 : index
    %41 = tpu.strided_load %arg7[%c1_27, %c0_28] {strides = array<i32: 2, 1>} : memref<64x128xf32, #tpu.memory_space<vmem>>, vector<32x128xf32>
    %42 = arith.maximumf %40, %41 : vector<32x128xf32>
    %43 = vector.shape_cast %42 : vector<32x128xf32> to vector<4x8x128xf32>
    %c0_29 = arith.constant 0 : index
    %c0_30 = arith.constant 0 : index
    %c0_31 = arith.constant 0 : index
    %c0_32 = arith.constant 0 : index
    %44 = vector.load %arg6[%c0_29, %c0_30, %c0_31, %c0_32] : memref<1x4x8x128xf32, #tpu.memory_space<vmem>>, vector<1x4x8x128xf32>
    %45 = vector.shape_cast %44 : vector<1x4x8x128xf32> to vector<4x8x128xf32>
    %46 = vector.shape_cast %43 : vector<4x8x128xf32> to vector<1x4x8x128xf32>
    tpu.vector_store %arg6[%c0_29, %c0_30, %c0_31, %c0_32], %46 {strides = array<i32>} : memref<1x4x8x128xf32, #tpu.memory_space<vmem>>, vector<1x4x8x128xf32>,
    return
  }
  func.func @transform_0(%arg0: i32, %arg1: i32) -> (i32, i32, i32, i32) {
    %c0_i32 = arith.constant 0 : i32
    %c0_i32_0 = arith.constant 0 : i32
    %c0_i32_1 = arith.constant 0 : i32
    %c0_i32_2 = arith.constant 0 : i32
    return %arg0, %c0_i32, %c0_i32_0, %c0_i32_1 : i32, i32, i32, i32
  }
  func.func @transform_1(%arg0: i32, %arg1: i32) -> (i32, i32, i32) {
    %c0_i32 = arith.constant 0 : i32
    %c0_i32_0 = arith.constant 0 : i32
    %c0_i32_1 = arith.constant 0 : i32
    %c0_i32_2 = arith.constant 0 : i32
    return %c0_i32, %c0_i32_0, %c0_i32_1 : i32, i32, i32
  }
  func.func @transform_2(%arg0: i32, %arg1: i32) -> (i32, i32) {
    %c0_i32 = arith.constant 0 : i32
    %c0_i32_0 = arith.constant 0 : i32
    %c0_i32_1 = arith.constant 0 : i32
    return %c0_i32, %c0_i32_0 : i32, i32
  }
  func.func @transform_3(%arg0: i32, %arg1: i32) -> (i32, i32) {
    %c0_i32 = arith.constant 0 : i32
    %c0_i32_0 = arith.constant 0 : i32
    %c0_i32_1 = arith.constant 0 : i32
    return %c0_i32, %c0_i32_0 : i32, i32
  }
  func.func @transform_4(%arg0: i32, %arg1: i32) -> (i32, i32, i32, i32) {
    %c0_i32 = arith.constant 0 : i32
    %c0_i32_0 = arith.constant 0 : i32
    %c0_i32_1 = arith.constant 0 : i32
    return %arg0, %arg1, %c0_i32, %c0_i32_0 : i32, i32, i32, i32
  }
}

module attributes {stable_mosaic.version = 11 : i64} {
  func.func @_gates_proj_kernel(%arg0: i32, %arg1: memref<16x512xf32, #tpu.memory_space<vmem>>, %arg2: memref<1x512x1024xf32, #tpu.memory_space<vmem>>, %arg3: memref<1x1x1024xf32, #tpu.memory_space<vmem>>, %arg4: memref<1x16x1024xf32, #tpu.memory_space<vmem>>) attributes {dimension_semantics = [#tpu.dimension_semantics<parallel>], iteration_bounds = array<i64: 2>, scalar_prefetch = 0 : i64, scratch_operands = 0 : i64, tpu.core_type = #tpu.core_type<tc>, window_params = [{pipeline_mode = #tpu.pipeline_mode<synchronous>, transform_indices = @transform_0, window_bounds = array<i64: 16, 512>}, {transform_indices = @transform_1, window_bounds = array<i64: 1, 512, 1024>}, {transform_indices = @transform_2, window_bounds = array<i64: 1, 1, 1024>}, {transform_indices = @transform_3, window_bounds = array<i64: 1, 16, 1024>}]} {
    %c0 = arith.constant 0 : index
    %c0_0 = arith.constant 0 : index
    %0 = vector.load %arg1[%c0, %c0_0] : memref<16x512xf32, #tpu.memory_space<vmem>>, vector<16x512xf32>
    %c0_1 = arith.constant 0 : index
    %c0_2 = arith.constant 0 : index
    %c0_3 = arith.constant 0 : index
    %1 = vector.load %arg2[%c0_1, %c0_2, %c0_3] : memref<1x512x1024xf32, #tpu.memory_space<vmem>>, vector<1x512x1024xf32>
    %2 = vector.shape_cast %1 : vector<1x512x1024xf32> to vector<512x1024xf32>
    %cst = arith.constant dense<0.000000e+00> : vector<16x1024xf32>
    %3 = tpu.matmul %0, %2, %cst {dimension_numbers = #tpu.dot_dimension_numbers<[1], [0], [0], [1], [0, 0, 1, 1], [], []>} : vector<16x512xf32>, vector<512x1024xf32>, vector<16x1024xf32> -> vector<16x1024xf32>
    %c0_4 = arith.constant 0 : index
    %c0_5 = arith.constant 0 : index
    %c0_6 = arith.constant 0 : index
    %4 = vector.load %arg3[%c0_4, %c0_5, %c0_6] : memref<1x1x1024xf32, #tpu.memory_space<vmem>>, vector<1x1x1024xf32>
    %5 = vector.shape_cast %4 : vector<1x1x1024xf32> to vector<1x1024xf32>
    %6 = vector.broadcast %5 : vector<1x1024xf32> to vector<16x1024xf32>
    %7 = arith.addf %3, %6 : vector<16x1024xf32>
    %c0_7 = arith.constant 0 : index
    %c0_8 = arith.constant 0 : index
    %c0_9 = arith.constant 0 : index
    %8 = vector.load %arg4[%c0_7, %c0_8, %c0_9] : memref<1x16x1024xf32, #tpu.memory_space<vmem>>, vector<1x16x1024xf32>
    %9 = vector.shape_cast %8 : vector<1x16x1024xf32> to vector<16x1024xf32>
    %10 = vector.shape_cast %7 : vector<16x1024xf32> to vector<1x16x1024xf32>
    tpu.vector_store %arg4[%c0_7, %c0_8, %c0_9], %10 {strides = array<i32>} : memref<1x16x1024xf32, #tpu.memory_space<vmem>>, vector<1x16x1024xf32>,
    return
  }
  func.func @transform_0(%arg0: i32) -> (i32, i32) {
    %c0_i32 = arith.constant 0 : i32
    %c0_i32_0 = arith.constant 0 : i32
    %c0_i32_1 = arith.constant 0 : i32
    return %c0_i32, %c0_i32_0 : i32, i32
  }
  func.func @transform_1(%arg0: i32) -> (i32, i32, i32) {
    %c0_i32 = arith.constant 0 : i32
    %c0_i32_0 = arith.constant 0 : i32
    %c0_i32_1 = arith.constant 0 : i32
    return %arg0, %c0_i32, %c0_i32_0 : i32, i32, i32
  }
  func.func @transform_2(%arg0: i32) -> (i32, i32, i32) {
    %c0_i32 = arith.constant 0 : i32
    %c0_i32_0 = arith.constant 0 : i32
    %c0_i32_1 = arith.constant 0 : i32
    return %arg0, %c0_i32, %c0_i32_0 : i32, i32, i32
  }
  func.func @transform_3(%arg0: i32) -> (i32, i32, i32) {
    %c0_i32 = arith.constant 0 : i32
    %c0_i32_0 = arith.constant 0 : i32
    %c0_i32_1 = arith.constant 0 : i32
    return %arg0, %c0_i32, %c0_i32_0 : i32, i32, i32
  }
}

module attributes {stable_mosaic.version = 11 : i64} {
  func.func @_bilstm_fc_kernel(%arg0: i32, %arg1: i32, %arg2: memref<1x1x2x1024xf32, #tpu.memory_space<vmem>>, %arg3: memref<1x256x1024xf32, #tpu.memory_space<vmem>>, %arg4: memref<1x256x128xf32, #tpu.memory_space<vmem>>, %arg5: memref<1x1x2x128xf32, #tpu.memory_space<vmem>>, %arg6: memref<2x256xf32, #tpu.memory_space<vmem>>, %arg7: memref<2x256xf32, #tpu.memory_space<vmem>>) attributes {dimension_semantics = [#tpu.dimension_semantics<parallel>, #tpu.dimension_semantics<arbitrary>], iteration_bounds = array<i64: 2, 8>, scalar_prefetch = 0 : i64, scratch_operands = 2 : i64, tpu.core_type = #tpu.core_type<tc>, window_params = [{transform_indices = @transform_0, window_bounds = array<i64: 1, 1, 2, 1024>}, {transform_indices = @transform_1, window_bounds = array<i64: 1, 256, 1024>}, {transform_indices = @transform_2, window_bounds = array<i64: 1, 256, 128>}, {transform_indices = @transform_3, window_bounds = array<i64: 1, 1, 2, 128>}]} {
    %c0_i32 = arith.constant 0 : i32
    %0 = arith.cmpi eq, %arg1, %c0_i32 : i32
    %1 = arith.extui %0 : i1 to i32
    %c0_i32_0 = arith.constant 0 : i32
    %2 = arith.cmpi ne, %1, %c0_i32_0 : i32
    scf.if %2 {
      %cst_32 = arith.constant 0.000000e+00 : f32
      %50 = vector.broadcast %cst_32 : f32 to vector<2x256xf32>
      %c0_33 = arith.constant 0 : index
      %c0_34 = arith.constant 0 : index
      %51 = vector.load %arg6[%c0_33, %c0_34] : memref<2x256xf32, #tpu.memory_space<vmem>>, vector<2x256xf32>
      tpu.vector_store %arg6[%c0_33, %c0_34], %50 {strides = array<i32>} : memref<2x256xf32, #tpu.memory_space<vmem>>, vector<2x256xf32>,
      %cst_35 = arith.constant 0.000000e+00 : f32
      %52 = vector.broadcast %cst_35 : f32 to vector<2x256xf32>
      %c0_36 = arith.constant 0 : index
      %c0_37 = arith.constant 0 : index
      %53 = vector.load %arg7[%c0_36, %c0_37] : memref<2x256xf32, #tpu.memory_space<vmem>>, vector<2x256xf32>
      tpu.vector_store %arg7[%c0_36, %c0_37], %52 {strides = array<i32>} : memref<2x256xf32, #tpu.memory_space<vmem>>, vector<2x256xf32>,
    } else {
    }
    %c0 = arith.constant 0 : index
    %c0_1 = arith.constant 0 : index
    %c0_2 = arith.constant 0 : index
    %c0_3 = arith.constant 0 : index
    %3 = vector.load %arg2[%c0, %c0_1, %c0_2, %c0_3] : memref<1x1x2x1024xf32, #tpu.memory_space<vmem>>, vector<1x1x2x1024xf32>
    %4 = vector.shape_cast %3 : vector<1x1x2x1024xf32> to vector<2x1024xf32>
    %c0_4 = arith.constant 0 : index
    %c0_5 = arith.constant 0 : index
    %5 = vector.load %arg6[%c0_4, %c0_5] : memref<2x256xf32, #tpu.memory_space<vmem>>, vector<2x256xf32>
    %c0_6 = arith.constant 0 : index
    %c0_7 = arith.constant 0 : index
    %c0_8 = arith.constant 0 : index
    %6 = vector.load %arg3[%c0_6, %c0_7, %c0_8] : memref<1x256x1024xf32, #tpu.memory_space<vmem>>, vector<1x256x1024xf32>
    %7 = vector.shape_cast %6 : vector<1x256x1024xf32> to vector<256x1024xf32>
    %cst = arith.constant dense<0.000000e+00> : vector<2x1024xf32>
    %8 = tpu.matmul %5, %7, %cst {dimension_numbers = #tpu.dot_dimension_numbers<[1], [0], [0], [1], [0, 0, 1, 1], [], []>} : vector<2x256xf32>, vector<256x1024xf32>, vector<2x1024xf32> -> vector<2x1024xf32>
    %9 = arith.addf %4, %8 : vector<2x1024xf32>
    %10 = vector.extract_strided_slice %9 {offsets = [0, 0], sizes = [2, 256], strides = [1, 1]} : vector<2x1024xf32> to vector<2x256xf32>
    %cst_9 = arith.constant 0.000000e+00 : f32
    %11 = vector.broadcast %cst_9 : f32 to vector<2x256xf32>
    %12 = arith.subf %11, %10 : vector<2x256xf32>
    %13 = math.exp %12 : vector<2x256xf32>
    %cst_10 = arith.constant 1.000000e+00 : f32
    %14 = vector.broadcast %cst_10 : f32 to vector<2x256xf32>
    %15 = arith.addf %14, %13 : vector<2x256xf32>
    %cst_11 = arith.constant 1.000000e+00 : f32
    %16 = vector.broadcast %cst_11 : f32 to vector<2x256xf32>
    %17 = arith.divf %16, %15 : vector<2x256xf32>
    %18 = vector.extract_strided_slice %9 {offsets = [0, 256], sizes = [2, 256], strides = [1, 1]} : vector<2x1024xf32> to vector<2x256xf32>
    %cst_12 = arith.constant 0.000000e+00 : f32
    %19 = vector.broadcast %cst_12 : f32 to vector<2x256xf32>
    %20 = arith.subf %19, %18 : vector<2x256xf32>
    %21 = math.exp %20 : vector<2x256xf32>
    %cst_13 = arith.constant 1.000000e+00 : f32
    %22 = vector.broadcast %cst_13 : f32 to vector<2x256xf32>
    %23 = arith.addf %22, %21 : vector<2x256xf32>
    %cst_14 = arith.constant 1.000000e+00 : f32
    %24 = vector.broadcast %cst_14 : f32 to vector<2x256xf32>
    %25 = arith.divf %24, %23 : vector<2x256xf32>
    %26 = vector.extract_strided_slice %9 {offsets = [0, 512], sizes = [2, 256], strides = [1, 1]} : vector<2x1024xf32> to vector<2x256xf32>
    %27 = math.tanh %26 : vector<2x256xf32>
    %28 = vector.extract_strided_slice %9 {offsets = [0, 768], sizes = [2, 256], strides = [1, 1]} : vector<2x1024xf32> to vector<2x256xf32>
    %cst_15 = arith.constant 0.000000e+00 : f32
    %29 = vector.broadcast %cst_15 : f32 to vector<2x256xf32>
    %30 = arith.subf %29, %28 : vector<2x256xf32>
    %31 = math.exp %30 : vector<2x256xf32>
    %cst_16 = arith.constant 1.000000e+00 : f32
    %32 = vector.broadcast %cst_16 : f32 to vector<2x256xf32>
    %33 = arith.addf %32, %31 : vector<2x256xf32>
    %cst_17 = arith.constant 1.000000e+00 : f32
    %34 = vector.broadcast %cst_17 : f32 to vector<2x256xf32>
    %35 = arith.divf %34, %33 : vector<2x256xf32>
    %c0_18 = arith.constant 0 : index
    %c0_19 = arith.constant 0 : index
    %36 = vector.load %arg7[%c0_18, %c0_19] : memref<2x256xf32, #tpu.memory_space<vmem>>, vector<2x256xf32>
    %37 = arith.mulf %25, %36 : vector<2x256xf32>
    %38 = arith.mulf %17, %27 : vector<2x256xf32>
    %39 = arith.addf %37, %38 : vector<2x256xf32>
    %40 = math.tanh %39 : vector<2x256xf32>
    %41 = arith.mulf %35, %40 : vector<2x256xf32>
    %c0_20 = arith.constant 0 : index
    %c0_21 = arith.constant 0 : index
    %42 = vector.load %arg7[%c0_20, %c0_21] : memref<2x256xf32, #tpu.memory_space<vmem>>, vector<2x256xf32>
    tpu.vector_store %arg7[%c0_20, %c0_21], %39 {strides = array<i32>} : memref<2x256xf32, #tpu.memory_space<vmem>>, vector<2x256xf32>,
    %c0_22 = arith.constant 0 : index
    %c0_23 = arith.constant 0 : index
    %43 = vector.load %arg6[%c0_22, %c0_23] : memref<2x256xf32, #tpu.memory_space<vmem>>, vector<2x256xf32>
    tpu.vector_store %arg6[%c0_22, %c0_23], %41 {strides = array<i32>} : memref<2x256xf32, #tpu.memory_space<vmem>>, vector<2x256xf32>,
    %c0_24 = arith.constant 0 : index
    %c0_25 = arith.constant 0 : index
    %c0_26 = arith.constant 0 : index
    %44 = vector.load %arg4[%c0_24, %c0_25, %c0_26] : memref<1x256x128xf32, #tpu.memory_space<vmem>>, vector<1x256x128xf32>
    %45 = vector.shape_cast %44 : vector<1x256x128xf32> to vector<256x128xf32>
    %cst_27 = arith.constant dense<0.000000e+00> : vector<2x128xf32>
    %46 = tpu.matmul %41, %45, %cst_27 {dimension_numbers = #tpu.dot_dimension_numbers<[1], [0], [0], [1], [0, 0, 1, 1], [], []>} : vector<2x256xf32>, vector<256x128xf32>, vector<2x128xf32> -> vector<2x128xf32>
    %c0_28 = arith.constant 0 : index
    %c0_29 = arith.constant 0 : index
    %c0_30 = arith.constant 0 : index
    %c0_31 = arith.constant 0 : index
    %47 = vector.load %arg5[%c0_28, %c0_29, %c0_30, %c0_31] : memref<1x1x2x128xf32, #tpu.memory_space<vmem>>, vector<1x1x2x128xf32>
    %48 = vector.shape_cast %47 : vector<1x1x2x128xf32> to vector<2x128xf32>
    %49 = vector.shape_cast %46 : vector<2x128xf32> to vector<1x1x2x128xf32>
    tpu.vector_store %arg5[%c0_28, %c0_29, %c0_30, %c0_31], %49 {strides = array<i32>} : memref<1x1x2x128xf32, #tpu.memory_space<vmem>>, vector<1x1x2x128xf32>,
    return
  }
  func.func @transform_0(%arg0: i32, %arg1: i32) -> (i32, i32, i32, i32) {
    %c2_i32 = arith.constant 2 : i32
    %0 = arith.muli %c2_i32, %arg1 : i32
    %c7_i32 = arith.constant 7 : i32
    %1 = arith.subi %c7_i32, %0 : i32
    %2 = arith.muli %arg0, %1 : i32
    %3 = arith.addi %arg1, %2 : i32
    %c0_i32 = arith.constant 0 : i32
    %c0_i32_0 = arith.constant 0 : i32
    %c0_i32_1 = arith.constant 0 : i32
    return %arg0, %3, %c0_i32, %c0_i32_0 : i32, i32, i32, i32
  }
  func.func @transform_1(%arg0: i32, %arg1: i32) -> (i32, i32, i32) {
    %c0_i32 = arith.constant 0 : i32
    %c0_i32_0 = arith.constant 0 : i32
    %c0_i32_1 = arith.constant 0 : i32
    return %arg0, %c0_i32, %c0_i32_0 : i32, i32, i32
  }
  func.func @transform_2(%arg0: i32, %arg1: i32) -> (i32, i32, i32) {
    %c0_i32 = arith.constant 0 : i32
    %c0_i32_0 = arith.constant 0 : i32
    %c0_i32_1 = arith.constant 0 : i32
    return %arg0, %c0_i32, %c0_i32_0 : i32, i32, i32
  }
  func.func @transform_3(%arg0: i32, %arg1: i32) -> (i32, i32, i32, i32) {
    %c2_i32 = arith.constant 2 : i32
    %0 = arith.muli %c2_i32, %arg1 : i32
    %c7_i32 = arith.constant 7 : i32
    %1 = arith.subi %c7_i32, %0 : i32
    %2 = arith.muli %arg0, %1 : i32
    %3 = arith.addi %arg1, %2 : i32
    %c0_i32 = arith.constant 0 : i32
    %c0_i32_0 = arith.constant 0 : i32
    %c0_i32_1 = arith.constant 0 : i32
    return %arg0, %3, %c0_i32, %c0_i32_0 : i32, i32, i32, i32
  }
}

</mosaic_0001>

<bundles_post_ra>
// kernel: cnn_forward.5
= control target key start
LH: loop header
LB: loop body
LE: loop exit
PB: predicated region body
PF: predicated region fallthrough
CT: control target
= control target key end

     0   :  { %s945_s15 = smov 0   ;;  %s947_s16 = smov 0   ;;  %s1216_s0 = inlined_call_operand.vmem [shape: f32[2,32,64,9], index: 0, kind: input, shape index: {}]   ;;  %s1217_s1 = inlined_call_operand.vmem [shape: f32[1,9,32], index: 1, kind: input, shape index: {}]   ;;  %s1218_s2 = inlined_call_operand.vmem [shape: f32[1,32], index: 2, kind: input, shape index: {}]   ;;  %s1219_s3 = inlined_call_operand.vmem [shape: f32[1,32], index: 3, kind: input, shape index: {}]   ;;  %s1220_s4 = inlined_call_operand.vmem [shape: f32[2,16,32,32], index: 4, kind: output, shape index: {}]  }
   0x1   :  { %s949_s17 = smov 0   ;;  %s951_s18 = smov 0  }
   0x2   :  { %s953_s19 = smov 0  }
   0x3 LB: > { %s23_s20 = sadd.s32 1, %s910_s17  ;;  %s26_s21 = sadd.s32 1, %s914_s18  ;;  %s918_s19 = sphi %s953_s19, %s14_s19   ;;  %s914_s18 = sphi %s951_s18, %s1224_s18   ;;  %s910_s17 = sphi %s949_s17, %s1223_s17   ;;  %s906_s16 = sphi %s947_s16, %s1222_s16   ;;  %s902_s15 = sphi %s945_s15, %s1221_s15  }
   0x4   : > { %p24_p0 = scmp.ge.s32.totalorder %s23_s20, 8  ;;  %p786_p1 = scmp.ge.s32.totalorder %s918_s19, 1 }
   0x5   : > { %p176_p2 = scmp.lt.s32.totalorder %s918_s19, 17 }
   0x6   : > { %s1226_s20 = smov (%p24_p0, %s23_s20), 0  ;;  %s1228_s21 = smov (!%p24_p0, %s26_s21), %s914_s18 }
   0x7   : > { %p177_p3 = pnand %p786_p1, %p176_p2  ;;  %p28_p4 = scmp.ge.s32.totalorder %s1228_s21, 2 }
   0x8   : > { %p207_p5 = scmp.lt.s32.totalorder (!%p177_p3), %s906_s16, 1  ;;  %s831_s26 = sshll.u32 (!%p177_p3), %s902_s15, 8 }
   0x9   : > { %s1230_s21 = smov (%p28_p4, %s1228_s21), 0  ;;  %180 = sbr.rel (%p177_p3) target bundleno = 230 (0xe6), region = 36 }
   0xa   : > { %s789_s10 = sshll.u32 (!%p177_p3), %s902_s15, 1 }
   0xb   : > { %p215_p6 = scmp.lt.s32.totalorder (!%p177_p3), %s789_s10, 15 }
   0xe   : > { %v259_v0 = vld [vmem:[%s1217_s1 + $0x8] sm:$0x1]  ;;  %vm357_vm0 = vcmask 1040384   ;;  %v258_v1 = vld [vmem:[%s1217_s1] sm:$0xff]  ;;  %s1232_s16 = smov (!%p207_p5, %s906_s16), 1  ;;  %vm260_vm1 = vcmask 72704  }
   0xf   : > { %795 = vmatpush.msk.msra.mxu0 %vm357_vm0, %v259_v0  ;;  %832 = vmatpush.msk.msra.mxu1 %vm357_vm0, %v259_v0  ;;  %s830_s27 = sshll.u32 %s1232_s16, 11  ;;  %v1059_v34 = vld [vmem:[%s1218_s2] ss:$0 sm:$0xff]  ;;  %vm578_vm2 = vcmask 261120   ;;  %s1234_s10 = smov (!%p215_p6, %s789_s10), 15 }
  0x10   : > { %833 = vmatpush.msk.msra.mxu2 %vm357_vm0, %v259_v0  ;;  %834 = vmatpush.msk.msra.mxu3 %vm357_vm0, %v259_v0  ;;  %s211_s30 = scalar_lea.vmem %s1216_s0, %s830_s27  ;;  %v1064_v35 = vld [vmem:[%s1219_s3] ss:$0 sm:$0xff]  ;;  %s790_s11 = sshll.u32 %s1234_s10, 2 }
  0x11   : > { %376 = vmatpush.msra.mxu0 %v258_v1  ;;  %835 = vmatpush.msra.mxu1 %v258_v1  ;;  %s990_s5 = scalar_lea.vmem %s211_s30, %s831_s26  ;;  %s791_s12 = sshll.u32 %s1232_s16, 6 }
  0x12   : > { %836 = vmatpush.msra.mxu2 %v258_v1  ;;  %837 = vmatpush.msra.mxu3 %v258_v1  ;;  %v226_v2 = vld [vmem:[%s990_s5] sm:$0xff]  ;;  %v227_v6 = vld [vmem:[%s990_s5 + $0x8] sm:$0xff]  ;;  %v228_v10 = vld [vmem:[%s990_s5 + $0x10] sm:$0xff]  ;;  %s219_s13 = sadd.s32 %s791_s12, %s790_s11 }
  0x13   : > { %v234_v3 = vld [vmem:[%s990_s5 + $0x40] sm:$0xff]  ;;  %796 = vmatmul.msk.f32.vlgmr.msra.gmra.mxu0 %vm260_vm1, %v226_v2  ;;  %v235_v7 = vld [vmem:[%s990_s5 + $0x48] sm:$0xff]  ;;  %v236_v11 = vld [vmem:[%s990_s5 + $0x50] sm:$0xff]  ;;  %s792_s14 = sshll.u32 %s219_s13, 3 }
  0x14   : > { %v242_v4 = vld [vmem:[%s990_s5 + $0x80] sm:$0xff]  ;;  %804 = vmatmul.msk.f32.vlgmr.msra.gmra.mxu1 %vm260_vm1, %v234_v3  ;;  %v243_v8 = vld [vmem:[%s990_s5 + $0x88] sm:$0xff]  ;;  %v244_v12 = vld [vmem:[%s990_s5 + $0x90] sm:$0xff]  ;;  %s1106_s22 = scalar_lea.vmem %s1220_s4, %s792_s14 }
  0x15   : > { %v250_v5 = vld [vmem:[%s990_s5 + $0xc0] sm:$0xff]  ;;  %812 = vmatmul.msk.f32.vlgmr.msra.gmra.mxu2 %vm260_vm1, %v242_v4  ;;  %v251_v9 = vld [vmem:[%s990_s5 + $0xc8] sm:$0xff]  ;;  %v252_v13 = vld [vmem:[%s990_s5 + $0xd0] sm:$0xff] }
  0x16   : > { %820 = vmatmul.msk.f32.vlgmr.msra.gmra.mxu3 %vm260_vm1, %v250_v5  ;;  %v229_v14 = vld [vmem:[%s990_s5 + $0x18] sm:$0xff]  ;;  %v230_v18 = vld [vmem:[%s990_s5 + $0x20] sm:$0xff]  ;;  %v231_v22 = vld [vmem:[%s990_s5 + $0x28] sm:$0xff] }
  0x17   : > { %v237_v15 = vld [vmem:[%s990_s5 + $0x58] sm:$0xff]  ;;  %v238_v19 = vld [vmem:[%s990_s5 + $0x60] sm:$0xff]  ;;  %v239_v23 = vld [vmem:[%s990_s5 + $0x68] sm:$0xff] }
  0x18   : > { %v245_v16 = vld [vmem:[%s990_s5 + $0x98] sm:$0xff]  ;;  %v246_v20 = vld [vmem:[%s990_s5 + $0xa0] sm:$0xff]  ;;  %v247_v24 = vld [vmem:[%s990_s5 + $0xa8] sm:$0xff] }
  0x19   : > { %v253_v17 = vld [vmem:[%s990_s5 + $0xd8] sm:$0xff]  ;;  %v254_v21 = vld [vmem:[%s990_s5 + $0xe0] sm:$0xff]  ;;  %v255_v25 = vld [vmem:[%s990_s5 + $0xe8] sm:$0xff] }
  0x1a   : > { %v232_v26 = vld [vmem:[%s990_s5 + $0x30] sm:$0xff]  ;;  %v233_v30 = vld [vmem:[%s990_s5 + $0x38] sm:$0xff] }
  0x1b   : > { %797 = vmatmul.msk.f32.gmra.mxu0 %vm260_vm1, %v227_v6  ;;  %v240_v27 = vld [vmem:[%s990_s5 + $0x70] sm:$0xff]  ;;  %v241_v31 = vld [vmem:[%s990_s5 + $0x78] sm:$0xff] }
  0x1c   : > { %805 = vmatmul.msk.f32.gmra.mxu1 %vm260_vm1, %v235_v7  ;;  %v248_v28 = vld [vmem:[%s990_s5 + $0xb0] sm:$0xff]  ;;  %v249_v32 = vld [vmem:[%s990_s5 + $0xb8] sm:$0xff] }
  0x1d   : > { %813 = vmatmul.msk.f32.gmra.mxu2 %vm260_vm1, %v243_v8  ;;  %v256_v29 = vld [vmem:[%s990_s5 + $0xf0] sm:$0xff]  ;;  %v257_v33 = vld [vmem:[%s990_s5 + $0xf8] sm:$0xff] }
  0x1e   : > { %821 = vmatmul.msk.f32.gmra.mxu3 %vm260_vm1, %v251_v9 }
  0x23   : > { %798 = vmatmul.msk.f32.gmra.mxu0 %vm260_vm1, %v228_v10 }
  0x24   : > { %806 = vmatmul.msk.f32.gmra.mxu1 %vm260_vm1, %v236_v11 }
  0x25   : > { %814 = vmatmul.msk.f32.gmra.mxu2 %vm260_vm1, %v244_v12 }
  0x26   : > { %822 = vmatmul.msk.f32.gmra.mxu3 %vm260_vm1, %v252_v13 }
  0x2b   : > { %799 = vmatmul.msk.f32.gmra.mxu0 %vm260_vm1, %v229_v14 }
  0x2c   : > { %807 = vmatmul.msk.f32.gmra.mxu1 %vm260_vm1, %v237_v15 }
  0x2d   : > { %815 = vmatmul.msk.f32.gmra.mxu2 %vm260_vm1, %v245_v16 }
  0x2e   : > { %823 = vmatmul.msk.f32.gmra.mxu3 %vm260_vm1, %v253_v17 }
  0x33   : > { %800 = vmatmul.msk.f32.gmra.mxu0 %vm260_vm1, %v230_v18 }
  0x34   : > { %808 = vmatmul.msk.f32.gmra.mxu1 %vm260_vm1, %v238_v19 }
  0x35   : > { %816 = vmatmul.msk.f32.gmra.mxu2 %vm260_vm1, %v246_v20 }
  0x36   : > { %824 = vmatmul.msk.f32.gmra.mxu3 %vm260_vm1, %v254_v21 }
  0x3b   : > { %801 = vmatmul.msk.f32.gmra.mxu0 %vm260_vm1, %v231_v22 }
  0x3c   : > { %809 = vmatmul.msk.f32.gmra.mxu1 %vm260_vm1, %v239_v23 }
  0x3d   : > { %817 = vmatmul.msk.f32.gmra.mxu2 %vm260_vm1, %v247_v24 }
  0x3e   : > { %825 = vmatmul.msk.f32.gmra.mxu3 %vm260_vm1, %v255_v25 }
  0x43   : > { %802 = vmatmul.msk.f32.gmra.mxu0 %vm260_vm1, %v232_v26 }
  0x44   : > { %810 = vmatmul.msk.f32.gmra.mxu1 %vm260_vm1, %v240_v27 }
  0x45   : > { %818 = vmatmul.msk.f32.gmra.mxu2 %vm260_vm1, %v248_v28 }
  0x46   : > { %826 = vmatmul.msk.f32.gmra.mxu3 %vm260_vm1, %v256_v29 }
  0x4b   : > { %803 = vmatmul.msk.f32.gmra.mxu0 %vm260_vm1, %v233_v30 }
  0x4c   : > { %811 = vmatmul.msk.f32.gmra.mxu1 %vm260_vm1, %v241_v31 }
  0x4d   : > { %819 = vmatmul.msk.f32.gmra.mxu2 %vm260_vm1, %v249_v32 }
  0x4e   : > { %827 = vmatmul.msk.f32.gmra.mxu3 %vm260_vm1, %v257_v33 }
  0x90   : > { %v378_v36 = vpop.f32.mrf.mxu0 }
  0x91   : > { %v402_v37 = vpop.f32.mrf.mxu1  ;;  %v478_v38 = vmul.f32 %v1059_v34, %v378_v36 }
  0x92   : > { %v486_v39 = vmul.f32 %v1059_v34, %v402_v37 }
  0x93   : > { %v514_v40 = vadd.f32 %v1064_v35, %v478_v38 }
  0x94   : > { %v522_v41 = vadd.f32 %v1064_v35, %v486_v39 }
  0x95   : > { %v546_v42 = vmax.f32 %v514_v40, 0.0 }
  0x96   : > { %v554_v43 = vmax.f32 %v522_v41, 0.0 }
  0x97   : > { %v579_v44 = vsel %vm578_vm2, %v546_v42, -inf }
  0x98   : > { %v580_v45 = vsel %vm578_vm2, %v554_v43, -inf  ;;  %v426_v46 = vpop.f32.mrf.mxu2  ;;  %v381_v51 = vpop.f32.mrf.mxu0 }
  0x99   : > { %v450_v47 = vpop.f32.mrf.mxu3  ;;  %v581_v48 = vmax.f32 %v579_v44, %v580_v45  ;;  %v494_v49 = vmul.f32 %v1059_v34, %v426_v46  ;;  %v405_v52 = vpop.f32.mrf.mxu1  ;;  %v479_v53 = vmul.f32 %v1059_v34, %v381_v51 }
  0x9a   : > { %v502_v50 = vmul.f32 %v1059_v34, %v450_v47  ;;  %v487_v54 = vmul.f32 %v1059_v34, %v405_v52 }
  0x9b   : > { %627 = vst.msk [vmem:[#allocation2] sm:$0xff] %vm578_vm2, %v581_v48  ;;  %v530_v55 = vadd.f32 %v1064_v35, %v494_v49  ;;  %v515_v57 = vadd.f32 %v1064_v35, %v479_v53 }
  0x9c   : > { %v538_v56 = vadd.f32 %v1064_v35, %v502_v50  ;;  %v523_v58 = vadd.f32 %v1064_v35, %v487_v54 }
  0x9d   : > { %v562_v59 = vmax.f32 %v530_v55, 0.0  ;;  %v547_v61 = vmax.f32 %v515_v57, 0.0 }
  0x9e   : > { %v570_v60 = vmax.f32 %v538_v56, 0.0  ;;  %v555_v62 = vmax.f32 %v523_v58, 0.0 }
  0x9f   : > { %v603_v63 = vsel %vm578_vm2, %v562_v59, -inf  ;;  %v582_v2 = vsel %vm578_vm2, %v547_v61, -inf }
  0xa0   : > { %v604_v0 = vsel %vm578_vm2, %v570_v60, -inf  ;;  %v583_v3 = vsel %vm578_vm2, %v555_v62, -inf  ;;  %v429_v4 = vpop.f32.mrf.mxu2  ;;  %v384_v9 = vpop.f32.mrf.mxu0 }
  0xa1   : > { %v605_v1 = vmax.f32 %v603_v63, %v604_v0  ;;  %v453_v5 = vpop.f32.mrf.mxu3  ;;  %v584_v6 = vmax.f32 %v582_v2, %v583_v3  ;;  %v495_v7 = vmul.f32 %v1059_v34, %v429_v4  ;;  %v408_v10 = vpop.f32.mrf.mxu1  ;;  %v480_v11 = vmul.f32 %v1059_v34, %v384_v9 }
  0xa2   : > { %v503_v8 = vmul.f32 %v1059_v34, %v453_v5  ;;  %v488_v12 = vmul.f32 %v1059_v34, %v408_v10 }
  0xa3   : > { %635 = vst.msk [vmem:[#allocation2 + $0x40] sm:$0xff] %vm578_vm2, %v605_v1  ;;  %v531_v13 = vadd.f32 %v1064_v35, %v495_v7  ;;  %v516_v15 = vadd.f32 %v1064_v35, %v480_v11 }
  0xa4   : > { %628 = vst.msk [vmem:[#allocation2 + $0x8] sm:$0xff] %vm578_vm2, %v584_v6  ;;  %v539_v14 = vadd.f32 %v1064_v35, %v503_v8  ;;  %v524_v16 = vadd.f32 %v1064_v35, %v488_v12 }
  0xa5   : > { %v563_v17 = vmax.f32 %v531_v13, 0.0  ;;  %v548_v19 = vmax.f32 %v516_v15, 0.0 }
  0xa6   : > { %v571_v18 = vmax.f32 %v539_v14, 0.0  ;;  %v556_v20 = vmax.f32 %v524_v16, 0.0 }
  0xa7   : > { %v606_v21 = vsel %vm578_vm2, %v563_v17, -inf  ;;  %v585_v24 = vsel %vm578_vm2, %v548_v19, -inf }
  0xa8   : > { %v607_v22 = vsel %vm578_vm2, %v571_v18, -inf  ;;  %v586_v25 = vsel %vm578_vm2, %v556_v20, -inf  ;;  %v432_v26 = vpop.f32.mrf.mxu2  ;;  %v387_v31 = vpop.f32.mrf.mxu0 }
  0xa9   : > { %v608_v23 = vmax.f32 %v606_v21, %v607_v22  ;;  %v456_v27 = vpop.f32.mrf.mxu3  ;;  %v587_v28 = vmax.f32 %v585_v24, %v586_v25  ;;  %v496_v29 = vmul.f32 %v1059_v34, %v432_v26  ;;  %v411_v32 = vpop.f32.mrf.mxu1  ;;  %v481_v37 = vmul.f32 %v1059_v34, %v387_v31 }
  0xaa   : > { %v504_v30 = vmul.f32 %v1059_v34, %v456_v27  ;;  %v489_v38 = vmul.f32 %v1059_v34, %v411_v32 }
  0xab   : > { %v643_v33 = vld [vmem:[#allocation2] ss:$2 sm:$0xff]  ;;  %v659_v36 = vld [vmem:[#allocation2 + $0x1] ss:$2 sm:$0xff]  ;;  %636 = vst.msk [vmem:[#allocation2 + $0x48] sm:$0xff] %vm578_vm2, %v608_v23  ;;  %v532_v40 = vadd.f32 %v1064_v35, %v496_v29  ;;  %v517_v42 = vadd.f32 %v1064_v35, %v481_v37 }
  0xac   : > { %v674_v39 = vmax.f32 %v643_v33, %v659_v36  ;;  %629 = vst.msk [vmem:[#allocation2 + $0x10] sm:$0xff] %vm578_vm2, %v587_v28  ;;  %v540_v41 = vadd.f32 %v1064_v35, %v504_v30  ;;  %v525_v43 = vadd.f32 %v1064_v35, %v489_v38 }
  0xad   : > { %v564_v44 = vmax.f32 %v532_v40, 0.0  ;;  %v549_v46 = vmax.f32 %v517_v42, 0.0 }
  0xae   : > { %682 = vst.msk [vmem:[%s1106_s22] sm:$0xff] %vm578_vm2, %v674_v39  ;;  %v572_v45 = vmax.f32 %v540_v41, 0.0  ;;  %v557_v47 = vmax.f32 %v525_v43, 0.0 }
  0xaf   : > { %v609_v48 = vsel %vm578_vm2, %v564_v44, -inf  ;;  %v588_v51 = vsel %vm578_vm2, %v549_v46, -inf }
  0xb0   : > { %v610_v49 = vsel %vm578_vm2, %v572_v45, -inf  ;;  %v589_v52 = vsel %vm578_vm2, %v557_v47, -inf  ;;  %v435_v53 = vpop.f32.mrf.mxu2  ;;  %v390_v60 = vpop.f32.mrf.mxu0 }
  0xb1   : > { %v611_v50 = vmax.f32 %v609_v48, %v610_v49  ;;  %v459_v54 = vpop.f32.mrf.mxu3  ;;  %v590_v57 = vmax.f32 %v588_v51, %v589_v52  ;;  %v497_v58 = vmul.f32 %v1059_v34, %v435_v53  ;;  %v414_v61 = vpop.f32.mrf.mxu1  ;;  %v482_v63 = vmul.f32 %v1059_v34, %v390_v60 }
  0xb2   : > { %v651_v55 = vld [vmem:[#allocation2 + $0x40] ss:$2 sm:$0xff]  ;;  %v667_v56 = vld [vmem:[#allocation2 + $0x41] ss:$2 sm:$0xff]  ;;  %v505_v59 = vmul.f32 %v1059_v34, %v459_v54  ;;  %v490_v0 = vmul.f32 %v1059_v34, %v414_v61 }
  0xb3   : > { %v678_v62 = vmax.f32 %v651_v55, %v667_v56  ;;  %637 = vst.msk [vmem:[#allocation2 + $0x50] sm:$0xff] %vm578_vm2, %v611_v50  ;;  %v533_v1 = vadd.f32 %v1064_v35, %v497_v58  ;;  %v518_v3 = vadd.f32 %v1064_v35, %v482_v63 }
  0xb4   : > { %630 = vst.msk [vmem:[#allocation2 + $0x18] sm:$0xff] %vm578_vm2, %v590_v57  ;;  %v541_v2 = vadd.f32 %v1064_v35, %v505_v59  ;;  %v526_v4 = vadd.f32 %v1064_v35, %v490_v0 }
  0xb5   : > { %686 = vst.msk [vmem:[%s1106_s22 + $0x20] sm:$0xff] %vm578_vm2, %v678_v62  ;;  %v565_v5 = vmax.f32 %v533_v1, 0.0  ;;  %v550_v7 = vmax.f32 %v518_v3, 0.0 }
  0xb6   : > { %v573_v6 = vmax.f32 %v541_v2, 0.0  ;;  %v558_v8 = vmax.f32 %v526_v4, 0.0 }
  0xb7   : > { %v612_v9 = vsel %vm578_vm2, %v565_v5, -inf  ;;  %v591_v12 = vsel %vm578_vm2, %v550_v7, -inf }
  0xb8   : > { %v613_v10 = vsel %vm578_vm2, %v573_v6, -inf  ;;  %v592_v13 = vsel %vm578_vm2, %v558_v8, -inf  ;;  %v438_v14 = vpop.f32.mrf.mxu2  ;;  %v393_v19 = vpop.f32.mrf.mxu0 }
  0xb9   : > { %v614_v11 = vmax.f32 %v612_v9, %v613_v10  ;;  %v462_v15 = vpop.f32.mrf.mxu3  ;;  %v593_v16 = vmax.f32 %v591_v12, %v592_v13  ;;  %v498_v17 = vmul.f32 %v1059_v34, %v438_v14  ;;  %v417_v20 = vpop.f32.mrf.mxu1  ;;  %v483_v23 = vmul.f32 %v1059_v34, %v393_v19 }
  0xba   : > { %v506_v18 = vmul.f32 %v1059_v34, %v462_v15  ;;  %v491_v24 = vmul.f32 %v1059_v34, %v417_v20 }
  0xbb   : > { %v645_v21 = vld [vmem:[#allocation2 + $0x10] ss:$2 sm:$0xff]  ;;  %v661_v22 = vld [vmem:[#allocation2 + $0x11] ss:$2 sm:$0xff]  ;;  %638 = vst.msk [vmem:[#allocation2 + $0x58] sm:$0xff] %vm578_vm2, %v614_v11  ;;  %v534_v26 = vadd.f32 %v1064_v35, %v498_v17  ;;  %v519_v28 = vadd.f32 %v1064_v35, %v483_v23 }
  0xbc   : > { %v675_v25 = vmax.f32 %v645_v21, %v661_v22  ;;  %631 = vst.msk [vmem:[#allocation2 + $0x20] sm:$0xff] %vm578_vm2, %v593_v16  ;;  %v542_v27 = vadd.f32 %v1064_v35, %v506_v18  ;;  %v527_v29 = vadd.f32 %v1064_v35, %v491_v24 }
  0xbd   : > { %v566_v30 = vmax.f32 %v534_v26, 0.0  ;;  %v551_v32 = vmax.f32 %v519_v28, 0.0 }
  0xbe   : > { %683 = vst.msk [vmem:[%s1106_s22 + $0x8] sm:$0xff] %vm578_vm2, %v675_v25  ;;  %v574_v31 = vmax.f32 %v542_v27, 0.0  ;;  %v559_v33 = vmax.f32 %v527_v29, 0.0 }
  0xbf   : > { %v615_v36 = vsel %vm578_vm2, %v566_v30, -inf  ;;  %v594_v39 = vsel %vm578_vm2, %v551_v32, -inf }
  0xc0   : > { %v616_v37 = vsel %vm578_vm2, %v574_v31, -inf  ;;  %v595_v40 = vsel %vm578_vm2, %v559_v33, -inf  ;;  %v441_v41 = vpop.f32.mrf.mxu2  ;;  %v396_v48 = vpop.f32.mrf.mxu0 }
  0xc1   : > { %v617_v38 = vmax.f32 %v615_v36, %v616_v37  ;;  %v465_v42 = vpop.f32.mrf.mxu3  ;;  %v596_v45 = vmax.f32 %v594_v39, %v595_v40  ;;  %v499_v46 = vmul.f32 %v1059_v34, %v441_v41  ;;  %v420_v49 = vpop.f32.mrf.mxu1  ;;  %v484_v51 = vmul.f32 %v1059_v34, %v396_v48 }
  0xc2   : > { %v653_v43 = vld [vmem:[#allocation2 + $0x50] ss:$2 sm:$0xff]  ;;  %v669_v44 = vld [vmem:[#allocation2 + $0x51] ss:$2 sm:$0xff]  ;;  %v507_v47 = vmul.f32 %v1059_v34, %v465_v42  ;;  %v492_v52 = vmul.f32 %v1059_v34, %v420_v49 }
  0xc3   : > { %v679_v50 = vmax.f32 %v653_v43, %v669_v44  ;;  %639 = vst.msk [vmem:[#allocation2 + $0x60] sm:$0xff] %vm578_vm2, %v617_v38  ;;  %v535_v53 = vadd.f32 %v1064_v35, %v499_v46  ;;  %v520_v55 = vadd.f32 %v1064_v35, %v484_v51 }
  0xc4   : > { %632 = vst.msk [vmem:[#allocation2 + $0x28] sm:$0xff] %vm578_vm2, %v596_v45  ;;  %v543_v54 = vadd.f32 %v1064_v35, %v507_v47  ;;  %v528_v56 = vadd.f32 %v1064_v35, %v492_v52 }
  0xc5   : > { %687 = vst.msk [vmem:[%s1106_s22 + $0x28] sm:$0xff] %vm578_vm2, %v679_v50  ;;  %v567_v57 = vmax.f32 %v535_v53, 0.0  ;;  %v552_v59 = vmax.f32 %v520_v55, 0.0 }
  0xc6   : > { %v575_v58 = vmax.f32 %v543_v54, 0.0  ;;  %v560_v60 = vmax.f32 %v528_v56, 0.0 }
  0xc7   : > { %v618_v61 = vsel %vm578_vm2, %v567_v57, -inf  ;;  %v597_v0 = vsel %vm578_vm2, %v552_v59, -inf }
  0xc8   : > { %v619_v62 = vsel %vm578_vm2, %v575_v58, -inf  ;;  %v598_v1 = vsel %vm578_vm2, %v560_v60, -inf  ;;  %v444_v2 = vpop.f32.mrf.mxu2  ;;  %v399_v7 = vpop.f32.mrf.mxu0 }
  0xc9   : > { %v620_v63 = vmax.f32 %v618_v61, %v619_v62  ;;  %v468_v3 = vpop.f32.mrf.mxu3  ;;  %v599_v4 = vmax.f32 %v597_v0, %v598_v1  ;;  %v500_v5 = vmul.f32 %v1059_v34, %v444_v2  ;;  %v423_v8 = vpop.f32.mrf.mxu1  ;;  %v485_v11 = vmul.f32 %v1059_v34, %v399_v7 }
  0xca   : > { %v508_v6 = vmul.f32 %v1059_v34, %v468_v3  ;;  %v493_v12 = vmul.f32 %v1059_v34, %v423_v8 }
  0xcb   : > { %v647_v9 = vld [vmem:[#allocation2 + $0x20] ss:$2 sm:$0xff]  ;;  %v663_v10 = vld [vmem:[#allocation2 + $0x21] ss:$2 sm:$0xff]  ;;  %640 = vst.msk [vmem:[#allocation2 + $0x68] sm:$0xff] %vm578_vm2, %v620_v63  ;;  %v536_v14 = vadd.f32 %v1064_v35, %v500_v5  ;;  %v521_v16 = vadd.f32 %v1064_v35, %v485_v11 }
  0xcc   : > { %v676_v13 = vmax.f32 %v647_v9, %v663_v10  ;;  %633 = vst.msk [vmem:[#allocation2 + $0x30] sm:$0xff] %vm578_vm2, %v599_v4  ;;  %v544_v15 = vadd.f32 %v1064_v35, %v508_v6  ;;  %v529_v17 = vadd.f32 %v1064_v35, %v493_v12 }
  0xcd   : > { %v568_v18 = vmax.f32 %v536_v14, 0.0  ;;  %v553_v20 = vmax.f32 %v521_v16, 0.0 }
  0xce   : > { %684 = vst.msk [vmem:[%s1106_s22 + $0x10] sm:$0xff] %vm578_vm2, %v676_v13  ;;  %v576_v19 = vmax.f32 %v544_v15, 0.0  ;;  %v561_v21 = vmax.f32 %v529_v17, 0.0 }
  0xcf   : > { %v621_v22 = vsel %vm578_vm2, %v568_v18, -inf  ;;  %v600_v25 = vsel %vm578_vm2, %v553_v20, -inf }
  0xd0   : > { %v622_v23 = vsel %vm578_vm2, %v576_v19, -inf  ;;  %v601_v26 = vsel %vm578_vm2, %v561_v21, -inf  ;;  %v447_v27 = vpop.f32.mrf.mxu2 }
  0xd1   : > { %v623_v24 = vmax.f32 %v621_v22, %v622_v23  ;;  %v471_v28 = vpop.f32.mrf.mxu3  ;;  %v602_v31 = vmax.f32 %v600_v25, %v601_v26  ;;  %v501_v32 = vmul.f32 %v1059_v34, %v447_v27 }
  0xd2   : > { %v655_v29 = vld [vmem:[#allocation2 + $0x60] ss:$2 sm:$0xff]  ;;  %v671_v30 = vld [vmem:[#allocation2 + $0x61] ss:$2 sm:$0xff]  ;;  %v509_v33 = vmul.f32 %v1059_v34, %v471_v28 }
  0xd3   : > { %v680_v36 = vmax.f32 %v655_v29, %v671_v30  ;;  %641 = vst.msk [vmem:[#allocation2 + $0x70] sm:$0xff] %vm578_vm2, %v623_v24  ;;  %v537_v37 = vadd.f32 %v1064_v35, %v501_v32 }
  0xd4   : > { %634 = vst.msk [vmem:[#allocation2 + $0x38] sm:$0xff] %vm578_vm2, %v602_v31  ;;  %v545_v38 = vadd.f32 %v1064_v35, %v509_v33 }
  0xd5   : > { %688 = vst.msk [vmem:[%s1106_s22 + $0x30] sm:$0xff] %vm578_vm2, %v680_v36  ;;  %v569_v39 = vmax.f32 %v537_v37, 0.0 }
  0xd6   : > { %v577_v40 = vmax.f32 %v545_v38, 0.0 }
  0xd7   : > { %v624_v41 = vsel %vm578_vm2, %v569_v39, -inf }
  0xd8   : > { %v625_v42 = vsel %vm578_vm2, %v577_v40, -inf }
  0xd9   : > { %v626_v34 = vmax.f32 %v624_v41, %v625_v42 }
  0xdb   : > { %v649_v43 = vld [vmem:[#allocation2 + $0x30] ss:$2 sm:$0xff]  ;;  %v665_v44 = vld [vmem:[#allocation2 + $0x31] ss:$2 sm:$0xff]  ;;  %642 = vst.msk [vmem:[#allocation2 + $0x78] sm:$0xff] %vm578_vm2, %v626_v34 }
  0xdc   : > { %v677_v45 = vmax.f32 %v649_v43, %v665_v44 }
  0xde   : > { %685 = vst.msk [vmem:[%s1106_s22 + $0x18] sm:$0xff] %vm578_vm2, %v677_v45 }
  0xe2   : > { %v657_v46 = vld [vmem:[#allocation2 + $0x70] ss:$2 sm:$0xff]  ;;  %v673_v47 = vld [vmem:[#allocation2 + $0x71] ss:$2 sm:$0xff] }
  0xe3   : > { %v681_v48 = vmax.f32 %v657_v46, %v673_v47 }
  0xe5   : > { %689 = vst.msk [vmem:[%s1106_s22 + $0x38] sm:$0xff] %vm578_vm2, %v681_v48 }
  0xe6 PF: > { %s14_s19 = sadd.s32 1, %s918_s19   ;;  %s1221_s15 = smov %s910_s17 }
  0xe7   : > { %p11_p7 = scmp.ge.s32.totalorder %s14_s19, 18   ;;  %s1222_s16 = smov %s914_s18 }
  0xe8   : > { %s1223_s17 = smov %s1226_s20  ;;  %s1224_s18 = smov %s1230_s21 }
  0xe9   :  { %13 = sbr.rel (!%p11_p7) target bundleno = 3 (0x3), region = 82 }

// kernel: cnn_forward.6
= control target key start
LH: loop header
LB: loop body
LE: loop exit
PB: predicated region body
PF: predicated region fallthrough
CT: control target
= control target key end

     0   :  { %s1691_s15 = smov 0   ;;  %s1693_s16 = smov 0   ;;  %s2375_s0 = inlined_call_operand.vmem [shape: f32[2,18,32,96], index: 0, kind: input, shape index: {}]   ;;  %s2376_s1 = inlined_call_operand.vmem [shape: f32[3,96,64], index: 1, kind: input, shape index: {}]   ;;  %s2377_s2 = inlined_call_operand.vmem [shape: f32[1,64], index: 2, kind: input, shape index: {}]   ;;  %s2378_s3 = inlined_call_operand.vmem [shape: f32[1,64], index: 3, kind: input, shape index: {}]   ;;  %s2379_s4 = inlined_call_operand.vmem [shape: f32[2,8,16,64], index: 4, kind: output, shape index: {}]  }
   0x1   :  { %s1695_s17 = smov 0   ;;  %s1697_s18 = smov 0  }
   0x2   :  { %s1699_s19 = smov 0  }
   0x3 LB: > { %s23_s20 = sadd.s32 1, %s1656_s17  ;;  %s26_s21 = sadd.s32 1, %s1660_s18  ;;  %s1664_s19 = sphi %s1699_s19, %s14_s19   ;;  %s1660_s18 = sphi %s1697_s18, %s2383_s18   ;;  %s1656_s17 = sphi %s1695_s17, %s2382_s17   ;;  %s1652_s16 = sphi %s1693_s16, %s2381_s16   ;;  %s1648_s15 = sphi %s1691_s15, %s2380_s15  }
   0x4   : > { %p24_p0 = scmp.ge.s32.totalorder %s23_s20, 2  ;;  %p1346_p1 = scmp.ge.s32.totalorder %s1664_s19, 1 }
   0x5   : > { %p176_p2 = scmp.lt.s32.totalorder %s1664_s19, 5 }
   0x6   : > { %s2385_s20 = smov (%p24_p0, %s23_s20), 0  ;;  %s2387_s21 = smov (!%p24_p0, %s26_s21), %s1660_s18 }
   0x7   : > { %p177_p3 = pnand %p1346_p1, %p176_p2  ;;  %p28_p4 = scmp.ge.s32.totalorder %s2387_s21, 2 }
   0x8   : > { %p207_p5 = scmp.lt.s32.totalorder (!%p177_p3), %s1652_s16, 1  ;;  %s1544_s23 = sshll.u32 (!%p177_p3), %s1648_s15, 8 }
   0x9   : > { %s2389_s21 = smov (%p28_p4, %s2387_s21), 0  ;;  %180 = sbr.rel (%p177_p3) target bundleno = 378 (0x17a), region = 36 }
   0xa   : > { %s1348_s29 = sshll.u32 (!%p177_p3), %s1648_s15, 2 }
   0xb   : > { %p215_p6 = scmp.lt.s32.totalorder (!%p177_p3), %s1348_s29, 7 }
   0xe   : > { %v1399_v0 = vld [vmem:[%s2376_s1 + $0xb8] sm:$0xff]  ;;  %v1398_v2 = vld [vmem:[%s2376_s1 + $0xb0] sm:$0xff]  ;;  %v1397_v5 = vld [vmem:[%s2376_s1 + $0xa8] sm:$0xff]  ;;  %s2391_s16 = smov (!%p207_p5, %s1652_s16), 1  ;;  %vm318_vm0 = vcmask 785408   ;;  %vm1130_vm1 = vcmask 523264  }
   0xf   : > { %v1731_v1 = vld [vmem:[%s2376_s1 + $0x118] sm:$0xff]  ;;  %1547 = vmatpush.msra.mxu3 %v1399_v0  ;;  %v1740_v3 = vld [vmem:[%s2376_s1 + $0x110] sm:$0xff]  ;;  %419 = vmatpush.msra.mxu0 %v1399_v0  ;;  %v1754_v6 = vld [vmem:[%s2376_s1 + $0x108] sm:$0xff]  ;;  %s1583_s26 = smul.u32 576, %s2391_s16  ;;  %s2393_s29 = smov (!%p215_p6, %s1348_s29), 7 }
  0x10   : > { %885 = vmatpush.msra.mxu2 %v1731_v1  ;;  %v1745_v4 = vld [vmem:[%s2376_s1 + $0x58] sm:$0xff]  ;;  %v1759_v7 = vld [vmem:[%s2376_s1 + $0x50] sm:$0xff]  ;;  %v1765_v8 = vld [vmem:[%s2376_s1 + $0x48] sm:$0xff]  ;;  %s1349_s15 = sshll.u32 %s2393_s29, 1  ;;  %s1350_s30 = sshll.u32 %s2391_s16, 4 }
  0x11   : > { %628 = vmatpush.msra.mxu1 %v1745_v4  ;;  %1548 = vmatpush.msra.mxu3 %v1398_v2  ;;  %v1396_v9 = vld [vmem:[%s2376_s1 + $0xa0] sm:$0xff]  ;;  %v1395_v12 = vld [vmem:[%s2376_s1 + $0x98] sm:$0xff]  ;;  %v1394_v15 = vld [vmem:[%s2376_s1 + $0x90] sm:$0xff]  ;;  %s211_s22 = scalar_lea.vmem %s2375_s0, %s1583_s26  ;;  %s219_s26 = sadd.s32 %s1350_s30, %s1349_s15 }
  0x12   : > { %886 = vmatpush.msra.mxu2 %v1740_v3  ;;  %420 = vmatpush.msra.mxu0 %v1398_v2  ;;  %v1775_v10 = vld [vmem:[%s2376_s1 + $0x100] sm:$0xff]  ;;  %v1790_v13 = vld [vmem:[%s2376_s1 + $0xf8] sm:$0xff]  ;;  %v1810_v16 = vld [vmem:[%s2376_s1 + $0xf0] sm:$0xff]  ;;  %s1887_s8 = scalar_lea.vmem %s211_s22, %s1544_s23  ;;  %s1351_s16 = sshll.u32 %s219_s26, 3 }
  0x13   : > { %629 = vmatpush.msra.mxu1 %v1759_v7  ;;  %1549 = vmatpush.msra.mxu3 %v1397_v5  ;;  %v1781_v11 = vld [vmem:[%s2376_s1 + $0x40] sm:$0xff]  ;;  %v1796_v14 = vld [vmem:[%s2376_s1 + $0x38] sm:$0xff]  ;;  %v1816_v17 = vld [vmem:[%s2376_s1 + $0x30] sm:$0xff]  ;;  %s2214_s7 = scalar_lea.vmem %s2379_s4, %s1351_s16 }
  0x14   : > { %887 = vmatpush.msra.mxu2 %v1754_v6  ;;  %421 = vmatpush.msra.mxu0 %v1397_v5  ;;  %v1393_v18 = vld [vmem:[%s2376_s1 + $0x88] sm:$0xff]  ;;  %v1392_v21 = vld [vmem:[%s2376_s1 + $0x80] sm:$0xff]  ;;  %v1391_v24 = vld [vmem:[%s2376_s1 + $0x78] sm:$0xff] }
  0x15   : > { %630 = vmatpush.msra.mxu1 %v1765_v8  ;;  %1550 = vmatpush.msra.mxu3 %v1396_v9  ;;  %v1825_v19 = vld [vmem:[%s2376_s1 + $0xe8] sm:$0xff]  ;;  %v1841_v22 = vld [vmem:[%s2376_s1 + $0xe0] sm:$0xff]  ;;  %v1856_v25 = vld [vmem:[%s2376_s1 + $0xd8] sm:$0xff] }
  0x16   : > { %888 = vmatpush.msra.mxu2 %v1775_v10  ;;  %422 = vmatpush.msra.mxu0 %v1396_v9  ;;  %v1831_v20 = vld [vmem:[%s2376_s1 + $0x28] sm:$0xff]  ;;  %v1847_v23 = vld [vmem:[%s2376_s1 + $0x20] sm:$0xff]  ;;  %v261_v26 = vld [vmem:[%s2376_s1 + $0x18] sm:$0xff] }
  0x17   : > { %631 = vmatpush.msra.mxu1 %v1781_v11  ;;  %1551 = vmatpush.msra.mxu3 %v1395_v12  ;;  %v1390_v27 = vld [vmem:[%s2376_s1 + $0x70] sm:$0xff]  ;;  %v1389_v30 = vld [vmem:[%s2376_s1 + $0x68] sm:$0xff]  ;;  %v1388_v33 = vld [vmem:[%s2376_s1 + $0x60] sm:$0xff] }
  0x18   : > { %889 = vmatpush.msra.mxu2 %v1790_v13  ;;  %423 = vmatpush.msra.mxu0 %v1395_v12  ;;  %v1873_v28 = vld [vmem:[%s2376_s1 + $0xd0] sm:$0xff]  ;;  %v1885_v31 = vld [vmem:[%s2376_s1 + $0xc8] sm:$0xff]  ;;  %v1899_v34 = vld [vmem:[%s2376_s1 + $0xc0] sm:$0xff] }
  0x19   : > { %632 = vmatpush.msra.mxu1 %v1796_v14  ;;  %1552 = vmatpush.msra.mxu3 %v1394_v15  ;;  %v260_v29 = vld [vmem:[%s2376_s1 + $0x10] sm:$0xff]  ;;  %v259_v32 = vld [vmem:[%s2376_s1 + $0x8] sm:$0xff]  ;;  %v1903_v35 = vld [vmem:[%s1887_s8 + $0xe0] sm:$0xff] }
  0x1a   : > { %890 = vmatpush.msra.mxu2 %v1810_v16  ;;  %424 = vmatpush.msra.mxu0 %v1394_v15  ;;  %v1906_v36 = vld [vmem:[%s1887_s8 + $0x40] sm:$0xff]  ;;  %v1923_v40 = vld [vmem:[%s1887_s8 + $0xe8] sm:$0xff]  ;;  %v1941_v44 = vld [vmem:[%s1887_s8 + $0xf0] sm:$0xff] }
  0x1b   : > { %633 = vmatpush.msra.mxu1 %v1816_v17  ;;  %1553 = vmatpush.msra.mxu3 %v1393_v18  ;;  %v258_v37 = vld [vmem:[%s2376_s1] sm:$0xff]  ;;  %v1926_v41 = vld [vmem:[%s1887_s8 + $0x48] sm:$0xff]  ;;  %v1944_v45 = vld [vmem:[%s1887_s8 + $0x50] sm:$0xff] }
  0x1c   : > { %891 = vmatpush.msra.mxu2 %v1825_v19  ;;  %425 = vmatpush.msra.mxu0 %v1393_v18  ;;  %v1356_v38 = vld [vmem:[%s1887_s8 + $0x20] sm:$0xff]  ;;  %v1357_v42 = vld [vmem:[%s1887_s8 + $0x28] sm:$0xff]  ;;  %v1358_v46 = vld [vmem:[%s1887_s8 + $0x30] sm:$0xff] }
  0x1d   : > { %634 = vmatpush.msra.mxu1 %v1831_v20  ;;  %1554 = vmatpush.msra.mxu3 %v1392_v21  ;;  %v226_v39 = vld [vmem:[%s1887_s8] sm:$0xff]  ;;  %v227_v43 = vld [vmem:[%s1887_s8 + $0x8] sm:$0xff]  ;;  %v228_v47 = vld [vmem:[%s1887_s8 + $0x10] sm:$0xff] }
  0x1e   : > { %892 = vmatpush.msra.mxu2 %v1841_v22  ;;  %426 = vmatpush.msra.mxu0 %v1392_v21  ;;  %v1957_v48 = vld [vmem:[%s1887_s8 + $0xf8] sm:$0xff]  ;;  %v1973_v52 = vld [vmem:[%s1887_s8 + $0x100] sm:$0xff]  ;;  %v1987_v54 = vld [vmem:[%s1887_s8 + $0x108] sm:$0xff] }
  0x1f   : > { %635 = vmatpush.msra.mxu1 %v1847_v23  ;;  %1555 = vmatpush.msra.mxu3 %v1391_v24  ;;  %v1960_v49 = vld [vmem:[%s1887_s8 + $0x58] sm:$0xff]  ;;  %v1470_v53 = vld [vmem:[%s1887_s8 + $0x60] sm:$0xff]  ;;  %v1471_v55 = vld [vmem:[%s1887_s8 + $0x68] sm:$0xff] }
  0x20   : > { %893 = vmatpush.msra.mxu2 %v1856_v25  ;;  %427 = vmatpush.msra.mxu0 %v1391_v24  ;;  %v1359_v50 = vld [vmem:[%s1887_s8 + $0x38] sm:$0xff]  ;;  %v2001_v56 = vld [vmem:[%s1887_s8 + $0x110] sm:$0xff]  ;;  %v2023_v60 = vld [vmem:[%s1887_s8 + $0xc0] sm:$0xff] }
  0x21   : > { %636 = vmatpush.msra.mxu1 %v261_v26  ;;  %1556 = vmatpush.msra.mxu3 %v1390_v27  ;;  %v229_v51 = vld [vmem:[%s1887_s8 + $0x18] sm:$0xff]  ;;  %v1472_v57 = vld [vmem:[%s1887_s8 + $0x70] sm:$0xff]  ;;  %v1474_v61 = vld [vmem:[%s1887_s8 + $0x80] sm:$0xff] }
  0x22   : > { %894 = vmatpush.msra.mxu2 %v1873_v28  ;;  %428 = vmatpush.msra.mxu0 %v1390_v27  ;;  %v2013_v58 = vld [vmem:[%s1887_s8 + $0x118] sm:$0xff]  ;;  %v2033_v62 = vld [vmem:[%s1887_s8 + $0xc8] sm:$0xff]  ;;  %v2043_v0 = vld [vmem:[%s1887_s8 + $0xd0] sm:$0xff] }
  0x23   : > { %637 = vmatpush.msra.mxu1 %v260_v29  ;;  %1557 = vmatpush.msra.mxu3 %v1389_v30  ;;  %v1473_v59 = vld [vmem:[%s1887_s8 + $0x78] sm:$0xff]  ;;  %v1475_v63 = vld [vmem:[%s1887_s8 + $0x88] sm:$0xff]  ;;  %v1494_v27 = vld [vmem:[%s1887_s8 + $0x120] sm:$0xff] }
  0x24   : > { %895 = vmatpush.msra.mxu2 %v1885_v31  ;;  %429 = vmatpush.msra.mxu0 %v1389_v30  ;;  %v2053_v2 = vld [vmem:[%s1887_s8 + $0xd8] sm:$0xff]  ;;  %v2072_v5 = vld [vmem:[%s1887_s8 + $0xa8] sm:$0xff] }
  0x25   : > { %638 = vmatpush.msra.mxu1 %v259_v32  ;;  %1558 = vmatpush.msra.mxu3 %v1388_v33 }
  0x26   : > { %896 = vmatpush.msra.mxu2 %v1899_v34  ;;  %1424 = vmatmul.msk.f32.vlgmr.msra.gmra.mxu3 %vm318_vm0, %v1903_v35 }
  0x27   : > { %1510 = vmatmul.msk.f32.vlgmr.msra.gmra.mxu2 %vm318_vm0, %v1906_v36  ;;  %1559 = vmatpush.msrb.mxu3 %v1745_v4  ;;  %v2063_v4 = vld [vmem:[%s1887_s8 + $0xa0] sm:$0xff] }
  0x28   : > { %430 = vmatpush.msra.mxu0 %v1388_v33  ;;  %639 = vmatpush.msra.mxu1 %v258_v37 }
  0x29   : > { %1400 = vmatmul.msk.f32.vlgmr.msra.gmra.mxu0 %vm318_vm0, %v1356_v38  ;;  %1432 = vmatmul.msk.f32.vlgmr.msra.gmra.mxu1 %vm318_vm0, %v226_v39 }
  0x2a   : > { %1560 = vmatpush.msrb.mxu3 %v1759_v7  ;;  %v2090_v7 = vld [vmem:[%s1887_s8 + $0xb8] sm:$0xff] }
  0x2c   : > { %1561 = vmatpush.msrb.mxu3 %v1765_v8 }
  0x2e   : > { %1562 = vmatpush.msrb.mxu3 %v1781_v11 }
  0x2f   : > { %1425 = vmatmul.msk.f32.gmra.mxu3 %vm318_vm0, %v1923_v40  ;;  %1511 = vmatmul.msk.f32.gmra.mxu2 %vm318_vm0, %v1926_v41 }
  0x30   : > { %1563 = vmatpush.msrb.mxu3 %v1796_v14 }
  0x31   : > { %1401 = vmatmul.msk.f32.gmra.mxu0 %vm318_vm0, %v1357_v42  ;;  %1433 = vmatmul.msk.f32.gmra.mxu1 %vm318_vm0, %v227_v43 }
  0x32   : > { %1564 = vmatpush.msrb.mxu3 %v1816_v17 }
  0x34   : > { %1565 = vmatpush.msrb.mxu3 %v1831_v20 }
  0x36   : > { %1566 = vmatpush.msrb.mxu3 %v1847_v23 }
  0x37   : > { %1426 = vmatmul.msk.f32.gmra.mxu3 %vm318_vm0, %v1941_v44  ;;  %1512 = vmatmul.msk.f32.gmra.mxu2 %vm318_vm0, %v1944_v45 }
  0x38   : > { %1567 = vmatpush.msrb.mxu3 %v261_v26  ;;  %v2139_v26 = vld [vmem:[%s2377_s2] ss:$0 sm:$0xff] }
  0x39   : > { %1402 = vmatmul.msk.f32.gmra.mxu0 %vm318_vm0, %v1358_v46  ;;  %1434 = vmatmul.msk.f32.gmra.mxu1 %vm318_vm0, %v228_v47 }
  0x3a   : > { %1568 = vmatpush.msrb.mxu3 %v260_v29 }
  0x3c   : > { %1569 = vmatpush.msrb.mxu3 %v259_v32 }
  0x3e   : > { %1570 = vmatpush.msrb.mxu3 %v258_v37 }
  0x3f   : > { %1427 = vmatmul.msk.f32.gmra.mxu3 %vm318_vm0, %v1957_v48  ;;  %1513 = vmatmul.msk.f32.gmra.mxu2 %vm318_vm0, %v1960_v49 }
  0x40   : > { %1571 = vmatpush.msra.mxu3 %v1731_v1  ;;  %v1476_v1 = vld [vmem:[%s1887_s8 + $0x90] sm:$0xff] }
  0x41   : > { %1403 = vmatmul.msk.f32.gmra.mxu0 %vm318_vm0, %v1359_v50  ;;  %1435 = vmatmul.msk.f32.gmra.mxu1 %vm318_vm0, %v229_v51 }
  0x42   : > { %1572 = vmatpush.msra.mxu3 %v1740_v3  ;;  %v1477_v3 = vld [vmem:[%s1887_s8 + $0x98] sm:$0xff] }
  0x44   : > { %1573 = vmatpush.msra.mxu3 %v1754_v6  ;;  %v2081_v6 = vld [vmem:[%s1887_s8 + $0xb0] sm:$0xff] }
  0x46   : > { %1574 = vmatpush.msra.mxu3 %v1775_v10 }
  0x47   : > { %1428 = vmatmul.msk.f32.gmra.mxu3 %vm318_vm0, %v1973_v52  ;;  %1514 = vmatmul.msk.f32.gmra.mxu2 %vm318_vm0, %v1470_v53 }
  0x48   : > { %1575 = vmatpush.msra.mxu3 %v1790_v13 }
  0x49   : > { %1404 = vmatmul.msk.f32.gmra.mxu0 %vm318_vm0, %v1906_v36  ;;  %1436 = vmatmul.msk.f32.gmra.mxu1 %vm318_vm0, %v1356_v38 }
  0x4a   : > { %1576 = vmatpush.msra.mxu3 %v1810_v16 }
  0x4c   : > { %1577 = vmatpush.msra.mxu3 %v1825_v19 }
  0x4e   : > { %1578 = vmatpush.msra.mxu3 %v1841_v22 }
  0x4f   : > { %1429 = vmatmul.msk.f32.gmra.mxu3 %vm318_vm0, %v1987_v54  ;;  %1515 = vmatmul.msk.f32.gmra.mxu2 %vm318_vm0, %v1471_v55 }
  0x50   : > { %1579 = vmatpush.msra.mxu3 %v1856_v25 }
  0x51   : > { %1405 = vmatmul.msk.f32.gmra.mxu0 %vm318_vm0, %v1926_v41  ;;  %1437 = vmatmul.msk.f32.gmra.mxu1 %vm318_vm0, %v1357_v42 }
  0x52   : > { %1580 = vmatpush.msra.mxu3 %v1873_v28 }
  0x54   : > { %1581 = vmatpush.msra.mxu3 %v1885_v31  ;;  %v2146_v31 = vld [vmem:[%s2378_s3] ss:$0 sm:$0xff] }
  0x56   : > { %1582 = vmatpush.msra.mxu3 %v1899_v34 }
  0x57   : > { %1430 = vmatmul.msk.f32.gmra.mxu3 %vm318_vm0, %v2001_v56  ;;  %1516 = vmatmul.msk.f32.gmra.mxu2 %vm318_vm0, %v1472_v57 }
  0x59   : > { %1406 = vmatmul.msk.f32.gmra.mxu0 %vm318_vm0, %v1944_v45  ;;  %1438 = vmatmul.msk.f32.gmra.mxu1 %vm318_vm0, %v1358_v46 }
  0x5f   : > { %1431 = vmatmul.msk.f32.gmra.mxu3 %vm318_vm0, %v2013_v58  ;;  %1517 = vmatmul.msk.f32.gmra.mxu2 %vm318_vm0, %v1473_v59 }
  0x61   : > { %1407 = vmatmul.msk.f32.gmra.mxu0 %vm318_vm0, %v1960_v49  ;;  %1439 = vmatmul.msk.f32.gmra.mxu1 %vm318_vm0, %v1359_v50 }
  0x67   : > { %1456 = vmatmul.msk.f32.vlgmr.msrb.gmra.mxu3 %vm318_vm0, %v2023_v60  ;;  %1518 = vmatmul.msk.f32.gmra.mxu2 %vm318_vm0, %v1474_v61 }
  0x69   : > { %1408 = vmatmul.msk.f32.gmra.mxu0 %vm318_vm0, %v1470_v53  ;;  %1440 = vmatmul.msk.f32.gmra.mxu1 %vm318_vm0, %v1906_v36 }
  0x6f   : > { %1457 = vmatmul.msk.f32.gmra.mxu3 %vm318_vm0, %v2033_v62  ;;  %1519 = vmatmul.msk.f32.gmra.mxu2 %vm318_vm0, %v1475_v63 }
  0x71   : > { %1409 = vmatmul.msk.f32.gmra.mxu0 %vm318_vm0, %v1471_v55  ;;  %1441 = vmatmul.msk.f32.gmra.mxu1 %vm318_vm0, %v1926_v41  ;;  %v1495_v41 = vld [vmem:[%s1887_s8 + $0x128] sm:$0xff] }
  0x77   : > { %1458 = vmatmul.msk.f32.gmra.mxu3 %vm318_vm0, %v2043_v0  ;;  %1520 = vmatmul.msk.f32.gmra.mxu2 %vm318_vm0, %v1476_v1 }
  0x79   : > { %1410 = vmatmul.msk.f32.gmra.mxu0 %vm318_vm0, %v1472_v57  ;;  %1442 = vmatmul.msk.f32.gmra.mxu1 %vm318_vm0, %v1944_v45 }
  0x7f   : > { %1459 = vmatmul.msk.f32.gmra.mxu3 %vm318_vm0, %v2053_v2  ;;  %1521 = vmatmul.msk.f32.gmra.mxu2 %vm318_vm0, %v1477_v3 }
  0x81   : > { %1411 = vmatmul.msk.f32.gmra.mxu0 %vm318_vm0, %v1473_v59  ;;  %1443 = vmatmul.msk.f32.gmra.mxu1 %vm318_vm0, %v1960_v49 }
  0x87   : > { %1460 = vmatmul.msk.f32.gmra.mxu3 %vm318_vm0, %v1903_v35  ;;  %1522 = vmatmul.msk.f32.gmra.mxu2 %vm318_vm0, %v2063_v4 }
  0x89   : > { %1412 = vmatmul.msk.f32.gmra.mxu0 %vm318_vm0, %v1474_v61  ;;  %1444 = vmatmul.msk.f32.gmra.mxu1 %vm318_vm0, %v1470_v53 }
  0x8f   : > { %1461 = vmatmul.msk.f32.gmra.mxu3 %vm318_vm0, %v1923_v40  ;;  %1523 = vmatmul.msk.f32.gmra.mxu2 %vm318_vm0, %v2072_v5 }
  0x91   : > { %1413 = vmatmul.msk.f32.gmra.mxu0 %vm318_vm0, %v1475_v63  ;;  %1445 = vmatmul.msk.f32.gmra.mxu1 %vm318_vm0, %v1471_v55 }
  0x97   : > { %1462 = vmatmul.msk.f32.gmra.mxu3 %vm318_vm0, %v1941_v44  ;;  %1524 = vmatmul.msk.f32.gmra.mxu2 %vm318_vm0, %v2081_v6 }
  0x99   : > { %1414 = vmatmul.msk.f32.gmra.mxu0 %vm318_vm0, %v1476_v1  ;;  %1446 = vmatmul.msk.f32.gmra.mxu1 %vm318_vm0, %v1472_v57 }
  0x9f   : > { %1463 = vmatmul.msk.f32.gmra.mxu3 %vm318_vm0, %v1957_v48  ;;  %1525 = vmatmul.msk.f32.gmra.mxu2 %vm318_vm0, %v2090_v7 }
  0xa1   : > { %1415 = vmatmul.msk.f32.gmra.mxu0 %vm318_vm0, %v1477_v3  ;;  %1447 = vmatmul.msk.f32.gmra.mxu1 %vm318_vm0, %v1473_v59  ;;  %v1496_v59 = vld [vmem:[%s1887_s8 + $0x130] sm:$0xff] }
  0xa6   : > { %v432_v8 = vpop.f32.mrf.mxu0  ;;  %v641_v9 = vpop.f32.mrf.mxu1 }
  0xa7   : > { %1526 = vmatmul.msk.f32.gmra.mxu2 %vm318_vm0, %v2023_v60  ;;  %1534 = vmatmul.msk.f32.vlgmr.msra.gmra.mxu3 %vm318_vm0, %v1973_v52  ;;  %v642_v21 = vadd.f32 %v641_v9, %v432_v8 }
  0xa9   : > { %1416 = vmatmul.msk.f32.gmra.mxu0 %vm318_vm0, %v2063_v4  ;;  %v2104_v10 = vpop.f32.mrf.mxu3  ;;  %1448 = vmatmul.msk.f32.gmra.mxu1 %vm318_vm0, %v1474_v61 }
  0xaa   : > { %v898_v11 = vpop.f32.mrf.mxu2 }
  0xab   : > { %v994_v25 = vadd.f32 %v898_v11, %v642_v21 }
  0xad   : > { %v1030_v30 = vmul.f32 %v2139_v26, %v994_v25 }
  0xae   : > { %v435_v12 = vpop.f32.mrf.mxu0  ;;  %v644_v13 = vpop.f32.mrf.mxu1 }
  0xaf   : > { %1527 = vmatmul.msk.f32.gmra.mxu2 %vm318_vm0, %v2033_v62  ;;  %1535 = vmatmul.msk.f32.gmra.mxu3 %vm318_vm0, %v1987_v54  ;;  %v645_v28 = vadd.f32 %v644_v13, %v435_v12  ;;  %v1066_v38 = vadd.f32 %v2146_v31, %v1030_v30 }
  0xb1   : > { %1417 = vmatmul.msk.f32.gmra.mxu0 %vm318_vm0, %v2072_v5  ;;  %1449 = vmatmul.msk.f32.gmra.mxu1 %vm318_vm0, %v1475_v63  ;;  %v1098_v45 = vmax.f32 %v1066_v38, 0.0 }
  0xb2   : > { %v2113_v14 = vpop.f32.mrf.mxu3  ;;  %v901_v15 = vpop.f32.mrf.mxu2 }
  0xb3   : > { %v995_v34 = vadd.f32 %v901_v15, %v645_v28 }
  0xb5   : > { %v1031_v42 = vmul.f32 %v2139_v26, %v995_v34 }
  0xb6   : > { %v438_v16 = vpop.f32.mrf.mxu0  ;;  %v647_v17 = vpop.f32.mrf.mxu1 }
  0xb7   : > { %1528 = vmatmul.msk.f32.gmra.mxu2 %vm318_vm0, %v2043_v0  ;;  %1536 = vmatmul.msk.f32.gmra.mxu3 %vm318_vm0, %v2001_v56  ;;  %v648_v46 = vadd.f32 %v647_v17, %v438_v16  ;;  %v1067_v52 = vadd.f32 %v2146_v31, %v1031_v42 }
  0xb9   : > { %1418 = vmatmul.msk.f32.gmra.mxu0 %vm318_vm0, %v2081_v6  ;;  %1450 = vmatmul.msk.f32.gmra.mxu1 %vm318_vm0, %v1476_v1  ;;  %v1099_v61 = vmax.f32 %v1067_v52, 0.0 }
  0xba   : > { %v2122_v18 = vpop.f32.mrf.mxu3  ;;  %v904_v19 = vpop.f32.mrf.mxu2 }
  0xbb   : > { %v996_v55 = vadd.f32 %v904_v19, %v648_v46  ;;  %v1134_v9 = vsel %vm1130_vm1, %v1099_v61, -inf  ;;  %v1497_v19 = vld [vmem:[%s1887_s8 + $0x138] sm:$0xff] }
  0xbd   : > { %v1032_v63 = vmul.f32 %v2139_v26, %v996_v55 }
  0xbe   : > { %v441_v20 = vpop.f32.mrf.mxu0  ;;  %v650_v22 = vpop.f32.mrf.mxu1 }
  0xbf   : > { %1529 = vmatmul.msk.f32.gmra.mxu2 %vm318_vm0, %v2053_v2  ;;  %1537 = vmatmul.msk.f32.gmra.mxu3 %vm318_vm0, %v2013_v58  ;;  %v651_v1 = vadd.f32 %v650_v22, %v441_v20 }
  0xc1   : > { %1419 = vmatmul.msk.f32.gmra.mxu0 %vm318_vm0, %v2090_v7  ;;  %1451 = vmatmul.msk.f32.gmra.mxu1 %vm318_vm0, %v1477_v3 }
  0xc2   : > { %v2131_v23 = vpop.f32.mrf.mxu3  ;;  %v2133_v24 = vpop.f32.mrf.mxu2 }
  0xc3   : > { %v997_v13 = vadd.f32 %v2133_v24, %v651_v1 }
  0xc5   : > { %v1033_v22 = vmul.f32 %v2139_v26, %v997_v13 }
  0xc6   : > { %v444_v29 = vpop.f32.mrf.mxu0  ;;  %v653_v32 = vpop.f32.mrf.mxu1 }
  0xc7   : > { %1530 = vmatmul.msk.f32.gmra.mxu2 %vm318_vm0, %v1903_v35  ;;  %1538 = vmatmul.msk.f32.gmra.mxu3 %vm318_vm0, %v1494_v27  ;;  %v654_v33 = vadd.f32 %v653_v32, %v444_v29  ;;  %v1069_v32 = vadd.f32 %v2146_v31, %v1033_v22 }
  0xc9   : > { %1420 = vmatmul.msk.f32.gmra.mxu0 %vm318_vm0, %v2023_v60  ;;  %1452 = vmatmul.msk.f32.gmra.mxu1 %vm318_vm0, %v2063_v4 }
  0xca   : > { %v2153_v36 = vpop.f32.mrf.mxu3  ;;  %v910_v37 = vpop.f32.mrf.mxu2 }
  0xcb   : > { %v998_v39 = vadd.f32 %v910_v37, %v654_v33 }
  0xcd   : > { %v1034_v35 = vmul.f32 %v2139_v26, %v998_v39 }
  0xce   : > { %v447_v43 = vpop.f32.mrf.mxu0  ;;  %v656_v49 = vpop.f32.mrf.mxu1 }
  0xcf   : > { %v1070_v47 = vadd.f32 %v2146_v31, %v1034_v35  ;;  %1531 = vmatmul.msk.f32.gmra.mxu2 %vm318_vm0, %v1923_v40  ;;  %1539 = vmatmul.msk.f32.gmra.mxu3 %vm318_vm0, %v1495_v41  ;;  %v657_v50 = vadd.f32 %v656_v49, %v447_v43  ;;  %v1131_v40 = vsel %vm1130_vm1, %v1098_v45, -inf  ;;  %v1101_v41 = vmax.f32 %v1069_v32, 0.0 }
  0xd1   : > { %v1102_v51 = vmax.f32 %v1070_v47, 0.0  ;;  %1421 = vmatmul.msk.f32.gmra.mxu0 %vm318_vm0, %v2033_v62  ;;  %1453 = vmatmul.msk.f32.gmra.mxu1 %vm318_vm0, %v2072_v5  ;;  %v1140_v47 = vsel %vm1130_vm1, %v1101_v41, -inf }
  0xd2   : > { %v2169_v53 = vpop.f32.mrf.mxu3  ;;  %v913_v54 = vpop.f32.mrf.mxu2 }
  0xd3   : > { %v1132_v56 = vsel %vm1130_vm1, %v1102_v51, -inf  ;;  %v999_v57 = vadd.f32 %v913_v54, %v657_v50 }
  0xd4   : > { %v1133_v58 = vmax.f32 %v1131_v40, %v1132_v56 }
  0xd5   : > { %v1035_v60 = vmul.f32 %v2139_v26, %v999_v57 }
  0xd6   : > { %1179 = vst.msk [vmem:[#allocation2] sm:$0xff] %vm1130_vm1, %v1133_v58  ;;  %v450_v62 = vpop.f32.mrf.mxu0  ;;  %v659_v4 = vpop.f32.mrf.mxu1 }
  0xd7   : > { %v1071_v3 = vadd.f32 %v2146_v31, %v1035_v60  ;;  %1532 = vmatmul.msk.f32.gmra.mxu2 %vm318_vm0, %v1941_v44  ;;  %1540 = vmatmul.msk.f32.gmra.mxu3 %vm318_vm0, %v1496_v59  ;;  %v660_v5 = vadd.f32 %v659_v4, %v450_v62  ;;  %v1068_v44 = vadd.f32 %v2146_v31, %v1032_v63 }
  0xd9   : > { %v1103_v8 = vmax.f32 %v1071_v3, 0.0  ;;  %1422 = vmatmul.msk.f32.gmra.mxu0 %vm318_vm0, %v2043_v0  ;;  %1454 = vmatmul.msk.f32.gmra.mxu1 %vm318_vm0, %v2081_v6  ;;  %v1100_v21 = vmax.f32 %v1068_v44, 0.0 }
  0xda   : > { %v2186_v11 = vpop.f32.mrf.mxu3  ;;  %v916_v12 = vpop.f32.mrf.mxu2 }
  0xdb   : > { %v1135_v15 = vsel %vm1130_vm1, %v1103_v8, -inf  ;;  %v1000_v16 = vadd.f32 %v916_v12, %v660_v5  ;;  %v1137_v30 = vsel %vm1130_vm1, %v1100_v21, -inf }
  0xdc   : > { %v1136_v17 = vmax.f32 %v1134_v9, %v1135_v15 }
  0xdd   : > { %v1036_v0 = vmul.f32 %v2139_v26, %v1000_v16 }
  0xde   : > { %1180 = vst.msk [vmem:[#allocation2 + $0x8] sm:$0xff] %vm1130_vm1, %v1136_v17  ;;  %v453_v20 = vpop.f32.mrf.mxu0  ;;  %v662_v24 = vpop.f32.mrf.mxu1 }
  0xdf   : > { %v1072_v6 = vadd.f32 %v2146_v31, %v1036_v0  ;;  %1533 = vmatmul.msk.f32.gmra.mxu2 %vm318_vm0, %v1957_v48  ;;  %1541 = vmatmul.msk.f32.gmra.mxu3 %vm318_vm0, %v1497_v19  ;;  %v663_v25 = vadd.f32 %v662_v24, %v453_v20 }
  0xe1   : > { %v1104_v27 = vmax.f32 %v1072_v6, 0.0  ;;  %1423 = vmatmul.msk.f32.gmra.mxu0 %vm318_vm0, %v2053_v2  ;;  %1455 = vmatmul.msk.f32.gmra.mxu1 %vm318_vm0, %v2090_v7 }
  0xe2   : > { %v2204_v28 = vpop.f32.mrf.mxu3  ;;  %v919_v29 = vpop.f32.mrf.mxu2 }
  0xe3   : > { %v1138_v48 = vsel %vm1130_vm1, %v1104_v27, -inf  ;;  %v1001_v33 = vadd.f32 %v919_v29, %v663_v25 }
  0xe4   : > { %v1139_v34 = vmax.f32 %v1137_v30, %v1138_v48 }
  0xe5   : > { %v1195_v2 = vld [vmem:[#allocation2] ss:$2 sm:$0xff]  ;;  %v1211_v37 = vld [vmem:[#allocation2 + $0x1] ss:$2 sm:$0xff]  ;;  %v1037_v38 = vmul.f32 %v2139_v26, %v1001_v33 }
  0xe6   : > { %v1226_v39 = vmax.f32 %v1195_v2, %v1211_v37  ;;  %1181 = vst.msk [vmem:[#allocation2 + $0x10] sm:$0xff] %vm1130_vm1, %v1139_v34  ;;  %v456_v7 = vpop.f32.mrf.mxu0  ;;  %v665_v42 = vpop.f32.mrf.mxu1 }
  0xe7   : > { %v1073_v35 = vadd.f32 %v2146_v31, %v1037_v38  ;;  %v666_v3 = vadd.f32 %v665_v42, %v456_v7 }
  0xe8   : > { %1234 = vst.msk [vmem:[%s2214_s7] sm:$0xff] %vm1130_vm1, %v1226_v39 }
  0xe9   : > { %v1105_v43 = vmax.f32 %v1073_v35, 0.0 }
  0xea   : > { %v713_v45 = vpop.f32.mrf.mxu3  ;;  %v922_v46 = vpop.f32.mrf.mxu2 }
  0xeb   : > { %v1141_v49 = vsel %vm1130_vm1, %v1105_v43, -inf  ;;  %v2224_v50 = vadd.f32 %v713_v45, %v2104_v10  ;;  %v1002_v9 = vadd.f32 %v922_v46, %v666_v3 }
  0xec   : > { %v1142_v51 = vmax.f32 %v1140_v47, %v1141_v49 }
  0xed   : > { %v1038_v13 = vmul.f32 %v2139_v26, %v1002_v9 }
  0xee   : > { %1182 = vst.msk [vmem:[#allocation2 + $0x18] sm:$0xff] %vm1130_vm1, %v1142_v51  ;;  %v459_v52 = vpop.f32.mrf.mxu0  ;;  %v668_v54 = vpop.f32.mrf.mxu1 }
  0xef   : > { %v669_v12 = vadd.f32 %v668_v54, %v459_v52  ;;  %v1074_v0 = vadd.f32 %v2146_v31, %v1038_v13 }
  0xf2   : > { %v716_v40 = vpop.f32.mrf.mxu3  ;;  %v925_v55 = vpop.f32.mrf.mxu2 }
  0xf3   : > { %v2228_v56 = vadd.f32 %v716_v40, %v2113_v14  ;;  %v1003_v17 = vadd.f32 %v925_v55, %v669_v12 }
  0xf5   : > { %v1197_v57 = vld [vmem:[#allocation2 + $0x10] ss:$2 sm:$0xff]  ;;  %v1213_v58 = vld [vmem:[#allocation2 + $0x11] ss:$2 sm:$0xff]  ;;  %v1039_v22 = vmul.f32 %v2139_v26, %v1003_v17 }
  0xf6   : > { %v1227_v59 = vmax.f32 %v1197_v57, %v1213_v58  ;;  %v462_v60 = vpop.f32.mrf.mxu0  ;;  %v671_v61 = vpop.f32.mrf.mxu1 }
  0xf7   : > { %v672_v24 = vadd.f32 %v671_v61, %v462_v60  ;;  %v1075_v32 = vadd.f32 %v2146_v31, %v1039_v22 }
  0xf8   : > { %1235 = vst.msk [vmem:[%s2214_s7 + $0x8] sm:$0xff] %vm1130_vm1, %v1227_v59 }
  0xf9   : > { %v1107_v41 = vmax.f32 %v1075_v32, 0.0 }
  0xfa   : > { %v719_v62 = vpop.f32.mrf.mxu3  ;;  %v928_v10 = vpop.f32.mrf.mxu2 }
  0xfb   : > { %v2233_v63 = vadd.f32 %v719_v62, %v2122_v18  ;;  %v1004_v2 = vadd.f32 %v928_v10, %v672_v24  ;;  %v1146_v51 = vsel %vm1130_vm1, %v1107_v41, -inf }
  0xfd   : > { %v1040_v42 = vmul.f32 %v2139_v26, %v1004_v2 }
  0xfe   : > { %v465_v1 = vpop.f32.mrf.mxu0  ;;  %v674_v4 = vpop.f32.mrf.mxu1 }
  0xff   : > { %v675_v43 = vadd.f32 %v674_v4, %v465_v1  ;;  %v1076_v40 = vadd.f32 %v2146_v31, %v1040_v42 }
 0x101   : > { %v1108_v62 = vmax.f32 %v1076_v40, 0.0 }
 0x102   : > { %v722_v5 = vpop.f32.mrf.mxu3  ;;  %v931_v8 = vpop.f32.mrf.mxu2 }
 0x103   : > { %v2236_v14 = vadd.f32 %v722_v5, %v2131_v23  ;;  %v1106_v23 = vmax.f32 %v1074_v0, 0.0  ;;  %v1005_v55 = vadd.f32 %v931_v8, %v675_v43  ;;  %v1149_v12 = vsel %vm1130_vm1, %v1108_v62, -inf }
 0x105   : > { %v1143_v34 = vsel %vm1130_vm1, %v1106_v23, -inf  ;;  %v1041_v10 = vmul.f32 %v2139_v26, %v1005_v55 }
 0x106   : > { %v468_v44 = vpop.f32.mrf.mxu0  ;;  %v677_v15 = vpop.f32.mrf.mxu1 }
 0x107   : > { %v678_v16 = vadd.f32 %v677_v15, %v468_v44  ;;  %v1077_v44 = vadd.f32 %v2146_v31, %v1041_v10 }
 0x109   : > { %v1109_v22 = vmax.f32 %v1077_v44, 0.0 }
 0x10a   : > { %v2239_v19 = vpop.f32.mrf.mxu3  ;;  %v934_v18 = vpop.f32.mrf.mxu2 }
 0x10b   : > { %v1006_v20 = vadd.f32 %v934_v18, %v678_v16  ;;  %v726_v62 = vadd.f32 %v2239_v19, %v2153_v36 }
 0x10d   : > { %v1042_v21 = vmul.f32 %v2139_v26, %v1006_v20 }
 0x10e   : > { %v471_v6 = vpop.f32.mrf.mxu0  ;;  %v680_v27 = vpop.f32.mrf.mxu1 }
 0x10f   : > { %v1078_v25 = vadd.f32 %v2146_v31, %v1042_v21  ;;  %v681_v29 = vadd.f32 %v680_v27, %v471_v6 }
 0x111   : > { %v1110_v30 = vmax.f32 %v1078_v25, 0.0 }
 0x112   : > { %v2246_v48 = vpop.f32.mrf.mxu3  ;;  %v937_v33 = vpop.f32.mrf.mxu2 }
 0x113   : > { %v1144_v37 = vsel %vm1130_vm1, %v1110_v30, -inf  ;;  %v1007_v38 = vadd.f32 %v937_v33, %v681_v29  ;;  %v1152_v29 = vsel %vm1130_vm1, %v1109_v22, -inf }
 0x114   : > { %v1145_v39 = vmax.f32 %v1143_v34, %v1144_v37 }
 0x115   : > { %v1043_v7 = vmul.f32 %v2139_v26, %v1007_v38 }
 0x116   : > { %1183 = vst.msk [vmem:[#allocation2 + $0x20] sm:$0xff] %vm1130_vm1, %v1145_v39  ;;  %v474_v35 = vpop.f32.mrf.mxu0  ;;  %v683_v46 = vpop.f32.mrf.mxu1 }
 0x117   : > { %v1079_v45 = vadd.f32 %v2146_v31, %v1043_v7  ;;  %v684_v47 = vadd.f32 %v683_v46, %v474_v35 }
 0x119   : > { %v1111_v49 = vmax.f32 %v1079_v45, 0.0 }
 0x11a   : > { %v2255_v52 = vpop.f32.mrf.mxu3  ;;  %v940_v54 = vpop.f32.mrf.mxu2 }
 0x11b   : > { %v1147_v57 = vsel %vm1130_vm1, %v1111_v49, -inf  ;;  %v1008_v58 = vadd.f32 %v940_v54, %v684_v47 }
 0x11c   : > { %v1148_v59 = vmax.f32 %v1146_v51, %v1147_v57 }
 0x11d   : > { %v1044_v60 = vmul.f32 %v2139_v26, %v1008_v58 }
 0x11e   : > { %1184 = vst.msk [vmem:[#allocation2 + $0x28] sm:$0xff] %vm1130_vm1, %v1148_v59  ;;  %v477_v61 = vpop.f32.mrf.mxu0  ;;  %v686_v3 = vpop.f32.mrf.mxu1 }
 0x11f   : > { %v1080_v1 = vadd.f32 %v2146_v31, %v1044_v60  ;;  %v687_v4 = vadd.f32 %v686_v3, %v477_v61 }
 0x121   : > { %v1112_v5 = vmax.f32 %v1080_v1, 0.0 }
 0x122   : > { %v2263_v9 = vpop.f32.mrf.mxu3  ;;  %v943_v8 = vpop.f32.mrf.mxu2 }
 0x123   : > { %v1150_v13 = vsel %vm1130_vm1, %v1112_v5, -inf  ;;  %v1009_v15 = vadd.f32 %v943_v8, %v687_v4 }
 0x124   : > { %v1151_v16 = vmax.f32 %v1149_v12, %v1150_v13 }
 0x125   : > { %v1199_v17 = vld [vmem:[#allocation2 + $0x20] ss:$2 sm:$0xff]  ;;  %v1215_v18 = vld [vmem:[#allocation2 + $0x21] ss:$2 sm:$0xff]  ;;  %v1045_v0 = vmul.f32 %v2139_v26, %v1009_v15 }
 0x126   : > { %v1228_v20 = vmax.f32 %v1199_v17, %v1215_v18  ;;  %1185 = vst.msk [vmem:[#allocation2 + $0x30] sm:$0xff] %vm1130_vm1, %v1151_v16  ;;  %v480_v21 = vpop.f32.mrf.mxu0  ;;  %v689_v23 = vpop.f32.mrf.mxu1 }
 0x127   : > { %v1081_v6 = vadd.f32 %v2146_v31, %v1045_v0  ;;  %v690_v45 = vadd.f32 %v689_v23, %v480_v21  ;;  %v729_v21 = vadd.f32 %v2246_v48, %v2169_v53 }
 0x128   : > { %1236 = vst.msk [vmem:[%s2214_s7 + $0x10] sm:$0xff] %vm1130_vm1, %v1228_v20 }
 0x129   : > { %v1113_v24 = vmax.f32 %v1081_v6, 0.0 }
 0x12a   : > { %v946_v25 = vpop.f32.mrf.mxu2  ;;  %v970_v27 = vpop.f32.mrf.mxu3 }
 0x12b   : > { %v1153_v30 = vsel %vm1130_vm1, %v1113_v24, -inf  ;;  %v1010_v49 = vadd.f32 %v946_v25, %v690_v45  ;;  %v1018_v51 = vadd.f32 %v970_v27, %v2224_v50 }
 0x12c   : > { %v1154_v32 = vmax.f32 %v1152_v29, %v1153_v30 }
 0x12d   : > { %v1046_v57 = vmul.f32 %v2139_v26, %v1010_v49  ;;  %v1054_v58 = vmul.f32 %v2139_v26, %v1018_v51 }
 0x12e   : > { %1186 = vst.msk [vmem:[#allocation2 + $0x38] sm:$0xff] %vm1130_vm1, %v1154_v32  ;;  %v483_v33 = vpop.f32.mrf.mxu0  ;;  %v692_v34 = vpop.f32.mrf.mxu1 }
 0x12f   : > { %v693_v55 = vadd.f32 %v692_v34, %v483_v33  ;;  %v1082_v50 = vadd.f32 %v2146_v31, %v1046_v57  ;;  %v1090_v3 = vadd.f32 %v2146_v31, %v1054_v58  ;;  %v732_v58 = vadd.f32 %v2255_v52, %v2186_v11 }
 0x131   : > { %v1114_v36 = vmax.f32 %v1082_v50, 0.0  ;;  %v1122_v19 = vmax.f32 %v1090_v3, 0.0 }
 0x132   : > { %v949_v2 = vpop.f32.mrf.mxu2  ;;  %v973_v37 = vpop.f32.mrf.mxu3 }
 0x133   : > { %v1011_v10 = vadd.f32 %v949_v2, %v693_v55  ;;  %v1019_v1 = vadd.f32 %v973_v37, %v2228_v56  ;;  %v1155_v27 = vsel %vm1130_vm1, %v1114_v36, -inf  ;;  %v1167_v29 = vsel %vm1130_vm1, %v1122_v19, -inf }
 0x135   : > { %v1201_v38 = vld [vmem:[#allocation2 + $0x30] ss:$2 sm:$0xff]  ;;  %v1217_v39 = vld [vmem:[#allocation2 + $0x31] ss:$2 sm:$0xff]  ;;  %v1047_v44 = vmul.f32 %v2139_v26, %v1011_v10  ;;  %v1055_v13 = vmul.f32 %v2139_v26, %v1019_v1 }
 0x136   : > { %v1229_v7 = vmax.f32 %v1201_v38, %v1217_v39  ;;  %v486_v41 = vpop.f32.mrf.mxu0  ;;  %v695_v35 = vpop.f32.mrf.mxu1 }
 0x137   : > { %v696_v17 = vadd.f32 %v695_v35, %v486_v41  ;;  %v1083_v6 = vadd.f32 %v2146_v31, %v1047_v44  ;;  %v1091_v23 = vadd.f32 %v2146_v31, %v1055_v13 }
 0x138   : > { %1237 = vst.msk [vmem:[%s2214_s7 + $0x18] sm:$0xff] %vm1130_vm1, %v1229_v7 }
 0x139   : > { %v1115_v7 = vmax.f32 %v1083_v6, 0.0  ;;  %v1123_v41 = vmax.f32 %v1091_v23, 0.0 }
 0x13a   : > { %v952_v42 = vpop.f32.mrf.mxu2  ;;  %v976_v43 = vpop.f32.mrf.mxu3 }
 0x13b   : > { %v1012_v30 = vadd.f32 %v952_v42, %v696_v17  ;;  %v1020_v32 = vadd.f32 %v976_v43, %v2233_v63 }
 0x13d   : > { %v1048_v42 = vmul.f32 %v2139_v26, %v1012_v30  ;;  %v1056_v63 = vmul.f32 %v2139_v26, %v1020_v32 }
 0x13e   : > { %v489_v46 = vpop.f32.mrf.mxu0  ;;  %v698_v47 = vpop.f32.mrf.mxu1 }
 0x13f   : > { %v699_v43 = vadd.f32 %v698_v47, %v489_v46  ;;  %v1084_v47 = vadd.f32 %v2146_v31, %v1048_v42  ;;  %v1092_v10 = vadd.f32 %v2146_v31, %v1056_v63 }
 0x141   : > { %v1124_v36 = vmax.f32 %v1092_v10, 0.0 }
 0x142   : > { %v2279_v54 = vpop.f32.mrf.mxu2  ;;  %v2281_v40 = vpop.f32.mrf.mxu3 }
 0x143   : > { %v1013_v1 = vadd.f32 %v2279_v54, %v699_v43  ;;  %v1021_v50 = vadd.f32 %v2281_v40, %v2236_v14  ;;  %v1173_v6 = vsel %vm1130_vm1, %v1124_v36, -inf }
 0x145   : > { %v1049_v54 = vmul.f32 %v2139_v26, %v1013_v1  ;;  %v1057_v14 = vmul.f32 %v2139_v26, %v1021_v50 }
 0x146   : > { %v492_v59 = vpop.f32.mrf.mxu0  ;;  %v701_v60 = vpop.f32.mrf.mxu1 }
 0x147   : > { %v702_v61 = vadd.f32 %v701_v60, %v492_v59  ;;  %v1158_v60 = vsel %vm1130_vm1, %v1115_v7, -inf  ;;  %v1085_v23 = vadd.f32 %v2146_v31, %v1049_v54 }
 0x14a   : > { %v958_v4 = vpop.f32.mrf.mxu2  ;;  %v982_v5 = vpop.f32.mrf.mxu3 }
 0x14b   : > { %v1014_v8 = vadd.f32 %v958_v4, %v702_v61  ;;  %v1022_v12 = vadd.f32 %v982_v5, %v726_v62  ;;  %v1170_v61 = vsel %vm1130_vm1, %v1123_v41, -inf }
 0x14d   : > { %v1050_v15 = vmul.f32 %v2139_v26, %v1014_v8  ;;  %v1058_v16 = vmul.f32 %v2139_v26, %v1022_v12 }
 0x14e   : > { %v495_v56 = vpop.f32.mrf.mxu0  ;;  %v704_v20 = vpop.f32.mrf.mxu1 }
 0x14f   : > { %v1086_v18 = vadd.f32 %v2146_v31, %v1050_v15  ;;  %v1094_v0 = vadd.f32 %v2146_v31, %v1058_v16  ;;  %v705_v22 = vadd.f32 %v704_v20, %v495_v56  ;;  %v1116_v16 = vmax.f32 %v1084_v47, 0.0 }
 0x151   : > { %v1118_v24 = vmax.f32 %v1086_v18, 0.0  ;;  %v1126_v25 = vmax.f32 %v1094_v0, 0.0  ;;  %v735_v0 = vadd.f32 %v2263_v9, %v2204_v28 }
 0x152   : > { %v961_v33 = vpop.f32.mrf.mxu2  ;;  %v985_v34 = vpop.f32.mrf.mxu3 }
 0x153   : > { %v1156_v2 = vsel %vm1130_vm1, %v1118_v24, -inf  ;;  %v1168_v53 = vsel %vm1130_vm1, %v1126_v25, -inf  ;;  %v1015_v48 = vadd.f32 %v961_v33, %v705_v22  ;;  %v1023_v37 = vadd.f32 %v985_v34, %v729_v21 }
 0x154   : > { %v1157_v38 = vmax.f32 %v1155_v27, %v1156_v2  ;;  %v1169_v39 = vmax.f32 %v1167_v29, %v1168_v53  ;;  %v1161_v22 = vsel %vm1130_vm1, %v1116_v16, -inf  ;;  %v1093_v24 = vadd.f32 %v2146_v31, %v1057_v14 }
 0x155   : > { %v1051_v35 = vmul.f32 %v2139_v26, %v1015_v48  ;;  %v1059_v45 = vmul.f32 %v2139_v26, %v1023_v37  ;;  %v1117_v37 = vmax.f32 %v1085_v23, 0.0 }
 0x156   : > { %1187 = vst.msk [vmem:[#allocation2 + $0x40] sm:$0xff] %vm1130_vm1, %v1157_v38  ;;  %v498_v49 = vpop.f32.mrf.mxu0  ;;  %v707_v57 = vpop.f32.mrf.mxu1  ;;  %v1125_v41 = vmax.f32 %v1093_v24, 0.0 }
 0x157   : > { %1191 = vst.msk [vmem:[#allocation2 + $0x60] sm:$0xff] %vm1130_vm1, %v1169_v39  ;;  %v1087_v51 = vadd.f32 %v2146_v31, %v1051_v35  ;;  %v1095_v55 = vadd.f32 %v2146_v31, %v1059_v45  ;;  %v708_v59 = vadd.f32 %v707_v57, %v498_v49  ;;  %v1164_v43 = vsel %vm1130_vm1, %v1117_v37, -inf }
 0x158   : > { %v1176_v49 = vsel %vm1130_vm1, %v1125_v41, -inf }
 0x159   : > { %v1119_v62 = vmax.f32 %v1087_v51, 0.0  ;;  %v1127_v46 = vmax.f32 %v1095_v55, 0.0 }
 0x15a   : > { %v964_v3 = vpop.f32.mrf.mxu2  ;;  %v988_v4 = vpop.f32.mrf.mxu3 }
 0x15b   : > { %v1159_v11 = vsel %vm1130_vm1, %v1119_v62, -inf  ;;  %v1171_v52 = vsel %vm1130_vm1, %v1127_v46, -inf  ;;  %v1016_v5 = vadd.f32 %v964_v3, %v708_v59  ;;  %v1024_v8 = vadd.f32 %v988_v4, %v732_v58 }
 0x15c   : > { %v1160_v12 = vmax.f32 %v1158_v60, %v1159_v11  ;;  %v1172_v44 = vmax.f32 %v1170_v61, %v1171_v52 }
 0x15d   : > { %v1052_v13 = vmul.f32 %v2139_v26, %v1016_v5  ;;  %v1060_v15 = vmul.f32 %v2139_v26, %v1024_v8 }
 0x15e   : > { %1188 = vst.msk [vmem:[#allocation2 + $0x48] sm:$0xff] %vm1130_vm1, %v1160_v12  ;;  %v501_v40 = vpop.f32.mrf.mxu0  ;;  %v710_v56 = vpop.f32.mrf.mxu1 }
 0x15f   : > { %1192 = vst.msk [vmem:[#allocation2 + $0x68] sm:$0xff] %vm1130_vm1, %v1172_v44  ;;  %v1088_v19 = vadd.f32 %v2146_v31, %v1052_v13  ;;  %v1096_v17 = vadd.f32 %v2146_v31, %v1060_v15  ;;  %v711_v18 = vadd.f32 %v710_v56, %v501_v40 }
 0x161   : > { %v1120_v20 = vmax.f32 %v1088_v19, 0.0  ;;  %v1128_v21 = vmax.f32 %v1096_v17, 0.0 }
 0x162   : > { %v967_v25 = vpop.f32.mrf.mxu2  ;;  %v991_v27 = vpop.f32.mrf.mxu3 }
 0x163   : > { %v1162_v29 = vsel %vm1130_vm1, %v1120_v20, -inf  ;;  %v1174_v30 = vsel %vm1130_vm1, %v1128_v21, -inf  ;;  %v1017_v32 = vadd.f32 %v967_v25, %v711_v18  ;;  %v1025_v33 = vadd.f32 %v991_v27, %v735_v0 }
 0x164   : > { %v1163_v34 = vmax.f32 %v1161_v22, %v1162_v29  ;;  %v1175_v28 = vmax.f32 %v1173_v6, %v1174_v30 }
 0x165   : > { %v1203_v9 = vld [vmem:[#allocation2 + $0x40] ss:$2 sm:$0xff]  ;;  %v1219_v2 = vld [vmem:[#allocation2 + $0x41] ss:$2 sm:$0xff]  ;;  %v1053_v53 = vmul.f32 %v2139_v26, %v1017_v32  ;;  %v1061_v48 = vmul.f32 %v2139_v26, %v1025_v33 }
 0x166   : > { %v1230_v38 = vmax.f32 %v1203_v9, %v1219_v2  ;;  %v1207_v39 = vld [vmem:[#allocation2 + $0x60] ss:$2 sm:$0xff]  ;;  %v1223_v7 = vld [vmem:[#allocation2 + $0x61] ss:$2 sm:$0xff]  ;;  %1189 = vst.msk [vmem:[#allocation2 + $0x50] sm:$0xff] %vm1130_vm1, %v1163_v34 }
 0x167   : > { %v1232_v35 = vmax.f32 %v1207_v39, %v1223_v7  ;;  %1193 = vst.msk [vmem:[#allocation2 + $0x70] sm:$0xff] %vm1130_vm1, %v1175_v28  ;;  %v1089_v45 = vadd.f32 %v2146_v31, %v1053_v53  ;;  %v1097_v42 = vadd.f32 %v2146_v31, %v1061_v48 }
 0x168   : > { %1238 = vst.msk [vmem:[%s2214_s7 + $0x20] sm:$0xff] %vm1130_vm1, %v1230_v38 }
 0x169   : > { %1240 = vst.msk [vmem:[%s2214_s7 + $0x30] sm:$0xff] %vm1130_vm1, %v1232_v35  ;;  %v1121_v63 = vmax.f32 %v1089_v45, 0.0  ;;  %v1129_v26 = vmax.f32 %v1097_v42, 0.0 }
 0x16b   : > { %v1165_v51 = vsel %vm1130_vm1, %v1121_v63, -inf  ;;  %v1177_v55 = vsel %vm1130_vm1, %v1129_v26, -inf }
 0x16c   : > { %v1166_v57 = vmax.f32 %v1164_v43, %v1165_v51  ;;  %v1178_v58 = vmax.f32 %v1176_v49, %v1177_v55 }
 0x16e   : > { %1190 = vst.msk [vmem:[#allocation2 + $0x58] sm:$0xff] %vm1130_vm1, %v1166_v57 }
 0x16f   : > { %1194 = vst.msk [vmem:[#allocation2 + $0x78] sm:$0xff] %vm1130_vm1, %v1178_v58 }
 0x175   : > { %v1205_v31 = vld [vmem:[#allocation2 + $0x50] ss:$2 sm:$0xff]  ;;  %v1221_v59 = vld [vmem:[#allocation2 + $0x51] ss:$2 sm:$0xff] }
 0x176   : > { %v1231_v60 = vmax.f32 %v1205_v31, %v1221_v59  ;;  %v1209_v61 = vld [vmem:[#allocation2 + $0x70] ss:$2 sm:$0xff]  ;;  %v1225_v62 = vld [vmem:[#allocation2 + $0x71] ss:$2 sm:$0xff] }
 0x177   : > { %v1233_v46 = vmax.f32 %v1209_v61, %v1225_v62 }
 0x178   : > { %1239 = vst.msk [vmem:[%s2214_s7 + $0x28] sm:$0xff] %vm1130_vm1, %v1231_v60 }
 0x179   : > { %1241 = vst.msk [vmem:[%s2214_s7 + $0x38] sm:$0xff] %vm1130_vm1, %v1233_v46 }
 0x17a PF: > { %s14_s19 = sadd.s32 1, %s1664_s19   ;;  %s2380_s15 = smov %s1656_s17 }
 0x17b   : > { %p11_p7 = scmp.ge.s32.totalorder %s14_s19, 6   ;;  %s2381_s16 = smov %s1660_s18 }
 0x17c   : > { %s2382_s17 = smov %s2385_s20  ;;  %s2383_s18 = smov %s2389_s21 }
 0x17d   :  { %13 = sbr.rel (!%p11_p7) target bundleno = 3 (0x3), region = 86 }

// kernel: cnn_forward.7
= control target key start
LH: loop header
LB: loop body
LE: loop exit
PB: predicated region body
PF: predicated region fallthrough
CT: control target
= control target key end

     0   :  { %s1403_s15 = smov 0   ;;  %s1405_s16 = smov 0   ;;  %s2070_s0 = inlined_call_operand.vmem [shape: f32[2,10,16,192], index: 0, kind: input, shape index: {}]   ;;  %s2071_s1 = inlined_call_operand.vmem [shape: f32[3,192,128], index: 1, kind: input, shape index: {}]   ;;  %s2072_s2 = inlined_call_operand.vmem [shape: f32[1,128], index: 2, kind: input, shape index: {}]   ;;  %s2073_s3 = inlined_call_operand.vmem [shape: f32[1,128], index: 3, kind: input, shape index: {}]   ;;  %s2074_s4 = inlined_call_operand.vmem [shape: f32[2,4,8,128], index: 4, kind: output, shape index: {}]  }
   0x1   :  { %s1407_s17 = smov 0  }
   0x2 LB: > { %s26_s18 = sadd.s32 1, %s1372_s16  ;;  %p1144_p0 = scmp.ge.s32.totalorder %s1376_s17, 1  ;;  %s1376_s17 = sphi %s1407_s17, %s14_s17   ;;  %s1372_s16 = sphi %s1405_s16, %s2082_s16   ;;  %s1368_s15 = sphi %s1403_s15, %s2081_s15  }
   0x3   : > { %p28_p1 = scmp.ge.s32.totalorder %s26_s18, 2  ;;  %p176_p2 = scmp.lt.s32.totalorder %s1376_s17, 3 }
   0x5   : > { %s2084_s18 = smov (%p28_p1, %s26_s18), 0  ;;  %p177_p3 = pnand %p1144_p0, %p176_p2 }
   0x7   : > { %180 = sbr.rel (%p177_p3) target bundleno = 377 (0x179), region = 36 }
   0xc   : > { %v1195_v0 = vld [vmem:[%s2071_s1 + $0x138] sm:$0xff]  ;;  %p206_p4 = scmp.lt.s32.totalorder %s1368_s15, 1  ;;  %v1194_v3 = vld [vmem:[%s2071_s1 + $0x130] sm:$0xff]  ;;  %v1193_v6 = vld [vmem:[%s2071_s1 + $0x128] sm:$0xff]  ;;  %vm342_vm0 = vcmask 523264  }
   0xd   : > { %v272_v1 = vld [vmem:[%s2071_s1 + $0x78] sm:$0xff]  ;;  %391 = vmatpush.msra.mxu0 %v1195_v0  ;;  %v271_v4 = vld [vmem:[%s2071_s1 + $0x70] sm:$0xff]  ;;  %v270_v7 = vld [vmem:[%s2071_s1 + $0x68] sm:$0xff] }
   0xe   : > { %v1430_v2 = vld [vmem:[%s2071_s1 + $0xb8] sm:$0xff]  ;;  %569 = vmatpush.msra.mxu2 %v272_v1  ;;  %v1441_v5 = vld [vmem:[%s2071_s1 + $0xb0] sm:$0xff]  ;;  %v1453_v8 = vld [vmem:[%s2071_s1 + $0xa8] sm:$0xff]  ;;  %s2086_s15 = smov (!%p206_p4, %s1368_s15), 1 }
   0xf   : > { %1319 = vmatpush.msra.mxu3 %v1430_v2  ;;  %392 = vmatpush.msra.mxu0 %v1194_v3  ;;  %v1458_v9 = vld [vmem:[%s2071_s1 + $0x178] sm:$0xff]  ;;  %v1192_v10 = vld [vmem:[%s2071_s1 + $0x120] sm:$0xff]  ;;  %v1473_v12 = vld [vmem:[%s2071_s1 + $0x170] sm:$0xff]  ;;  %s1327_s9 = smul.u32 320, %s2086_s15  ;;  %s1310_s20 = sshll.u32 %s2086_s15, 5 }
  0x10   : > { %570 = vmatpush.msra.mxu2 %v271_v4  ;;  %1311 = vmatpush.msra.mxu1 %v1458_v9  ;;  %v269_v11 = vld [vmem:[%s2071_s1 + $0x60] sm:$0xff]  ;;  %v1191_v14 = vld [vmem:[%s2071_s1 + $0x118] sm:$0xff]  ;;  %v1491_v16 = vld [vmem:[%s2071_s1 + $0x168] sm:$0xff]  ;;  %s2025_s23 = scalar_lea.vmem %s2074_s4, %s1310_s20 }
  0x11   : > { %1320 = vmatpush.msra.mxu3 %v1441_v5  ;;  %393 = vmatpush.msra.mxu0 %v1193_v6  ;;  %v1478_v13 = vld [vmem:[%s2071_s1 + $0xa0] sm:$0xff]  ;;  %v268_v15 = vld [vmem:[%s2071_s1 + $0x58] sm:$0xff]  ;;  %v1190_v19 = vld [vmem:[%s2071_s1 + $0x110] sm:$0xff]  ;;  %s1538_s30 = scalar_lea.vmem %s2070_s0, %s1327_s9 }
  0x12   : > { %571 = vmatpush.msra.mxu2 %v270_v7  ;;  %1312 = vmatpush.msra.mxu1 %v1473_v12  ;;  %v1496_v17 = vld [vmem:[%s2071_s1 + $0x98] sm:$0xff]  ;;  %v1501_v18 = vld [vmem:[%s2071_s1 + $0x160] sm:$0xff]  ;;  %v267_v20 = vld [vmem:[%s2071_s1 + $0x50] sm:$0xff] }
  0x13   : > { %1321 = vmatpush.msra.mxu3 %v1453_v8  ;;  %394 = vmatpush.msra.mxu0 %v1192_v10  ;;  %v1515_v21 = vld [vmem:[%s2071_s1 + $0x90] sm:$0xff]  ;;  %v1520_v22 = vld [vmem:[%s2071_s1 + $0x158] sm:$0xff]  ;;  %v1189_v23 = vld [vmem:[%s2071_s1 + $0x108] sm:$0xff] }
  0x14   : > { %572 = vmatpush.msra.mxu2 %v269_v11  ;;  %1313 = vmatpush.msra.mxu1 %v1491_v16  ;;  %v266_v24 = vld [vmem:[%s2071_s1 + $0x48] sm:$0xff]  ;;  %v1543_v26 = vld [vmem:[%s2071_s1 + $0x150] sm:$0xff]  ;;  %v1188_v27 = vld [vmem:[%s2071_s1 + $0x100] sm:$0xff] }
  0x15   : > { %1322 = vmatpush.msra.mxu3 %v1478_v13  ;;  %395 = vmatpush.msra.mxu0 %v1191_v14  ;;  %v1533_v25 = vld [vmem:[%s2071_s1 + $0x88] sm:$0xff]  ;;  %v265_v28 = vld [vmem:[%s2071_s1 + $0x40] sm:$0xff]  ;;  %v1565_v31 = vld [vmem:[%s1538_s30 + $0x78] sm:$0xff] }
  0x16   : > { %573 = vmatpush.msra.mxu2 %v268_v15  ;;  %1314 = vmatpush.msra.mxu1 %v1501_v18  ;;  %v1556_v29 = vld [vmem:[%s2071_s1 + $0x80] sm:$0xff]  ;;  %v1561_v30 = vld [vmem:[%s2071_s1 + $0x148] sm:$0xff]  ;;  %v1187_v32 = vld [vmem:[%s2071_s1 + $0xf8] sm:$0xff] }
  0x17   : > { %1323 = vmatpush.msra.mxu3 %v1496_v17  ;;  %396 = vmatpush.msra.mxu0 %v1190_v19  ;;  %v1291_v33 = vld [vmem:[%s2071_s1 + $0x238] sm:$0xff]  ;;  %v1186_v35 = vld [vmem:[%s2071_s1 + $0xf0] sm:$0xff]  ;;  %v1585_v36 = vld [vmem:[%s2071_s1 + $0x140] sm:$0xff] }
  0x18   : > { %574 = vmatpush.msra.mxu2 %v267_v20  ;;  %1315 = vmatpush.msra.mxu1 %v1520_v22  ;;  %v264_v34 = vld [vmem:[%s2071_s1 + $0x38] sm:$0xff]  ;;  %v263_v37 = vld [vmem:[%s2071_s1 + $0x30] sm:$0xff]  ;;  %v1185_v39 = vld [vmem:[%s2071_s1 + $0xe8] sm:$0xff] }
  0x19   : > { %1324 = vmatpush.msra.mxu3 %v1515_v21  ;;  %397 = vmatpush.msra.mxu0 %v1189_v23  ;;  %v1593_v38 = vld [vmem:[%s1538_s30 + $0x98] sm:$0xff]  ;;  %v262_v41 = vld [vmem:[%s2071_s1 + $0x28] sm:$0xff]  ;;  %v1290_v42 = vld [vmem:[%s2071_s1 + $0x230] sm:$0xff] }
  0x1a   : > { %575 = vmatpush.msra.mxu2 %v266_v24  ;;  %1316 = vmatpush.msra.mxu1 %v1543_v26  ;;  %v1283_v40 = vld [vmem:[%s2071_s1 + $0x1f8] sm:$0xff]  ;;  %v1184_v43 = vld [vmem:[%s2071_s1 + $0xe0] sm:$0xff]  ;;  %v1282_v44 = vld [vmem:[%s2071_s1 + $0x1f0] sm:$0xff] }
  0x1b   : > { %1325 = vmatpush.msra.mxu3 %v1533_v25  ;;  %398 = vmatpush.msra.mxu0 %v1188_v27  ;;  %v261_v45 = vld [vmem:[%s2071_s1 + $0x20] sm:$0xff]  ;;  %v1289_v46 = vld [vmem:[%s2071_s1 + $0x228] sm:$0xff]  ;;  %v1183_v48 = vld [vmem:[%s2071_s1 + $0xd8] sm:$0xff] }
  0x1c   : > { %576 = vmatpush.msra.mxu2 %v265_v28  ;;  %1317 = vmatpush.msra.mxu1 %v1561_v30  ;;  %v1623_v47 = vld [vmem:[%s1538_s30 + $0x88] sm:$0xff]  ;;  %v260_v49 = vld [vmem:[%s2071_s1 + $0x18] sm:$0xff]  ;;  %v1182_v51 = vld [vmem:[%s2071_s1 + $0xd0] sm:$0xff] }
  0x1d   : > { %1326 = vmatpush.msra.mxu3 %v1556_v29  ;;  %399 = vmatpush.msra.mxu0 %v1187_v32  ;;  %v1281_v50 = vld [vmem:[%s2071_s1 + $0x1e8] sm:$0xff]  ;;  %v1288_v52 = vld [vmem:[%s2071_s1 + $0x220] sm:$0xff]  ;;  %v259_v53 = vld [vmem:[%s2071_s1 + $0x10] sm:$0xff] }
  0x1e   : > { %1227 = vmatmul.msk.f32.vlgmr.msra.gmra.mxu3 %vm342_vm0, %v1565_v31  ;;  %577 = vmatpush.msra.mxu2 %v264_v34  ;;  %v1646_v54 = vld [vmem:[%s1538_s30 + $0xa8] sm:$0xff]  ;;  %v1280_v56 = vld [vmem:[%s2071_s1 + $0x1e0] sm:$0xff]  ;;  %v1287_v58 = vld [vmem:[%s2071_s1 + $0x218] sm:$0xff] }
  0x1f   : > { %881 = vmatpush.msrb.mxu3 %v1291_v33  ;;  %400 = vmatpush.msra.mxu0 %v1186_v35  ;;  %v1181_v55 = vld [vmem:[%s2071_s1 + $0xc8] sm:$0xff]  ;;  %v1180_v59 = vld [vmem:[%s2071_s1 + $0xc0] sm:$0xff]  ;;  %v1279_v60 = vld [vmem:[%s2071_s1 + $0x1d8] sm:$0xff] }
  0x20   : > { %1318 = vmatpush.msra.mxu1 %v1585_v36  ;;  %578 = vmatpush.msra.mxu2 %v263_v37  ;;  %v258_v57 = vld [vmem:[%s2071_s1 + $0x8] sm:$0xff]  ;;  %v257_v61 = vld [vmem:[%s2071_s1] sm:$0xff]  ;;  %v1278_v0 = vld [vmem:[%s2071_s1 + $0x1d0] sm:$0xff] }
  0x21   : > { %1211 = vmatmul.msk.f32.vlgmr.msra.gmra.mxu1 %vm342_vm0, %v1593_v38  ;;  %401 = vmatpush.msra.mxu0 %v1185_v39  ;;  %v1148_v62 = vld [vmem:[%s1538_s30 + $0x20] sm:$0xff]  ;;  %v1286_v1 = vld [vmem:[%s2071_s1 + $0x210] sm:$0xff]  ;;  %v1682_v3 = vld [vmem:[%s1538_s30 + $0xb8] sm:$0xff] }
  0x22   : > { %808 = vmatpush.msrb.mxu1 %v1283_v40  ;;  %579 = vmatpush.msra.mxu2 %v262_v41  ;;  %v225_v63 = vld [vmem:[%s1538_s30] sm:$0xff]  ;;  %v1277_v4 = vld [vmem:[%s2071_s1 + $0x1c8] sm:$0xff]  ;;  %v1150_v7 = vld [vmem:[%s1538_s30 + $0x30] sm:$0xff] }
  0x23   : > { %882 = vmatpush.msrb.mxu3 %v1290_v42  ;;  %402 = vmatpush.msra.mxu0 %v1184_v43  ;;  %v1276_v6 = vld [vmem:[%s2071_s1 + $0x1c0] sm:$0xff]  ;;  %v1710_v10 = vld [vmem:[%s1538_s30 + $0xc8] sm:$0xff]  ;;  %v1736_v15 = vld [vmem:[%s1538_s30 + $0xd8] sm:$0xff] }
  0x24   : > { %809 = vmatpush.msrb.mxu1 %v1282_v44  ;;  %580 = vmatpush.msra.mxu2 %v261_v45  ;;  %v1273_v11 = vld [vmem:[%s2071_s1 + $0x1a8] sm:$0xff]  ;;  %v1272_v14 = vld [vmem:[%s2071_s1 + $0x1a0] sm:$0xff]  ;;  %v1767_v23 = vld [vmem:[%s1538_s30 + $0xf8] sm:$0xff] }
  0x25   : > { %883 = vmatpush.msrb.mxu3 %v1289_v46  ;;  %403 = vmatpush.msra.mxu0 %v1183_v48  ;;  %v1269_v19 = vld [vmem:[%s2071_s1 + $0x188] sm:$0xff]  ;;  %v1158_v24 = vld [vmem:[%s1538_s30 + $0x70] sm:$0xff]  ;;  %v1783_v27 = vld [vmem:[%s1538_s30 + $0x118] sm:$0xff] }
  0x26   : > { %1228 = vmatmul.msk.f32.gmra.mxu3 %vm342_vm0, %v1623_v47  ;;  %581 = vmatpush.msra.mxu2 %v260_v49  ;;  %v1756_v20 = vld [vmem:[%s1538_s30 + $0xe8] sm:$0xff]  ;;  %v1162_v28 = vld [vmem:[%s1538_s30 + $0x90] sm:$0xff]  ;;  %v1795_v32 = vld [vmem:[%s1538_s30 + $0x58] sm:$0xff] }
  0x27   : > { %810 = vmatpush.msrb.mxu1 %v1281_v50  ;;  %404 = vmatpush.msra.mxu0 %v1182_v51  ;;  %v1166_v33 = vld [vmem:[%s1538_s30 + $0xb0] sm:$0xff]  ;;  %v1801_v34 = vld [vmem:[%s1538_s30 + $0x68] sm:$0xff]  ;;  %v1168_v35 = vld [vmem:[%s1538_s30 + $0xc0] sm:$0xff] }
  0x28   : > { %884 = vmatpush.msrb.mxu3 %v1288_v52  ;;  %582 = vmatpush.msra.mxu2 %v259_v53  ;;  %v1172_v37 = vld [vmem:[%s1538_s30 + $0xe0] sm:$0xff]  ;;  %v1174_v39 = vld [vmem:[%s1538_s30 + $0xf0] sm:$0xff]  ;;  %v1149_v46 = vld [vmem:[%s1538_s30 + $0x28] sm:$0xff] }
  0x29   : > { %1212 = vmatmul.msk.f32.gmra.mxu1 %vm342_vm0, %v1646_v54  ;;  %405 = vmatpush.msra.mxu0 %v1181_v55  ;;  %v1176_v40 = vld [vmem:[%s1538_s30 + $0x100] sm:$0xff]  ;;  %v226_v48 = vld [vmem:[%s1538_s30 + $0x8] sm:$0xff]  ;;  %v1151_v53 = vld [vmem:[%s1538_s30 + $0x38] sm:$0xff] }
  0x2a   : > { %811 = vmatpush.msrb.mxu1 %v1280_v56  ;;  %583 = vmatpush.msra.mxu2 %v258_v57 }
  0x2b   : > { %885 = vmatpush.msrb.mxu3 %v1287_v58  ;;  %406 = vmatpush.msra.mxu0 %v1180_v59 }
  0x2c   : > { %812 = vmatpush.msrb.mxu1 %v1279_v60  ;;  %584 = vmatpush.msra.mxu2 %v257_v61 }
  0x2d   : > { %407 = vmatmul.f32.vlgmr.msra.gmra.mxu0 %v1148_v62  ;;  %585 = vmatmul.f32.vlgmr.msra.gmra.mxu2 %v225_v63 }
  0x2e   : > { %1229 = vmatmul.msk.f32.gmra.mxu3 %vm342_vm0, %v1593_v38  ;;  %642 = vmatpush.msrb.mxu2 %v1430_v2  ;;  %v1285_v2 = vld [vmem:[%s2071_s1 + $0x208] sm:$0xff] }
  0x2f   : > { %464 = vmatpush.msrb.mxu0 %v1458_v9  ;;  %813 = vmatpush.msrb.mxu1 %v1278_v0  ;;  %v227_v9 = vld [vmem:[%s1538_s30 + $0x10] sm:$0xff] }
  0x30   : > { %886 = vmatpush.msrb.mxu3 %v1286_v1  ;;  %643 = vmatpush.msrb.mxu2 %v1441_v5  ;;  %v1275_v5 = vld [vmem:[%s2071_s1 + $0x1b8] sm:$0xff] }
  0x31   : > { %1213 = vmatmul.msk.f32.gmra.mxu1 %vm342_vm0, %v1682_v3  ;;  %465 = vmatpush.msrb.mxu0 %v1473_v12  ;;  %v1284_v12 = vld [vmem:[%s2071_s1 + $0x200] sm:$0xff] }
  0x32   : > { %814 = vmatpush.msrb.mxu1 %v1277_v4  ;;  %644 = vmatpush.msrb.mxu2 %v1453_v8  ;;  %v1274_v8 = vld [vmem:[%s2071_s1 + $0x1b0] sm:$0xff] }
  0x33   : > { %887 = vmatpush.msrb.mxu3 %v1285_v2  ;;  %466 = vmatpush.msrb.mxu0 %v1491_v16  ;;  %v1271_v16 = vld [vmem:[%s2071_s1 + $0x198] sm:$0xff] }
  0x34   : > { %815 = vmatpush.msrb.mxu1 %v1276_v6  ;;  %645 = vmatpush.msrb.mxu2 %v1478_v13  ;;  %v1152_v13 = vld [vmem:[%s1538_s30 + $0x40] sm:$0xff] }
  0x35   : > { %410 = vmatmul.f32.gmra.mxu0 %v1150_v7  ;;  %588 = vmatmul.f32.gmra.mxu2 %v227_v9  ;;  %v1265_v9 = vld [vmem:[%s1538_s30 + $0x128] sm:$0xff] }
  0x36   : > { %1230 = vmatmul.msk.f32.gmra.mxu3 %vm342_vm0, %v1646_v54  ;;  %816 = vmatpush.msrb.mxu1 %v1275_v5 }
  0x37   : > { %467 = vmatpush.msrb.mxu0 %v1501_v18  ;;  %646 = vmatpush.msrb.mxu2 %v1496_v17  ;;  %v1270_v17 = vld [vmem:[%s2071_s1 + $0x190] sm:$0xff] }
  0x38   : > { %817 = vmatpush.msrb.mxu1 %v1274_v8  ;;  %888 = vmatpush.msrb.mxu3 %v1284_v12  ;;  %v1154_v18 = vld [vmem:[%s1538_s30 + $0x50] sm:$0xff] }
  0x39   : > { %1214 = vmatmul.msk.f32.gmra.mxu1 %vm342_vm0, %v1710_v10  ;;  %468 = vmatpush.msrb.mxu0 %v1520_v22  ;;  %v1156_v22 = vld [vmem:[%s1538_s30 + $0x60] sm:$0xff] }
  0x3a   : > { %647 = vmatpush.msrb.mxu2 %v1515_v21  ;;  %818 = vmatpush.msrb.mxu1 %v1273_v11  ;;  %v1268_v21 = vld [vmem:[%s2071_s1 + $0x180] sm:$0xff] }
  0x3b   : > { %469 = vmatpush.msrb.mxu0 %v1543_v26  ;;  %v1160_v26 = vld [vmem:[%s1538_s30 + $0x80] sm:$0xff] }
  0x3c   : > { %648 = vmatpush.msrb.mxu2 %v1533_v25  ;;  %819 = vmatpush.msrb.mxu1 %v1272_v14  ;;  %v1775_v25 = vld [vmem:[%s1538_s30 + $0x108] sm:$0xff]  ;;  %v1266_v14 = vld [vmem:[%s1538_s30 + $0x130] sm:$0xff] }
  0x3d   : > { %413 = vmatmul.f32.gmra.mxu0 %v1152_v13  ;;  %591 = vmatmul.f32.gmra.mxu2 %v1148_v62 }
  0x3e   : > { %1231 = vmatmul.msk.f32.gmra.mxu3 %vm342_vm0, %v1682_v3  ;;  %470 = vmatpush.msrb.mxu0 %v1561_v30  ;;  %v1164_v30 = vld [vmem:[%s1538_s30 + $0xa0] sm:$0xff] }
  0x3f   : > { %649 = vmatpush.msrb.mxu2 %v1556_v29  ;;  %820 = vmatpush.msrb.mxu1 %v1271_v16  ;;  %v1789_v29 = vld [vmem:[%s1538_s30 + $0x48] sm:$0xff] }
  0x40   : > { %471 = vmatpush.msrb.mxu0 %v1585_v36  ;;  %v1170_v36 = vld [vmem:[%s1538_s30 + $0xd0] sm:$0xff] }
  0x41   : > { %1215 = vmatmul.msk.f32.gmra.mxu1 %vm342_vm0, %v1736_v15 }
  0x42   : > { %821 = vmatpush.msrb.mxu1 %v1270_v17 }
  0x44   : > { %822 = vmatpush.msrb.mxu1 %v1269_v19 }
  0x45   : > { %416 = vmatmul.f32.gmra.mxu0 %v1154_v18  ;;  %594 = vmatmul.f32.gmra.mxu2 %v1150_v7 }
  0x46   : > { %1232 = vmatmul.msk.f32.gmra.mxu3 %vm342_vm0, %v1710_v10  ;;  %823 = vmatpush.msrb.mxu1 %v1268_v21 }
  0x49   : > { %1216 = vmatmul.msk.f32.gmra.mxu1 %vm342_vm0, %v1756_v20 }
  0x4d   : > { %419 = vmatmul.f32.gmra.mxu0 %v1156_v22  ;;  %597 = vmatmul.f32.gmra.mxu2 %v1152_v13 }
  0x4e   : > { %1233 = vmatmul.msk.f32.gmra.mxu3 %vm342_vm0, %v1736_v15 }
  0x51   : > { %1217 = vmatmul.msk.f32.gmra.mxu1 %vm342_vm0, %v1767_v23 }
  0x55   : > { %422 = vmatmul.f32.gmra.mxu0 %v1158_v24  ;;  %600 = vmatmul.f32.gmra.mxu2 %v1154_v18 }
  0x56   : > { %1234 = vmatmul.msk.f32.gmra.mxu3 %vm342_vm0, %v1756_v20 }
  0x59   : > { %1218 = vmatmul.msk.f32.gmra.mxu1 %vm342_vm0, %v1775_v25 }
  0x5d   : > { %425 = vmatmul.f32.gmra.mxu0 %v1160_v26  ;;  %603 = vmatmul.f32.gmra.mxu2 %v1156_v22 }
  0x5e   : > { %1235 = vmatmul.msk.f32.gmra.mxu3 %vm342_vm0, %v1767_v23 }
  0x61   : > { %1219 = vmatmul.msk.f32.gmra.mxu1 %vm342_vm0, %v1783_v27 }
  0x65   : > { %428 = vmatmul.f32.gmra.mxu0 %v1162_v28  ;;  %606 = vmatmul.f32.gmra.mxu2 %v1158_v24 }
  0x66   : > { %1292 = vmatmul.msk.f32.vlgmr.msrb.gmra.mxu3 %vm342_vm0, %v1789_v29 }
  0x69   : > { %824 = vmatmul.f32.vlgmr.msrb.gmra.mxu1 %v1152_v13  ;;  %v1267_v13 = vld [vmem:[%s1538_s30 + $0x138] sm:$0xff] }
  0x6d   : > { %431 = vmatmul.f32.gmra.mxu0 %v1164_v30  ;;  %609 = vmatmul.f32.gmra.mxu2 %v1160_v26 }
  0x6e   : > { %1293 = vmatmul.msk.f32.gmra.mxu3 %vm342_vm0, %v1795_v32 }
  0x71   : > { %827 = vmatmul.f32.gmra.mxu1 %v1154_v18 }
  0x75   : > { %434 = vmatmul.f32.gmra.mxu0 %v1166_v33  ;;  %612 = vmatmul.f32.gmra.mxu2 %v1162_v28 }
  0x76   : > { %1294 = vmatmul.msk.f32.gmra.mxu3 %vm342_vm0, %v1801_v34 }
  0x79   : > { %830 = vmatmul.f32.gmra.mxu1 %v1156_v22 }
  0x7d   : > { %437 = vmatmul.f32.gmra.mxu0 %v1168_v35  ;;  %615 = vmatmul.f32.gmra.mxu2 %v1164_v30 }
  0x7e   : > { %1295 = vmatmul.msk.f32.gmra.mxu3 %vm342_vm0, %v1565_v31 }
  0x81   : > { %833 = vmatmul.f32.gmra.mxu1 %v1158_v24 }
  0x85   : > { %440 = vmatmul.f32.gmra.mxu0 %v1170_v36  ;;  %618 = vmatmul.f32.gmra.mxu2 %v1166_v33 }
  0x86   : > { %1296 = vmatmul.msk.f32.gmra.mxu3 %vm342_vm0, %v1623_v47 }
  0x89   : > { %836 = vmatmul.f32.gmra.mxu1 %v1160_v26 }
  0x8d   : > { %443 = vmatmul.f32.gmra.mxu0 %v1172_v37  ;;  %621 = vmatmul.f32.gmra.mxu2 %v1168_v35 }
  0x8e   : > { %1297 = vmatmul.msk.f32.gmra.mxu3 %vm342_vm0, %v1593_v38  ;;  %v1178_v38 = vld [vmem:[%s1538_s30 + $0x110] sm:$0xff] }
  0x91   : > { %839 = vmatmul.f32.gmra.mxu1 %v1162_v28 }
  0x95   : > { %446 = vmatmul.f32.gmra.mxu0 %v1174_v39  ;;  %624 = vmatmul.f32.gmra.mxu2 %v1170_v36 }
  0x96   : > { %1298 = vmatmul.msk.f32.gmra.mxu3 %vm342_vm0, %v1646_v54  ;;  %v228_v54 = vld [vmem:[%s1538_s30 + $0x18] sm:$0xff] }
  0x99   : > { %842 = vmatmul.f32.gmra.mxu1 %v1164_v30 }
  0x9d   : > { %449 = vmatmul.f32.gmra.mxu0 %v1176_v40  ;;  %627 = vmatmul.f32.gmra.mxu2 %v1172_v37 }
  0x9e   : > { %1299 = vmatmul.msk.f32.gmra.mxu3 %vm342_vm0, %v1682_v3  ;;  %v1820_v41 = vpop.f32.mrf.mxu1 }
  0xa1   : > { %v1822_v42 = vpop.f32.mrf.mxu3  ;;  %845 = vmatmul.f32.gmra.mxu1 %v1166_v33 }
  0xa5   : > { %452 = vmatmul.f32.gmra.mxu0 %v1178_v38  ;;  %630 = vmatmul.f32.gmra.mxu2 %v1174_v39 }
  0xa6   : > { %1300 = vmatmul.msk.f32.gmra.mxu3 %vm342_vm0, %v1710_v10  ;;  %v1827_v43 = vpop.f32.mrf.mxu1  ;;  %v1264_v10 = vld [vmem:[%s1538_s30 + $0x120] sm:$0xff] }
  0xa9   : > { %v1829_v44 = vpop.f32.mrf.mxu3  ;;  %848 = vmatmul.f32.gmra.mxu1 %v1168_v35 }
  0xaa   : > { %v1831_v45 = vpop.f32.mrf.mxu0 }
  0xad   : > { %1204 = vmatmul.msk.f32.vlgmr.msrb.gmra.mxu0 %vm342_vm0, %v1149_v46  ;;  %1220 = vmatmul.msk.f32.vlgmr.msrb.gmra.mxu2 %vm342_vm0, %v226_v48 }
  0xae   : > { %1301 = vmatmul.msk.f32.gmra.mxu3 %vm342_vm0, %v1736_v15  ;;  %v1839_v49 = vpop.f32.mrf.mxu1 }
  0xb0   : > { %v1841_v50 = vpop.f32.mrf.mxu2 }
  0xb1   : > { %v1843_v51 = vpop.f32.mrf.mxu3  ;;  %851 = vmatmul.f32.gmra.mxu1 %v1170_v36 }
  0xb2   : > { %v1845_v52 = vpop.f32.mrf.mxu0 }
  0xb5   : > { %1205 = vmatmul.msk.f32.gmra.mxu0 %vm342_vm0, %v1151_v53  ;;  %1221 = vmatmul.msk.f32.gmra.mxu2 %vm342_vm0, %v228_v54 }
  0xb6   : > { %1302 = vmatmul.msk.f32.gmra.mxu3 %vm342_vm0, %v1756_v20  ;;  %v1853_v55 = vpop.f32.mrf.mxu1 }
  0xb8   : > { %v1855_v56 = vpop.f32.mrf.mxu2 }
  0xb9   : > { %v1857_v57 = vpop.f32.mrf.mxu3  ;;  %854 = vmatmul.f32.gmra.mxu1 %v1172_v37 }
  0xba   : > { %v1859_v58 = vpop.f32.mrf.mxu0 }
  0xbd   : > { %1206 = vmatmul.msk.f32.gmra.mxu0 %vm342_vm0, %v1789_v29  ;;  %1222 = vmatmul.msk.f32.gmra.mxu2 %vm342_vm0, %v1149_v46 }
  0xbe   : > { %1303 = vmatmul.msk.f32.gmra.mxu3 %vm342_vm0, %v1767_v23  ;;  %v1866_v59 = vpop.f32.mrf.mxu1 }
  0xc0   : > { %v1868_v60 = vpop.f32.mrf.mxu2 }
  0xc1   : > { %v1870_v61 = vpop.f32.mrf.mxu3  ;;  %857 = vmatmul.f32.gmra.mxu1 %v1174_v39 }
  0xc2   : > { %v1872_v62 = vpop.f32.mrf.mxu0 }
  0xc5   : > { %1207 = vmatmul.msk.f32.gmra.mxu0 %vm342_vm0, %v1795_v32  ;;  %1223 = vmatmul.msk.f32.gmra.mxu2 %vm342_vm0, %v1151_v53 }
  0xc6   : > { %1304 = vmatmul.msk.f32.gmra.mxu3 %vm342_vm0, %v1775_v25  ;;  %v1879_v63 = vpop.f32.mrf.mxu1 }
  0xc8   : > { %v1881_v0 = vpop.f32.mrf.mxu2 }
  0xc9   : > { %v1883_v1 = vpop.f32.mrf.mxu3  ;;  %860 = vmatmul.f32.gmra.mxu1 %v1176_v40 }
  0xca   : > { %v1885_v3 = vpop.f32.mrf.mxu0 }
  0xcd   : > { %1208 = vmatmul.msk.f32.gmra.mxu0 %vm342_vm0, %v1801_v34  ;;  %1224 = vmatmul.msk.f32.gmra.mxu2 %vm342_vm0, %v1789_v29 }
  0xce   : > { %1305 = vmatmul.msk.f32.gmra.mxu3 %vm342_vm0, %v1783_v27  ;;  %v1893_v4 = vpop.f32.mrf.mxu1 }
  0xd0   : > { %v1895_v6 = vpop.f32.mrf.mxu2 }
  0xd1   : > { %v1897_v2 = vpop.f32.mrf.mxu3  ;;  %863 = vmatmul.f32.gmra.mxu1 %v1178_v38 }
  0xd2   : > { %v1899_v7 = vpop.f32.mrf.mxu0 }
  0xd5   : > { %1209 = vmatmul.msk.f32.gmra.mxu0 %vm342_vm0, %v1565_v31  ;;  %1225 = vmatmul.msk.f32.gmra.mxu2 %vm342_vm0, %v1795_v32 }
  0xd6   : > { %1306 = vmatmul.msk.f32.gmra.mxu3 %vm342_vm0, %v1265_v9  ;;  %v1907_v5 = vpop.f32.mrf.mxu1 }
  0xd8   : > { %v1910_v8 = vpop.f32.mrf.mxu2 }
  0xd9   : > { %v1912_v11 = vpop.f32.mrf.mxu3  ;;  %866 = vmatmul.f32.gmra.mxu1 %v1264_v10 }
  0xda   : > { %v1914_v12 = vpop.f32.mrf.mxu0 }
  0xdd   : > { %1210 = vmatmul.msk.f32.gmra.mxu0 %vm342_vm0, %v1623_v47  ;;  %1226 = vmatmul.msk.f32.gmra.mxu2 %vm342_vm0, %v1801_v34 }
  0xde   : > { %1307 = vmatmul.msk.f32.gmra.mxu3 %vm342_vm0, %v1267_v13  ;;  %v1922_v31 = vpop.f32.mrf.mxu1 }
  0xe0   : > { %v1925_v15 = vpop.f32.mrf.mxu2 }
  0xe1   : > { %2075 = vst [vmem:[#allocation3_spill] sm:$0xff] %v1925_v15  ;;  %v1927_v16 = vpop.f32.mrf.mxu3  ;;  %869 = vmatmul.f32.gmra.mxu1 %v1266_v14 }
  0xe2   : > { %2076 = vst [vmem:[#allocation4_spill] sm:$0xff] %v1927_v16  ;;  %v429_v17 = vpop.f32.mrf.mxu0 }
  0xe3   : > { %v495_v18 = vadd.f32 %v1820_v41, %v429_v17 }
  0xe6   : > { %v825_v19 = vpop.f32.mrf.mxu1 }
  0xe8   : > { %v607_v20 = vpop.f32.mrf.mxu2 }
  0xe9   : > { %v890_v21 = vpop.f32.mrf.mxu3  ;;  %v1930_v47 = vadd.f32 %v607_v20, %v495_v18 }
  0xea   : > { %v1932_v22 = vadd.f32 %v890_v21, %v825_v19  ;;  %v432_v23 = vpop.f32.mrf.mxu0 }
  0xeb   : > { %v498_v24 = vadd.f32 %v1827_v43, %v432_v23 }
  0xee   : > { %v828_v25 = vpop.f32.mrf.mxu1 }
  0xf0   : > { %v610_v26 = vpop.f32.mrf.mxu2 }
  0xf1   : > { %v893_v27 = vpop.f32.mrf.mxu3  ;;  %v611_v28 = vadd.f32 %v610_v26, %v498_v24 }
  0xf2   : > { %v1935_v29 = vadd.f32 %v893_v27, %v828_v25  ;;  %v435_v30 = vpop.f32.mrf.mxu0 }
  0xf3   : > { %v501_v32 = vadd.f32 %v1839_v49, %v435_v30 }
  0xf6   : > { %v831_v33 = vpop.f32.mrf.mxu1 }
  0xf8   : > { %v613_v34 = vpop.f32.mrf.mxu2 }
  0xf9   : > { %v896_v35 = vpop.f32.mrf.mxu3  ;;  %v614_v36 = vadd.f32 %v613_v34, %v501_v32 }
  0xfa   : > { %v1938_v37 = vadd.f32 %v896_v35, %v831_v33  ;;  %v438_v39 = vpop.f32.mrf.mxu0 }
  0xfe   : > { %v834_v40 = vpop.f32.mrf.mxu1 }
 0x100   : > { %v616_v41 = vpop.f32.mrf.mxu2 }
 0x101   : > { %v899_v38 = vpop.f32.mrf.mxu3 }
 0x102   : > { %v1940_v43 = vadd.f32 %v899_v38, %v834_v40  ;;  %v441_v46 = vpop.f32.mrf.mxu0 }
 0x106   : > { %v837_v48 = vpop.f32.mrf.mxu1 }
 0x108   : > { %v619_v53 = vpop.f32.mrf.mxu2 }
 0x109   : > { %v902_v54 = vpop.f32.mrf.mxu3 }
 0x10a   : > { %v1942_v9 = vadd.f32 %v902_v54, %v837_v48  ;;  %v444_v10 = vpop.f32.mrf.mxu0 }
 0x10b   : > { %v510_v49 = vadd.f32 %v1879_v63, %v444_v10 }
 0x10e   : > { %v840_v13 = vpop.f32.mrf.mxu1 }
 0x110   : > { %v622_v14 = vpop.f32.mrf.mxu2 }
 0x111   : > { %v905_v17 = vpop.f32.mrf.mxu3  ;;  %v1945_v18 = vadd.f32 %v622_v14, %v510_v49  ;;  %v676_v14 = vadd.f32 %v1829_v44, %v611_v28 }
 0x112   : > { %v1947_v19 = vadd.f32 %v905_v17, %v840_v13  ;;  %v447_v20 = vpop.f32.mrf.mxu0 }
 0x113   : > { %v513_v21 = vadd.f32 %v1893_v4, %v447_v20  ;;  %v504_v20 = vadd.f32 %v1853_v55, %v438_v39  ;;  %v679_v39 = vadd.f32 %v1843_v51, %v614_v36 }
 0x116   : > { %v843_v23 = vpop.f32.mrf.mxu1 }
 0x118   : > { %v625_v24 = vpop.f32.mrf.mxu2 }
 0x119   : > { %v908_v25 = vpop.f32.mrf.mxu3  ;;  %v1950_v26 = vadd.f32 %v625_v24, %v513_v21 }
 0x11a   : > { %v1952_v27 = vadd.f32 %v908_v25, %v843_v23  ;;  %v1954_v30 = vpop.f32.mrf.mxu0  ;;  %v617_v23 = vadd.f32 %v616_v41, %v504_v20  ;;  %v1972_v25 = vld [vmem:[%s2072_s2] ss:$0 sm:$0xff]  ;;  %v507_v41 = vadd.f32 %v1866_v59, %v441_v46 }
 0x11c   : > { %2077 = vst [vmem:[#allocation5_spill] sm:$0xff] %v1952_v27 }
 0x11e   : > { %v1956_v63 = vpop.f32.mrf.mxu1 }
 0x120   : > { %v1958_v32 = vpop.f32.mrf.mxu2 }
 0x121   : > { %v1960_v33 = vpop.f32.mrf.mxu3 }
 0x122   : > { %v1962_v34 = vpop.f32.mrf.mxu0 }
 0x126   : > { %v849_v35 = vpop.f32.mrf.mxu1 }
 0x128   : > { %v1964_v40 = vpop.f32.mrf.mxu2 }
 0x129   : > { %v914_v4 = vpop.f32.mrf.mxu3 }
 0x12a   : > { %v473_v38 = vpop.f32.mrf.mxu0  ;;  %v915_v54 = vadd.f32 %v914_v4, %v849_v35 }
 0x12b   : > { %v474_v17 = vadd.f32 %v473_v38, %v1831_v45  ;;  %v682_v45 = vadd.f32 %v1857_v57, %v617_v23  ;;  %v1982_v38 = vld [vmem:[%s2073_s3] ss:$0 sm:$0xff] }
 0x12c   : > { %v946_v21 = vadd.f32 %v915_v54, %v676_v14 }
 0x12d   : > { %v587_v27 = vadd.f32 %v1841_v50, %v474_v17 }
 0x12e   : > { %v852_v48 = vpop.f32.mrf.mxu1  ;;  %v966_v35 = vmul.f32 %v1972_v25, %v946_v21 }
 0x130   : > { %v651_v10 = vpop.f32.mrf.mxu2 }
 0x131   : > { %v917_v49 = vpop.f32.mrf.mxu3  ;;  %v652_v4 = vadd.f32 %v651_v10, %v587_v27  ;;  %v986_v10 = vadd.f32 %v1982_v38, %v966_v35 }
 0x132   : > { %v476_v13 = vpop.f32.mrf.mxu0  ;;  %v918_v16 = vadd.f32 %v917_v49, %v852_v48  ;;  %v620_v48 = vadd.f32 %v619_v53, %v507_v41 }
 0x133   : > { %v477_v50 = vadd.f32 %v476_v13, %v1845_v52  ;;  %v938_v57 = vadd.f32 %v1932_v22, %v652_v4  ;;  %v1002_v13 = vmax.f32 %v986_v10, 0.0 }
 0x134   : > { %v947_v49 = vadd.f32 %v918_v16, %v679_v39  ;;  %v685_v52 = vadd.f32 %v1870_v61, %v620_v48 }
 0x135   : > { %v590_v59 = vadd.f32 %v1855_v56, %v477_v50 }
 0x136   : > { %v855_v24 = vpop.f32.mrf.mxu1  ;;  %v967_v53 = vmul.f32 %v1972_v25, %v947_v49 }
 0x138   : > { %v654_v15 = vpop.f32.mrf.mxu2 }
 0x139   : > { %v920_v44 = vpop.f32.mrf.mxu3  ;;  %v655_v22 = vadd.f32 %v654_v15, %v590_v59 }
 0x13a   : > { %v921_v28 = vadd.f32 %v920_v44, %v855_v24  ;;  %v479_v55 = vpop.f32.mrf.mxu0  ;;  %v987_v44 = vadd.f32 %v1982_v38, %v967_v53 }
 0x13b   : > { %v480_v27 = vadd.f32 %v479_v55, %v1859_v58  ;;  %v958_v58 = vmul.f32 %v1972_v25, %v938_v57 }
 0x13c   : > { %v948_v54 = vadd.f32 %v921_v28, %v682_v45  ;;  %v939_v45 = vadd.f32 %v1935_v29, %v655_v22 }
 0x13d   : > { %v593_v14 = vadd.f32 %v1868_v60, %v480_v27  ;;  %v978_v61 = vadd.f32 %v1982_v38, %v958_v58 }
 0x13e   : > { %v968_v51 = vmul.f32 %v1972_v25, %v948_v54  ;;  %v858_v36 = vpop.f32.mrf.mxu1  ;;  %v959_v48 = vmul.f32 %v1972_v25, %v939_v45 }
 0x13f   : > { %v994_v50 = vmax.f32 %v978_v61, 0.0 }
 0x140   : > { %v988_v46 = vadd.f32 %v1982_v38, %v968_v51  ;;  %v657_v17 = vpop.f32.mrf.mxu2 }
 0x141   : > { %v923_v20 = vpop.f32.mrf.mxu3  ;;  %v658_v21 = vadd.f32 %v657_v17, %v593_v14 }
 0x142   : > { %v1004_v16 = vmax.f32 %v988_v46, 0.0  ;;  %v924_v23 = vadd.f32 %v923_v20, %v858_v36  ;;  %v482_v24 = vpop.f32.mrf.mxu0  ;;  %v979_v46 = vadd.f32 %v1982_v38, %v959_v48  ;;  %v673_v20 = vadd.f32 %v1822_v42, %v1930_v47 }
 0x143   : > { %v940_v56 = vadd.f32 %v1938_v37, %v658_v21  ;;  %v483_v60 = vadd.f32 %v482_v24, %v1872_v62  ;;  %v1003_v62 = vmax.f32 %v987_v44, 0.0  ;;  %v688_v21 = vadd.f32 %v1883_v1, %v1945_v18 }
 0x144   : > { %v1014_v35 = vmax.f32 %v1002_v13, %v1004_v16  ;;  %v949_v4 = vadd.f32 %v924_v23, %v685_v52  ;;  %v912_v52 = vadd.f32 %v1960_v33, %v1956_v63  ;;  %v516_v63 = vadd.f32 %v1907_v5, %v1954_v30 }
 0x145   : > { %v960_v28 = vmul.f32 %v1972_v25, %v940_v56  ;;  %v596_v37 = vadd.f32 %v1881_v0, %v483_v60 }
 0x146   : > { %1022 = vst [vmem:[#allocation2 + $0x20] sm:$0xff] %v1014_v35  ;;  %v969_v15 = vmul.f32 %v1972_v25, %v949_v4  ;;  %v861_v55 = vpop.f32.mrf.mxu1  ;;  %v945_v33 = vadd.f32 %v912_v52, %v673_v20  ;;  %v629_v4 = vadd.f32 %v1958_v32, %v516_v63  ;;  %v2080_v20 = vld [vmem:[#allocation5_spill] sm:$0xff] }
 0x147   : > { %v980_v39 = vadd.f32 %v1982_v38, %v960_v28 }
 0x148   : > { %v989_v41 = vadd.f32 %v1982_v38, %v969_v15  ;;  %v660_v54 = vpop.f32.mrf.mxu2  ;;  %v965_v18 = vmul.f32 %v1972_v25, %v945_v33  ;;  %v694_v45 = vadd.f32 %v1912_v11, %v629_v4 }
 0x149   : > { %v926_v27 = vpop.f32.mrf.mxu3  ;;  %v996_v10 = vmax.f32 %v980_v39, 0.0  ;;  %v661_v57 = vadd.f32 %v660_v54, %v596_v37  ;;  %v691_v39 = vadd.f32 %v1897_v2, %v1950_v26 }
 0x14a   : > { %v1005_v29 = vmax.f32 %v989_v41, 0.0  ;;  %v485_v49 = vpop.f32.mrf.mxu0  ;;  %v927_v58 = vadd.f32 %v926_v27, %v861_v55 }
 0x14b   : > { %v1010_v51 = vmax.f32 %v994_v50, %v996_v10  ;;  %v941_v59 = vadd.f32 %v1940_v43, %v661_v57  ;;  %v995_v43 = vmax.f32 %v979_v46, 0.0  ;;  %v486_v23 = vadd.f32 %v485_v49, %v1885_v3  ;;  %v2079_v49 = vld [vmem:[#allocation4_spill] sm:$0xff] }
 0x14c   : > { %v1015_v36 = vmax.f32 %v1003_v62, %v1005_v29  ;;  %v950_v56 = vadd.f32 %v927_v58, %v688_v21 }
 0x14d   : > { %1018 = vst [vmem:[#allocation2] sm:$0xff] %v1010_v51  ;;  %v961_v0 = vmul.f32 %v1972_v25, %v941_v59  ;;  %v599_v5 = vadd.f32 %v1895_v6, %v486_v23  ;;  %v519_v6 = vadd.f32 %v1922_v31, %v1962_v34 }
 0x14e   : > { %v864_v14 = vpop.f32.mrf.mxu1  ;;  %1023 = vst [vmem:[#allocation2 + $0x28] sm:$0xff] %v1015_v36  ;;  %v970_v30 = vmul.f32 %v1972_v25, %v950_v56 }
 0x14f   : > { %v981_v13 = vadd.f32 %v1982_v38, %v961_v0  ;;  %v632_v62 = vadd.f32 %v1964_v40, %v519_v6  ;;  %v2078_v40 = vld [vmem:[#allocation3_spill] sm:$0xff] }
 0x150   : > { %v663_v53 = vpop.f32.mrf.mxu2  ;;  %v990_v27 = vadd.f32 %v1982_v38, %v970_v30 }
 0x151   : > { %v929_v17 = vpop.f32.mrf.mxu3  ;;  %v997_v22 = vmax.f32 %v981_v13, 0.0  ;;  %v664_v32 = vadd.f32 %v663_v53, %v599_v5  ;;  %v697_v51 = vadd.f32 %v2079_v49, %v632_v62 }
 0x152   : > { %v488_v16 = vpop.f32.mrf.mxu0  ;;  %v930_v60 = vadd.f32 %v929_v17, %v864_v14  ;;  %v1006_v36 = vmax.f32 %v990_v27, 0.0 }
 0x153   : > { %v1011_v24 = vmax.f32 %v995_v43, %v997_v22  ;;  %v489_v35 = vadd.f32 %v488_v16, %v1899_v7  ;;  %v942_v48 = vadd.f32 %v1942_v9, %v664_v32 }
 0x154   : > { %v951_v2 = vadd.f32 %v930_v60, %v691_v39 }
 0x155   : > { %v1030_v42 = vld [vmem:[#allocation2 + $0x20] ss:$2 sm:$0xff]  ;;  %v1038_v1 = vld [vmem:[#allocation2 + $0x21] ss:$2 sm:$0xff]  ;;  %1019 = vst [vmem:[#allocation2 + $0x8] sm:$0xff] %v1011_v24  ;;  %v602_v7 = vadd.f32 %v1910_v8, %v489_v35  ;;  %v985_v8 = vadd.f32 %v1982_v38, %v965_v18  ;;  %v962_v9 = vmul.f32 %v1972_v25, %v942_v48 }
 0x156   : > { %v867_v3 = vpop.f32.mrf.mxu1  ;;  %v1043_v47 = vmax.f32 %v1030_v42, %v1038_v1  ;;  %v971_v59 = vmul.f32 %v1972_v25, %v951_v2 }
 0x157   : > { %v1001_v29 = vmax.f32 %v985_v8, 0.0  ;;  %v982_v16 = vadd.f32 %v1982_v38, %v962_v9 }
 0x158   : > { %1047 = vst [vmem:[%s2025_s23 + $0x10] sm:$0xff] %v1043_v47  ;;  %v666_v61 = vpop.f32.mrf.mxu2  ;;  %v991_v21 = vadd.f32 %v1982_v38, %v971_v59 }
 0x159   : > { %v932_v44 = vpop.f32.mrf.mxu3  ;;  %v667_v28 = vadd.f32 %v666_v61, %v602_v7  ;;  %v998_v35 = vmax.f32 %v982_v16, 0.0 }
 0x15a   : > { %v933_v15 = vadd.f32 %v932_v44, %v867_v3  ;;  %v491_v55 = vpop.f32.mrf.mxu0  ;;  %v1007_v56 = vmax.f32 %v991_v21, 0.0 }
 0x15b   : > { %v943_v41 = vadd.f32 %v1947_v19, %v667_v28  ;;  %v492_v50 = vadd.f32 %v491_v55, %v1914_v12 }
 0x15c   : > { %v952_v37 = vadd.f32 %v933_v15, %v694_v45  ;;  %v1026_v11 = vld [vmem:[#allocation2] ss:$2 sm:$0xff]  ;;  %v1034_v54 = vld [vmem:[#allocation2 + $0x1] ss:$2 sm:$0xff] }
 0x15d   : > { %v1041_v26 = vmax.f32 %v1026_v11, %v1034_v54  ;;  %v963_v31 = vmul.f32 %v1972_v25, %v943_v41  ;;  %v605_v57 = vadd.f32 %v2078_v40, %v492_v50 }
 0x15e   : > { %v972_v34 = vmul.f32 %v1972_v25, %v952_v37  ;;  %v870_v10 = vpop.f32.mrf.mxu1 }
 0x15f   : > { %1045 = vst [vmem:[%s2025_s23] sm:$0xff] %v1041_v26  ;;  %v983_v19 = vadd.f32 %v1982_v38, %v963_v31 }
 0x160   : > { %v992_v12 = vadd.f32 %v1982_v38, %v972_v34  ;;  %v669_v46 = vpop.f32.mrf.mxu2 }
 0x161   : > { %v935_v0 = vpop.f32.mrf.mxu3  ;;  %v999_v14 = vmax.f32 %v983_v19, 0.0  ;;  %v670_v13 = vadd.f32 %v669_v46, %v605_v57 }
 0x162   : > { %v1008_v52 = vmax.f32 %v992_v12, 0.0  ;;  %v936_v58 = vadd.f32 %v935_v0, %v870_v10 }
 0x163   : > { %v1013_v53 = vmax.f32 %v999_v14, %v1001_v29  ;;  %v944_v43 = vadd.f32 %v2080_v20, %v670_v13 }
 0x164   : > { %v1016_v17 = vmax.f32 %v1006_v36, %v1008_v52  ;;  %v953_v22 = vadd.f32 %v936_v58, %v697_v51 }
 0x165   : > { %1021 = vst [vmem:[#allocation2 + $0x18] sm:$0xff] %v1013_v53  ;;  %v964_v23 = vmul.f32 %v1972_v25, %v944_v43 }
 0x166   : > { %v973_v63 = vmul.f32 %v1972_v25, %v953_v22  ;;  %1024 = vst [vmem:[#allocation2 + $0x30] sm:$0xff] %v1016_v17 }
 0x167   : > { %v984_v33 = vadd.f32 %v1982_v38, %v964_v23 }
 0x168   : > { %v993_v24 = vadd.f32 %v1982_v38, %v973_v63 }
 0x169   : > { %v1000_v4 = vmax.f32 %v984_v33, 0.0 }
 0x16a   : > { %v1009_v42 = vmax.f32 %v993_v24, 0.0 }
 0x16b   : > { %v1012_v1 = vmax.f32 %v998_v35, %v1000_v4 }
 0x16c   : > { %v1017_v3 = vmax.f32 %v1007_v56, %v1009_v42 }
 0x16d   : > { %1020 = vst [vmem:[#allocation2 + $0x10] sm:$0xff] %v1012_v1 }
 0x16e   : > { %1025 = vst [vmem:[#allocation2 + $0x38] sm:$0xff] %v1017_v3 }
 0x174   : > { %v1028_v47 = vld [vmem:[#allocation2 + $0x10] ss:$2 sm:$0xff]  ;;  %v1036_v5 = vld [vmem:[#allocation2 + $0x11] ss:$2 sm:$0xff] }
 0x175   : > { %v1042_v18 = vmax.f32 %v1028_v47, %v1036_v5  ;;  %v1032_v7 = vld [vmem:[#allocation2 + $0x30] ss:$2 sm:$0xff]  ;;  %v1040_v25 = vld [vmem:[#allocation2 + $0x31] ss:$2 sm:$0xff] }
 0x176   : > { %v1044_v30 = vmax.f32 %v1032_v7, %v1040_v25 }
 0x177   : > { %1046 = vst [vmem:[%s2025_s23 + $0x8] sm:$0xff] %v1042_v18 }
 0x178   : > { %1048 = vst [vmem:[%s2025_s23 + $0x18] sm:$0xff] %v1044_v30 }
 0x179 PF: > { %s14_s17 = sadd.s32 1, %s1376_s17   ;;  %s2081_s15 = smov %s1372_s16 }
 0x17a   : > { %p11_p5 = scmp.ge.s32.totalorder %s14_s17, 4   ;;  %s2082_s16 = smov %s2084_s18 }
 0x17c   :  { %13 = sbr.rel (!%p11_p5) target bundleno = 2 (0x2), region = 78 }

// kernel: cnn_forward.8
= control target key start
LH: loop header
LB: loop body
LE: loop exit
PB: predicated region body
PF: predicated region fallthrough
CT: control target
= control target key end

     0   :  { %s1603_s12 = smov 0   ;;  %s2326_s0 = inlined_call_operand.vmem [shape: f32[16,512], index: 0, kind: input, shape index: {}]   ;;  %s2327_s1 = inlined_call_operand.vmem [shape: f32[2,512,1024], index: 1, kind: input, shape index: {}]   ;;  %s2328_s2 = inlined_call_operand.vmem [shape: f32[2,1,1024], index: 2, kind: input, shape index: {}]   ;;  %s2329_s3 = inlined_call_operand.vmem [shape: f32[2,16,1024], index: 3, kind: output, shape index: {}]  }
   0x1 LB: > { %s1545_s13 = sadd.s32 4294967295, %s1581_s12   ;;  %p1549_p0 = scmp.ge.s32.totalorder %s1581_s12, 1  ;;  %s1581_s12 = sphi %s1603_s12, %s13_s12  }
   0x2   : > { %p146_p1 = scmp.lt.s32.totalorder %s1581_s12, 3 }
   0x4   : > { %p147_p2 = pnand %p1549_p0, %p146_p1 }
   0x5   : > { %p174_p3 = scmp.lt.s32.totalorder (!%p147_p2), %s1545_s13, 1 }
   0x6   : > { %150 = sbr.rel (%p147_p2) target bundleno = 473 (0x1d9), region = 32 }
   0xb   : > { %s2331_s13 = smov (!%p174_p3, %s1545_s13), 1 }
   0xc   : > { %s1557_s14 = sshll.u32 %s2331_s13, 12  ;;  %s1552_s7 = sshll.u32 %s2331_s13, 3 }
   0xd   : > { %s1617_s17 = scalar_lea.vmem %s2327_s1, %s1557_s14  ;;  %s182_s10 = scalar_lea.vmem %s2328_s2, %s1552_s7 }
   0xe   : > { %v572_v0 = vld [vmem:[%s1617_s17 + $0xbc0] sm:$0xff]  ;;  %v573_v62 = vld [vmem:[%s1617_s17 + $0xbc8] sm:$0xff]  ;;  %s1558_s11 = sshll.u32 %s2331_s13, 7 }
   0xf   : > { %v316_v1 = vld [vmem:[%s1617_s17 + $0x3c0] sm:$0xff]  ;;  %772 = vmatpush.msra.mxu2 %v572_v0  ;;  %v317_v0 = vld [vmem:[%s1617_s17 + $0x3c8] sm:$0xff]  ;;  %s2072_s15 = scalar_lea.vmem %s2329_s3, %s1558_s11 }
  0x10   : > { %v564_v2 = vld [vmem:[%s1617_s17 + $0xb80] sm:$0xff]  ;;  %726 = vmatpush.msra.mxu0 %v316_v1  ;;  %v701_v1 = vld [vmem:[%s1617_s17 + $0xfc8] sm:$0xff] }
  0x11   : > { %v700_v3 = vld [vmem:[%s1617_s17 + $0xfc0] sm:$0xff]  ;;  %773 = vmatpush.msra.mxu2 %v564_v2  ;;  %v565_v2 = vld [vmem:[%s1617_s17 + $0xb88] sm:$0xff] }
  0x12   : > { %v308_v4 = vld [vmem:[%s1617_s17 + $0x380] sm:$0xff]  ;;  %795 = vmatpush.msra.mxu3 %v700_v3 }
  0x13   : > { %v444_v5 = vld [vmem:[%s1617_s17 + $0x7c0] sm:$0xff]  ;;  %727 = vmatpush.msra.mxu0 %v308_v4  ;;  %v309_v4 = vld [vmem:[%s1617_s17 + $0x388] sm:$0xff] }
  0x14   : > { %749 = vmatpush.msra.mxu1 %v444_v5  ;;  %v556_v6 = vld [vmem:[%s1617_s17 + $0xb40] sm:$0xff]  ;;  %v445_v5 = vld [vmem:[%s1617_s17 + $0x7c8] sm:$0xff] }
  0x15   : > { %v692_v7 = vld [vmem:[%s1617_s17 + $0xf80] sm:$0xff]  ;;  %774 = vmatpush.msra.mxu2 %v556_v6  ;;  %v557_v6 = vld [vmem:[%s1617_s17 + $0xb48] sm:$0xff] }
  0x16   : > { %v300_v8 = vld [vmem:[%s1617_s17 + $0x340] sm:$0xff]  ;;  %796 = vmatpush.msra.mxu3 %v692_v7  ;;  %v693_v7 = vld [vmem:[%s1617_s17 + $0xf88] sm:$0xff] }
  0x17   : > { %v436_v9 = vld [vmem:[%s1617_s17 + $0x780] sm:$0xff]  ;;  %728 = vmatpush.msra.mxu0 %v300_v8  ;;  %v301_v8 = vld [vmem:[%s1617_s17 + $0x348] sm:$0xff] }
  0x18   : > { %v684_v10 = vld [vmem:[%s1617_s17 + $0xf40] sm:$0xff]  ;;  %750 = vmatpush.msra.mxu1 %v436_v9  ;;  %v437_v9 = vld [vmem:[%s1617_s17 + $0x788] sm:$0xff] }
  0x19   : > { %v548_v11 = vld [vmem:[%s1617_s17 + $0xb00] sm:$0xff]  ;;  %797 = vmatpush.msra.mxu3 %v684_v10  ;;  %v549_v10 = vld [vmem:[%s1617_s17 + $0xb08] sm:$0xff] }
  0x1a   : > { %v292_v12 = vld [vmem:[%s1617_s17 + $0x300] sm:$0xff]  ;;  %775 = vmatpush.msra.mxu2 %v548_v11  ;;  %v685_v11 = vld [vmem:[%s1617_s17 + $0xf48] sm:$0xff] }
  0x1b   : > { %v428_v13 = vld [vmem:[%s1617_s17 + $0x740] sm:$0xff]  ;;  %729 = vmatpush.msra.mxu0 %v292_v12  ;;  %v293_v12 = vld [vmem:[%s1617_s17 + $0x308] sm:$0xff] }
  0x1c   : > { %v676_v14 = vld [vmem:[%s1617_s17 + $0xf00] sm:$0xff]  ;;  %751 = vmatpush.msra.mxu1 %v428_v13  ;;  %v429_v13 = vld [vmem:[%s1617_s17 + $0x748] sm:$0xff] }
  0x1d   : > { %v420_v15 = vld [vmem:[%s1617_s17 + $0x700] sm:$0xff]  ;;  %798 = vmatpush.msra.mxu3 %v676_v14  ;;  %v541_v14 = vld [vmem:[%s1617_s17 + $0xac8] sm:$0xff] }
  0x1e   : > { %v540_v16 = vld [vmem:[%s1617_s17 + $0xac0] sm:$0xff]  ;;  %752 = vmatpush.msra.mxu1 %v420_v15  ;;  %v677_v15 = vld [vmem:[%s1617_s17 + $0xf08] sm:$0xff] }
  0x1f   : > { %v284_v17 = vld [vmem:[%s1617_s17 + $0x2c0] sm:$0xff]  ;;  %776 = vmatpush.msra.mxu2 %v540_v16  ;;  %v285_v16 = vld [vmem:[%s1617_s17 + $0x2c8] sm:$0xff] }
  0x20   : > { %v668_v18 = vld [vmem:[%s1617_s17 + $0xec0] sm:$0xff]  ;;  %730 = vmatpush.msra.mxu0 %v284_v17  ;;  %v421_v17 = vld [vmem:[%s1617_s17 + $0x708] sm:$0xff] }
  0x21   : > { %v412_v19 = vld [vmem:[%s1617_s17 + $0x6c0] sm:$0xff]  ;;  %799 = vmatpush.msra.mxu3 %v668_v18  ;;  %v533_v18 = vld [vmem:[%s1617_s17 + $0xa88] sm:$0xff] }
  0x22   : > { %v532_v20 = vld [vmem:[%s1617_s17 + $0xa80] sm:$0xff]  ;;  %753 = vmatpush.msra.mxu1 %v412_v19  ;;  %v669_v19 = vld [vmem:[%s1617_s17 + $0xec8] sm:$0xff] }
  0x23   : > { %v276_v21 = vld [vmem:[%s1617_s17 + $0x280] sm:$0xff]  ;;  %777 = vmatpush.msra.mxu2 %v532_v20  ;;  %v277_v20 = vld [vmem:[%s1617_s17 + $0x288] sm:$0xff] }
  0x24   : > { %v660_v22 = vld [vmem:[%s1617_s17 + $0xe80] sm:$0xff]  ;;  %731 = vmatpush.msra.mxu0 %v276_v21  ;;  %v413_v21 = vld [vmem:[%s1617_s17 + $0x6c8] sm:$0xff] }
  0x25   : > { %v404_v23 = vld [vmem:[%s1617_s17 + $0x680] sm:$0xff]  ;;  %800 = vmatpush.msra.mxu3 %v660_v22  ;;  %v525_v22 = vld [vmem:[%s1617_s17 + $0xa48] sm:$0xff] }
  0x26   : > { %v524_v24 = vld [vmem:[%s1617_s17 + $0xa40] sm:$0xff]  ;;  %754 = vmatpush.msra.mxu1 %v404_v23  ;;  %v661_v23 = vld [vmem:[%s1617_s17 + $0xe88] sm:$0xff] }
  0x27   : > { %v268_v25 = vld [vmem:[%s1617_s17 + $0x240] sm:$0xff]  ;;  %778 = vmatpush.msra.mxu2 %v524_v24  ;;  %v269_v24 = vld [vmem:[%s1617_s17 + $0x248] sm:$0xff] }
  0x28   : > { %v652_v26 = vld [vmem:[%s1617_s17 + $0xe40] sm:$0xff]  ;;  %732 = vmatpush.msra.mxu0 %v268_v25  ;;  %v405_v25 = vld [vmem:[%s1617_s17 + $0x688] sm:$0xff] }
  0x29   : > { %v396_v27 = vld [vmem:[%s1617_s17 + $0x640] sm:$0xff]  ;;  %801 = vmatpush.msra.mxu3 %v652_v26  ;;  %v517_v26 = vld [vmem:[%s1617_s17 + $0xa08] sm:$0xff] }
  0x2a   : > { %v516_v28 = vld [vmem:[%s1617_s17 + $0xa00] sm:$0xff]  ;;  %755 = vmatpush.msra.mxu1 %v396_v27  ;;  %v653_v27 = vld [vmem:[%s1617_s17 + $0xe48] sm:$0xff] }
  0x2b   : > { %v260_v29 = vld [vmem:[%s1617_s17 + $0x200] sm:$0xff]  ;;  %779 = vmatpush.msra.mxu2 %v516_v28  ;;  %v261_v28 = vld [vmem:[%s1617_s17 + $0x208] sm:$0xff] }
  0x2c   : > { %v644_v30 = vld [vmem:[%s1617_s17 + $0xe00] sm:$0xff]  ;;  %733 = vmatpush.msra.mxu0 %v260_v29  ;;  %v397_v29 = vld [vmem:[%s1617_s17 + $0x648] sm:$0xff] }
  0x2d   : > { %v388_v31 = vld [vmem:[%s1617_s17 + $0x600] sm:$0xff]  ;;  %802 = vmatpush.msra.mxu3 %v644_v30  ;;  %v509_v30 = vld [vmem:[%s1617_s17 + $0x9c8] sm:$0xff] }
  0x2e   : > { %v508_v32 = vld [vmem:[%s1617_s17 + $0x9c0] sm:$0xff]  ;;  %756 = vmatpush.msra.mxu1 %v388_v31  ;;  %v645_v31 = vld [vmem:[%s1617_s17 + $0xe08] sm:$0xff] }
  0x2f   : > { %v252_v33 = vld [vmem:[%s1617_s17 + $0x1c0] sm:$0xff]  ;;  %780 = vmatpush.msra.mxu2 %v508_v32  ;;  %v253_v32 = vld [vmem:[%s1617_s17 + $0x1c8] sm:$0xff] }
  0x30   : > { %v636_v34 = vld [vmem:[%s1617_s17 + $0xdc0] sm:$0xff]  ;;  %734 = vmatpush.msra.mxu0 %v252_v33  ;;  %v389_v33 = vld [vmem:[%s1617_s17 + $0x608] sm:$0xff] }
  0x31   : > { %v380_v35 = vld [vmem:[%s1617_s17 + $0x5c0] sm:$0xff]  ;;  %803 = vmatpush.msra.mxu3 %v636_v34  ;;  %v501_v34 = vld [vmem:[%s1617_s17 + $0x988] sm:$0xff] }
  0x32   : > { %v500_v36 = vld [vmem:[%s1617_s17 + $0x980] sm:$0xff]  ;;  %757 = vmatpush.msra.mxu1 %v380_v35  ;;  %v637_v35 = vld [vmem:[%s1617_s17 + $0xdc8] sm:$0xff] }
  0x33   : > { %v244_v37 = vld [vmem:[%s1617_s17 + $0x180] sm:$0xff]  ;;  %781 = vmatpush.msra.mxu2 %v500_v36  ;;  %v245_v36 = vld [vmem:[%s1617_s17 + $0x188] sm:$0xff] }
  0x34   : > { %v628_v38 = vld [vmem:[%s1617_s17 + $0xd80] sm:$0xff]  ;;  %735 = vmatpush.msra.mxu0 %v244_v37  ;;  %v381_v37 = vld [vmem:[%s1617_s17 + $0x5c8] sm:$0xff] }
  0x35   : > { %v372_v39 = vld [vmem:[%s1617_s17 + $0x580] sm:$0xff]  ;;  %804 = vmatpush.msra.mxu3 %v628_v38  ;;  %v493_v38 = vld [vmem:[%s1617_s17 + $0x948] sm:$0xff] }
  0x36   : > { %v492_v40 = vld [vmem:[%s1617_s17 + $0x940] sm:$0xff]  ;;  %758 = vmatpush.msra.mxu1 %v372_v39  ;;  %v629_v39 = vld [vmem:[%s1617_s17 + $0xd88] sm:$0xff] }
  0x37   : > { %v236_v41 = vld [vmem:[%s1617_s17 + $0x140] sm:$0xff]  ;;  %782 = vmatpush.msra.mxu2 %v492_v40  ;;  %v237_v40 = vld [vmem:[%s1617_s17 + $0x148] sm:$0xff] }
  0x38   : > { %v620_v42 = vld [vmem:[%s1617_s17 + $0xd40] sm:$0xff]  ;;  %736 = vmatpush.msra.mxu0 %v236_v41  ;;  %v373_v41 = vld [vmem:[%s1617_s17 + $0x588] sm:$0xff] }
  0x39   : > { %v364_v43 = vld [vmem:[%s1617_s17 + $0x540] sm:$0xff]  ;;  %805 = vmatpush.msra.mxu3 %v620_v42  ;;  %v485_v42 = vld [vmem:[%s1617_s17 + $0x908] sm:$0xff] }
  0x3a   : > { %v484_v44 = vld [vmem:[%s1617_s17 + $0x900] sm:$0xff]  ;;  %759 = vmatpush.msra.mxu1 %v364_v43  ;;  %v621_v43 = vld [vmem:[%s1617_s17 + $0xd48] sm:$0xff] }
  0x3b   : > { %v228_v45 = vld [vmem:[%s1617_s17 + $0x100] sm:$0xff]  ;;  %783 = vmatpush.msra.mxu2 %v484_v44  ;;  %v229_v44 = vld [vmem:[%s1617_s17 + $0x108] sm:$0xff] }
  0x3c   : > { %v612_v46 = vld [vmem:[%s1617_s17 + $0xd00] sm:$0xff]  ;;  %737 = vmatpush.msra.mxu0 %v228_v45  ;;  %v365_v45 = vld [vmem:[%s1617_s17 + $0x548] sm:$0xff] }
  0x3d   : > { %v356_v47 = vld [vmem:[%s1617_s17 + $0x500] sm:$0xff]  ;;  %806 = vmatpush.msra.mxu3 %v612_v46  ;;  %v477_v46 = vld [vmem:[%s1617_s17 + $0x8c8] sm:$0xff] }
  0x3e   : > { %v476_v48 = vld [vmem:[%s1617_s17 + $0x8c0] sm:$0xff]  ;;  %760 = vmatpush.msra.mxu1 %v356_v47  ;;  %v613_v47 = vld [vmem:[%s1617_s17 + $0xd08] sm:$0xff] }
  0x3f   : > { %v220_v49 = vld [vmem:[%s1617_s17 + $0xc0] sm:$0xff]  ;;  %784 = vmatpush.msra.mxu2 %v476_v48  ;;  %v221_v48 = vld [vmem:[%s1617_s17 + $0xc8] sm:$0xff] }
  0x40   : > { %v604_v50 = vld [vmem:[%s1617_s17 + $0xcc0] sm:$0xff]  ;;  %738 = vmatpush.msra.mxu0 %v220_v49  ;;  %v357_v49 = vld [vmem:[%s1617_s17 + $0x508] sm:$0xff] }
  0x41   : > { %v348_v51 = vld [vmem:[%s1617_s17 + $0x4c0] sm:$0xff]  ;;  %807 = vmatpush.msra.mxu3 %v604_v50  ;;  %v469_v50 = vld [vmem:[%s1617_s17 + $0x888] sm:$0xff] }
  0x42   : > { %v468_v52 = vld [vmem:[%s1617_s17 + $0x880] sm:$0xff]  ;;  %761 = vmatpush.msra.mxu1 %v348_v51  ;;  %v605_v51 = vld [vmem:[%s1617_s17 + $0xcc8] sm:$0xff] }
  0x43   : > { %v212_v53 = vld [vmem:[%s1617_s17 + $0x80] sm:$0xff]  ;;  %785 = vmatpush.msra.mxu2 %v468_v52  ;;  %v213_v52 = vld [vmem:[%s1617_s17 + $0x88] sm:$0xff] }
  0x44   : > { %v596_v54 = vld [vmem:[%s1617_s17 + $0xc80] sm:$0xff]  ;;  %739 = vmatpush.msra.mxu0 %v212_v53  ;;  %v349_v53 = vld [vmem:[%s1617_s17 + $0x4c8] sm:$0xff] }
  0x45   : > { %v340_v55 = vld [vmem:[%s1617_s17 + $0x480] sm:$0xff]  ;;  %808 = vmatpush.msra.mxu3 %v596_v54  ;;  %v461_v54 = vld [vmem:[%s1617_s17 + $0x848] sm:$0xff] }
  0x46   : > { %v460_v56 = vld [vmem:[%s1617_s17 + $0x840] sm:$0xff]  ;;  %762 = vmatpush.msra.mxu1 %v340_v55  ;;  %v597_v55 = vld [vmem:[%s1617_s17 + $0xc88] sm:$0xff] }
  0x47   : > { %v204_v57 = vld [vmem:[%s1617_s17 + $0x40] sm:$0xff]  ;;  %786 = vmatpush.msra.mxu2 %v460_v56  ;;  %v205_v56 = vld [vmem:[%s1617_s17 + $0x48] sm:$0xff] }
  0x48   : > { %v588_v58 = vld [vmem:[%s1617_s17 + $0xc40] sm:$0xff]  ;;  %740 = vmatpush.msra.mxu0 %v204_v57  ;;  %v341_v57 = vld [vmem:[%s1617_s17 + $0x488] sm:$0xff] }
  0x49   : > { %v332_v59 = vld [vmem:[%s1617_s17 + $0x440] sm:$0xff]  ;;  %809 = vmatpush.msra.mxu3 %v588_v58  ;;  %v453_v58 = vld [vmem:[%s1617_s17 + $0x808] sm:$0xff] }
  0x4a   : > { %v452_v60 = vld [vmem:[%s1617_s17 + $0x800] sm:$0xff]  ;;  %763 = vmatpush.msra.mxu1 %v332_v59  ;;  %v589_v59 = vld [vmem:[%s1617_s17 + $0xc48] sm:$0xff] }
  0x4b   : > { %v196_v61 = vld [vmem:[%s1617_s17] sm:$0xff]  ;;  %787 = vmatpush.msra.mxu2 %v452_v60  ;;  %v1746_v60 = vld [vmem:[%s2326_s0 + $0x10] sm:$0xff] }
  0x4c   : > { %v580_v63 = vld [vmem:[%s1617_s17 + $0xc00] sm:$0xff]  ;;  %741 = vmatpush.msra.mxu0 %v196_v61  ;;  %v197_v61 = vld [vmem:[%s1617_s17 + $0x8] sm:$0xff]  ;;  %788 = vmatmul.f32.vlgmr.msra.gmra.mxu2 %v1746_v60 }
  0x4d   : > { %v324_v3 = vld [vmem:[%s1617_s17 + $0x400] sm:$0xff]  ;;  %864 = vmatpush.msrb.mxu2 %v573_v62  ;;  %810 = vmatpush.msra.mxu3 %v580_v63  ;;  %v574_v62 = vld [vmem:[%s1617_s17 + $0xbd0] sm:$0xff]  ;;  %v333_v63 = vld [vmem:[%s1617_s17 + $0x448] sm:$0xff] }
  0x4e   : > { %818 = vmatpush.msrb.mxu0 %v317_v0  ;;  %764 = vmatpush.msra.mxu1 %v324_v3  ;;  %v581_v0 = vld [vmem:[%s1617_s17 + $0xc08] sm:$0xff]  ;;  %v318_v3 = vld [vmem:[%s1617_s17 + $0x3d0] sm:$0xff] }
  0x4f   : > { %887 = vmatpush.msrb.mxu3 %v701_v1  ;;  %865 = vmatpush.msrb.mxu2 %v565_v2  ;;  %v1755_v1 = vld [vmem:[%s2326_s0] sm:$0xff]  ;;  %v1761_v2 = vld [vmem:[%s2326_s0 + $0x18] sm:$0xff] }
  0x50   : > { %819 = vmatpush.msrb.mxu0 %v309_v4  ;;  %841 = vmatpush.msrb.mxu1 %v445_v5  ;;  %v566_v4 = vld [vmem:[%s1617_s17 + $0xb90] sm:$0xff] }
  0x51   : > { %866 = vmatpush.msrb.mxu2 %v557_v6  ;;  %888 = vmatpush.msrb.mxu3 %v693_v7  ;;  %v702_v5 = vld [vmem:[%s1617_s17 + $0xfd0] sm:$0xff]  ;;  %v325_v6 = vld [vmem:[%s1617_s17 + $0x408] sm:$0xff] }
  0x52   : > { %820 = vmatpush.msrb.mxu0 %v301_v8  ;;  %842 = vmatpush.msrb.mxu1 %v437_v9  ;;  %v310_v7 = vld [vmem:[%s1617_s17 + $0x390] sm:$0xff]  ;;  %v1773_v8 = vld [vmem:[%s2326_s0 + $0x8] sm:$0xff] }
  0x53   : > { %867 = vmatpush.msrb.mxu2 %v549_v10  ;;  %889 = vmatpush.msrb.mxu3 %v685_v11  ;;  %v558_v9 = vld [vmem:[%s1617_s17 + $0xb50] sm:$0xff] }
  0x54   : > { %821 = vmatpush.msrb.mxu0 %v293_v12  ;;  %843 = vmatpush.msrb.mxu1 %v429_v13  ;;  %v446_v10 = vld [vmem:[%s1617_s17 + $0x7d0] sm:$0xff] }
  0x55   : > { %868 = vmatpush.msrb.mxu2 %v541_v14  ;;  %890 = vmatpush.msrb.mxu3 %v677_v15  ;;  %v694_v11 = vld [vmem:[%s1617_s17 + $0xf90] sm:$0xff] }
  0x56   : > { %822 = vmatpush.msrb.mxu0 %v285_v16  ;;  %844 = vmatpush.msrb.mxu1 %v421_v17  ;;  %v302_v12 = vld [vmem:[%s1617_s17 + $0x350] sm:$0xff] }
  0x57   : > { %869 = vmatpush.msrb.mxu2 %v533_v18  ;;  %891 = vmatpush.msrb.mxu3 %v669_v19  ;;  %v550_v13 = vld [vmem:[%s1617_s17 + $0xb10] sm:$0xff] }
  0x58   : > { %823 = vmatpush.msrb.mxu0 %v277_v20  ;;  %845 = vmatpush.msrb.mxu1 %v413_v21  ;;  %v438_v14 = vld [vmem:[%s1617_s17 + $0x790] sm:$0xff] }
  0x59   : > { %870 = vmatpush.msrb.mxu2 %v525_v22  ;;  %892 = vmatpush.msrb.mxu3 %v661_v23  ;;  %v686_v15 = vld [vmem:[%s1617_s17 + $0xf50] sm:$0xff] }
  0x5a   : > { %824 = vmatpush.msrb.mxu0 %v269_v24  ;;  %846 = vmatpush.msrb.mxu1 %v405_v25  ;;  %v294_v16 = vld [vmem:[%s1617_s17 + $0x310] sm:$0xff] }
  0x5b   : > { %871 = vmatpush.msrb.mxu2 %v517_v26  ;;  %893 = vmatpush.msrb.mxu3 %v653_v27  ;;  %v542_v17 = vld [vmem:[%s1617_s17 + $0xad0] sm:$0xff] }
  0x5c   : > { %825 = vmatpush.msrb.mxu0 %v261_v28  ;;  %847 = vmatpush.msrb.mxu1 %v397_v29  ;;  %v430_v18 = vld [vmem:[%s1617_s17 + $0x750] sm:$0xff] }
  0x5d   : > { %872 = vmatpush.msrb.mxu2 %v509_v30  ;;  %894 = vmatpush.msrb.mxu3 %v645_v31  ;;  %v678_v19 = vld [vmem:[%s1617_s17 + $0xf10] sm:$0xff] }
  0x5e   : > { %826 = vmatpush.msrb.mxu0 %v253_v32  ;;  %848 = vmatpush.msrb.mxu1 %v389_v33  ;;  %v286_v20 = vld [vmem:[%s1617_s17 + $0x2d0] sm:$0xff] }
  0x5f   : > { %873 = vmatpush.msrb.mxu2 %v501_v34  ;;  %895 = vmatpush.msrb.mxu3 %v637_v35  ;;  %v534_v21 = vld [vmem:[%s1617_s17 + $0xa90] sm:$0xff] }
  0x60   : > { %827 = vmatpush.msrb.mxu0 %v245_v36  ;;  %849 = vmatpush.msrb.mxu1 %v381_v37  ;;  %v422_v22 = vld [vmem:[%s1617_s17 + $0x710] sm:$0xff] }
  0x61   : > { %874 = vmatpush.msrb.mxu2 %v493_v38  ;;  %896 = vmatpush.msrb.mxu3 %v629_v39  ;;  %v670_v23 = vld [vmem:[%s1617_s17 + $0xed0] sm:$0xff] }
  0x62   : > { %828 = vmatpush.msrb.mxu0 %v237_v40  ;;  %850 = vmatpush.msrb.mxu1 %v373_v41  ;;  %v278_v24 = vld [vmem:[%s1617_s17 + $0x290] sm:$0xff] }
  0x63   : > { %875 = vmatpush.msrb.mxu2 %v485_v42  ;;  %897 = vmatpush.msrb.mxu3 %v621_v43  ;;  %v526_v25 = vld [vmem:[%s1617_s17 + $0xa50] sm:$0xff] }
  0x64   : > { %829 = vmatpush.msrb.mxu0 %v229_v44  ;;  %851 = vmatpush.msrb.mxu1 %v365_v45  ;;  %v414_v26 = vld [vmem:[%s1617_s17 + $0x6d0] sm:$0xff] }
  0x65   : > { %876 = vmatpush.msrb.mxu2 %v477_v46  ;;  %898 = vmatpush.msrb.mxu3 %v613_v47  ;;  %v662_v27 = vld [vmem:[%s1617_s17 + $0xe90] sm:$0xff] }
  0x66   : > { %830 = vmatpush.msrb.mxu0 %v221_v48  ;;  %852 = vmatpush.msrb.mxu1 %v357_v49  ;;  %v270_v28 = vld [vmem:[%s1617_s17 + $0x250] sm:$0xff] }
  0x67   : > { %877 = vmatpush.msrb.mxu2 %v469_v50  ;;  %899 = vmatpush.msrb.mxu3 %v605_v51  ;;  %v518_v29 = vld [vmem:[%s1617_s17 + $0xa10] sm:$0xff] }
  0x68   : > { %831 = vmatpush.msrb.mxu0 %v213_v52  ;;  %853 = vmatpush.msrb.mxu1 %v349_v53  ;;  %v406_v30 = vld [vmem:[%s1617_s17 + $0x690] sm:$0xff]  ;;  %v1827_v53 = vld [vmem:[%s2326_s0 + $0x20] sm:$0xff] }
  0x69   : > { %878 = vmatpush.msrb.mxu2 %v461_v54  ;;  %900 = vmatpush.msrb.mxu3 %v597_v55  ;;  %v654_v31 = vld [vmem:[%s1617_s17 + $0xe50] sm:$0xff]  ;;  %v1833_v54 = vld [vmem:[%s2326_s0 + $0x38] sm:$0xff] }
  0x6a   : > { %832 = vmatpush.msrb.mxu0 %v205_v56  ;;  %854 = vmatpush.msrb.mxu1 %v341_v57  ;;  %v262_v32 = vld [vmem:[%s1617_s17 + $0x210] sm:$0xff] }
  0x6b   : > { %879 = vmatpush.msrb.mxu2 %v453_v58  ;;  %901 = vmatpush.msrb.mxu3 %v589_v59  ;;  %v510_v33 = vld [vmem:[%s1617_s17 + $0x9d0] sm:$0xff]  ;;  %v1843_v59 = vld [vmem:[%s2326_s0 + $0x28] sm:$0xff] }
  0x6c   : > { %833 = vmatpush.msrb.mxu0 %v197_v61  ;;  %855 = vmatpush.msrb.mxu1 %v333_v63  ;;  %v398_v34 = vld [vmem:[%s1617_s17 + $0x650] sm:$0xff] }
  0x6d   : > { %956 = vmatpush.msra.mxu2 %v574_v62  ;;  %902 = vmatpush.msrb.mxu3 %v581_v0  ;;  %v646_v35 = vld [vmem:[%s1617_s17 + $0xe10] sm:$0xff] }
  0x6e   : > { %742 = vmatmul.f32.vlgmr.msra.gmra.mxu0 %v1755_v1  ;;  %811 = vmatmul.f32.vlgmr.msra.gmra.mxu3 %v1761_v2  ;;  %v254_v36 = vld [vmem:[%s1617_s17 + $0x1d0] sm:$0xff] }
  0x6f   : > { %910 = vmatpush.msra.mxu0 %v318_v3  ;;  %957 = vmatpush.msra.mxu2 %v566_v4  ;;  %v502_v37 = vld [vmem:[%s1617_s17 + $0x990] sm:$0xff] }
  0x70   : > { %979 = vmatpush.msra.mxu3 %v702_v5  ;;  %856 = vmatpush.msrb.mxu1 %v325_v6  ;;  %v390_v38 = vld [vmem:[%s1617_s17 + $0x610] sm:$0xff] }
  0x71   : > { %911 = vmatpush.msra.mxu0 %v310_v7  ;;  %765 = vmatmul.f32.vlgmr.msra.gmra.mxu1 %v1773_v8  ;;  %v638_v39 = vld [vmem:[%s1617_s17 + $0xdd0] sm:$0xff] }
  0x72   : > { %958 = vmatpush.msra.mxu2 %v558_v9  ;;  %933 = vmatpush.msra.mxu1 %v446_v10  ;;  %v246_v40 = vld [vmem:[%s1617_s17 + $0x190] sm:$0xff]  ;;  %v575_v9 = vld [vmem:[%s1617_s17 + $0xbd8] sm:$0xff] }
  0x73   : > { %980 = vmatpush.msra.mxu3 %v694_v11  ;;  %912 = vmatpush.msra.mxu0 %v302_v12  ;;  %v494_v41 = vld [vmem:[%s1617_s17 + $0x950] sm:$0xff]  ;;  %v319_v12 = vld [vmem:[%s1617_s17 + $0x3d8] sm:$0xff] }
  0x74   : > { %959 = vmatpush.msra.mxu2 %v550_v13  ;;  %934 = vmatpush.msra.mxu1 %v438_v14  ;;  %v382_v42 = vld [vmem:[%s1617_s17 + $0x5d0] sm:$0xff]  ;;  %v567_v13 = vld [vmem:[%s1617_s17 + $0xb98] sm:$0xff] }
  0x75   : > { %981 = vmatpush.msra.mxu3 %v686_v15  ;;  %913 = vmatpush.msra.mxu0 %v294_v16  ;;  %v630_v43 = vld [vmem:[%s1617_s17 + $0xd90] sm:$0xff]  ;;  %v703_v14 = vld [vmem:[%s1617_s17 + $0xfd8] sm:$0xff] }
  0x76   : > { %960 = vmatpush.msra.mxu2 %v542_v17  ;;  %935 = vmatpush.msra.mxu1 %v430_v18  ;;  %v238_v44 = vld [vmem:[%s1617_s17 + $0x150] sm:$0xff]  ;;  %v311_v16 = vld [vmem:[%s1617_s17 + $0x398] sm:$0xff] }
  0x77   : > { %982 = vmatpush.msra.mxu3 %v678_v19  ;;  %914 = vmatpush.msra.mxu0 %v286_v20  ;;  %v486_v45 = vld [vmem:[%s1617_s17 + $0x910] sm:$0xff]  ;;  %v559_v17 = vld [vmem:[%s1617_s17 + $0xb58] sm:$0xff] }
  0x78   : > { %961 = vmatpush.msra.mxu2 %v534_v21  ;;  %936 = vmatpush.msra.mxu1 %v422_v22  ;;  %v374_v46 = vld [vmem:[%s1617_s17 + $0x590] sm:$0xff]  ;;  %v447_v18 = vld [vmem:[%s1617_s17 + $0x7d8] sm:$0xff] }
  0x79   : > { %983 = vmatpush.msra.mxu3 %v670_v23  ;;  %915 = vmatpush.msra.mxu0 %v278_v24  ;;  %v622_v47 = vld [vmem:[%s1617_s17 + $0xd50] sm:$0xff]  ;;  %v695_v19 = vld [vmem:[%s1617_s17 + $0xf98] sm:$0xff] }
  0x7a   : > { %962 = vmatpush.msra.mxu2 %v526_v25  ;;  %937 = vmatpush.msra.mxu1 %v414_v26  ;;  %v1818_v48 = vld [vmem:[%s2326_s0 + $0x30] sm:$0xff]  ;;  %v303_v20 = vld [vmem:[%s1617_s17 + $0x358] sm:$0xff] }
  0x7b   : > { %984 = vmatpush.msra.mxu3 %v662_v27  ;;  %916 = vmatpush.msra.mxu0 %v270_v28  ;;  %v230_v49 = vld [vmem:[%s1617_s17 + $0x110] sm:$0xff]  ;;  %v551_v21 = vld [vmem:[%s1617_s17 + $0xb18] sm:$0xff] }
  0x7c   : > { %963 = vmatpush.msra.mxu2 %v518_v29  ;;  %938 = vmatpush.msra.mxu1 %v406_v30  ;;  %v366_v50 = vld [vmem:[%s1617_s17 + $0x550] sm:$0xff]  ;;  %v439_v22 = vld [vmem:[%s1617_s17 + $0x798] sm:$0xff] }
  0x7d   : > { %985 = vmatpush.msra.mxu3 %v654_v31  ;;  %917 = vmatpush.msra.mxu0 %v262_v32  ;;  %v478_v51 = vld [vmem:[%s1617_s17 + $0x8d0] sm:$0xff]  ;;  %v687_v23 = vld [vmem:[%s1617_s17 + $0xf58] sm:$0xff] }
  0x7e   : > { %964 = vmatpush.msra.mxu2 %v510_v33  ;;  %939 = vmatpush.msra.mxu1 %v398_v34  ;;  %v614_v52 = vld [vmem:[%s1617_s17 + $0xd10] sm:$0xff]  ;;  %v295_v24 = vld [vmem:[%s1617_s17 + $0x318] sm:$0xff] }
  0x7f   : > { %986 = vmatpush.msra.mxu3 %v646_v35  ;;  %918 = vmatpush.msra.mxu0 %v254_v36  ;;  %v222_v55 = vld [vmem:[%s1617_s17 + $0xd0] sm:$0xff]  ;;  %v543_v25 = vld [vmem:[%s1617_s17 + $0xad8] sm:$0xff] }
  0x80   : > { %965 = vmatpush.msra.mxu2 %v502_v37  ;;  %940 = vmatpush.msra.mxu1 %v390_v38  ;;  %v358_v56 = vld [vmem:[%s1617_s17 + $0x510] sm:$0xff]  ;;  %v431_v26 = vld [vmem:[%s1617_s17 + $0x758] sm:$0xff] }
  0x81   : > { %987 = vmatpush.msra.mxu3 %v638_v39  ;;  %919 = vmatpush.msra.mxu0 %v246_v40  ;;  %v470_v57 = vld [vmem:[%s1617_s17 + $0x890] sm:$0xff]  ;;  %v679_v27 = vld [vmem:[%s1617_s17 + $0xf18] sm:$0xff] }
  0x82   : > { %966 = vmatpush.msra.mxu2 %v494_v41  ;;  %941 = vmatpush.msra.mxu1 %v382_v42  ;;  %v606_v58 = vld [vmem:[%s1617_s17 + $0xcd0] sm:$0xff]  ;;  %v287_v28 = vld [vmem:[%s1617_s17 + $0x2d8] sm:$0xff] }
  0x83   : > { %988 = vmatpush.msra.mxu3 %v630_v43  ;;  %920 = vmatpush.msra.mxu0 %v238_v44  ;;  %v214_v61 = vld [vmem:[%s1617_s17 + $0x90] sm:$0xff]  ;;  %v535_v29 = vld [vmem:[%s1617_s17 + $0xa98] sm:$0xff] }
  0x84   : > { %967 = vmatpush.msra.mxu2 %v486_v45  ;;  %942 = vmatpush.msra.mxu1 %v374_v46  ;;  %v350_v62 = vld [vmem:[%s1617_s17 + $0x4d0] sm:$0xff]  ;;  %v423_v30 = vld [vmem:[%s1617_s17 + $0x718] sm:$0xff] }
  0x85   : > { %989 = vmatpush.msra.mxu3 %v622_v47  ;;  %791 = vmatmul.f32.gmra.mxu2 %v1818_v48  ;;  %v462_v63 = vld [vmem:[%s1617_s17 + $0x850] sm:$0xff]  ;;  %v671_v31 = vld [vmem:[%s1617_s17 + $0xed8] sm:$0xff] }
  0x86   : > { %921 = vmatpush.msra.mxu0 %v230_v49  ;;  %943 = vmatpush.msra.mxu1 %v366_v50  ;;  %v598_v0 = vld [vmem:[%s1617_s17 + $0xc90] sm:$0xff]  ;;  %v279_v32 = vld [vmem:[%s1617_s17 + $0x298] sm:$0xff] }
  0x87   : > { %968 = vmatpush.msra.mxu2 %v478_v51  ;;  %990 = vmatpush.msra.mxu3 %v614_v52  ;;  %v206_v3 = vld [vmem:[%s1617_s17 + $0x50] sm:$0xff]  ;;  %v527_v33 = vld [vmem:[%s1617_s17 + $0xa58] sm:$0xff] }
  0x88   : > { %745 = vmatmul.f32.gmra.mxu0 %v1827_v53  ;;  %814 = vmatmul.f32.gmra.mxu3 %v1833_v54  ;;  %v342_v4 = vld [vmem:[%s1617_s17 + $0x490] sm:$0xff]  ;;  %v415_v34 = vld [vmem:[%s1617_s17 + $0x6d8] sm:$0xff] }
  0x89   : > { %922 = vmatpush.msra.mxu0 %v222_v55  ;;  %944 = vmatpush.msra.mxu1 %v358_v56  ;;  %v454_v5 = vld [vmem:[%s1617_s17 + $0x810] sm:$0xff]  ;;  %v663_v35 = vld [vmem:[%s1617_s17 + $0xe98] sm:$0xff] }
  0x8a   : > { %969 = vmatpush.msra.mxu2 %v470_v57  ;;  %991 = vmatpush.msra.mxu3 %v606_v58  ;;  %v590_v6 = vld [vmem:[%s1617_s17 + $0xc50] sm:$0xff]  ;;  %v271_v36 = vld [vmem:[%s1617_s17 + $0x258] sm:$0xff] }
  0x8b   : > { %768 = vmatmul.f32.gmra.mxu1 %v1843_v59  ;;  %923 = vmatpush.msra.mxu0 %v214_v61  ;;  %v198_v7 = vld [vmem:[%s1617_s17 + $0x10] sm:$0xff]  ;;  %v519_v37 = vld [vmem:[%s1617_s17 + $0xa18] sm:$0xff] }
  0x8c   : > { %945 = vmatpush.msra.mxu1 %v350_v62  ;;  %970 = vmatpush.msra.mxu2 %v462_v63  ;;  %v334_v10 = vld [vmem:[%s1617_s17 + $0x450] sm:$0xff]  ;;  %v407_v38 = vld [vmem:[%s1617_s17 + $0x698] sm:$0xff] }
  0x8d   : > { %992 = vmatpush.msra.mxu3 %v598_v0  ;;  %924 = vmatpush.msra.mxu0 %v206_v3  ;;  %v582_v11 = vld [vmem:[%s1617_s17 + $0xc10] sm:$0xff]  ;;  %v655_v39 = vld [vmem:[%s1617_s17 + $0xe58] sm:$0xff] }
  0x8e   : > { %946 = vmatpush.msra.mxu1 %v342_v4  ;;  %971 = vmatpush.msra.mxu2 %v454_v5  ;;  %v326_v15 = vld [vmem:[%s1617_s17 + $0x410] sm:$0xff]  ;;  %v263_v40 = vld [vmem:[%s1617_s17 + $0x218] sm:$0xff] }
  0x8f   : > { %993 = vmatpush.msra.mxu3 %v590_v6  ;;  %880 = vmatmul.f32.vlgmr.msrb.gmra.mxu2 %v1746_v60  ;;  %v511_v41 = vld [vmem:[%s1617_s17 + $0x9d8] sm:$0xff] }
  0x90   : > { %925 = vmatpush.msra.mxu0 %v198_v7  ;;  %1048 = vmatpush.msrb.mxu2 %v575_v9  ;;  %v399_v42 = vld [vmem:[%s1617_s17 + $0x658] sm:$0xff] }
  0x91   : > { %947 = vmatpush.msra.mxu1 %v334_v10  ;;  %994 = vmatpush.msra.mxu3 %v582_v11  ;;  %v647_v43 = vld [vmem:[%s1617_s17 + $0xe18] sm:$0xff] }
  0x92   : > { %834 = vmatmul.f32.vlgmr.msrb.gmra.mxu0 %v1755_v1  ;;  %903 = vmatmul.f32.vlgmr.msrb.gmra.mxu3 %v1761_v2  ;;  %v255_v44 = vld [vmem:[%s1617_s17 + $0x1d8] sm:$0xff] }
  0x93   : > { %1002 = vmatpush.msrb.mxu0 %v319_v12  ;;  %1049 = vmatpush.msrb.mxu2 %v567_v13  ;;  %v503_v45 = vld [vmem:[%s1617_s17 + $0x998] sm:$0xff] }
  0x94   : > { %1071 = vmatpush.msrb.mxu3 %v703_v14  ;;  %948 = vmatpush.msra.mxu1 %v326_v15  ;;  %v391_v46 = vld [vmem:[%s1617_s17 + $0x618] sm:$0xff] }
  0x95   : > { %1003 = vmatpush.msrb.mxu0 %v311_v16  ;;  %857 = vmatmul.f32.vlgmr.msrb.gmra.mxu1 %v1773_v8  ;;  %v639_v47 = vld [vmem:[%s1617_s17 + $0xdd8] sm:$0xff] }
  0x96   : > { %1050 = vmatpush.msrb.mxu2 %v559_v17  ;;  %1025 = vmatpush.msrb.mxu1 %v447_v18  ;;  %v247_v49 = vld [vmem:[%s1617_s17 + $0x198] sm:$0xff]  ;;  %v576_v17 = vld [vmem:[%s1617_s17 + $0xbe0] sm:$0xff] }
  0x97   : > { %1072 = vmatpush.msrb.mxu3 %v695_v19  ;;  %1004 = vmatpush.msrb.mxu0 %v303_v20  ;;  %v495_v50 = vld [vmem:[%s1617_s17 + $0x958] sm:$0xff]  ;;  %v320_v20 = vld [vmem:[%s1617_s17 + $0x3e0] sm:$0xff] }
  0x98   : > { %1051 = vmatpush.msrb.mxu2 %v551_v21  ;;  %1026 = vmatpush.msrb.mxu1 %v439_v22  ;;  %v383_v51 = vld [vmem:[%s1617_s17 + $0x5d8] sm:$0xff]  ;;  %v568_v21 = vld [vmem:[%s1617_s17 + $0xba0] sm:$0xff] }
  0x99   : > { %1073 = vmatpush.msrb.mxu3 %v687_v23  ;;  %1005 = vmatpush.msrb.mxu0 %v295_v24  ;;  %v631_v52 = vld [vmem:[%s1617_s17 + $0xd98] sm:$0xff]  ;;  %v704_v22 = vld [vmem:[%s1617_s17 + $0xfe0] sm:$0xff] }
  0x9a   : > { %1052 = vmatpush.msrb.mxu2 %v543_v25  ;;  %1027 = vmatpush.msrb.mxu1 %v431_v26  ;;  %v239_v55 = vld [vmem:[%s1617_s17 + $0x158] sm:$0xff]  ;;  %v312_v24 = vld [vmem:[%s1617_s17 + $0x3a0] sm:$0xff] }
  0x9b   : > { %1074 = vmatpush.msrb.mxu3 %v679_v27  ;;  %1006 = vmatpush.msrb.mxu0 %v287_v28  ;;  %v487_v56 = vld [vmem:[%s1617_s17 + $0x918] sm:$0xff]  ;;  %v560_v25 = vld [vmem:[%s1617_s17 + $0xb60] sm:$0xff] }
  0x9c   : > { %1053 = vmatpush.msrb.mxu2 %v535_v29  ;;  %1028 = vmatpush.msrb.mxu1 %v423_v30  ;;  %v375_v57 = vld [vmem:[%s1617_s17 + $0x598] sm:$0xff]  ;;  %v448_v26 = vld [vmem:[%s1617_s17 + $0x7e0] sm:$0xff] }
  0x9d   : > { %1075 = vmatpush.msrb.mxu3 %v671_v31  ;;  %1007 = vmatpush.msrb.mxu0 %v279_v32  ;;  %v623_v58 = vld [vmem:[%s1617_s17 + $0xd58] sm:$0xff]  ;;  %v696_v27 = vld [vmem:[%s1617_s17 + $0xfa0] sm:$0xff] }
  0x9e   : > { %1054 = vmatpush.msrb.mxu2 %v527_v33  ;;  %1029 = vmatpush.msrb.mxu1 %v415_v34  ;;  %v231_v61 = vld [vmem:[%s1617_s17 + $0x118] sm:$0xff]  ;;  %v304_v28 = vld [vmem:[%s1617_s17 + $0x360] sm:$0xff] }
  0x9f   : > { %1076 = vmatpush.msrb.mxu3 %v663_v35  ;;  %1008 = vmatpush.msrb.mxu0 %v271_v36  ;;  %v367_v62 = vld [vmem:[%s1617_s17 + $0x558] sm:$0xff]  ;;  %v552_v29 = vld [vmem:[%s1617_s17 + $0xb20] sm:$0xff] }
  0xa0   : > { %1055 = vmatpush.msrb.mxu2 %v519_v37  ;;  %1030 = vmatpush.msrb.mxu1 %v407_v38  ;;  %v479_v63 = vld [vmem:[%s1617_s17 + $0x8d8] sm:$0xff]  ;;  %v440_v30 = vld [vmem:[%s1617_s17 + $0x7a0] sm:$0xff] }
  0xa1   : > { %1077 = vmatpush.msrb.mxu3 %v655_v39  ;;  %1009 = vmatpush.msrb.mxu0 %v263_v40  ;;  %v615_v0 = vld [vmem:[%s1617_s17 + $0xd18] sm:$0xff]  ;;  %v688_v31 = vld [vmem:[%s1617_s17 + $0xf60] sm:$0xff] }
  0xa2   : > { %1056 = vmatpush.msrb.mxu2 %v511_v41  ;;  %1031 = vmatpush.msrb.mxu1 %v399_v42  ;;  %v223_v3 = vld [vmem:[%s1617_s17 + $0xd8] sm:$0xff]  ;;  %v296_v32 = vld [vmem:[%s1617_s17 + $0x320] sm:$0xff] }
  0xa3   : > { %1078 = vmatpush.msrb.mxu3 %v647_v43  ;;  %1010 = vmatpush.msrb.mxu0 %v255_v44  ;;  %v359_v4 = vld [vmem:[%s1617_s17 + $0x518] sm:$0xff]  ;;  %v544_v33 = vld [vmem:[%s1617_s17 + $0xae0] sm:$0xff] }
  0xa4   : > { %1057 = vmatpush.msrb.mxu2 %v503_v45  ;;  %1032 = vmatpush.msrb.mxu1 %v391_v46  ;;  %v471_v5 = vld [vmem:[%s1617_s17 + $0x898] sm:$0xff]  ;;  %v432_v34 = vld [vmem:[%s1617_s17 + $0x760] sm:$0xff] }
  0xa5   : > { %1079 = vmatpush.msrb.mxu3 %v639_v47  ;;  %1011 = vmatpush.msrb.mxu0 %v247_v49  ;;  %v607_v6 = vld [vmem:[%s1617_s17 + $0xcd8] sm:$0xff]  ;;  %v680_v35 = vld [vmem:[%s1617_s17 + $0xf20] sm:$0xff] }
  0xa6   : > { %1058 = vmatpush.msrb.mxu2 %v495_v50  ;;  %1033 = vmatpush.msrb.mxu1 %v383_v51  ;;  %v215_v7 = vld [vmem:[%s1617_s17 + $0x98] sm:$0xff]  ;;  %v288_v36 = vld [vmem:[%s1617_s17 + $0x2e0] sm:$0xff] }
  0xa7   : > { %1080 = vmatpush.msrb.mxu3 %v631_v52  ;;  %1012 = vmatpush.msrb.mxu0 %v239_v55  ;;  %v351_v9 = vld [vmem:[%s1617_s17 + $0x4d8] sm:$0xff]  ;;  %v536_v37 = vld [vmem:[%s1617_s17 + $0xaa0] sm:$0xff] }
  0xa8   : > { %1059 = vmatpush.msrb.mxu2 %v487_v56  ;;  %1034 = vmatpush.msrb.mxu1 %v375_v57  ;;  %v463_v10 = vld [vmem:[%s1617_s17 + $0x858] sm:$0xff]  ;;  %v424_v38 = vld [vmem:[%s1617_s17 + $0x720] sm:$0xff] }
  0xa9   : > { %1081 = vmatpush.msrb.mxu3 %v623_v58  ;;  %883 = vmatmul.f32.gmra.mxu2 %v1818_v48  ;;  %v599_v11 = vld [vmem:[%s1617_s17 + $0xc98] sm:$0xff]  ;;  %v672_v39 = vld [vmem:[%s1617_s17 + $0xee0] sm:$0xff] }
  0xaa   : > { %1013 = vmatpush.msrb.mxu0 %v231_v61  ;;  %1035 = vmatpush.msrb.mxu1 %v367_v62  ;;  %v207_v12 = vld [vmem:[%s1617_s17 + $0x58] sm:$0xff]  ;;  %v280_v40 = vld [vmem:[%s1617_s17 + $0x2a0] sm:$0xff] }
  0xab   : > { %1060 = vmatpush.msrb.mxu2 %v479_v63  ;;  %1082 = vmatpush.msrb.mxu3 %v615_v0  ;;  %v343_v13 = vld [vmem:[%s1617_s17 + $0x498] sm:$0xff]  ;;  %v528_v41 = vld [vmem:[%s1617_s17 + $0xa60] sm:$0xff] }
  0xac   : > { %837 = vmatmul.f32.gmra.mxu0 %v1827_v53  ;;  %906 = vmatmul.f32.gmra.mxu3 %v1833_v54  ;;  %v455_v14 = vld [vmem:[%s1617_s17 + $0x818] sm:$0xff]  ;;  %v416_v42 = vld [vmem:[%s1617_s17 + $0x6e0] sm:$0xff] }
  0xad   : > { %1014 = vmatpush.msrb.mxu0 %v223_v3  ;;  %1036 = vmatpush.msrb.mxu1 %v359_v4  ;;  %v591_v15 = vld [vmem:[%s1617_s17 + $0xc58] sm:$0xff]  ;;  %v664_v43 = vld [vmem:[%s1617_s17 + $0xea0] sm:$0xff] }
  0xae   : > { %1061 = vmatpush.msrb.mxu2 %v471_v5  ;;  %1083 = vmatpush.msrb.mxu3 %v607_v6  ;;  %v199_v16 = vld [vmem:[%s1617_s17 + $0x18] sm:$0xff]  ;;  %v272_v44 = vld [vmem:[%s1617_s17 + $0x260] sm:$0xff] }
  0xaf   : > { %860 = vmatmul.f32.gmra.mxu1 %v1843_v59  ;;  %1015 = vmatpush.msrb.mxu0 %v215_v7  ;;  %v335_v18 = vld [vmem:[%s1617_s17 + $0x458] sm:$0xff]  ;;  %v520_v45 = vld [vmem:[%s1617_s17 + $0xa20] sm:$0xff] }
  0xb0   : > { %1037 = vmatpush.msrb.mxu1 %v351_v9  ;;  %1062 = vmatpush.msrb.mxu2 %v463_v10  ;;  %v583_v19 = vld [vmem:[%s1617_s17 + $0xc18] sm:$0xff]  ;;  %v408_v46 = vld [vmem:[%s1617_s17 + $0x6a0] sm:$0xff] }
  0xb1   : > { %1084 = vmatpush.msrb.mxu3 %v599_v11  ;;  %1016 = vmatpush.msrb.mxu0 %v207_v12  ;;  %v327_v23 = vld [vmem:[%s1617_s17 + $0x418] sm:$0xff]  ;;  %v656_v47 = vld [vmem:[%s1617_s17 + $0xe60] sm:$0xff] }
  0xb2   : > { %1038 = vmatpush.msrb.mxu1 %v343_v13  ;;  %1063 = vmatpush.msrb.mxu2 %v455_v14  ;;  %v264_v49 = vld [vmem:[%s1617_s17 + $0x220] sm:$0xff] }
  0xb3   : > { %1085 = vmatpush.msrb.mxu3 %v591_v15  ;;  %972 = vmatmul.f32.vlgmr.msra.gmra.mxu2 %v1746_v60  ;;  %v512_v50 = vld [vmem:[%s1617_s17 + $0x9e0] sm:$0xff] }
  0xb4   : > { %1017 = vmatpush.msrb.mxu0 %v199_v16  ;;  %1140 = vmatpush.msra.mxu2 %v576_v17  ;;  %v400_v51 = vld [vmem:[%s1617_s17 + $0x660] sm:$0xff] }
  0xb5   : > { %1039 = vmatpush.msrb.mxu1 %v335_v18  ;;  %1086 = vmatpush.msrb.mxu3 %v583_v19  ;;  %v648_v52 = vld [vmem:[%s1617_s17 + $0xe20] sm:$0xff] }
  0xb6   : > { %926 = vmatmul.f32.vlgmr.msra.gmra.mxu0 %v1755_v1  ;;  %995 = vmatmul.f32.vlgmr.msra.gmra.mxu3 %v1761_v2  ;;  %v256_v55 = vld [vmem:[%s1617_s17 + $0x1e0] sm:$0xff] }
  0xb7   : > { %1094 = vmatpush.msra.mxu0 %v320_v20  ;;  %1141 = vmatpush.msra.mxu2 %v568_v21  ;;  %v504_v56 = vld [vmem:[%s1617_s17 + $0x9a0] sm:$0xff] }
  0xb8   : > { %1163 = vmatpush.msra.mxu3 %v704_v22  ;;  %1040 = vmatpush.msrb.mxu1 %v327_v23  ;;  %v392_v57 = vld [vmem:[%s1617_s17 + $0x620] sm:$0xff] }
  0xb9   : > { %1095 = vmatpush.msra.mxu0 %v312_v24  ;;  %949 = vmatmul.f32.vlgmr.msra.gmra.mxu1 %v1773_v8  ;;  %v640_v58 = vld [vmem:[%s1617_s17 + $0xde0] sm:$0xff] }
  0xba   : > { %1142 = vmatpush.msra.mxu2 %v560_v25  ;;  %1117 = vmatpush.msra.mxu1 %v448_v26  ;;  %v248_v61 = vld [vmem:[%s1617_s17 + $0x1a0] sm:$0xff]  ;;  %v577_v25 = vld [vmem:[%s1617_s17 + $0xbe8] sm:$0xff] }
  0xbb   : > { %1164 = vmatpush.msra.mxu3 %v696_v27  ;;  %1096 = vmatpush.msra.mxu0 %v304_v28  ;;  %v496_v62 = vld [vmem:[%s1617_s17 + $0x960] sm:$0xff]  ;;  %v321_v28 = vld [vmem:[%s1617_s17 + $0x3e8] sm:$0xff] }
  0xbc   : > { %1143 = vmatpush.msra.mxu2 %v552_v29  ;;  %1118 = vmatpush.msra.mxu1 %v440_v30  ;;  %v384_v63 = vld [vmem:[%s1617_s17 + $0x5e0] sm:$0xff]  ;;  %v569_v29 = vld [vmem:[%s1617_s17 + $0xba8] sm:$0xff] }
  0xbd   : > { %1165 = vmatpush.msra.mxu3 %v688_v31  ;;  %1097 = vmatpush.msra.mxu0 %v296_v32  ;;  %v632_v0 = vld [vmem:[%s1617_s17 + $0xda0] sm:$0xff]  ;;  %v705_v30 = vld [vmem:[%s1617_s17 + $0xfe8] sm:$0xff] }
  0xbe   : > { %1144 = vmatpush.msra.mxu2 %v544_v33  ;;  %1119 = vmatpush.msra.mxu1 %v432_v34  ;;  %v240_v3 = vld [vmem:[%s1617_s17 + $0x160] sm:$0xff]  ;;  %v313_v32 = vld [vmem:[%s1617_s17 + $0x3a8] sm:$0xff] }
  0xbf   : > { %1166 = vmatpush.msra.mxu3 %v680_v35  ;;  %1098 = vmatpush.msra.mxu0 %v288_v36  ;;  %v488_v4 = vld [vmem:[%s1617_s17 + $0x920] sm:$0xff]  ;;  %v449_v33 = vld [vmem:[%s1617_s17 + $0x7e8] sm:$0xff] }
  0xc0   : > { %1145 = vmatpush.msra.mxu2 %v536_v37  ;;  %1120 = vmatpush.msra.mxu1 %v424_v38  ;;  %v376_v5 = vld [vmem:[%s1617_s17 + $0x5a0] sm:$0xff]  ;;  %v697_v34 = vld [vmem:[%s1617_s17 + $0xfa8] sm:$0xff] }
  0xc1   : > { %1167 = vmatpush.msra.mxu3 %v672_v39  ;;  %1099 = vmatpush.msra.mxu0 %v280_v40  ;;  %v624_v6 = vld [vmem:[%s1617_s17 + $0xd60] sm:$0xff]  ;;  %v553_v35 = vld [vmem:[%s1617_s17 + $0xb28] sm:$0xff] }
  0xc2   : > { %1146 = vmatpush.msra.mxu2 %v528_v41  ;;  %1121 = vmatpush.msra.mxu1 %v416_v42  ;;  %v232_v7 = vld [vmem:[%s1617_s17 + $0x120] sm:$0xff]  ;;  %v689_v36 = vld [vmem:[%s1617_s17 + $0xf68] sm:$0xff] }
  0xc3   : > { %1168 = vmatpush.msra.mxu3 %v664_v43  ;;  %1100 = vmatpush.msra.mxu0 %v272_v44  ;;  %v368_v9 = vld [vmem:[%s1617_s17 + $0x560] sm:$0xff]  ;;  %v297_v37 = vld [vmem:[%s1617_s17 + $0x328] sm:$0xff] }
  0xc4   : > { %1147 = vmatpush.msra.mxu2 %v520_v45  ;;  %1122 = vmatpush.msra.mxu1 %v408_v46  ;;  %v480_v10 = vld [vmem:[%s1617_s17 + $0x8e0] sm:$0xff]  ;;  %v545_v38 = vld [vmem:[%s1617_s17 + $0xae8] sm:$0xff] }
  0xc5   : > { %1169 = vmatpush.msra.mxu3 %v656_v47  ;;  %1101 = vmatpush.msra.mxu0 %v264_v49  ;;  %v616_v11 = vld [vmem:[%s1617_s17 + $0xd20] sm:$0xff]  ;;  %v433_v39 = vld [vmem:[%s1617_s17 + $0x768] sm:$0xff] }
  0xc6   : > { %1148 = vmatpush.msra.mxu2 %v512_v50  ;;  %1123 = vmatpush.msra.mxu1 %v400_v51  ;;  %v224_v12 = vld [vmem:[%s1617_s17 + $0xe0] sm:$0xff]  ;;  %v681_v40 = vld [vmem:[%s1617_s17 + $0xf28] sm:$0xff] }
  0xc7   : > { %1170 = vmatpush.msra.mxu3 %v648_v52  ;;  %1102 = vmatpush.msra.mxu0 %v256_v55  ;;  %v360_v13 = vld [vmem:[%s1617_s17 + $0x520] sm:$0xff]  ;;  %v537_v41 = vld [vmem:[%s1617_s17 + $0xaa8] sm:$0xff] }
  0xc8   : > { %1149 = vmatpush.msra.mxu2 %v504_v56  ;;  %1124 = vmatpush.msra.mxu1 %v392_v57  ;;  %v472_v14 = vld [vmem:[%s1617_s17 + $0x8a0] sm:$0xff]  ;;  %v425_v42 = vld [vmem:[%s1617_s17 + $0x728] sm:$0xff] }
  0xc9   : > { %1171 = vmatpush.msra.mxu3 %v640_v58  ;;  %1103 = vmatpush.msra.mxu0 %v248_v61  ;;  %v608_v15 = vld [vmem:[%s1617_s17 + $0xce0] sm:$0xff]  ;;  %v673_v43 = vld [vmem:[%s1617_s17 + $0xee8] sm:$0xff] }
  0xca   : > { %1150 = vmatpush.msra.mxu2 %v496_v62  ;;  %1125 = vmatpush.msra.mxu1 %v384_v63  ;;  %v216_v16 = vld [vmem:[%s1617_s17 + $0xa0] sm:$0xff]  ;;  %v281_v44 = vld [vmem:[%s1617_s17 + $0x2a8] sm:$0xff] }
  0xcb   : > { %1172 = vmatpush.msra.mxu3 %v632_v0  ;;  %1104 = vmatpush.msra.mxu0 %v240_v3  ;;  %v352_v17 = vld [vmem:[%s1617_s17 + $0x4e0] sm:$0xff]  ;;  %v529_v45 = vld [vmem:[%s1617_s17 + $0xa68] sm:$0xff] }
  0xcc   : > { %1151 = vmatpush.msra.mxu2 %v488_v4  ;;  %1126 = vmatpush.msra.mxu1 %v376_v5  ;;  %v464_v18 = vld [vmem:[%s1617_s17 + $0x860] sm:$0xff]  ;;  %v417_v46 = vld [vmem:[%s1617_s17 + $0x6e8] sm:$0xff] }
  0xcd   : > { %1173 = vmatpush.msra.mxu3 %v624_v6  ;;  %975 = vmatmul.f32.gmra.mxu2 %v1818_v48  ;;  %v600_v19 = vld [vmem:[%s1617_s17 + $0xca0] sm:$0xff]  ;;  %v665_v47 = vld [vmem:[%s1617_s17 + $0xea8] sm:$0xff] }
  0xce   : > { %1105 = vmatpush.msra.mxu0 %v232_v7  ;;  %1127 = vmatpush.msra.mxu1 %v368_v9  ;;  %v208_v20 = vld [vmem:[%s1617_s17 + $0x60] sm:$0xff]  ;;  %v273_v49 = vld [vmem:[%s1617_s17 + $0x268] sm:$0xff] }
  0xcf   : > { %1152 = vmatpush.msra.mxu2 %v480_v10  ;;  %1174 = vmatpush.msra.mxu3 %v616_v11  ;;  %v344_v21 = vld [vmem:[%s1617_s17 + $0x4a0] sm:$0xff]  ;;  %v521_v50 = vld [vmem:[%s1617_s17 + $0xa28] sm:$0xff] }
  0xd0   : > { %929 = vmatmul.f32.gmra.mxu0 %v1827_v53  ;;  %998 = vmatmul.f32.gmra.mxu3 %v1833_v54  ;;  %v456_v22 = vld [vmem:[%s1617_s17 + $0x820] sm:$0xff]  ;;  %v409_v52 = vld [vmem:[%s1617_s17 + $0x6a8] sm:$0xff] }
  0xd1   : > { %1106 = vmatpush.msra.mxu0 %v224_v12  ;;  %1128 = vmatpush.msra.mxu1 %v360_v13  ;;  %v592_v23 = vld [vmem:[%s1617_s17 + $0xc60] sm:$0xff]  ;;  %v657_v55 = vld [vmem:[%s1617_s17 + $0xe68] sm:$0xff] }
  0xd2   : > { %1153 = vmatpush.msra.mxu2 %v472_v14  ;;  %1175 = vmatpush.msra.mxu3 %v608_v15  ;;  %v200_v24 = vld [vmem:[%s1617_s17 + $0x20] sm:$0xff]  ;;  %v265_v56 = vld [vmem:[%s1617_s17 + $0x228] sm:$0xff] }
  0xd3   : > { %952 = vmatmul.f32.gmra.mxu1 %v1843_v59  ;;  %1107 = vmatpush.msra.mxu0 %v216_v16  ;;  %v336_v26 = vld [vmem:[%s1617_s17 + $0x460] sm:$0xff]  ;;  %v513_v57 = vld [vmem:[%s1617_s17 + $0x9e8] sm:$0xff] }
  0xd4   : > { %1129 = vmatpush.msra.mxu1 %v352_v17  ;;  %1154 = vmatpush.msra.mxu2 %v464_v18  ;;  %v584_v27 = vld [vmem:[%s1617_s17 + $0xc20] sm:$0xff]  ;;  %v401_v58 = vld [vmem:[%s1617_s17 + $0x668] sm:$0xff]  ;;  %v789_v18 = vpop.f32.mrf.mxu2 }
  0xd5   : > { %1176 = vmatpush.msra.mxu3 %v600_v19  ;;  %1108 = vmatpush.msra.mxu0 %v208_v20  ;;  %v328_v31 = vld [vmem:[%s1617_s17 + $0x420] sm:$0xff]  ;;  %v649_v61 = vld [vmem:[%s1617_s17 + $0xe28] sm:$0xff] }
  0xd6   : > { %1130 = vmatpush.msra.mxu1 %v344_v21  ;;  %1155 = vmatpush.msra.mxu2 %v456_v22  ;;  %v2037_v51 = vld [vmem:[%s182_s10] sm:$0xff]  ;;  %v257_v63 = vld [vmem:[%s1617_s17 + $0x1e8] sm:$0xff] }
  0xd7   : > { %1177 = vmatpush.msra.mxu3 %v592_v23  ;;  %1064 = vmatmul.f32.vlgmr.msrb.gmra.mxu2 %v1746_v60  ;;  %v561_v60 = vld [vmem:[%s1617_s17 + $0xb68] sm:$0xff]  ;;  %v710_v62 = vperm.slane %v2037_v51, 0 }
  0xd8   : > { %1109 = vmatpush.msra.mxu0 %v200_v24  ;;  %1232 = vmatpush.msrb.mxu2 %v577_v25  ;;  %v505_v0 = vld [vmem:[%s1617_s17 + $0x9a8] sm:$0xff] }
  0xd9   : > { %1131 = vmatpush.msra.mxu1 %v336_v26  ;;  %1178 = vmatpush.msra.mxu3 %v584_v27  ;;  %v393_v3 = vld [vmem:[%s1617_s17 + $0x628] sm:$0xff] }
  0xda   : > { %1018 = vmatmul.f32.vlgmr.msrb.gmra.mxu0 %v1755_v1  ;;  %1087 = vmatmul.f32.vlgmr.msrb.gmra.mxu3 %v1761_v2  ;;  %v305_v1 = vld [vmem:[%s1617_s17 + $0x368] sm:$0xff] }
  0xdb   : > { %1186 = vmatpush.msrb.mxu0 %v321_v28  ;;  %1233 = vmatpush.msrb.mxu2 %v569_v29  ;;  %v441_v2 = vld [vmem:[%s1617_s17 + $0x7a8] sm:$0xff] }
  0xdc   : > { %1255 = vmatpush.msrb.mxu3 %v705_v30  ;;  %1132 = vmatpush.msra.mxu1 %v328_v31  ;;  %v641_v4 = vld [vmem:[%s1617_s17 + $0xde8] sm:$0xff] }
  0xdd   : > { %1187 = vmatpush.msrb.mxu0 %v313_v32  ;;  %1041 = vmatmul.f32.vlgmr.msrb.gmra.mxu1 %v1773_v8  ;;  %v289_v8 = vld [vmem:[%s1617_s17 + $0x2e8] sm:$0xff] }
  0xde   : > { %1234 = vmatpush.msrb.mxu2 %v561_v60  ;;  %1209 = vmatpush.msrb.mxu1 %v449_v33  ;;  %v249_v5 = vld [vmem:[%s1617_s17 + $0x1a8] sm:$0xff] }
  0xdf   : > { %1256 = vmatpush.msrb.mxu3 %v697_v34  ;;  %1188 = vmatpush.msrb.mxu0 %v305_v1  ;;  %v497_v6 = vld [vmem:[%s1617_s17 + $0x968] sm:$0xff]  ;;  %v578_v1 = vld [vmem:[%s1617_s17 + $0xbf0] sm:$0xff] }
  0xe0   : > { %1235 = vmatpush.msrb.mxu2 %v553_v35  ;;  %1210 = vmatpush.msrb.mxu1 %v441_v2  ;;  %v385_v9 = vld [vmem:[%s1617_s17 + $0x5e8] sm:$0xff]  ;;  %v2094_v2 = vld [vmem:[%s2326_s0 + $0x10] sm:$0xff] }
  0xe1   : > { %1257 = vmatpush.msrb.mxu3 %v689_v36  ;;  %1189 = vmatpush.msrb.mxu0 %v297_v37  ;;  %v633_v10 = vld [vmem:[%s1617_s17 + $0xda8] sm:$0xff]  ;;  %v322_v36 = vld [vmem:[%s1617_s17 + $0x3f0] sm:$0xff] }
  0xe2   : > { %1236 = vmatpush.msrb.mxu2 %v545_v38  ;;  %1211 = vmatpush.msrb.mxu1 %v433_v39  ;;  %v241_v12 = vld [vmem:[%s1617_s17 + $0x168] sm:$0xff]  ;;  %v570_v37 = vld [vmem:[%s1617_s17 + $0xbb0] sm:$0xff]  ;;  %v2103_v39 = vld [vmem:[%s2326_s0] sm:$0xff] }
  0xe3   : > { %1258 = vmatpush.msrb.mxu3 %v681_v40  ;;  %1190 = vmatpush.msrb.mxu0 %v289_v8  ;;  %v489_v13 = vld [vmem:[%s1617_s17 + $0x928] sm:$0xff]  ;;  %v706_v38 = vld [vmem:[%s1617_s17 + $0xff0] sm:$0xff] }
  0xe4   : > { %1237 = vmatpush.msrb.mxu2 %v537_v41  ;;  %1212 = vmatpush.msrb.mxu1 %v425_v42  ;;  %v377_v14 = vld [vmem:[%s1617_s17 + $0x5a8] sm:$0xff]  ;;  %v314_v8 = vld [vmem:[%s1617_s17 + $0x3b0] sm:$0xff]  ;;  %v2111_v41 = vld [vmem:[%s2326_s0 + $0x18] sm:$0xff] }
  0xe5   : > { %1259 = vmatpush.msrb.mxu3 %v673_v43  ;;  %1191 = vmatpush.msrb.mxu0 %v281_v44  ;;  %v625_v15 = vld [vmem:[%s1617_s17 + $0xd68] sm:$0xff]  ;;  %v562_v42 = vld [vmem:[%s1617_s17 + $0xb70] sm:$0xff] }
  0xe6   : > { %1238 = vmatpush.msrb.mxu2 %v529_v45  ;;  %1213 = vmatpush.msrb.mxu1 %v417_v46  ;;  %v233_v16 = vld [vmem:[%s1617_s17 + $0x128] sm:$0xff]  ;;  %v450_v43 = vld [vmem:[%s1617_s17 + $0x7f0] sm:$0xff] }
  0xe7   : > { %1260 = vmatpush.msrb.mxu3 %v665_v47  ;;  %1192 = vmatpush.msrb.mxu0 %v273_v49  ;;  %v369_v19 = vld [vmem:[%s1617_s17 + $0x568] sm:$0xff]  ;;  %v698_v44 = vld [vmem:[%s1617_s17 + $0xfb0] sm:$0xff] }
  0xe8   : > { %1239 = vmatpush.msrb.mxu2 %v521_v50  ;;  %1214 = vmatpush.msrb.mxu1 %v409_v52  ;;  %v481_v20 = vld [vmem:[%s1617_s17 + $0x8e8] sm:$0xff]  ;;  %v306_v45 = vld [vmem:[%s1617_s17 + $0x370] sm:$0xff] }
  0xe9   : > { %1261 = vmatpush.msrb.mxu3 %v657_v55  ;;  %1193 = vmatpush.msrb.mxu0 %v265_v56  ;;  %v617_v22 = vld [vmem:[%s1617_s17 + $0xd28] sm:$0xff]  ;;  %v554_v46 = vld [vmem:[%s1617_s17 + $0xb30] sm:$0xff] }
  0xea   : > { %1240 = vmatpush.msrb.mxu2 %v513_v57  ;;  %1215 = vmatpush.msrb.mxu1 %v401_v58  ;;  %v225_v23 = vld [vmem:[%s1617_s17 + $0xe8] sm:$0xff]  ;;  %v442_v49 = vld [vmem:[%s1617_s17 + $0x7b0] sm:$0xff] }
  0xeb   : > { %1262 = vmatpush.msrb.mxu3 %v649_v61  ;;  %v743_v7 = vpop.f32.mrf.mxu0  ;;  %1194 = vmatpush.msrb.mxu0 %v257_v63  ;;  %v361_v26 = vld [vmem:[%s1617_s17 + $0x528] sm:$0xff]  ;;  %v690_v50 = vld [vmem:[%s1617_s17 + $0xf70] sm:$0xff] }
  0xec   : > { %1241 = vmatpush.msrb.mxu2 %v505_v0  ;;  %v744_v11 = vadd.f32 %v743_v7, %v710_v62  ;;  %1216 = vmatpush.msrb.mxu1 %v393_v3  ;;  %v473_v27 = vld [vmem:[%s1617_s17 + $0x8a8] sm:$0xff]  ;;  %v298_v52 = vld [vmem:[%s1617_s17 + $0x330] sm:$0xff] }
  0xed   : > { %1263 = vmatpush.msrb.mxu3 %v641_v4  ;;  %1195 = vmatpush.msrb.mxu0 %v249_v5  ;;  %v217_v29 = vld [vmem:[%s1617_s17 + $0xa8] sm:$0xff]  ;;  %v546_v55 = vld [vmem:[%s1617_s17 + $0xaf0] sm:$0xff] }
  0xee   : > { %1242 = vmatpush.msrb.mxu2 %v497_v6  ;;  %1217 = vmatpush.msrb.mxu1 %v385_v9  ;;  %v766_v17 = vpop.f32.mrf.mxu1  ;;  %v353_v30 = vld [vmem:[%s1617_s17 + $0x4e8] sm:$0xff]  ;;  %v434_v56 = vld [vmem:[%s1617_s17 + $0x770] sm:$0xff] }
  0xef   : > { %1264 = vmatpush.msrb.mxu3 %v633_v10  ;;  %1196 = vmatpush.msrb.mxu0 %v241_v12  ;;  %v767_v21 = vadd.f32 %v766_v17, %v744_v11  ;;  %v465_v31 = vld [vmem:[%s1617_s17 + $0x868] sm:$0xff]  ;;  %v682_v57 = vld [vmem:[%s1617_s17 + $0xf30] sm:$0xff] }
  0xf0   : > { %1243 = vmatpush.msrb.mxu2 %v489_v13  ;;  %1218 = vmatpush.msrb.mxu1 %v377_v14  ;;  %v601_v32 = vld [vmem:[%s1617_s17 + $0xca8] sm:$0xff]  ;;  %v290_v58 = vld [vmem:[%s1617_s17 + $0x2f0] sm:$0xff] }
  0xf1   : > { %1265 = vmatpush.msrb.mxu3 %v625_v15  ;;  %1067 = vmatmul.f32.gmra.mxu2 %v1818_v48  ;;  %v790_v24 = vadd.f32 %v789_v18, %v767_v21  ;;  %v812_v25 = vpop.f32.mrf.mxu3  ;;  %v609_v48 = vld [vmem:[%s1617_s17 + $0xce8] sm:$0xff]  ;;  %v538_v61 = vld [vmem:[%s1617_s17 + $0xab0] sm:$0xff] }
  0xf2   : > { %1197 = vmatpush.msrb.mxu0 %v233_v16  ;;  %1219 = vmatpush.msrb.mxu1 %v369_v19  ;;  %v345_v60 = vld [vmem:[%s1617_s17 + $0x4a8] sm:$0xff]  ;;  %v426_v0 = vld [vmem:[%s1617_s17 + $0x730] sm:$0xff] }
  0xf3   : > { %1244 = vmatpush.msrb.mxu2 %v481_v20  ;;  %1266 = vmatpush.msrb.mxu3 %v617_v22  ;;  %v813_v28 = vadd.f32 %v812_v25, %v790_v24  ;;  %v593_v33 = vld [vmem:[%s1617_s17 + $0xc68] sm:$0xff]  ;;  %v674_v3 = vld [vmem:[%s1617_s17 + $0xef0] sm:$0xff]  ;;  %v711_v22 = vperm.slane %v2037_v51, 1 }
  0xf4   : > { %1021 = vmatmul.f32.gmra.mxu0 %v1827_v53  ;;  %1090 = vmatmul.f32.gmra.mxu3 %v1833_v54  ;;  %v209_v53 = vld [vmem:[%s1617_s17 + $0x68] sm:$0xff]  ;;  %v282_v5 = vld [vmem:[%s1617_s17 + $0x2b0] sm:$0xff] }
  0xf5   : > { %1198 = vmatpush.msrb.mxu0 %v225_v23  ;;  %1220 = vmatpush.msrb.mxu1 %v361_v26  ;;  %1462 = vst [vmem:[%s2072_s15] sm:$0xff] %v813_v28  ;;  %v457_v54 = vld [vmem:[%s1617_s17 + $0x828] sm:$0xff]  ;;  %v530_v6 = vld [vmem:[%s1617_s17 + $0xa70] sm:$0xff] }
  0xf6   : > { %1245 = vmatpush.msrb.mxu2 %v473_v27  ;;  %1267 = vmatpush.msrb.mxu3 %v609_v48  ;;  %v201_v34 = vld [vmem:[%s1617_s17 + $0x28] sm:$0xff]  ;;  %v418_v7 = vld [vmem:[%s1617_s17 + $0x6f0] sm:$0xff] }
  0xf7   : > { %1044 = vmatmul.f32.gmra.mxu1 %v1843_v59  ;;  %1199 = vmatpush.msrb.mxu0 %v217_v29  ;;  %v337_v35 = vld [vmem:[%s1617_s17 + $0x468] sm:$0xff]  ;;  %v666_v9 = vld [vmem:[%s1617_s17 + $0xeb0] sm:$0xff] }
  0xf8   : > { %1221 = vmatpush.msrb.mxu1 %v353_v30  ;;  %1246 = vmatpush.msrb.mxu2 %v465_v31  ;;  %v585_v59 = vld [vmem:[%s1617_s17 + $0xc28] sm:$0xff]  ;;  %v274_v11 = vld [vmem:[%s1617_s17 + $0x270] sm:$0xff] }
  0xf9   : > { %1268 = vmatpush.msrb.mxu3 %v601_v32  ;;  %1200 = vmatpush.msrb.mxu0 %v209_v53  ;;  %v329_v40 = vld [vmem:[%s1617_s17 + $0x428] sm:$0xff]  ;;  %v522_v12 = vld [vmem:[%s1617_s17 + $0xa30] sm:$0xff] }
  0xfa   : > { %1222 = vmatpush.msrb.mxu1 %v345_v60  ;;  %1247 = vmatpush.msrb.mxu2 %v457_v54  ;;  %v2122_v47 = vld [vmem:[%s2326_s0 + $0x8] sm:$0xff]  ;;  %v410_v14 = vld [vmem:[%s1617_s17 + $0x6b0] sm:$0xff] }
  0xfb   : > { %1269 = vmatpush.msrb.mxu3 %v593_v33  ;;  %1156 = vmatmul.f32.vlgmr.msra.gmra.mxu2 %v2094_v2  ;;  %v658_v15 = vld [vmem:[%s1617_s17 + $0xe70] sm:$0xff] }
  0xfc   : > { %1201 = vmatpush.msrb.mxu0 %v201_v34  ;;  %1324 = vmatpush.msra.mxu2 %v578_v1  ;;  %v266_v16 = vld [vmem:[%s1617_s17 + $0x230] sm:$0xff] }
  0xfd   : > { %1223 = vmatpush.msrb.mxu1 %v337_v35  ;;  %1270 = vmatpush.msrb.mxu3 %v585_v59  ;;  %v514_v17 = vld [vmem:[%s1617_s17 + $0x9f0] sm:$0xff] }
  0xfe   : > { %1110 = vmatmul.f32.vlgmr.msra.gmra.mxu0 %v2103_v39  ;;  %1179 = vmatmul.f32.vlgmr.msra.gmra.mxu3 %v2111_v41  ;;  %v402_v19 = vld [vmem:[%s1617_s17 + $0x670] sm:$0xff] }
  0xff   : > { %1278 = vmatpush.msra.mxu0 %v322_v36  ;;  %1325 = vmatpush.msra.mxu2 %v570_v37  ;;  %v650_v20 = vld [vmem:[%s1617_s17 + $0xe30] sm:$0xff] }
 0x100   : > { %1347 = vmatpush.msra.mxu3 %v706_v38  ;;  %1224 = vmatpush.msrb.mxu1 %v329_v40  ;;  %v258_v23 = vld [vmem:[%s1617_s17 + $0x1f0] sm:$0xff]  ;;  %v2177_v40 = vld [vmem:[%s2326_s0 + $0x20] sm:$0xff] }
 0x101   : > { %1279 = vmatpush.msra.mxu0 %v314_v8  ;;  %1133 = vmatmul.f32.vlgmr.msra.gmra.mxu1 %v2122_v47  ;;  %v506_v24 = vld [vmem:[%s1617_s17 + $0x9b0] sm:$0xff] }
 0x102   : > { %1326 = vmatpush.msra.mxu2 %v562_v42  ;;  %1301 = vmatpush.msra.mxu1 %v450_v43  ;;  %v394_v26 = vld [vmem:[%s1617_s17 + $0x630] sm:$0xff] }
 0x103   : > { %1348 = vmatpush.msra.mxu3 %v698_v44  ;;  %1280 = vmatpush.msra.mxu0 %v306_v45  ;;  %v642_v27 = vld [vmem:[%s1617_s17 + $0xdf0] sm:$0xff]  ;;  %v2184_v44 = vld [vmem:[%s2326_s0 + $0x38] sm:$0xff] }
 0x104   : > { %1327 = vmatpush.msra.mxu2 %v554_v46  ;;  %1302 = vmatpush.msra.mxu1 %v442_v49  ;;  %v250_v48 = vld [vmem:[%s1617_s17 + $0x1b0] sm:$0xff] }
 0x105   : > { %1349 = vmatpush.msra.mxu3 %v690_v50  ;;  %v746_v63 = vpop.f32.mrf.mxu0  ;;  %1281 = vmatpush.msra.mxu0 %v298_v52  ;;  %v498_v28 = vld [vmem:[%s1617_s17 + $0x970] sm:$0xff] }
 0x106   : > { %1328 = vmatpush.msra.mxu2 %v546_v55  ;;  %v747_v4 = vadd.f32 %v746_v63, %v710_v62  ;;  %1303 = vmatpush.msra.mxu1 %v434_v56  ;;  %v386_v30 = vld [vmem:[%s1617_s17 + $0x5f0] sm:$0xff]  ;;  %v2194_v55 = vld [vmem:[%s2326_s0 + $0x28] sm:$0xff] }
 0x107   : > { %1350 = vmatpush.msra.mxu3 %v682_v57  ;;  %1282 = vmatpush.msra.mxu0 %v290_v58  ;;  %v634_v31 = vld [vmem:[%s1617_s17 + $0xdb0] sm:$0xff] }
 0x108   : > { %1329 = vmatpush.msra.mxu2 %v538_v61  ;;  %v769_v10 = vpop.f32.mrf.mxu1  ;;  %1304 = vmatpush.msra.mxu1 %v426_v0  ;;  %v792_v13 = vpop.f32.mrf.mxu2  ;;  %v242_v53 = vld [vmem:[%s1617_s17 + $0x170] sm:$0xff] }
 0x109   : > { %1351 = vmatpush.msra.mxu3 %v674_v3  ;;  %v770_v62 = vadd.f32 %v769_v10, %v747_v4  ;;  %1283 = vmatpush.msra.mxu0 %v282_v5  ;;  %v378_v60 = vld [vmem:[%s1617_s17 + $0x5b0] sm:$0xff]  ;;  %v579_v5 = vld [vmem:[%s1617_s17 + $0xbf8] sm:$0xff] }
 0x10a   : > { %1330 = vmatpush.msra.mxu2 %v530_v6  ;;  %1305 = vmatpush.msra.mxu1 %v418_v7  ;;  %v490_v54 = vld [vmem:[%s1617_s17 + $0x930] sm:$0xff]  ;;  %v323_v10 = vld [vmem:[%s1617_s17 + $0x3f8] sm:$0xff] }
 0x10b   : > { %1352 = vmatpush.msra.mxu3 %v666_v9  ;;  %v793_v18 = vadd.f32 %v792_v13, %v770_v62  ;;  %1284 = vmatpush.msra.mxu0 %v274_v11  ;;  %v815_v21 = vpop.f32.mrf.mxu3  ;;  %v626_v33 = vld [vmem:[%s1617_s17 + $0xd70] sm:$0xff]  ;;  %v571_v11 = vld [vmem:[%s1617_s17 + $0xbb8] sm:$0xff] }
 0x10c   : > { %1331 = vmatpush.msra.mxu2 %v522_v12  ;;  %1306 = vmatpush.msra.mxu1 %v410_v14  ;;  %v2168_v35 = vld [vmem:[%s2326_s0 + $0x30] sm:$0xff]  ;;  %v707_v12 = vld [vmem:[%s1617_s17 + $0xff8] sm:$0xff] }
 0x10d   : > { %1353 = vmatpush.msra.mxu3 %v658_v15  ;;  %v816_v25 = vadd.f32 %v815_v21, %v793_v18  ;;  %1285 = vmatpush.msra.mxu0 %v266_v16  ;;  %v234_v59 = vld [vmem:[%s1617_s17 + $0x130] sm:$0xff]  ;;  %v315_v62 = vld [vmem:[%s1617_s17 + $0x3b8] sm:$0xff] }
 0x10e   : > { %1332 = vmatpush.msra.mxu2 %v514_v17  ;;  %1307 = vmatpush.msra.mxu1 %v402_v19  ;;  %v370_v37 = vld [vmem:[%s1617_s17 + $0x570] sm:$0xff]  ;;  %v563_v14 = vld [vmem:[%s1617_s17 + $0xb78] sm:$0xff] }
 0x10f   : > { %1354 = vmatpush.msra.mxu3 %v650_v20  ;;  %1470 = vst [vmem:[%s2072_s15 + $0x40] sm:$0xff] %v816_v25  ;;  %v835_v29 = vpop.f32.mrf.mxu0  ;;  %1286 = vmatpush.msra.mxu0 %v258_v23  ;;  %v482_v38 = vld [vmem:[%s1617_s17 + $0x8f0] sm:$0xff]  ;;  %v451_v15 = vld [vmem:[%s1617_s17 + $0x7f8] sm:$0xff] }
 0x110   : > { %1333 = vmatpush.msra.mxu2 %v506_v24  ;;  %v836_v32 = vadd.f32 %v835_v29, %v711_v22  ;;  %1308 = vmatpush.msra.mxu1 %v394_v26  ;;  %v618_v8 = vld [vmem:[%s1617_s17 + $0xd30] sm:$0xff]  ;;  %v699_v16 = vld [vmem:[%s1617_s17 + $0xfb8] sm:$0xff] }
 0x111   : > { %1355 = vmatpush.msra.mxu3 %v642_v27  ;;  %1287 = vmatpush.msra.mxu0 %v250_v48  ;;  %v226_v45 = vld [vmem:[%s1617_s17 + $0xf0] sm:$0xff]  ;;  %v307_v17 = vld [vmem:[%s1617_s17 + $0x378] sm:$0xff] }
 0x112   : > { %1334 = vmatpush.msra.mxu2 %v498_v28  ;;  %1309 = vmatpush.msra.mxu1 %v386_v30  ;;  %v858_v34 = vpop.f32.mrf.mxu1  ;;  %v881_v1 = vpop.f32.mrf.mxu2  ;;  %v362_v46 = vld [vmem:[%s1617_s17 + $0x530] sm:$0xff]  ;;  %v555_v18 = vld [vmem:[%s1617_s17 + $0xb38] sm:$0xff] }
 0x113   : > { %1356 = vmatpush.msra.mxu3 %v634_v31  ;;  %1159 = vmatmul.f32.gmra.mxu2 %v2168_v35  ;;  %v859_v36 = vadd.f32 %v858_v34, %v836_v32  ;;  %v474_v49 = vld [vmem:[%s1617_s17 + $0x8b0] sm:$0xff]  ;;  %v443_v19 = vld [vmem:[%s1617_s17 + $0x7b8] sm:$0xff] }
 0x114   : > { %1288 = vmatpush.msra.mxu0 %v242_v53  ;;  %1310 = vmatpush.msra.mxu1 %v378_v60  ;;  %v610_v50 = vld [vmem:[%s1617_s17 + $0xcf0] sm:$0xff]  ;;  %v691_v20 = vld [vmem:[%s1617_s17 + $0xf78] sm:$0xff] }
 0x115   : > { %1335 = vmatpush.msra.mxu2 %v490_v54  ;;  %1357 = vmatpush.msra.mxu3 %v626_v33  ;;  %v882_v42 = vadd.f32 %v881_v1, %v859_v36  ;;  %v904_v43 = vpop.f32.mrf.mxu3  ;;  %v218_v56 = vld [vmem:[%s1617_s17 + $0xb0] sm:$0xff]  ;;  %v299_v21 = vld [vmem:[%s1617_s17 + $0x338] sm:$0xff] }
 0x116   : > { %1113 = vmatmul.f32.gmra.mxu0 %v2177_v40  ;;  %1182 = vmatmul.f32.gmra.mxu3 %v2184_v44  ;;  %v354_v57 = vld [vmem:[%s1617_s17 + $0x4f0] sm:$0xff]  ;;  %v435_v23 = vld [vmem:[%s1617_s17 + $0x778] sm:$0xff] }
 0x117   : > { %1289 = vmatpush.msra.mxu0 %v234_v59  ;;  %1311 = vmatpush.msra.mxu1 %v370_v37  ;;  %v905_v52 = vadd.f32 %v904_v43, %v882_v42  ;;  %v466_v58 = vld [vmem:[%s1617_s17 + $0x870] sm:$0xff]  ;;  %v547_v24 = vld [vmem:[%s1617_s17 + $0xaf8] sm:$0xff] }
 0x118   : > { %1336 = vmatpush.msra.mxu2 %v482_v38  ;;  %1358 = vmatpush.msra.mxu3 %v618_v8  ;;  %v602_v61 = vld [vmem:[%s1617_s17 + $0xcb0] sm:$0xff]  ;;  %v683_v25 = vld [vmem:[%s1617_s17 + $0xf38] sm:$0xff]  ;;  %v712_v8 = vperm.slane %v2037_v51, 2 }
 0x119   : > { %1136 = vmatmul.f32.gmra.mxu1 %v2194_v55  ;;  %1290 = vmatpush.msra.mxu0 %v226_v45  ;;  %1463 = vst [vmem:[%s2072_s15 + $0x8] sm:$0xff] %v905_v52  ;;  %v210_v63 = vld [vmem:[%s1617_s17 + $0x70] sm:$0xff]  ;;  %v291_v27 = vld [vmem:[%s1617_s17 + $0x2f8] sm:$0xff] }
 0x11a   : > { %1312 = vmatpush.msra.mxu1 %v362_v46  ;;  %1337 = vmatpush.msra.mxu2 %v474_v49  ;;  %v346_v0 = vld [vmem:[%s1617_s17 + $0x4b0] sm:$0xff]  ;;  %v427_v28 = vld [vmem:[%s1617_s17 + $0x738] sm:$0xff] }
 0x11b   : > { %1359 = vmatpush.msra.mxu3 %v610_v50  ;;  %1291 = vmatpush.msra.mxu0 %v218_v56  ;;  %v458_v3 = vld [vmem:[%s1617_s17 + $0x830] sm:$0xff]  ;;  %v539_v29 = vld [vmem:[%s1617_s17 + $0xab8] sm:$0xff] }
 0x11c   : > { %1313 = vmatpush.msra.mxu1 %v354_v57  ;;  %1338 = vmatpush.msra.mxu2 %v466_v58  ;;  %v594_v4 = vld [vmem:[%s1617_s17 + $0xc70] sm:$0xff]  ;;  %v675_v30 = vld [vmem:[%s1617_s17 + $0xef8] sm:$0xff] }
 0x11d   : > { %1360 = vmatpush.msra.mxu3 %v602_v61  ;;  %1248 = vmatmul.f32.vlgmr.msrb.gmra.mxu2 %v2094_v2  ;;  %v202_v6 = vld [vmem:[%s1617_s17 + $0x30] sm:$0xff]  ;;  %v283_v32 = vld [vmem:[%s1617_s17 + $0x2b8] sm:$0xff] }
 0x11e   : > { %1292 = vmatpush.msra.mxu0 %v210_v63  ;;  %1314 = vmatpush.msra.mxu1 %v346_v0  ;;  %v338_v7 = vld [vmem:[%s1617_s17 + $0x470] sm:$0xff]  ;;  %v531_v54 = vld [vmem:[%s1617_s17 + $0xa78] sm:$0xff] }
 0x11f   : > { %1339 = vmatpush.msra.mxu2 %v458_v3  ;;  %1361 = vmatpush.msra.mxu3 %v594_v4  ;;  %v586_v9 = vld [vmem:[%s1617_s17 + $0xc30] sm:$0xff]  ;;  %v667_v33 = vld [vmem:[%s1617_s17 + $0xeb8] sm:$0xff] }
 0x120   : > { %1202 = vmatmul.f32.vlgmr.msrb.gmra.mxu0 %v2103_v39  ;;  %1271 = vmatmul.f32.vlgmr.msrb.gmra.mxu3 %v2111_v41  ;;  %v330_v13 = vld [vmem:[%s1617_s17 + $0x430] sm:$0xff]  ;;  %v275_v34 = vld [vmem:[%s1617_s17 + $0x278] sm:$0xff] }
 0x121   : > { %1416 = vmatpush.msrb.mxu2 %v579_v5  ;;  %1293 = vmatpush.msra.mxu0 %v202_v6  ;;  %v411_v1 = vld [vmem:[%s1617_s17 + $0x6b8] sm:$0xff] }
 0x122   : > { %1315 = vmatpush.msra.mxu1 %v338_v7  ;;  %1362 = vmatpush.msra.mxu3 %v586_v9  ;;  %v523_v36 = vld [vmem:[%s1617_s17 + $0xa38] sm:$0xff] }
 0x123   : > { %1370 = vmatpush.msrb.mxu0 %v323_v10  ;;  %1417 = vmatpush.msrb.mxu2 %v571_v11  ;;  %v659_v37 = vld [vmem:[%s1617_s17 + $0xe78] sm:$0xff] }
 0x124   : > { %1439 = vmatpush.msrb.mxu3 %v707_v12  ;;  %1225 = vmatmul.f32.vlgmr.msrb.gmra.mxu1 %v2122_v47  ;;  %v267_v42 = vld [vmem:[%s1617_s17 + $0x238] sm:$0xff] }
 0x125   : > { %1371 = vmatpush.msrb.mxu0 %v315_v62  ;;  %1316 = vmatpush.msra.mxu1 %v330_v13  ;;  %v403_v45 = vld [vmem:[%s1617_s17 + $0x678] sm:$0xff] }
 0x126   : > { %1418 = vmatpush.msrb.mxu2 %v563_v14  ;;  %1440 = vmatpush.msrb.mxu3 %v699_v16  ;;  %v515_v46 = vld [vmem:[%s1617_s17 + $0x9f8] sm:$0xff] }
 0x127   : > { %1393 = vmatpush.msrb.mxu1 %v451_v15  ;;  %1372 = vmatpush.msrb.mxu0 %v307_v17  ;;  %v651_v49 = vld [vmem:[%s1617_s17 + $0xe38] sm:$0xff] }
 0x128   : > { %1419 = vmatpush.msrb.mxu2 %v555_v18  ;;  %1441 = vmatpush.msrb.mxu3 %v691_v20  ;;  %v259_v52 = vld [vmem:[%s1617_s17 + $0x1f8] sm:$0xff] }
 0x129   : > { %1394 = vmatpush.msrb.mxu1 %v443_v19  ;;  %v838_v26 = vpop.f32.mrf.mxu0  ;;  %1251 = vmatmul.f32.gmra.mxu2 %v2168_v35  ;;  %v395_v57 = vld [vmem:[%s1617_s17 + $0x638] sm:$0xff] }
 0x12a   : > { %1373 = vmatpush.msrb.mxu0 %v299_v21  ;;  %v839_v48 = vadd.f32 %v838_v26, %v711_v22  ;;  %1420 = vmatpush.msrb.mxu2 %v547_v24  ;;  %v419_v22 = vld [vmem:[%s1617_s17 + $0x6f8] sm:$0xff] }
 0x12b   : > { %1395 = vmatpush.msrb.mxu1 %v435_v23  ;;  %1442 = vmatpush.msrb.mxu3 %v683_v25  ;;  %v507_v58 = vld [vmem:[%s1617_s17 + $0x9b8] sm:$0xff] }
 0x12c   : > { %1205 = vmatmul.f32.gmra.mxu0 %v2177_v40  ;;  %v861_v31 = vpop.f32.mrf.mxu1  ;;  %1274 = vmatmul.f32.gmra.mxu3 %v2184_v44  ;;  %v884_v60 = vpop.f32.mrf.mxu2  ;;  %v643_v61 = vld [vmem:[%s1617_s17 + $0xdf8] sm:$0xff] }
 0x12d   : > { %1374 = vmatpush.msrb.mxu0 %v291_v27  ;;  %v862_v53 = vadd.f32 %v861_v31, %v839_v48  ;;  %1396 = vmatpush.msrb.mxu1 %v427_v28  ;;  %v251_v63 = vld [vmem:[%s1617_s17 + $0x1b8] sm:$0xff] }
 0x12e   : > { %1421 = vmatpush.msrb.mxu2 %v539_v29  ;;  %1443 = vmatpush.msrb.mxu3 %v675_v30  ;;  %v387_v0 = vld [vmem:[%s1617_s17 + $0x5f8] sm:$0xff] }
 0x12f   : > { %1228 = vmatmul.f32.gmra.mxu1 %v2194_v55  ;;  %v885_v59 = vadd.f32 %v884_v60, %v862_v53  ;;  %1375 = vmatpush.msrb.mxu0 %v283_v32  ;;  %v907_v38 = vpop.f32.mrf.mxu3  ;;  %v499_v5 = vld [vmem:[%s1617_s17 + $0x978] sm:$0xff] }
 0x130   : > { %1397 = vmatpush.msrb.mxu1 %v419_v22  ;;  %1422 = vmatpush.msrb.mxu2 %v531_v54  ;;  %v635_v6 = vld [vmem:[%s1617_s17 + $0xdb8] sm:$0xff] }
 0x131   : > { %1444 = vmatpush.msrb.mxu3 %v667_v33  ;;  %v908_v43 = vadd.f32 %v907_v38, %v885_v59  ;;  %1376 = vmatpush.msrb.mxu0 %v275_v34  ;;  %v243_v9 = vld [vmem:[%s1617_s17 + $0x178] sm:$0xff] }
 0x132   : > { %1398 = vmatpush.msrb.mxu1 %v411_v1  ;;  %1423 = vmatpush.msrb.mxu2 %v523_v36  ;;  %v379_v10 = vld [vmem:[%s1617_s17 + $0x5b8] sm:$0xff] }
 0x133   : > { %1445 = vmatpush.msrb.mxu3 %v659_v37  ;;  %1471 = vst [vmem:[%s2072_s15 + $0x48] sm:$0xff] %v908_v43  ;;  %v927_v50 = vpop.f32.mrf.mxu0  ;;  %1340 = vmatmul.f32.vlgmr.msra.gmra.mxu2 %v2094_v2  ;;  %v491_v11 = vld [vmem:[%s1617_s17 + $0x938] sm:$0xff] }
 0x134   : > { %1377 = vmatpush.msrb.mxu0 %v267_v42  ;;  %v928_v56 = vadd.f32 %v927_v50, %v712_v8  ;;  %1399 = vmatpush.msrb.mxu1 %v403_v45  ;;  %v627_v12 = vld [vmem:[%s1617_s17 + $0xd78] sm:$0xff] }
 0x135   : > { %1424 = vmatpush.msrb.mxu2 %v515_v46  ;;  %1446 = vmatpush.msrb.mxu3 %v651_v49  ;;  %v235_v14 = vld [vmem:[%s1617_s17 + $0x138] sm:$0xff] }
 0x136   : > { %1294 = vmatmul.f32.vlgmr.msra.gmra.mxu0 %v2103_v39  ;;  %1363 = vmatmul.f32.vlgmr.msra.gmra.mxu3 %v2111_v41  ;;  %v950_v3 = vpop.f32.mrf.mxu1  ;;  %v973_v4 = vpop.f32.mrf.mxu2  ;;  %v371_v15 = vld [vmem:[%s1617_s17 + $0x578] sm:$0xff] }
 0x137   : > { %1378 = vmatpush.msrb.mxu0 %v259_v52  ;;  %1400 = vmatpush.msrb.mxu1 %v395_v57  ;;  %v951_v7 = vadd.f32 %v950_v3, %v928_v56  ;;  %v483_v16 = vld [vmem:[%s1617_s17 + $0x8f8] sm:$0xff]  ;;  %v714_v52 = vperm.slane %v2037_v51, 4 }
 0x138   : > { %1425 = vmatpush.msrb.mxu2 %v507_v58  ;;  %1447 = vmatpush.msrb.mxu3 %v643_v61  ;;  %v619_v18 = vld [vmem:[%s1617_s17 + $0xd38] sm:$0xff] }
 0x139   : > { %1317 = vmatmul.f32.vlgmr.msra.gmra.mxu1 %v2122_v47  ;;  %1379 = vmatpush.msrb.mxu0 %v251_v63  ;;  %v974_v62 = vadd.f32 %v973_v4, %v951_v7  ;;  %v996_v13 = vpop.f32.mrf.mxu3  ;;  %v227_v19 = vld [vmem:[%s1617_s17 + $0xf8] sm:$0xff] }
 0x13a   : > { %1401 = vmatpush.msrb.mxu1 %v387_v0  ;;  %1426 = vmatpush.msrb.mxu2 %v499_v5  ;;  %v363_v20 = vld [vmem:[%s1617_s17 + $0x538] sm:$0xff] }
 0x13b   : > { %1448 = vmatpush.msrb.mxu3 %v635_v6  ;;  %1380 = vmatpush.msrb.mxu0 %v243_v9  ;;  %v997_v17 = vadd.f32 %v996_v13, %v974_v62  ;;  %v475_v21 = vld [vmem:[%s1617_s17 + $0x8b8] sm:$0xff] }
 0x13c   : > { %1402 = vmatpush.msrb.mxu1 %v379_v10  ;;  %1427 = vmatpush.msrb.mxu2 %v491_v11  ;;  %v611_v23 = vld [vmem:[%s1617_s17 + $0xcf8] sm:$0xff] }
 0x13d   : > { %1449 = vmatpush.msrb.mxu3 %v627_v12  ;;  %1343 = vmatmul.f32.gmra.mxu2 %v2168_v35  ;;  %1464 = vst [vmem:[%s2072_s15 + $0x10] sm:$0xff] %v997_v17  ;;  %v219_v24 = vld [vmem:[%s1617_s17 + $0xb8] sm:$0xff] }
 0x13e   : > { %1381 = vmatpush.msrb.mxu0 %v235_v14  ;;  %1403 = vmatpush.msrb.mxu1 %v371_v15  ;;  %v355_v25 = vld [vmem:[%s1617_s17 + $0x4f8] sm:$0xff]  ;;  %v715_v14 = vperm.slane %v2037_v51, 5 }
 0x13f   : > { %1428 = vmatpush.msrb.mxu2 %v483_v16  ;;  %1450 = vmatpush.msrb.mxu3 %v619_v18  ;;  %v467_v26 = vld [vmem:[%s1617_s17 + $0x878] sm:$0xff] }
 0x140   : > { %1297 = vmatmul.f32.gmra.mxu0 %v2177_v40  ;;  %1366 = vmatmul.f32.gmra.mxu3 %v2184_v44  ;;  %v603_v27 = vld [vmem:[%s1617_s17 + $0xcb8] sm:$0xff] }
 0x141   : > { %1382 = vmatpush.msrb.mxu0 %v227_v19  ;;  %1404 = vmatpush.msrb.mxu1 %v363_v20  ;;  %v211_v48 = vld [vmem:[%s1617_s17 + $0x78] sm:$0xff] }
 0x142   : > { %1429 = vmatpush.msrb.mxu2 %v475_v21  ;;  %1451 = vmatpush.msrb.mxu3 %v611_v23  ;;  %v347_v28 = vld [vmem:[%s1617_s17 + $0x4b8] sm:$0xff] }
 0x143   : > { %1320 = vmatmul.f32.gmra.mxu1 %v2194_v55  ;;  %1383 = vmatpush.msrb.mxu0 %v219_v24  ;;  %v459_v29 = vld [vmem:[%s1617_s17 + $0x838] sm:$0xff] }
 0x144   : > { %1405 = vmatpush.msrb.mxu1 %v355_v25  ;;  %v595_v30 = vld [vmem:[%s1617_s17 + $0xc78] sm:$0xff]  ;;  %1430 = vmatpush.msrb.mxu2 %v467_v26 }
 0x145   : > { %1452 = vmatpush.msrb.mxu3 %v603_v27  ;;  %v203_v31 = vld [vmem:[%s1617_s17 + $0x38] sm:$0xff]  ;;  %1384 = vmatpush.msrb.mxu0 %v211_v48 }
 0x146   : > { %1406 = vmatpush.msrb.mxu1 %v347_v28  ;;  %v339_v32 = vld [vmem:[%s1617_s17 + $0x478] sm:$0xff]  ;;  %1431 = vmatpush.msrb.mxu2 %v459_v29 }
 0x147   : > { %v587_v22 = vld [vmem:[%s1617_s17 + $0xc38] sm:$0xff]  ;;  %1453 = vmatpush.msrb.mxu3 %v595_v30  ;;  %1432 = vmatmul.f32.vlgmr.msrb.gmra.mxu2 %v2094_v2  ;;  %v716_v30 = vperm.slane %v2037_v51, 6 }
 0x148   : > { %1385 = vmatpush.msrb.mxu0 %v203_v31  ;;  %v331_v53 = vld [vmem:[%s1617_s17 + $0x438] sm:$0xff]  ;;  %1407 = vmatpush.msrb.mxu1 %v339_v32 }
 0x149   : > { %1454 = vmatpush.msrb.mxu3 %v587_v22  ;;  %1386 = vmatmul.f32.vlgmr.msrb.gmra.mxu0 %v2103_v39 }
 0x14a   : > { %1455 = vmatmul.f32.vlgmr.msrb.gmra.mxu3 %v2111_v41  ;;  %1408 = vmatpush.msrb.mxu1 %v331_v53 }
 0x14b   : > { %1409 = vmatmul.f32.vlgmr.msrb.gmra.mxu1 %v2122_v47  ;;  %v713_v47 = vperm.slane %v2037_v51, 3 }
 0x14d   : > { %v930_v60 = vpop.f32.mrf.mxu0 }
 0x14e   : > { %v931_v54 = vadd.f32 %v930_v60, %v712_v8 }
 0x14f   : > { %1435 = vmatmul.f32.gmra.mxu2 %v2168_v35 }
 0x150   : > { %v953_v33 = vpop.f32.mrf.mxu1  ;;  %v976_v34 = vpop.f32.mrf.mxu2 }
 0x151   : > { %v954_v2 = vadd.f32 %v953_v33, %v931_v54  ;;  %1389 = vmatmul.f32.gmra.mxu0 %v2177_v40 }
 0x152   : > { %1458 = vmatmul.f32.gmra.mxu3 %v2184_v44 }
 0x153   : > { %v977_v39 = vadd.f32 %v976_v34, %v954_v2  ;;  %1412 = vmatmul.f32.gmra.mxu1 %v2194_v55  ;;  %v999_v41 = vpop.f32.mrf.mxu3 }
 0x155   : > { %v1000_v1 = vadd.f32 %v999_v41, %v977_v39 }
 0x157   : > { %1472 = vst [vmem:[%s2072_s15 + $0x50] sm:$0xff] %v1000_v1  ;;  %v1019_v59 = vpop.f32.mrf.mxu0 }
 0x158   : > { %v1020_v36 = vadd.f32 %v1019_v59, %v713_v47 }
 0x15a   : > { %v1042_v37 = vpop.f32.mrf.mxu1  ;;  %v1065_v35 = vpop.f32.mrf.mxu2 }
 0x15b   : > { %v1043_v38 = vadd.f32 %v1042_v37, %v1020_v36 }
 0x15d   : > { %v1066_v8 = vadd.f32 %v1065_v35, %v1043_v38  ;;  %v1088_v42 = vpop.f32.mrf.mxu3  ;;  %v717_v35 = vperm.slane %v2037_v51, 7 }
 0x15f   : > { %v1089_v40 = vadd.f32 %v1088_v42, %v1066_v8 }
 0x161   : > { %1465 = vst [vmem:[%s2072_s15 + $0x18] sm:$0xff] %v1089_v40 }
 0x171   : > { %v1022_v43 = vpop.f32.mrf.mxu0 }
 0x172   : > { %v1023_v44 = vadd.f32 %v1022_v43, %v713_v47 }
 0x174   : > { %v1045_v45 = vpop.f32.mrf.mxu1  ;;  %v1068_v46 = vpop.f32.mrf.mxu2 }
 0x175   : > { %v1046_v55 = vadd.f32 %v1045_v45, %v1023_v44 }
 0x177   : > { %v1069_v49 = vadd.f32 %v1068_v46, %v1046_v55  ;;  %v1091_v50 = vpop.f32.mrf.mxu3 }
 0x179   : > { %v1092_v56 = vadd.f32 %v1091_v50, %v1069_v49 }
 0x17b   : > { %1473 = vst [vmem:[%s2072_s15 + $0x58] sm:$0xff] %v1092_v56  ;;  %v1111_v57 = vpop.f32.mrf.mxu0 }
 0x17c   : > { %v1112_v58 = vadd.f32 %v1111_v57, %v714_v52 }
 0x17e   : > { %v1134_v61 = vpop.f32.mrf.mxu1  ;;  %v1157_v63 = vpop.f32.mrf.mxu2 }
 0x17f   : > { %v1135_v0 = vadd.f32 %v1134_v61, %v1112_v58 }
 0x181   : > { %v1158_v3 = vadd.f32 %v1157_v63, %v1135_v0  ;;  %v1180_v4 = vpop.f32.mrf.mxu3 }
 0x183   : > { %v1181_v5 = vadd.f32 %v1180_v4, %v1158_v3 }
 0x185   : > { %1466 = vst [vmem:[%s2072_s15 + $0x20] sm:$0xff] %v1181_v5 }
 0x193   : > { %v1114_v6 = vpop.f32.mrf.mxu0 }
 0x194   : > { %v1115_v7 = vadd.f32 %v1114_v6, %v714_v52 }
 0x196   : > { %v1137_v9 = vpop.f32.mrf.mxu1  ;;  %v1160_v11 = vpop.f32.mrf.mxu2 }
 0x197   : > { %v1138_v10 = vadd.f32 %v1137_v9, %v1115_v7 }
 0x199   : > { %v1161_v12 = vadd.f32 %v1160_v11, %v1138_v10  ;;  %v1183_v62 = vpop.f32.mrf.mxu3 }
 0x19b   : > { %v1184_v13 = vadd.f32 %v1183_v62, %v1161_v12 }
 0x19d   : > { %1474 = vst [vmem:[%s2072_s15 + $0x60] sm:$0xff] %v1184_v13  ;;  %v1203_v15 = vpop.f32.mrf.mxu0 }
 0x19e   : > { %v1204_v16 = vadd.f32 %v1203_v15, %v715_v14 }
 0x1a0   : > { %v1249_v18 = vpop.f32.mrf.mxu2 }
 0x1a1   : > { %v1226_v17 = vpop.f32.mrf.mxu1 }
 0x1a2   : > { %v1227_v19 = vadd.f32 %v1226_v17, %v1204_v16 }
 0x1a3   : > { %v1272_v20 = vpop.f32.mrf.mxu3 }
 0x1a4   : > { %v1250_v21 = vadd.f32 %v1249_v18, %v1227_v19 }
 0x1a6   : > { %v1273_v23 = vadd.f32 %v1272_v20, %v1250_v21 }
 0x1a8   : > { %1467 = vst [vmem:[%s2072_s15 + $0x28] sm:$0xff] %v1273_v23 }
 0x1a9   : > { %v1206_v24 = vpop.f32.mrf.mxu0 }
 0x1aa   : > { %v1207_v25 = vadd.f32 %v1206_v24, %v715_v14 }
 0x1ac   : > { %v1229_v26 = vpop.f32.mrf.mxu1  ;;  %v1252_v48 = vpop.f32.mrf.mxu2 }
 0x1ad   : > { %v1230_v27 = vadd.f32 %v1229_v26, %v1207_v25 }
 0x1af   : > { %v1253_v28 = vadd.f32 %v1252_v48, %v1230_v27  ;;  %v1275_v29 = vpop.f32.mrf.mxu3 }
 0x1b1   : > { %v1276_v31 = vadd.f32 %v1275_v29, %v1253_v28 }
 0x1b3   : > { %1475 = vst [vmem:[%s2072_s15 + $0x68] sm:$0xff] %v1276_v31  ;;  %v1295_v32 = vpop.f32.mrf.mxu0 }
 0x1b4   : > { %v1296_v22 = vadd.f32 %v1295_v32, %v716_v30 }
 0x1b6   : > { %v1318_v53 = vpop.f32.mrf.mxu1  ;;  %v1341_v54 = vpop.f32.mrf.mxu2 }
 0x1b7   : > { %v1319_v60 = vadd.f32 %v1318_v53, %v1296_v22 }
 0x1b9   : > { %v1342_v33 = vadd.f32 %v1341_v54, %v1319_v60  ;;  %v1364_v2 = vpop.f32.mrf.mxu3 }
 0x1bb   : > { %v1365_v34 = vadd.f32 %v1364_v2, %v1342_v33 }
 0x1bd   : > { %1468 = vst [vmem:[%s2072_s15 + $0x30] sm:$0xff] %v1365_v34  ;;  %v1298_v39 = vpop.f32.mrf.mxu0 }
 0x1be   : > { %v1299_v41 = vadd.f32 %v1298_v39, %v716_v30 }
 0x1c0   : > { %v1321_v47 = vpop.f32.mrf.mxu1  ;;  %v1344_v59 = vpop.f32.mrf.mxu2 }
 0x1c1   : > { %v1322_v1 = vadd.f32 %v1321_v47, %v1299_v41 }
 0x1c3   : > { %v1345_v36 = vadd.f32 %v1344_v59, %v1322_v1  ;;  %v1367_v37 = vpop.f32.mrf.mxu3 }
 0x1c5   : > { %v1368_v38 = vadd.f32 %v1367_v37, %v1345_v36 }
 0x1c6   : > { %v1387_v8 = vpop.f32.mrf.mxu0 }
 0x1c7   : > { %1476 = vst [vmem:[%s2072_s15 + $0x70] sm:$0xff] %v1368_v38  ;;  %v1388_v42 = vadd.f32 %v1387_v8, %v717_v35 }
 0x1c8   : > { %v1410_v40 = vpop.f32.mrf.mxu1 }
 0x1c9   : > { %v1411_v43 = vadd.f32 %v1410_v40, %v1388_v42 }
 0x1ca   : > { %v1433_v44 = vpop.f32.mrf.mxu2 }
 0x1cb   : > { %v1434_v45 = vadd.f32 %v1433_v44, %v1411_v43 }
 0x1cd   : > { %v1456_v55 = vpop.f32.mrf.mxu3 }
 0x1ce   : > { %v1457_v46 = vadd.f32 %v1456_v55, %v1434_v45  ;;  %v1390_v49 = vpop.f32.mrf.mxu0 }
 0x1cf   : > { %v1391_v50 = vadd.f32 %v1390_v49, %v717_v35 }
 0x1d0   : > { %1469 = vst [vmem:[%s2072_s15 + $0x38] sm:$0xff] %v1457_v46  ;;  %v1413_v52 = vpop.f32.mrf.mxu1 }
 0x1d1   : > { %v1414_v56 = vadd.f32 %v1413_v52, %v1391_v50 }
 0x1d2   : > { %v1436_v57 = vpop.f32.mrf.mxu2 }
 0x1d3   : > { %v1437_v58 = vadd.f32 %v1436_v57, %v1414_v56 }
 0x1d5   : > { %v1459_v61 = vpop.f32.mrf.mxu3 }
 0x1d6   : > { %v1460_v51 = vadd.f32 %v1459_v61, %v1437_v58 }
 0x1d8   : > { %1477 = vst [vmem:[%s2072_s15 + $0x78] sm:$0xff] %v1460_v51 }
 0x1d9 PF: > { %s13_s12 = sadd.s32 1, %s1581_s12  }
 0x1da   : > { %p10_p4 = scmp.ge.s32.totalorder %s13_s12, 4  }
 0x1dc   :  { %12 = sbr.rel (!%p10_p4) target bundleno = 1 (0x1), region = 65 }

// kernel: cnn_forward.9
= control target key start
LH: loop header
LB: loop body
LE: loop exit
PB: predicated region body
PF: predicated region fallthrough
CT: control target
= control target key end

     0   :  { %s1331_s12 = smov 0   ;;  %s1333_s13 = smov 0   ;;  %s1760_s0 = inlined_call_operand.vmem [shape: f32[2,8,2,1024], index: 0, kind: input, shape index: {}]   ;;  %s1761_s1 = inlined_call_operand.vmem [shape: f32[2,256,1024], index: 1, kind: input, shape index: {}]   ;;  %s1762_s2 = inlined_call_operand.vmem [shape: f32[2,256,128], index: 2, kind: input, shape index: {}]   ;;  %s1763_s3 = inlined_call_operand.vmem [shape: f32[2,8,2,128], index: 3, kind: output, shape index: {}]  }
   0x1   :  { %s1335_s14 = smov 0   ;;  %s1337_s15 = smov 0  }
   0x2   :  { %s1339_s16 = smov 0  }
   0x3 LB: > { %s22_s17 = sadd.s32 1, %s1300_s14  ;;  %s25_s18 = sadd.s32 1, %s1304_s15  ;;  %s1308_s16 = sphi %s1339_s16, %s13_s16   ;;  %s1304_s15 = sphi %s1337_s15, %s1771_s15   ;;  %s1300_s14 = sphi %s1335_s14, %s1770_s14   ;;  %s1296_s13 = sphi %s1333_s13, %s1769_s13   ;;  %s1292_s12 = sphi %s1331_s12, %s1768_s12  }
   0x4   : > { %p23_p0 = scmp.ge.s32.totalorder %s22_s17, 8  ;;  %p1196_p1 = scmp.ge.s32.totalorder %s1308_s16, 1 }
   0x5   : > { %p201_p2 = scmp.lt.s32.totalorder %s1308_s16, 17 }
   0x6   : > { %s1773_s17 = smov (%p23_p0, %s22_s17), 0  ;;  %s1775_s18 = smov (!%p23_p0, %s25_s18), %s1304_s15 }
   0x7   : > { %p202_p3 = pnand %p1196_p1, %p201_p2  ;;  %p27_p4 = scmp.ge.s32.totalorder %s1775_s18, 2 }
   0x8   : > { %s1197_s19 = sshll.u32 (!%p202_p3), %s1292_s12, 1  ;;  %p254_p5 = scmp.lt.s32.totalorder (!%p202_p3), %s1296_s13, 1 }
   0x9   : > { %s1777_s18 = smov (%p27_p4, %s1775_s18), 0  ;;  %205 = sbr.rel (%p202_p3) target bundleno = 475 (0x1db), region = 32 }
   0xa   : > { %s251_s20 = ssub.s32 (!%p202_p3), 7, %s1197_s19  ;;  %p1208_p7 = scmp.ne.s32.totalorder (!%p202_p3), %s1292_s12, 0 }
   0xb   : > { %s252_s21 = smul.u32 (!%p202_p3), %s1296_s13, %s251_s20 }
   0xd   : > { %s253_s22 = sadd.s32 (!%p202_p3), %s1292_s12, %s252_s21 }
   0xe   : > { %s1779_s13 = smov (!%p254_p5, %s1296_s13), 1  ;;  %p256_p6 = scmp.lt.s32.totalorder %s253_s22, 7 }
   0xf   : > { %s1199_s23 = sshll.u32 %s1779_s13, 6  ;;  %s1211_s24 = sshll.u32 %s1779_s13, 11 }
  0x10   : > { %s1212_s25 = sshll.u32 %s1779_s13, 8  ;;  %s1781_s22 = smov (!%p256_p6, %s253_s22), 7 }
  0x11   : > { %s1368_s28 = scalar_lea.vmem %s1761_s1, %s1211_s24  ;;  %s1373_s4 = scalar_lea.vmem %s1762_s2, %s1212_s25 }
  0x12   : > { %s1198_s5 = sshll.u32 %s1781_s22, 3  ;;  %s1206_s6 = sshll.u32 %s1779_s13, 3 }
  0x13   : > { %s260_s7 = sadd.s32 %s1199_s23, %s1198_s5  ;;  %s286_s8 = sadd.s32 %s1206_s6, %s1781_s22 }
  0x14   : > { %s1200_s9 = sshll.u32 %s260_s7, 1  ;;  %s1207_s10 = sshll.u32 %s286_s8, 1 }
  0x15   : > { %s1378_s20 = scalar_lea.vmem %s1760_s0, %s1200_s9  ;;  %s1383_s24 = scalar_lea.vmem %s1763_s3, %s1207_s10 }
  0x16   : > { %296 = sbr.rel (%p1208_p7) target bundleno = 30 (0x1e), region = 36 }
  0x1b   : > { %v1310_v0 = vmov 0.0  }
  0x1c   : > { %297 = vst [vmem:[#allocation2] sm:$0xf] %v1310_v0 }
  0x1d   : > { %298 = vst [vmem:[#allocation3] sm:$0xf] %v1310_v0 }
  0x1e PF: > { %v423_v1 = vld [vmem:[%s1368_s28 + $0x3c8] sm:$0xff]  ;;  %v422_v7 = vld [vmem:[%s1368_s28 + $0x3c0] sm:$0xff]  ;;  %v425_v61 = vld [vmem:[%s1368_s28 + $0x3d8] sm:$0xff]  ;;  %vm900_vm0 = vcmask 1045508   ;;  %vm898_vm1 = vcmask 1041408   ;;  %vm902_vm2 = vcmask 1043456  }
  0x1f   : > { %v551_v2 = vld [vmem:[%s1368_s28 + $0x7c8] sm:$0xff]  ;;  %604 = vmatpush.msra.mxu2 %v423_v1  ;;  %v550_v8 = vld [vmem:[%s1368_s28 + $0x7c0] sm:$0xff]  ;;  %564 = vmatpush.msra.mxu0 %v422_v7  ;;  %v553_v62 = vld [vmem:[%s1368_s28 + $0x7d8] sm:$0xff] }
  0x20   : > { %v415_v3 = vld [vmem:[%s1368_s28 + $0x388] sm:$0xff]  ;;  %624 = vmatpush.msra.mxu3 %v551_v2  ;;  %v414_v9 = vld [vmem:[%s1368_s28 + $0x380] sm:$0xff]  ;;  %584 = vmatpush.msra.mxu1 %v550_v8  ;;  %v417_v1 = vld [vmem:[%s1368_s28 + $0x398] sm:$0xff] }
  0x21   : > { %v543_v4 = vld [vmem:[%s1368_s28 + $0x788] sm:$0xff]  ;;  %605 = vmatpush.msra.mxu2 %v415_v3  ;;  %v542_v10 = vld [vmem:[%s1368_s28 + $0x780] sm:$0xff]  ;;  %565 = vmatpush.msra.mxu0 %v414_v9  ;;  %v545_v2 = vld [vmem:[%s1368_s28 + $0x798] sm:$0xff] }
  0x22   : > { %v407_v5 = vld [vmem:[%s1368_s28 + $0x348] sm:$0xff]  ;;  %625 = vmatpush.msra.mxu3 %v543_v4  ;;  %v406_v13 = vld [vmem:[%s1368_s28 + $0x340] sm:$0xff]  ;;  %585 = vmatpush.msra.mxu1 %v542_v10  ;;  %v424_v7 = vld [vmem:[%s1368_s28 + $0x3d0] sm:$0xff] }
  0x23   : > { %v535_v6 = vld [vmem:[%s1368_s28 + $0x748] sm:$0xff]  ;;  %606 = vmatpush.msra.mxu2 %v407_v5  ;;  %v534_v14 = vld [vmem:[%s1368_s28 + $0x740] sm:$0xff]  ;;  %566 = vmatpush.msra.mxu0 %v406_v13  ;;  %v409_v5 = vld [vmem:[%s1368_s28 + $0x358] sm:$0xff] }
  0x24   : > { %v399_v11 = vld [vmem:[%s1368_s28 + $0x308] sm:$0xff]  ;;  %626 = vmatpush.msra.mxu3 %v535_v6  ;;  %v398_v17 = vld [vmem:[%s1368_s28 + $0x300] sm:$0xff]  ;;  %586 = vmatpush.msra.mxu1 %v534_v14  ;;  %v537_v6 = vld [vmem:[%s1368_s28 + $0x758] sm:$0xff] }
  0x25   : > { %v527_v12 = vld [vmem:[%s1368_s28 + $0x708] sm:$0xff]  ;;  %607 = vmatpush.msra.mxu2 %v399_v11  ;;  %v526_v18 = vld [vmem:[%s1368_s28 + $0x700] sm:$0xff]  ;;  %567 = vmatpush.msra.mxu0 %v398_v17  ;;  %v552_v8 = vld [vmem:[%s1368_s28 + $0x7d0] sm:$0xff] }
  0x26   : > { %v391_v15 = vld [vmem:[%s1368_s28 + $0x2c8] sm:$0xff]  ;;  %627 = vmatpush.msra.mxu3 %v527_v12  ;;  %v390_v21 = vld [vmem:[%s1368_s28 + $0x2c0] sm:$0xff]  ;;  %587 = vmatpush.msra.mxu1 %v526_v18  ;;  %v401_v9 = vld [vmem:[%s1368_s28 + $0x318] sm:$0xff] }
  0x27   : > { %v519_v16 = vld [vmem:[%s1368_s28 + $0x6c8] sm:$0xff]  ;;  %608 = vmatpush.msra.mxu2 %v391_v15  ;;  %v518_v22 = vld [vmem:[%s1368_s28 + $0x6c0] sm:$0xff]  ;;  %568 = vmatpush.msra.mxu0 %v390_v21  ;;  %v529_v10 = vld [vmem:[%s1368_s28 + $0x718] sm:$0xff] }
  0x28   : > { %v383_v19 = vld [vmem:[%s1368_s28 + $0x288] sm:$0xff]  ;;  %628 = vmatpush.msra.mxu3 %v519_v16  ;;  %v382_v25 = vld [vmem:[%s1368_s28 + $0x280] sm:$0xff]  ;;  %588 = vmatpush.msra.mxu1 %v518_v22  ;;  %v416_v12 = vld [vmem:[%s1368_s28 + $0x390] sm:$0xff] }
  0x29   : > { %v511_v20 = vld [vmem:[%s1368_s28 + $0x688] sm:$0xff]  ;;  %609 = vmatpush.msra.mxu2 %v383_v19  ;;  %v510_v26 = vld [vmem:[%s1368_s28 + $0x680] sm:$0xff]  ;;  %569 = vmatpush.msra.mxu0 %v382_v25  ;;  %v544_v13 = vld [vmem:[%s1368_s28 + $0x790] sm:$0xff] }
  0x2a   : > { %v375_v23 = vld [vmem:[%s1368_s28 + $0x248] sm:$0xff]  ;;  %629 = vmatpush.msra.mxu3 %v511_v20  ;;  %v374_v29 = vld [vmem:[%s1368_s28 + $0x240] sm:$0xff]  ;;  %589 = vmatpush.msra.mxu1 %v510_v26  ;;  %v393_v14 = vld [vmem:[%s1368_s28 + $0x2d8] sm:$0xff] }
  0x2b   : > { %v503_v24 = vld [vmem:[%s1368_s28 + $0x648] sm:$0xff]  ;;  %610 = vmatpush.msra.mxu2 %v375_v23  ;;  %v502_v30 = vld [vmem:[%s1368_s28 + $0x640] sm:$0xff]  ;;  %570 = vmatpush.msra.mxu0 %v374_v29  ;;  %v521_v15 = vld [vmem:[%s1368_s28 + $0x6d8] sm:$0xff] }
  0x2c   : > { %v367_v27 = vld [vmem:[%s1368_s28 + $0x208] sm:$0xff]  ;;  %630 = vmatpush.msra.mxu3 %v503_v24  ;;  %v366_v33 = vld [vmem:[%s1368_s28 + $0x200] sm:$0xff]  ;;  %590 = vmatpush.msra.mxu1 %v502_v30  ;;  %v408_v16 = vld [vmem:[%s1368_s28 + $0x350] sm:$0xff] }
  0x2d   : > { %v495_v28 = vld [vmem:[%s1368_s28 + $0x608] sm:$0xff]  ;;  %611 = vmatpush.msra.mxu2 %v367_v27  ;;  %v494_v34 = vld [vmem:[%s1368_s28 + $0x600] sm:$0xff]  ;;  %571 = vmatpush.msra.mxu0 %v366_v33  ;;  %v536_v17 = vld [vmem:[%s1368_s28 + $0x750] sm:$0xff] }
  0x2e   : > { %v359_v31 = vld [vmem:[%s1368_s28 + $0x1c8] sm:$0xff]  ;;  %631 = vmatpush.msra.mxu3 %v495_v28  ;;  %v358_v37 = vld [vmem:[%s1368_s28 + $0x1c0] sm:$0xff]  ;;  %591 = vmatpush.msra.mxu1 %v494_v34  ;;  %v385_v18 = vld [vmem:[%s1368_s28 + $0x298] sm:$0xff] }
  0x2f   : > { %v487_v32 = vld [vmem:[%s1368_s28 + $0x5c8] sm:$0xff]  ;;  %612 = vmatpush.msra.mxu2 %v359_v31  ;;  %v486_v38 = vld [vmem:[%s1368_s28 + $0x5c0] sm:$0xff]  ;;  %572 = vmatpush.msra.mxu0 %v358_v37  ;;  %v513_v19 = vld [vmem:[%s1368_s28 + $0x698] sm:$0xff] }
  0x30   : > { %v351_v35 = vld [vmem:[%s1368_s28 + $0x188] sm:$0xff]  ;;  %632 = vmatpush.msra.mxu3 %v487_v32  ;;  %v350_v41 = vld [vmem:[%s1368_s28 + $0x180] sm:$0xff]  ;;  %592 = vmatpush.msra.mxu1 %v486_v38  ;;  %v400_v20 = vld [vmem:[%s1368_s28 + $0x310] sm:$0xff] }
  0x31   : > { %v479_v36 = vld [vmem:[%s1368_s28 + $0x588] sm:$0xff]  ;;  %613 = vmatpush.msra.mxu2 %v351_v35  ;;  %v478_v42 = vld [vmem:[%s1368_s28 + $0x580] sm:$0xff]  ;;  %573 = vmatpush.msra.mxu0 %v350_v41  ;;  %v528_v21 = vld [vmem:[%s1368_s28 + $0x710] sm:$0xff] }
  0x32   : > { %v343_v39 = vld [vmem:[%s1368_s28 + $0x148] sm:$0xff]  ;;  %633 = vmatpush.msra.mxu3 %v479_v36  ;;  %v342_v45 = vld [vmem:[%s1368_s28 + $0x140] sm:$0xff]  ;;  %593 = vmatpush.msra.mxu1 %v478_v42  ;;  %v377_v22 = vld [vmem:[%s1368_s28 + $0x258] sm:$0xff] }
  0x33   : > { %v471_v40 = vld [vmem:[%s1368_s28 + $0x548] sm:$0xff]  ;;  %614 = vmatpush.msra.mxu2 %v343_v39  ;;  %v470_v46 = vld [vmem:[%s1368_s28 + $0x540] sm:$0xff]  ;;  %574 = vmatpush.msra.mxu0 %v342_v45  ;;  %v505_v23 = vld [vmem:[%s1368_s28 + $0x658] sm:$0xff] }
  0x34   : > { %v335_v43 = vld [vmem:[%s1368_s28 + $0x108] sm:$0xff]  ;;  %634 = vmatpush.msra.mxu3 %v471_v40  ;;  %v334_v49 = vld [vmem:[%s1368_s28 + $0x100] sm:$0xff]  ;;  %594 = vmatpush.msra.mxu1 %v470_v46  ;;  %v392_v24 = vld [vmem:[%s1368_s28 + $0x2d0] sm:$0xff] }
  0x35   : > { %v463_v44 = vld [vmem:[%s1368_s28 + $0x508] sm:$0xff]  ;;  %615 = vmatpush.msra.mxu2 %v335_v43  ;;  %v462_v50 = vld [vmem:[%s1368_s28 + $0x500] sm:$0xff]  ;;  %575 = vmatpush.msra.mxu0 %v334_v49  ;;  %v520_v25 = vld [vmem:[%s1368_s28 + $0x6d0] sm:$0xff] }
  0x36   : > { %v327_v47 = vld [vmem:[%s1368_s28 + $0xc8] sm:$0xff]  ;;  %635 = vmatpush.msra.mxu3 %v463_v44  ;;  %v326_v53 = vld [vmem:[%s1368_s28 + $0xc0] sm:$0xff]  ;;  %595 = vmatpush.msra.mxu1 %v462_v50  ;;  %v369_v26 = vld [vmem:[%s1368_s28 + $0x218] sm:$0xff] }
  0x37   : > { %v455_v48 = vld [vmem:[%s1368_s28 + $0x4c8] sm:$0xff]  ;;  %616 = vmatpush.msra.mxu2 %v327_v47  ;;  %v454_v54 = vld [vmem:[%s1368_s28 + $0x4c0] sm:$0xff]  ;;  %576 = vmatpush.msra.mxu0 %v326_v53  ;;  %v497_v27 = vld [vmem:[%s1368_s28 + $0x618] sm:$0xff] }
  0x38   : > { %v319_v51 = vld [vmem:[%s1368_s28 + $0x88] sm:$0xff]  ;;  %636 = vmatpush.msra.mxu3 %v455_v48  ;;  %v318_v57 = vld [vmem:[%s1368_s28 + $0x80] sm:$0xff]  ;;  %596 = vmatpush.msra.mxu1 %v454_v54  ;;  %v384_v28 = vld [vmem:[%s1368_s28 + $0x290] sm:$0xff] }
  0x39   : > { %v447_v52 = vld [vmem:[%s1368_s28 + $0x488] sm:$0xff]  ;;  %617 = vmatpush.msra.mxu2 %v319_v51  ;;  %v446_v58 = vld [vmem:[%s1368_s28 + $0x480] sm:$0xff]  ;;  %577 = vmatpush.msra.mxu0 %v318_v57  ;;  %v512_v29 = vld [vmem:[%s1368_s28 + $0x690] sm:$0xff] }
  0x3a   : > { %v311_v55 = vld [vmem:[%s1368_s28 + $0x48] sm:$0xff]  ;;  %637 = vmatpush.msra.mxu3 %v447_v52  ;;  %597 = vmatpush.msra.mxu1 %v446_v58  ;;  %v310_v63 = vld [vmem:[%s1368_s28 + $0x40] sm:$0xff]  ;;  %v361_v30 = vld [vmem:[%s1368_s28 + $0x1d8] sm:$0xff] }
  0x3b   : > { %v439_v56 = vld [vmem:[%s1368_s28 + $0x448] sm:$0xff]  ;;  %618 = vmatpush.msra.mxu2 %v311_v55  ;;  %v438_v0 = vld [vmem:[%s1368_s28 + $0x440] sm:$0xff]  ;;  %578 = vmatpush.msra.mxu0 %v310_v63  ;;  %v489_v31 = vld [vmem:[%s1368_s28 + $0x5d8] sm:$0xff] }
  0x3c   : > { %v303_v59 = vld [vmem:[%s1368_s28 + $0x8] sm:$0xff]  ;;  %638 = vmatpush.msra.mxu3 %v439_v56  ;;  %v302_v3 = vld [vmem:[%s1368_s28] sm:$0xff]  ;;  %598 = vmatpush.msra.mxu1 %v438_v0  ;;  %v376_v32 = vld [vmem:[%s1368_s28 + $0x250] sm:$0xff] }
  0x3d   : > { %v431_v60 = vld [vmem:[%s1368_s28 + $0x408] sm:$0xff]  ;;  %619 = vmatpush.msra.mxu2 %v303_v59  ;;  %v430_v4 = vld [vmem:[%s1368_s28 + $0x400] sm:$0xff]  ;;  %579 = vmatpush.msra.mxu0 %v302_v3  ;;  %v504_v33 = vld [vmem:[%s1368_s28 + $0x650] sm:$0xff] }
  0x3e   : > { %639 = vmatpush.msra.mxu3 %v431_v60  ;;  %599 = vmatpush.msra.mxu1 %v430_v4  ;;  %v301_v11 = vld [vmem:[#allocation2] sm:$0xf]  ;;  %v353_v34 = vld [vmem:[%s1368_s28 + $0x198] sm:$0xff]  ;;  %v368_v36 = vld [vmem:[%s1368_s28 + $0x210] sm:$0xff] }
  0x3f   : > { %684 = vmatpush.msrb.mxu2 %v425_v61  ;;  %559 = vst [vmem:[#allocation1] ss:$4 sm:$0xff] %v301_v11  ;;  %644 = vmatpush.msrb.mxu0 %v424_v7  ;;  %v481_v35 = vld [vmem:[%s1368_s28 + $0x598] sm:$0xff]  ;;  %v496_v37 = vld [vmem:[%s1368_s28 + $0x610] sm:$0xff]  ;;  %v555_v63 = vld [vmem:[%s1368_s28 + $0x7e8] sm:$0xff] }
  0x40   : > { %704 = vmatpush.msrb.mxu3 %v553_v62  ;;  %664 = vmatpush.msrb.mxu1 %v552_v8  ;;  %v345_v38 = vld [vmem:[%s1368_s28 + $0x158] sm:$0xff]  ;;  %v360_v40 = vld [vmem:[%s1368_s28 + $0x1d0] sm:$0xff]  ;;  %v427_v62 = vld [vmem:[%s1368_s28 + $0x3e8] sm:$0xff] }
  0x41   : > { %685 = vmatpush.msrb.mxu2 %v417_v1  ;;  %645 = vmatpush.msrb.mxu0 %v416_v12  ;;  %v473_v39 = vld [vmem:[%s1368_s28 + $0x558] sm:$0xff]  ;;  %v488_v41 = vld [vmem:[%s1368_s28 + $0x5d0] sm:$0xff]  ;;  %v547_v3 = vld [vmem:[%s1368_s28 + $0x7a8] sm:$0xff] }
  0x42   : > { %705 = vmatpush.msrb.mxu3 %v545_v2  ;;  %665 = vmatpush.msrb.mxu1 %v544_v13  ;;  %v337_v42 = vld [vmem:[%s1368_s28 + $0x118] sm:$0xff]  ;;  %v352_v46 = vld [vmem:[%s1368_s28 + $0x190] sm:$0xff]  ;;  %v419_v2 = vld [vmem:[%s1368_s28 + $0x3a8] sm:$0xff] }
  0x43   : > { %686 = vmatpush.msrb.mxu2 %v409_v5  ;;  %646 = vmatpush.msrb.mxu0 %v408_v16  ;;  %v465_v43 = vld [vmem:[%s1368_s28 + $0x518] sm:$0xff]  ;;  %v480_v47 = vld [vmem:[%s1368_s28 + $0x590] sm:$0xff]  ;;  %v539_v7 = vld [vmem:[%s1368_s28 + $0x768] sm:$0xff] }
  0x44   : > { %706 = vmatpush.msrb.mxu3 %v537_v6  ;;  %666 = vmatpush.msrb.mxu1 %v536_v17  ;;  %v329_v48 = vld [vmem:[%s1368_s28 + $0xd8] sm:$0xff]  ;;  %v344_v50 = vld [vmem:[%s1368_s28 + $0x150] sm:$0xff]  ;;  %v411_v6 = vld [vmem:[%s1368_s28 + $0x368] sm:$0xff] }
  0x45   : > { %687 = vmatpush.msrb.mxu2 %v401_v9  ;;  %647 = vmatpush.msrb.mxu0 %v400_v20  ;;  %v457_v49 = vld [vmem:[%s1368_s28 + $0x4d8] sm:$0xff]  ;;  %v472_v51 = vld [vmem:[%s1368_s28 + $0x550] sm:$0xff]  ;;  %v554_v11 = vld [vmem:[%s1368_s28 + $0x7e0] sm:$0xff] }
  0x46   : > { %707 = vmatpush.msrb.mxu3 %v529_v10  ;;  %667 = vmatpush.msrb.mxu1 %v528_v21  ;;  %v1492_v44 = vld.sshfl [vmem:[#allocation1] sm:$0xff pattern:$0x73625140]  ;;  %v1494_v45 = vld.sshfl [vmem:[#allocation1 + $0x8] sm:$0xff pattern:$0x73625140] }
  0x47   : > { %688 = vmatpush.msrb.mxu2 %v393_v14  ;;  %648 = vmatpush.msrb.mxu0 %v392_v24  ;;  %v321_v52 = vld [vmem:[%s1368_s28 + $0x98] sm:$0xff]  ;;  %v336_v54 = vld [vmem:[%s1368_s28 + $0x110] sm:$0xff]  ;;  %v426_v10 = vld [vmem:[%s1368_s28 + $0x3e0] sm:$0xff] }
  0x48   : > { %708 = vmatpush.msrb.mxu3 %v521_v15  ;;  %668 = vmatpush.msrb.mxu1 %v520_v25  ;;  %v449_v53 = vld [vmem:[%s1368_s28 + $0x498] sm:$0xff]  ;;  %v464_v55 = vld [vmem:[%s1368_s28 + $0x510] sm:$0xff]  ;;  %v403_v12 = vld [vmem:[%s1368_s28 + $0x328] sm:$0xff] }
  0x49   : > { %689 = vmatpush.msrb.mxu2 %v385_v18  ;;  %649 = vmatpush.msrb.mxu0 %v384_v28  ;;  %v313_v56 = vld [vmem:[%s1368_s28 + $0x58] sm:$0xff]  ;;  %v328_v58 = vld [vmem:[%s1368_s28 + $0xd0] sm:$0xff]  ;;  %v531_v13 = vld [vmem:[%s1368_s28 + $0x728] sm:$0xff] }
  0x4a   : > { %709 = vmatpush.msrb.mxu3 %v513_v19  ;;  %669 = vmatpush.msrb.mxu1 %v512_v29  ;;  %v441_v57 = vld [vmem:[%s1368_s28 + $0x458] sm:$0xff]  ;;  %v456_v59 = vld [vmem:[%s1368_s28 + $0x4d0] sm:$0xff]  ;;  %v418_v14 = vld [vmem:[%s1368_s28 + $0x3a0] sm:$0xff] }
  0x4b   : > { %690 = vmatpush.msrb.mxu2 %v377_v22  ;;  %650 = vmatpush.msrb.mxu0 %v376_v32  ;;  %v305_v60 = vld [vmem:[%s1368_s28 + $0x18] sm:$0xff]  ;;  %v320_v0 = vld [vmem:[%s1368_s28 + $0x90] sm:$0xff]  ;;  %v546_v15 = vld [vmem:[%s1368_s28 + $0x7a0] sm:$0xff] }
  0x4c   : > { %710 = vmatpush.msrb.mxu3 %v505_v23  ;;  %670 = vmatpush.msrb.mxu1 %v504_v33  ;;  %v433_v61 = vld [vmem:[%s1368_s28 + $0x418] sm:$0xff]  ;;  %v448_v1 = vld [vmem:[%s1368_s28 + $0x490] sm:$0xff]  ;;  %v395_v16 = vld [vmem:[%s1368_s28 + $0x2e8] sm:$0xff] }
  0x4d   : > { %691 = vmatpush.msrb.mxu2 %v369_v26  ;;  %651 = vmatpush.msrb.mxu0 %v368_v36  ;;  %v312_v4 = vld [vmem:[%s1368_s28 + $0x50] sm:$0xff]  ;;  %v523_v17 = vld [vmem:[%s1368_s28 + $0x6e8] sm:$0xff]  ;;  %v410_v18 = vld [vmem:[%s1368_s28 + $0x360] sm:$0xff] }
  0x4e   : > { %711 = vmatpush.msrb.mxu3 %v497_v27  ;;  %671 = vmatpush.msrb.mxu1 %v496_v37  ;;  %v440_v5 = vld [vmem:[%s1368_s28 + $0x450] sm:$0xff]  ;;  %v538_v19 = vld [vmem:[%s1368_s28 + $0x760] sm:$0xff]  ;;  %v387_v20 = vld [vmem:[%s1368_s28 + $0x2a8] sm:$0xff] }
  0x4f   : > { %692 = vmatpush.msrb.mxu2 %v361_v30  ;;  %652 = vmatpush.msrb.mxu0 %v360_v40  ;;  %v304_v8 = vld [vmem:[%s1368_s28 + $0x10] sm:$0xff]  ;;  %v515_v21 = vld [vmem:[%s1368_s28 + $0x6a8] sm:$0xff]  ;;  %v402_v22 = vld [vmem:[%s1368_s28 + $0x320] sm:$0xff] }
  0x50   : > { %712 = vmatpush.msrb.mxu3 %v489_v31  ;;  %672 = vmatpush.msrb.mxu1 %v488_v41  ;;  %v432_v9 = vld [vmem:[%s1368_s28 + $0x410] sm:$0xff]  ;;  %v530_v23 = vld [vmem:[%s1368_s28 + $0x720] sm:$0xff]  ;;  %v379_v24 = vld [vmem:[%s1368_s28 + $0x268] sm:$0xff] }
  0x51   : > { %693 = vmatpush.msrb.mxu2 %v353_v34  ;;  %640 = vmatmul.f32.vlgmr.msra.gmra.mxu3 %v1494_v45  ;;  %v507_v25 = vld [vmem:[%s1368_s28 + $0x668] sm:$0xff]  ;;  %v394_v26 = vld [vmem:[%s1368_s28 + $0x2e0] sm:$0xff] }
  0x52   : > { %713 = vmatpush.msrb.mxu3 %v481_v35  ;;  %620 = vmatmul.f32.vlgmr.msra.gmra.mxu2 %v1492_v44  ;;  %v522_v27 = vld [vmem:[%s1368_s28 + $0x6e0] sm:$0xff]  ;;  %v371_v28 = vld [vmem:[%s1368_s28 + $0x228] sm:$0xff] }
  0x53   : > { %694 = vmatpush.msrb.mxu2 %v345_v38  ;;  %653 = vmatpush.msrb.mxu0 %v352_v46  ;;  %v499_v29 = vld [vmem:[%s1368_s28 + $0x628] sm:$0xff]  ;;  %v386_v30 = vld [vmem:[%s1368_s28 + $0x2a0] sm:$0xff] }
  0x54   : > { %714 = vmatpush.msrb.mxu3 %v473_v39  ;;  %673 = vmatpush.msrb.mxu1 %v480_v47  ;;  %v514_v31 = vld [vmem:[%s1368_s28 + $0x6a0] sm:$0xff]  ;;  %v363_v32 = vld [vmem:[%s1368_s28 + $0x1e8] sm:$0xff] }
  0x55   : > { %695 = vmatpush.msrb.mxu2 %v337_v42  ;;  %654 = vmatpush.msrb.mxu0 %v344_v50  ;;  %v491_v33 = vld [vmem:[%s1368_s28 + $0x5e8] sm:$0xff]  ;;  %v378_v34 = vld [vmem:[%s1368_s28 + $0x260] sm:$0xff] }
  0x56   : > { %715 = vmatpush.msrb.mxu3 %v465_v43  ;;  %674 = vmatpush.msrb.mxu1 %v472_v51  ;;  %v506_v35 = vld [vmem:[%s1368_s28 + $0x660] sm:$0xff]  ;;  %v355_v36 = vld [vmem:[%s1368_s28 + $0x1a8] sm:$0xff] }
  0x57   : > { %696 = vmatpush.msrb.mxu2 %v329_v48  ;;  %655 = vmatpush.msrb.mxu0 %v336_v54  ;;  %v483_v37 = vld [vmem:[%s1368_s28 + $0x5a8] sm:$0xff]  ;;  %v370_v38 = vld [vmem:[%s1368_s28 + $0x220] sm:$0xff] }
  0x58   : > { %716 = vmatpush.msrb.mxu3 %v457_v49  ;;  %675 = vmatpush.msrb.mxu1 %v464_v55  ;;  %v498_v39 = vld [vmem:[%s1368_s28 + $0x620] sm:$0xff]  ;;  %v347_v40 = vld [vmem:[%s1368_s28 + $0x168] sm:$0xff] }
  0x59   : > { %697 = vmatpush.msrb.mxu2 %v321_v52  ;;  %580 = vmatmul.f32.vlgmr.msra.gmra.mxu0 %v1492_v44  ;;  %v475_v41 = vld [vmem:[%s1368_s28 + $0x568] sm:$0xff]  ;;  %v362_v42 = vld [vmem:[%s1368_s28 + $0x1e0] sm:$0xff] }
  0x5a   : > { %717 = vmatpush.msrb.mxu3 %v449_v53  ;;  %600 = vmatmul.f32.vlgmr.msra.gmra.mxu1 %v1494_v45  ;;  %v490_v43 = vld [vmem:[%s1368_s28 + $0x5e0] sm:$0xff]  ;;  %v339_v46 = vld [vmem:[%s1368_s28 + $0x128] sm:$0xff] }
  0x5b   : > { %698 = vmatpush.msrb.mxu2 %v313_v56  ;;  %656 = vmatpush.msrb.mxu0 %v328_v58  ;;  %v467_v47 = vld [vmem:[%s1368_s28 + $0x528] sm:$0xff]  ;;  %v354_v48 = vld [vmem:[%s1368_s28 + $0x1a0] sm:$0xff] }
  0x5c   : > { %718 = vmatpush.msrb.mxu3 %v441_v57  ;;  %676 = vmatpush.msrb.mxu1 %v456_v59  ;;  %v482_v49 = vld [vmem:[%s1368_s28 + $0x5a0] sm:$0xff]  ;;  %v331_v50 = vld [vmem:[%s1368_s28 + $0xe8] sm:$0xff] }
  0x5d   : > { %699 = vmatpush.msrb.mxu2 %v305_v60  ;;  %657 = vmatpush.msrb.mxu0 %v320_v0  ;;  %v459_v51 = vld [vmem:[%s1368_s28 + $0x4e8] sm:$0xff]  ;;  %v346_v52 = vld [vmem:[%s1368_s28 + $0x160] sm:$0xff]  ;;  %v429_v0 = vld [vmem:[%s1368_s28 + $0x3f8] sm:$0xff] }
  0x5e   : > { %719 = vmatpush.msrb.mxu3 %v433_v61  ;;  %700 = vmatmul.f32.vlgmr.msrb.gmra.mxu2 %v1492_v44  ;;  %v474_v53 = vld [vmem:[%s1368_s28 + $0x560] sm:$0xff]  ;;  %v323_v54 = vld [vmem:[%s1368_s28 + $0xa8] sm:$0xff] }
  0x5f   : > { %720 = vmatmul.f32.vlgmr.msrb.gmra.mxu3 %v1494_v45  ;;  %764 = vmatpush.msra.mxu2 %v427_v62  ;;  %v451_v55 = vld [vmem:[%s1368_s28 + $0x4a8] sm:$0xff]  ;;  %v338_v56 = vld [vmem:[%s1368_s28 + $0x120] sm:$0xff] }
  0x60   : > { %784 = vmatpush.msra.mxu3 %v555_v63  ;;  %677 = vmatpush.msrb.mxu1 %v448_v1  ;;  %v466_v57 = vld [vmem:[%s1368_s28 + $0x520] sm:$0xff]  ;;  %v315_v58 = vld [vmem:[%s1368_s28 + $0x68] sm:$0xff]  ;;  %v557_v1 = vld [vmem:[%s1368_s28 + $0x7f8] sm:$0xff] }
  0x61   : > { %765 = vmatpush.msra.mxu2 %v419_v2  ;;  %658 = vmatpush.msrb.mxu0 %v312_v4  ;;  %v443_v59 = vld [vmem:[%s1368_s28 + $0x468] sm:$0xff]  ;;  %v330_v60 = vld [vmem:[%s1368_s28 + $0xe0] sm:$0xff]  ;;  %v421_v4 = vld [vmem:[%s1368_s28 + $0x3b8] sm:$0xff] }
  0x62   : > { %785 = vmatpush.msra.mxu3 %v547_v3  ;;  %678 = vmatpush.msrb.mxu1 %v440_v5  ;;  %v458_v61 = vld [vmem:[%s1368_s28 + $0x4e0] sm:$0xff]  ;;  %v307_v62 = vld [vmem:[%s1368_s28 + $0x28] sm:$0xff]  ;;  %v549_v5 = vld [vmem:[%s1368_s28 + $0x7b8] sm:$0xff] }
  0x63   : > { %766 = vmatpush.msra.mxu2 %v411_v6  ;;  %659 = vmatpush.msrb.mxu0 %v304_v8  ;;  %v435_v63 = vld [vmem:[%s1368_s28 + $0x428] sm:$0xff]  ;;  %v322_v2 = vld [vmem:[%s1368_s28 + $0xa0] sm:$0xff]  ;;  %v413_v8 = vld [vmem:[%s1368_s28 + $0x378] sm:$0xff] }
  0x64   : > { %786 = vmatpush.msra.mxu3 %v539_v7  ;;  %679 = vmatpush.msrb.mxu1 %v432_v9  ;;  %v450_v3 = vld [vmem:[%s1368_s28 + $0x4a0] sm:$0xff]  ;;  %v541_v9 = vld [vmem:[%s1368_s28 + $0x778] sm:$0xff] }
  0x65   : > { %660 = vmatmul.f32.vlgmr.msrb.gmra.mxu0 %v1492_v44  ;;  %680 = vmatmul.f32.vlgmr.msrb.gmra.mxu1 %v1494_v45  ;;  %v314_v6 = vld [vmem:[%s1368_s28 + $0x60] sm:$0xff] }
  0x66   : > { %724 = vmatpush.msra.mxu0 %v426_v10  ;;  %744 = vmatpush.msra.mxu1 %v554_v11  ;;  %v442_v7 = vld [vmem:[%s1368_s28 + $0x460] sm:$0xff] }
  0x67   : > { %767 = vmatpush.msra.mxu2 %v403_v12  ;;  %787 = vmatpush.msra.mxu3 %v531_v13  ;;  %v306_v10 = vld [vmem:[%s1368_s28 + $0x20] sm:$0xff]  ;;  %v428_v12 = vld [vmem:[%s1368_s28 + $0x3f0] sm:$0xff] }
  0x68   : > { %725 = vmatpush.msra.mxu0 %v418_v14  ;;  %745 = vmatpush.msra.mxu1 %v546_v15  ;;  %v434_v11 = vld [vmem:[%s1368_s28 + $0x420] sm:$0xff]  ;;  %v556_v13 = vld [vmem:[%s1368_s28 + $0x7f0] sm:$0xff]  ;;  %v405_v14 = vld [vmem:[%s1368_s28 + $0x338] sm:$0xff] }
  0x69   : > { %768 = vmatpush.msra.mxu2 %v395_v16  ;;  %788 = vmatpush.msra.mxu3 %v523_v17  ;;  %v533_v15 = vld [vmem:[%s1368_s28 + $0x738] sm:$0xff]  ;;  %v420_v16 = vld [vmem:[%s1368_s28 + $0x3b0] sm:$0xff] }
  0x6a   : > { %726 = vmatpush.msra.mxu0 %v410_v18  ;;  %746 = vmatpush.msra.mxu1 %v538_v19  ;;  %v548_v17 = vld [vmem:[%s1368_s28 + $0x7b0] sm:$0xff]  ;;  %v397_v18 = vld [vmem:[%s1368_s28 + $0x2f8] sm:$0xff] }
  0x6b   : > { %769 = vmatpush.msra.mxu2 %v387_v20  ;;  %789 = vmatpush.msra.mxu3 %v515_v21  ;;  %v525_v19 = vld [vmem:[%s1368_s28 + $0x6f8] sm:$0xff]  ;;  %v412_v20 = vld [vmem:[%s1368_s28 + $0x370] sm:$0xff] }
  0x6c   : > { %727 = vmatpush.msra.mxu0 %v402_v22  ;;  %747 = vmatpush.msra.mxu1 %v530_v23  ;;  %v540_v21 = vld [vmem:[%s1368_s28 + $0x770] sm:$0xff]  ;;  %v389_v22 = vld [vmem:[%s1368_s28 + $0x2b8] sm:$0xff] }
  0x6d   : > { %770 = vmatpush.msra.mxu2 %v379_v24  ;;  %790 = vmatpush.msra.mxu3 %v507_v25  ;;  %v517_v23 = vld [vmem:[%s1368_s28 + $0x6b8] sm:$0xff]  ;;  %v404_v24 = vld [vmem:[%s1368_s28 + $0x330] sm:$0xff] }
  0x6e   : > { %728 = vmatpush.msra.mxu0 %v394_v26  ;;  %748 = vmatpush.msra.mxu1 %v522_v27  ;;  %v532_v25 = vld [vmem:[%s1368_s28 + $0x730] sm:$0xff]  ;;  %v381_v26 = vld [vmem:[%s1368_s28 + $0x278] sm:$0xff] }
  0x6f   : > { %771 = vmatpush.msra.mxu2 %v371_v28  ;;  %791 = vmatpush.msra.mxu3 %v499_v29  ;;  %v509_v27 = vld [vmem:[%s1368_s28 + $0x678] sm:$0xff]  ;;  %v396_v28 = vld [vmem:[%s1368_s28 + $0x2f0] sm:$0xff] }
  0x70   : > { %729 = vmatpush.msra.mxu0 %v386_v30  ;;  %749 = vmatpush.msra.mxu1 %v514_v31  ;;  %v524_v29 = vld [vmem:[%s1368_s28 + $0x6f0] sm:$0xff]  ;;  %v373_v30 = vld [vmem:[%s1368_s28 + $0x238] sm:$0xff] }
  0x71   : > { %772 = vmatpush.msra.mxu2 %v363_v32  ;;  %792 = vmatpush.msra.mxu3 %v491_v33  ;;  %v501_v31 = vld [vmem:[%s1368_s28 + $0x638] sm:$0xff]  ;;  %v388_v32 = vld [vmem:[%s1368_s28 + $0x2b0] sm:$0xff] }
  0x72   : > { %730 = vmatpush.msra.mxu0 %v378_v34  ;;  %750 = vmatpush.msra.mxu1 %v506_v35  ;;  %v516_v33 = vld [vmem:[%s1368_s28 + $0x6b0] sm:$0xff]  ;;  %v365_v34 = vld [vmem:[%s1368_s28 + $0x1f8] sm:$0xff] }
  0x73   : > { %773 = vmatpush.msra.mxu2 %v355_v36  ;;  %793 = vmatpush.msra.mxu3 %v483_v37  ;;  %v493_v35 = vld [vmem:[%s1368_s28 + $0x5f8] sm:$0xff]  ;;  %v380_v36 = vld [vmem:[%s1368_s28 + $0x270] sm:$0xff] }
  0x74   : > { %731 = vmatpush.msra.mxu0 %v370_v38  ;;  %751 = vmatpush.msra.mxu1 %v498_v39  ;;  %v508_v37 = vld [vmem:[%s1368_s28 + $0x670] sm:$0xff]  ;;  %v357_v38 = vld [vmem:[%s1368_s28 + $0x1b8] sm:$0xff] }
  0x75   : > { %774 = vmatpush.msra.mxu2 %v347_v40  ;;  %794 = vmatpush.msra.mxu3 %v475_v41  ;;  %v485_v39 = vld [vmem:[%s1368_s28 + $0x5b8] sm:$0xff]  ;;  %v372_v40 = vld [vmem:[%s1368_s28 + $0x230] sm:$0xff] }
  0x76   : > { %732 = vmatpush.msra.mxu0 %v362_v42  ;;  %752 = vmatpush.msra.mxu1 %v490_v43  ;;  %v500_v41 = vld [vmem:[%s1368_s28 + $0x630] sm:$0xff]  ;;  %v349_v42 = vld [vmem:[%s1368_s28 + $0x178] sm:$0xff] }
  0x77   : > { %775 = vmatpush.msra.mxu2 %v339_v46  ;;  %795 = vmatpush.msra.mxu3 %v467_v47  ;;  %v477_v43 = vld [vmem:[%s1368_s28 + $0x578] sm:$0xff]  ;;  %v364_v46 = vld [vmem:[%s1368_s28 + $0x1f0] sm:$0xff] }
  0x78   : > { %733 = vmatpush.msra.mxu0 %v354_v48  ;;  %753 = vmatpush.msra.mxu1 %v482_v49  ;;  %v492_v47 = vld [vmem:[%s1368_s28 + $0x5f0] sm:$0xff]  ;;  %v341_v48 = vld [vmem:[%s1368_s28 + $0x138] sm:$0xff] }
  0x79   : > { %776 = vmatpush.msra.mxu2 %v331_v50  ;;  %796 = vmatpush.msra.mxu3 %v459_v51  ;;  %v469_v49 = vld [vmem:[%s1368_s28 + $0x538] sm:$0xff]  ;;  %v356_v50 = vld [vmem:[%s1368_s28 + $0x1b0] sm:$0xff] }
  0x7a   : > { %734 = vmatpush.msra.mxu0 %v346_v52  ;;  %754 = vmatpush.msra.mxu1 %v474_v53  ;;  %v484_v51 = vld [vmem:[%s1368_s28 + $0x5b0] sm:$0xff]  ;;  %v333_v52 = vld [vmem:[%s1368_s28 + $0xf8] sm:$0xff] }
  0x7b   : > { %777 = vmatpush.msra.mxu2 %v323_v54  ;;  %797 = vmatpush.msra.mxu3 %v451_v55  ;;  %v461_v53 = vld [vmem:[%s1368_s28 + $0x4f8] sm:$0xff]  ;;  %v348_v54 = vld [vmem:[%s1368_s28 + $0x170] sm:$0xff] }
  0x7c   : > { %735 = vmatpush.msra.mxu0 %v338_v56  ;;  %755 = vmatpush.msra.mxu1 %v466_v57  ;;  %v476_v55 = vld [vmem:[%s1368_s28 + $0x570] sm:$0xff]  ;;  %v325_v56 = vld [vmem:[%s1368_s28 + $0xb8] sm:$0xff] }
  0x7d   : > { %778 = vmatpush.msra.mxu2 %v315_v58  ;;  %798 = vmatpush.msra.mxu3 %v443_v59  ;;  %v453_v57 = vld [vmem:[%s1368_s28 + $0x4b8] sm:$0xff]  ;;  %v340_v58 = vld [vmem:[%s1368_s28 + $0x130] sm:$0xff] }
  0x7e   : > { %736 = vmatpush.msra.mxu0 %v330_v60  ;;  %756 = vmatpush.msra.mxu1 %v458_v61  ;;  %v468_v59 = vld [vmem:[%s1368_s28 + $0x530] sm:$0xff]  ;;  %v317_v60 = vld [vmem:[%s1368_s28 + $0x78] sm:$0xff] }
  0x7f   : > { %779 = vmatpush.msra.mxu2 %v307_v62  ;;  %799 = vmatpush.msra.mxu3 %v435_v63  ;;  %v445_v61 = vld [vmem:[%s1368_s28 + $0x478] sm:$0xff]  ;;  %v332_v62 = vld [vmem:[%s1368_s28 + $0xf0] sm:$0xff] }
  0x80   : > { %737 = vmatpush.msra.mxu0 %v322_v2  ;;  %757 = vmatpush.msra.mxu1 %v450_v3  ;;  %v460_v63 = vld [vmem:[%s1368_s28 + $0x4f0] sm:$0xff] }
  0x81   : > { %844 = vmatpush.msrb.mxu2 %v429_v0  ;;  %864 = vmatpush.msrb.mxu3 %v557_v1  ;;  %v309_v0 = vld [vmem:[%s1368_s28 + $0x38] sm:$0xff]  ;;  %v324_v2 = vld [vmem:[%s1368_s28 + $0xb0] sm:$0xff] }
  0x82   : > { %738 = vmatpush.msra.mxu0 %v314_v6  ;;  %758 = vmatpush.msra.mxu1 %v442_v7  ;;  %v437_v1 = vld [vmem:[%s1368_s28 + $0x438] sm:$0xff]  ;;  %v452_v3 = vld [vmem:[%s1368_s28 + $0x4b0] sm:$0xff] }
  0x83   : > { %845 = vmatpush.msrb.mxu2 %v421_v4  ;;  %865 = vmatpush.msrb.mxu3 %v549_v5  ;;  %v316_v4 = vld [vmem:[%s1368_s28 + $0x70] sm:$0xff] }
  0x84   : > { %739 = vmatpush.msra.mxu0 %v306_v10  ;;  %759 = vmatpush.msra.mxu1 %v434_v11  ;;  %v444_v5 = vld [vmem:[%s1368_s28 + $0x470] sm:$0xff] }
  0x85   : > { %846 = vmatpush.msrb.mxu2 %v413_v8  ;;  %866 = vmatpush.msrb.mxu3 %v541_v9  ;;  %v308_v6 = vld [vmem:[%s1368_s28 + $0x30] sm:$0xff] }
  0x86   : > { %804 = vmatpush.msrb.mxu0 %v428_v12  ;;  %824 = vmatpush.msrb.mxu1 %v556_v13  ;;  %v436_v7 = vld [vmem:[%s1368_s28 + $0x430] sm:$0xff] }
  0x87   : > { %847 = vmatpush.msrb.mxu2 %v405_v14  ;;  %867 = vmatpush.msrb.mxu3 %v533_v15 }
  0x88   : > { %805 = vmatpush.msrb.mxu0 %v420_v16  ;;  %825 = vmatpush.msrb.mxu1 %v548_v17 }
  0x89   : > { %848 = vmatpush.msrb.mxu2 %v397_v18  ;;  %868 = vmatpush.msrb.mxu3 %v525_v19 }
  0x8a   : > { %806 = vmatpush.msrb.mxu0 %v412_v20  ;;  %826 = vmatpush.msrb.mxu1 %v540_v21 }
  0x8b   : > { %849 = vmatpush.msrb.mxu2 %v389_v22  ;;  %869 = vmatpush.msrb.mxu3 %v517_v23  ;;  %v299_v23 = vld [vmem:[%s1378_s20] sm:$0xff] }
  0x8c   : > { %807 = vmatpush.msrb.mxu0 %v404_v24  ;;  %827 = vmatpush.msrb.mxu1 %v532_v25 }
  0x8d   : > { %850 = vmatpush.msrb.mxu2 %v381_v26  ;;  %870 = vmatpush.msrb.mxu3 %v509_v27 }
  0x8e   : > { %808 = vmatpush.msrb.mxu0 %v396_v28  ;;  %828 = vmatpush.msrb.mxu1 %v524_v29 }
  0x8f   : > { %851 = vmatpush.msrb.mxu2 %v373_v30  ;;  %871 = vmatpush.msrb.mxu3 %v501_v31 }
  0x90   : > { %809 = vmatpush.msrb.mxu0 %v388_v32  ;;  %829 = vmatpush.msrb.mxu1 %v516_v33 }
  0x91   : > { %852 = vmatpush.msrb.mxu2 %v365_v34  ;;  %872 = vmatpush.msrb.mxu3 %v493_v35  ;;  %v998_v35 = vld [vmem:[%s1373_s4 + $0x78] sm:$0xff] }
  0x92   : > { %810 = vmatpush.msrb.mxu0 %v380_v36  ;;  %830 = vmatpush.msrb.mxu1 %v508_v37  ;;  %v1014_v36 = vld [vmem:[%s1373_s4 + $0xf8] sm:$0xff] }
  0x93   : > { %853 = vmatpush.msrb.mxu2 %v357_v38  ;;  %873 = vmatpush.msrb.mxu3 %v485_v39  ;;  %v997_v39 = vld [vmem:[%s1373_s4 + $0x70] sm:$0xff] }
  0x94   : > { %811 = vmatpush.msrb.mxu0 %v372_v40  ;;  %831 = vmatpush.msrb.mxu1 %v500_v41  ;;  %v1013_v40 = vld [vmem:[%s1373_s4 + $0xf0] sm:$0xff] }
  0x95   : > { %854 = vmatpush.msrb.mxu2 %v349_v42  ;;  %874 = vmatpush.msrb.mxu3 %v477_v43 }
  0x96   : > { %780 = vmatmul.f32.vlgmr.msra.gmra.mxu2 %v1492_v44  ;;  %800 = vmatmul.f32.vlgmr.msra.gmra.mxu3 %v1494_v45 }
  0x97   : > { %812 = vmatpush.msrb.mxu0 %v364_v46  ;;  %832 = vmatpush.msrb.mxu1 %v492_v47  ;;  %v996_v46 = vld [vmem:[%s1373_s4 + $0x68] sm:$0xff] }
  0x98   : > { %855 = vmatpush.msrb.mxu2 %v341_v48  ;;  %875 = vmatpush.msrb.mxu3 %v469_v49  ;;  %v1012_v47 = vld [vmem:[%s1373_s4 + $0xe8] sm:$0xff] }
  0x99   : > { %813 = vmatpush.msrb.mxu0 %v356_v50  ;;  %833 = vmatpush.msrb.mxu1 %v484_v51  ;;  %v995_v50 = vld [vmem:[%s1373_s4 + $0x60] sm:$0xff] }
  0x9a   : > { %856 = vmatpush.msrb.mxu2 %v333_v52  ;;  %876 = vmatpush.msrb.mxu3 %v461_v53  ;;  %v1011_v51 = vld [vmem:[%s1373_s4 + $0xe0] sm:$0xff]  ;;  %v994_v53 = vld [vmem:[%s1373_s4 + $0x58] sm:$0xff] }
  0x9b   : > { %814 = vmatpush.msrb.mxu0 %v348_v54  ;;  %834 = vmatpush.msrb.mxu1 %v476_v55  ;;  %v1010_v54 = vld [vmem:[%s1373_s4 + $0xd8] sm:$0xff] }
  0x9c   : > { %857 = vmatpush.msrb.mxu2 %v325_v56  ;;  %877 = vmatpush.msrb.mxu3 %v453_v57  ;;  %v993_v57 = vld [vmem:[%s1373_s4 + $0x50] sm:$0xff] }
  0x9d   : > { %815 = vmatpush.msrb.mxu0 %v340_v58  ;;  %835 = vmatpush.msrb.mxu1 %v468_v59  ;;  %v1009_v58 = vld [vmem:[%s1373_s4 + $0xd0] sm:$0xff] }
  0x9e   : > { %858 = vmatpush.msrb.mxu2 %v317_v60  ;;  %878 = vmatpush.msrb.mxu3 %v445_v61 }
  0x9f   : > { %740 = vmatmul.f32.vlgmr.msra.gmra.mxu0 %v1492_v44  ;;  %760 = vmatmul.f32.vlgmr.msra.gmra.mxu1 %v1494_v45 }
  0xa0   : > { %816 = vmatpush.msrb.mxu0 %v332_v62  ;;  %836 = vmatpush.msrb.mxu1 %v460_v63 }
  0xa1   : > { %859 = vmatpush.msrb.mxu2 %v309_v0  ;;  %879 = vmatpush.msrb.mxu3 %v437_v1  ;;  %v992_v1 = vld [vmem:[%s1373_s4 + $0x48] sm:$0xff] }
  0xa2   : > { %860 = vmatmul.f32.vlgmr.msrb.gmra.mxu2 %v1492_v44  ;;  %880 = vmatmul.f32.vlgmr.msrb.gmra.mxu3 %v1494_v45 }
  0xa3   : > { %817 = vmatpush.msrb.mxu0 %v324_v2  ;;  %837 = vmatpush.msrb.mxu1 %v452_v3  ;;  %v1008_v2 = vld [vmem:[%s1373_s4 + $0xc8] sm:$0xff] }
  0xa5   : > { %818 = vmatpush.msrb.mxu0 %v316_v4  ;;  %838 = vmatpush.msrb.mxu1 %v444_v5 }
  0xa7   : > { %819 = vmatpush.msrb.mxu0 %v308_v6  ;;  %839 = vmatpush.msrb.mxu1 %v436_v7 }
  0xa8   : > { %820 = vmatmul.f32.vlgmr.msrb.gmra.mxu0 %v1492_v44  ;;  %840 = vmatmul.f32.vlgmr.msrb.gmra.mxu1 %v1494_v45 }
  0xa9   : > { %1021 = vmatpush.msra.mxu0 %v998_v35  ;;  %1041 = vmatpush.msra.mxu1 %v1014_v36  ;;  %v986_v36 = vld [vmem:[%s1373_s4 + $0x18] sm:$0xff] }
  0xab   : > { %1022 = vmatpush.msra.mxu0 %v997_v39  ;;  %1042 = vmatpush.msra.mxu1 %v1013_v40 }
  0xad   : > { %1023 = vmatpush.msra.mxu0 %v996_v46  ;;  %1043 = vmatpush.msra.mxu1 %v1012_v47  ;;  %v984_v46 = vld [vmem:[%s1373_s4 + $0x8] sm:$0xff] }
  0xae   : > { %v1000_v47 = vld [vmem:[%s1373_s4 + $0x88] sm:$0xff] }
  0xaf   : > { %1024 = vmatpush.msra.mxu0 %v995_v50  ;;  %1044 = vmatpush.msra.mxu1 %v1011_v51 }
  0xb1   : > { %1025 = vmatpush.msra.mxu0 %v994_v53  ;;  %1045 = vmatpush.msra.mxu1 %v1010_v54  ;;  %v999_v53 = vld [vmem:[%s1373_s4 + $0x80] sm:$0xff] }
  0xb3   : > { %1026 = vmatpush.msra.mxu0 %v993_v57  ;;  %1046 = vmatpush.msra.mxu1 %v1009_v58 }
  0xb5   : > { %1027 = vmatpush.msra.mxu0 %v992_v1  ;;  %1047 = vmatpush.msra.mxu1 %v1008_v2 }
  0xd4   : > { %v641_v9 = vpop.f32.mrf.mxu3 }
  0xd5   : > { %v621_v8 = vpop.f32.mrf.mxu2 }
  0xd6   : > { %v581_v10 = vpop.f32.mrf.mxu0  ;;  %v642_v18 = vadd.f32 %v641_v9, %v621_v8  ;;  %v991_v8 = vld [vmem:[%s1373_s4 + $0x40] sm:$0xff] }
  0xd7   : > { %v601_v11 = vpop.f32.mrf.mxu1  ;;  %v1007_v9 = vld [vmem:[%s1373_s4 + $0xc0] sm:$0xff]  ;;  %1028 = vmatpush.msra.mxu0 %v991_v8 }
  0xd8   : > { %v602_v21 = vadd.f32 %v601_v11, %v581_v10  ;;  %v892_v22 = vrot.slane %v642_v18, 6  ;;  %1048 = vmatpush.msra.mxu1 %v1007_v9  ;;  %v300_v11 = vld [vmem:[%s1378_s20 + $0x8] sm:$0xff] }
  0xda   : > { %v899_v45 = vsel %vm898_vm1, %v602_v21, %v892_v22 }
  0xe1   : > { %v701_v12 = vpop.f32.mrf.mxu2 }
  0xe2   : > { %v721_v13 = vpop.f32.mrf.mxu3  ;;  %v661_v14 = vpop.f32.mrf.mxu0 }
  0xe3   : > { %v681_v15 = vpop.f32.mrf.mxu1  ;;  %v722_v17 = vadd.f32 %v721_v13, %v701_v12  ;;  %v990_v13 = vld [vmem:[%s1373_s4 + $0x38] sm:$0xff] }
  0xe4   : > { %v682_v16 = vadd.f32 %v681_v15, %v661_v14  ;;  %v1006_v14 = vld [vmem:[%s1373_s4 + $0xb8] sm:$0xff]  ;;  %1029 = vmatpush.msra.mxu0 %v990_v13 }
  0xe5   : > { %v894_v20 = vrot.slane %v722_v17, 2  ;;  %1049 = vmatpush.msra.mxu1 %v1006_v14 }
  0xe6   : > { %v893_v19 = vrot.slane %v682_v16, 4 }
  0xe8   : > { %v901_v44 = vsel %vm900_vm0, %v893_v19, %v894_v20  ;;  %v989_v19 = vld [vmem:[%s1373_s4 + $0x30] sm:$0xff] }
  0xe9   : > { %v903_v24 = vsel %vm902_vm2, %v899_v45, %v901_v44  ;;  %v1005_v20 = vld [vmem:[%s1373_s4 + $0xb0] sm:$0xff]  ;;  %1030 = vmatpush.msra.mxu0 %v989_v19 }
  0xea   : > { %v909_v25 = vadd.f32 %v903_v24, %v299_v23  ;;  %1050 = vmatpush.msra.mxu1 %v1005_v20  ;;  %v988_v23 = vld [vmem:[%s1373_s4 + $0x28] sm:$0xff] }
  0xeb   : > { %v1004_v24 = vld [vmem:[%s1373_s4 + $0xa8] sm:$0xff]  ;;  %1031 = vmatpush.msra.mxu0 %v988_v23 }
  0xec   : > { %v931_v26 = vrot.slane %v909_v25, 4  ;;  %v911_v28 = vsub.f32 0.0, %v909_v25  ;;  %1051 = vmatpush.msra.mxu1 %v1004_v24 }
  0xee   : > { %v933_v27 = vsub.f32 0.0, %v931_v26  ;;  %v912_v30 = vmul.f32 1.442695, %v911_v28 }
  0xf0   : > { %v934_v29 = vmul.f32 1.442695, %v933_v27 }
  0xf2   : > { %1254 = vpow2.f32 %v934_v29 }
  0xf3   : > { %1256 = vpow2.f32 %v912_v30  ;;  %v987_v30 = vld [vmem:[%s1373_s4 + $0x20] sm:$0xff] }
  0xf4   : > { %1032 = vmatpush.msra.mxu0 %v987_v30 }
  0xf6   : > { %1033 = vmatpush.msra.mxu0 %v986_v36 }
  0xf8   : > { %v1255_v31 = vpop.eup %1254 }
  0xf9   : > { %v1257_v32 = vpop.eup %1256  ;;  %v1666_v33 = vadd.f32 1.0, %v1255_v31  ;;  %v1003_v31 = vld [vmem:[%s1373_s4 + $0xa0] sm:$0xff] }
  0xfa   : > { %v1668_v34 = vadd.f32 1.0, %v1257_v32  ;;  %1052 = vmatpush.msra.mxu1 %v1003_v31 }
  0xfb   : > { %1258 = vrcp.f32 %v1666_v33  ;;  %v948_v21 = vand.u32 2147483648, %v1666_v33  ;;  %vm942_vm4 = vweird.f32 %v1666_v33  ;;  %v946_v45 = vand.u32 2147483647, %v1666_v33 }
  0xfc   : > { %1260 = vrcp.f32 %v1668_v34  ;;  %v926_v25 = vand.u32 2147483648, %v1668_v34  ;;  %vm920_vm7 = vweird.f32 %v1668_v34  ;;  %v924_v28 = vand.u32 2147483647, %v1668_v34 }
  0xfd   : > { %v949_v32 = vor.u32 1.1754944e-38, %v948_v21  ;;  %vm947_vm9 = vcmp.eq.f32.partialorder %v946_v45, 8.507059e+37 }
  0xfe   : > { %v927_v39 = vor.u32 1.1754944e-38, %v926_v25  ;;  %vm925_vm10 = vcmp.eq.f32.partialorder %v924_v28, 8.507059e+37 }
 0x101   : > { %v1676_v41 = vpop.eup %1258 }
 0x102   : > { %v1680_v48 = vpop.eup %1260  ;;  %v938_v49 = vmul.f32 %v1676_v41, %v1666_v33  ;;  %vm943_vm3 = vweird.f32 %v1676_v41 }
 0x103   : > { %v916_v52 = vmul.f32 %v1680_v48, %v1668_v34  ;;  %vm921_vm5 = vweird.f32 %v1680_v48  ;;  %vm1716_vm6 = vmor %vm942_vm4, %vm943_vm3 }
 0x104   : > { %v939_v56 = vsub.f32 1.0, %v938_v49  ;;  %vm1729_vm8 = vmor %vm920_vm7, %vm921_vm5 }
 0x105   : > { %v917_v61 = vsub.f32 1.0, %v916_v52  ;;  %v983_v52 = vld [vmem:[%s1373_s4] sm:$0xff] }
 0x106   : > { %v940_v6 = vmul.f32 %v1676_v41, %v939_v56 }
 0x107   : > { %v918_v12 = vmul.f32 %v1680_v48, %v917_v61 }
 0x108   : > { %v941_v18 = vadd.f32 %v1676_v41, %v940_v6 }
 0x109   : > { %v919_v44 = vadd.f32 %v1680_v48, %v918_v12 }
 0x10a   : > { %v945_v29 = vsel %vm1716_vm6, %v1676_v41, %v941_v18 }
 0x10b   : > { %v923_v34 = vsel %vm1729_vm8, %v1680_v48, %v919_v44  ;;  %v950_v40 = vsel %vm947_vm9, %v949_v32, %v945_v29 }
 0x10c   : > { %v928_v50 = vsel %vm925_vm10, %v927_v39, %v923_v34 }
 0x119   : > { %v781_v42 = vpop.f32.mrf.mxu2  ;;  %v801_v43 = vpop.f32.mrf.mxu3 }
 0x11a   : > { %v802_v55 = vadd.f32 %v801_v43, %v781_v42  ;;  %v975_v42 = vld [vmem:[#allocation3] sm:$0xf]  ;;  %v1001_v43 = vld [vmem:[%s1373_s4 + $0x90] sm:$0xff] }
 0x11b   : > { %v976_v48 = vmul.f32 %v975_v42, %v950_v40 }
 0x11c   : > { %v741_v37 = vpop.f32.mrf.mxu0  ;;  %v761_v38 = vpop.f32.mrf.mxu1  ;;  %v895_v3 = vrot.slane %v802_v55, 6 }
 0x11d   : > { %v762_v4 = vadd.f32 %v761_v38, %v741_v37  ;;  %v1002_v37 = vld [vmem:[%s1373_s4 + $0x98] sm:$0xff]  ;;  %v985_v38 = vld [vmem:[%s1373_s4 + $0x10] sm:$0xff] }
 0x11e   : > { %1053 = vmatpush.msra.mxu1 %v1002_v37  ;;  %1034 = vmatpush.msra.mxu0 %v985_v38 }
 0x11f   : > { %v904_v15 = vsel %vm898_vm1, %v762_v4, %v895_v3 }
 0x120   : > { %1054 = vmatpush.msra.mxu1 %v1001_v43  ;;  %1035 = vmatpush.msra.mxu0 %v984_v46 }
 0x122   : > { %1055 = vmatpush.msra.mxu1 %v1000_v47  ;;  %1036 = vmatpush.msra.mxu0 %v983_v52 }
 0x124   : > { %1056 = vmatpush.msra.mxu1 %v999_v53 }
 0x125   : > { %v821_v59 = vpop.f32.mrf.mxu0  ;;  %v841_v60 = vpop.f32.mrf.mxu1 }
 0x126   : > { %v842_v62 = vadd.f32 %v841_v60, %v821_v59  ;;  %v861_v63 = vpop.f32.mrf.mxu2  ;;  %v881_v0 = vpop.f32.mrf.mxu3 }
 0x127   : > { %v882_v5 = vadd.f32 %v881_v0, %v861_v63 }
 0x128   : > { %v896_v7 = vrot.slane %v842_v62, 4 }
 0x129   : > { %v897_v10 = vrot.slane %v882_v5, 2 }
 0x12b   : > { %v905_v16 = vsel %vm900_vm0, %v896_v7, %v897_v10 }
 0x12c   : > { %v906_v17 = vsel %vm902_vm2, %v904_v15, %v905_v16 }
 0x12d   : > { %v910_v22 = vadd.f32 %v906_v17, %v300_v11 }
 0x12f   : > { %1262 = vtanh.f32 %v910_v22  ;;  %v954_v27 = vrot.slane %v910_v22, 4 }
 0x131   : > { %v956_v35 = vsub.f32 0.0, %v954_v27 }
 0x133   : > { %v957_v41 = vmul.f32 1.442695, %v956_v35 }
 0x135   : > { %v1263_v49 = vpop.eup %1262  ;;  %1264 = vpow2.f32 %v957_v41 }
 0x136   : > { %v977_v51 = vmul.f32 %v1263_v49, %v928_v50 }
 0x138   : > { %v978_v54 = vadd.f32 %v977_v51, %v976_v48 }
 0x13a   : > { %981 = vst [vmem:[#allocation3] sm:$0xf] %v978_v54 }
 0x13b   : > { %v1265_v55 = vpop.eup %1264 }
 0x13c   : > { %v959_v56 = vadd.f32 1.0, %v1265_v55 }
 0x13e   : > { %1266 = vrcp.f32 %v959_v56  ;;  %v971_v60 = vand.u32 2147483648, %v959_v56  ;;  %v969_v62 = vand.u32 2147483647, %v959_v56  ;;  %vm965_vm12 = vweird.f32 %v959_v56 }
 0x13f   : > { %1268 = vtanh.f32 %v978_v54 }
 0x140   : > { %v972_v0 = vor.u32 1.1754944e-38, %v971_v60  ;;  %vm970_vm14 = vcmp.eq.f32.partialorder %v969_v62, 8.507059e+37 }
 0x144   : > { %v1267_v57 = vpop.eup %1266 }
 0x145   : > { %v961_v58 = vmul.f32 %v1267_v57, %v959_v56  ;;  %vm966_vm11 = vweird.f32 %v1267_v57  ;;  %v1269_v2 = vpop.eup %1268 }
 0x146   : > { %vm967_vm13 = vmor %vm965_vm12, %vm966_vm11 }
 0x147   : > { %v962_v59 = vsub.f32 1.0, %v961_v58 }
 0x149   : > { %v963_v61 = vmul.f32 %v1267_v57, %v962_v59 }
 0x14b   : > { %v964_v63 = vadd.f32 %v1267_v57, %v963_v61 }
 0x14d   : > { %v968_v1 = vsel %vm967_vm13, %v1267_v57, %v964_v63 }
 0x14e   : > { %v973_v3 = vsel %vm970_vm14, %v972_v0, %v968_v1 }
 0x14f   : > { %v980_v4 = vmul.f32 %v1269_v2, %v973_v3 }
 0x151   : > { %982 = vst [vmem:[#allocation2] sm:$0xf] %v980_v4 }
 0x152   : > { %1016 = vst [vmem:[#allocation1] ss:$4 sm:$0xff] %v980_v4 }
 0x159   : > { %v1017_v5 = vld.sshfl [vmem:[#allocation1] sm:$0xff pattern:$0x73625140]  ;;  %v1018_v6 = vld.sshfl [vmem:[#allocation1 + $0x8] sm:$0xff pattern:$0x73625140] }
 0x15a   : > { %1037 = vmatmul.f32.vlgmr.msra.gmra.mxu0 %v1017_v5  ;;  %1057 = vmatmul.f32.vlgmr.msra.gmra.mxu1 %v1018_v6 }
 0x1d7   : > { %v1038_v7 = vpop.f32.mrf.mxu0  ;;  %v1058_v8 = vpop.f32.mrf.mxu1 }
 0x1d8   : > { %v1059_v9 = vadd.f32 %v1058_v8, %v1038_v7 }
 0x1da   : > { %1061 = vst [vmem:[%s1383_s24] sm:$0x3] %v1059_v9 }
 0x1db PF: > { %s13_s16 = sadd.s32 1, %s1308_s16   ;;  %s1768_s12 = smov %s1300_s14 }
 0x1dc   : > { %p10_p8 = scmp.ge.s32.totalorder %s13_s16, 18   ;;  %s1769_s13 = smov %s1304_s15 }
 0x1dd   : > { %s1770_s14 = smov %s1773_s17  ;;  %s1771_s15 = smov %s1777_s18 }
 0x1de   :  { %12 = sbr.rel (!%p10_p8) target bundleno = 3 (0x3), region = 72 }

</bundles_post_ra>
